<compile_context>
chip_gen: v6e
topology: v6e:2x2x1
jax: 0.10.0
libtpu: 0.0.40
codegen_flags: <defaults>
</compile_context>

<pallas_src>
import functools
import math

import jax
import jax.numpy as jnp
from jax.experimental import pallas as pl
from jax.experimental.pallas import tpu as pltpu


# ---------------------------------------------------------------------------
# Pallas kernels: fused channel-major GEMM + bias (+ residual) (+ ReLU) -> bf16
# ---------------------------------------------------------------------------
def _gemm_kernel(w_ref, p_ref, b_ref, o_ref, *, relu):
    acc = jnp.dot(w_ref[...], p_ref[...], preferred_element_type=jnp.float32)
    acc = acc + b_ref[...]
    if relu:
        acc = jnp.maximum(acc, 0.0)
    o_ref[...] = acc.astype(o_ref.dtype)


def _gemm_res_kernel(w_ref, p_ref, b_ref, r_ref, o_ref, *, relu):
    acc = jnp.dot(w_ref[...], p_ref[...], preferred_element_type=jnp.float32)
    acc = acc + b_ref[...] + r_ref[...].astype(jnp.float32)
    if relu:
        acc = jnp.maximum(acc, 0.0)
    o_ref[...] = acc.astype(o_ref.dtype)


def _trans_kernel(x_ref, w1_ref, b1_ref, w2_ref, b2_ref, o_ref):
    # Fused bottleneck: relu(W2 @ relu(W1 @ x + b1) + b2); everything in VMEM.
    h = jnp.dot(w1_ref[...], x_ref[...], preferred_element_type=jnp.float32)
    h = jnp.maximum(h + b1_ref[...], 0.0).astype(jnp.bfloat16)
    y = jnp.dot(w2_ref[...], h, preferred_element_type=jnp.float32)
    y = jnp.maximum(y + b2_ref[...], 0.0)
    o_ref[...] = y.astype(o_ref.dtype)


def _round_up(x, m):
    return ((x + m - 1) // m) * m


def _col_tiling(m):
    """Tile the lane (M) axis.  Single full block for M <= 4096 (no padding,
    (8,128) rule satisfied by full-dim blocks); for larger M use an EVEN number
    of >=128-aligned steps so v7x's two TensorCores get balanced work."""
    cap = 4096
    if m <= cap:
        return m, m
    steps = -(-m // cap)
    if steps % 2:
        steps += 1
    tm = _round_up(-(-m // steps), 128)
    mp = _round_up(m, tm)
    return tm, mp


def _fused_gemm(wg, patches, bias, *, residual=None, relu=True):
    """wg (Nc, K) bf16, patches (K, M) bf16, bias (Nc, 1) f32 -> (Nc, M) bf16."""
    nc, kk = wg.shape
    m = patches.shape[1]
    tm, mp = _col_tiling(m)
    if mp != m:                       # never triggers at the default shapes
        patches = jnp.pad(patches, ((0, 0), (0, mp - m)))

    in_arrays = [wg, patches, bias]
    in_specs = [
        pl.BlockSpec((nc, kk), lambda i: (0, 0)),
        pl.BlockSpec((kk, tm), lambda i: (0, i)),
        pl.BlockSpec((nc, 1), lambda i: (0, 0)),
    ]
    if residual is not None:
        if mp != m:
            residual = jnp.pad(residual, ((0, 0), (0, mp - m)))
        in_arrays.append(residual)
        in_specs.append(pl.BlockSpec((nc, tm), lambda i: (0, i)))
        kernel = functools.partial(_gemm_res_kernel, relu=relu)
    else:
        kernel = functools.partial(_gemm_kernel, relu=relu)

    out = pl.pallas_call(
        kernel,
        out_shape=jax.ShapeDtypeStruct((nc, mp), jnp.bfloat16),
        grid=(mp // tm,),
        in_specs=in_specs,
        out_specs=pl.BlockSpec((nc, tm), lambda i: (0, i)),
        compiler_params=pltpu.CompilerParams(
            dimension_semantics=("parallel",),
            vmem_limit_bytes=32 * 1024 * 1024),   # safe on v5e/v6e/v7x
    )(*in_arrays)
    if mp != m:
        out = out[:, :m]
    return out


def _fused_trans(h, p1, p2):
    """trans1 (conv1_s1 + relu) and trans2 (deconv1_s1 + relu) as one kernel."""
    c, n, hh, ww = h.shape
    m = n * hh * ww
    x = h.astype(jnp.bfloat16).reshape(c, m)
    cout = p2["wg"].shape[0]
    out = pl.pallas_call(
        _trans_kernel,
        out_shape=jax.ShapeDtypeStruct((cout, m), jnp.bfloat16),
        grid=(1,),
        in_specs=[
            pl.BlockSpec((c, m), lambda i: (0, 0)),
            pl.BlockSpec(p1["wg"].shape, lambda i: (0, 0)),
            pl.BlockSpec(p1["bias"].shape, lambda i: (0, 0)),
            pl.BlockSpec(p2["wg"].shape, lambda i: (0, 0)),
            pl.BlockSpec(p2["bias"].shape, lambda i: (0, 0)),
        ],
        out_specs=pl.BlockSpec((cout, m), lambda i: (0, 0)),
        compiler_params=pltpu.CompilerParams(
            vmem_limit_bytes=32 * 1024 * 1024),
    )(x, p1["wg"], p1["bias"], p2["wg"], p2["bias"])
    return out.reshape(cout, n, hh, ww)


# ---------------------------------------------------------------------------
# Channel-major im2col: (C, N, H, W) -> (C*k*k, N*Ho*Wo), tap order (c, kh, kw)
# ---------------------------------------------------------------------------
def _im2col_cm(x, k, stride, pad):
    if pad:
        x = jnp.pad(x, ((0, 0), (0, 0), (pad, pad), (pad, pad)))
    c, n, h, w = x.shape
    ho = (h - k) // stride + 1
    wo = (w - k) // stride + 1
    taps = []
    for kh in range(k):
        for kw in range(k):
            taps.append(x[:, :, kh:kh + stride * (ho - 1) + 1:stride,
                          kw:kw + stride * (wo - 1) + 1:stride])
    p = jnp.stack(taps, axis=1)                     # (C, k*k, N, Ho, Wo)
    return p.reshape(c * k * k, n * ho * wo), ho, wo


def apply_layer(h, spec, arrs, *, relu, residual=None):
    """h: (C, N, H, W) activation (channel-major). Returns (Cout, N, Ho, Wo)."""
    k, stride, pad, cout = spec["k"], spec["stride"], spec["pad"], spec["cout"]
    c, n, hh, ww = h.shape
    hb = h.astype(jnp.bfloat16)                     # no-op after the first layer
    if k == 1 and stride == 1 and pad == 0:
        ho, wo = hh, ww
        patches = hb.reshape(c, n * hh * ww)
    else:
        patches, ho, wo = _im2col_cm(hb, k, stride, pad)
    res2d = None
    if residual is not None:
        res2d = residual.reshape(cout, -1)          # already channel-major view
    out = _fused_gemm(arrs["wg"], patches, arrs["bias"],
                      residual=res2d, relu=relu)
    if spec["kind"] == "deconv_s2":
        # de-interleave 4 sub-pixel phases: (4*Cout, M) -> (Cout, N, 2Ho, 2Wo)
        out = out.reshape(2, 2, cout, n, ho, wo)
        out = out.transpose(2, 3, 4, 0, 5, 1).reshape(cout, n, 2 * ho, 2 * wo)
    else:
        out = out.reshape(cout, n, ho, wo)
    return out


# ---------------------------------------------------------------------------
# Parameter construction (synthetic, xavier-like; conv bias = 0, BatchNorm in
# eval mode with running_mean=0 / running_var=1, random gamma/beta).  BN is
# folded, weights reshaped to channel-major GEMM layout and cast to bf16 ONCE.
# Static layer metadata (python ints/strings) is returned SEPARATELY from the
# array params so jax.jit never sees non-array leaves.
# ---------------------------------------------------------------------------
def _bn_params(key, cout, bn):
    if not bn:
        return jnp.ones((cout,), jnp.float32), jnp.zeros((cout,), jnp.float32)
    kg, kb = jax.random.split(key)
    gamma = jax.random.uniform(kg, (cout,), jnp.float32, 0.5, 1.5)
    beta = jax.random.uniform(kb, (cout,), jnp.float32, -0.1, 0.1)
    scale = gamma / jnp.float32(math.sqrt(1.0 + 1e-5))
    return scale, beta


def _xavier(key, shape, cin, cout, k):
    bound = math.sqrt(6.0 / ((cin + cout) * k * k))
    return jax.random.uniform(key, shape, jnp.float32, -bound, bound)


def _make_conv(key, cin, cout, k, stride, pad, bn):
    kw_, kbn = jax.random.split(key)
    w = _xavier(kw_, (cout, cin, k, k), cin, cout, k)
    scale, shift = _bn_params(kbn, cout, bn)
    wg = (w * scale[:, None, None, None]).reshape(cout, cin * k * k)
    spec = dict(kind="conv", k=k, stride=stride, pad=pad, cout=cout)
    arrs = dict(wg=wg.astype(jnp.bfloat16),
                bias=shift.reshape(cout, 1).astype(jnp.float32))
    return spec, arrs


def _make_deconv(key, cin, cout, k, stride, pad, bn):
    kw_, kbn = jax.random.split(key)
    wt = _xavier(kw_, (cin, cout, k, k), cin, cout, k)  # ConvTranspose2d layout
    scale, shift = _bn_params(kbn, cout, bn)
    if stride == 1:
        # equivalent stride-1 conv with flipped / transposed kernel
        w = jnp.transpose(jnp.flip(wt, axis=(2, 3)), (1, 0, 2, 3))
        wg = (w * scale[:, None, None, None]).reshape(cout, cin * k * k)
        spec = dict(kind="conv", k=k, stride=1, pad=k - 1 - pad, cout=cout)
        return spec, dict(wg=wg.astype(jnp.bfloat16),
                          bias=shift.reshape(cout, 1).astype(jnp.float32))
    # stride-2, k=4, pad=1 transposed conv -> sub-pixel decomposition.
    # Output phase (di,dj) at (2m+di, 2n+dj) only touches the 3x3 input window
    # around (m,n); sub-kernel taps kh = di+3-2a, kw = dj+3-2b.
    assert stride == 2 and k == 4 and pad == 1
    wg = jnp.zeros((4 * cout, cin, 9), jnp.float32)
    for di in range(2):
        for dj in range(2):
            ph = di * 2 + dj
            for a in range(3):
                kh = di + 3 - 2 * a
                if kh < 0 or kh > 3:
                    continue
                for b in range(3):
                    kw = dj + 3 - 2 * b
                    if kw < 0 or kw > 3:
                        continue
                    wg = wg.at[ph * cout:(ph + 1) * cout, :, a * 3 + b].set(
                        wt[:, :, kh, kw].T)
    wg = wg.reshape(4 * cout, cin * 9) * jnp.tile(scale, 4)[:, None]
    bias4 = jnp.tile(shift, 4).reshape(4 * cout, 1)
    # GEMM runs over a k=3, s=1, p=1 im2col of the (input-resolution) tensor.
    spec = dict(kind="deconv_s2", k=3, stride=1, pad=1, cout=cout)
    return spec, dict(wg=wg.astype(jnp.bfloat16),
                      bias=bias4.astype(jnp.float32))


ENC_CH = [(1, 2), (2, 4), (4, 8), (8, 16), (16, 32), (32, 64)]
DEC_CH = [(64, 32), (32, 32), (32, 16), (16, 16), (16, 8), (8, 8),
          (8, 4), (4, 4), (4, 2), (2, 2), (2, 1), (1, 1)]


def build_model(key):
    keys = jax.random.split(key, 2 * len(ENC_CH) + 2 + len(DEC_CH))
    specs, params = {}, {}
    idx = 0
    for s, (cin, cout) in enumerate(ENC_CH):
        sp, ar = _make_conv(keys[idx], cin, cout, 4, 2, 1, bn=(s > 0)); idx += 1
        specs[f"enc{s}_a"], params[f"enc{s}_a"] = sp, ar
        sp, ar = _make_conv(keys[idx], cout, cout, 3, 1, 1, bn=True); idx += 1
        specs[f"enc{s}_b"], params[f"enc{s}_b"] = sp, ar
    sp, ar = _make_conv(keys[idx], 64, 64, 1, 1, 0, bn=False); idx += 1
    specs["trans1"], params["trans1"] = sp, ar
    sp, ar = _make_deconv(keys[idx], 64, 64, 1, 1, 0, bn=False); idx += 1
    specs["trans2"], params["trans2"] = sp, ar
    for d, (cin, cout) in enumerate(DEC_CH):
        if d % 2 == 0:
            sp, ar = _make_deconv(keys[idx], cin, cout, 4, 2, 1, bn=True)
        else:
            sp, ar = _make_deconv(keys[idx], cin, cout, 3, 1, 1, bn=True)
        idx += 1
        specs[f"dec{d}"], params[f"dec{d}"] = sp, ar
    return specs, params


# ---------------------------------------------------------------------------
# Forward pass (default config path of SPECT_Model_channelized2)
# ---------------------------------------------------------------------------
def _forward(specs, params, x_nchw):
    h = x_nchw.transpose(1, 0, 2, 3)                  # NCHW -> channel-major (C,N,H,W)
    # Encoder: conv(k4,s2) -> conv(k3,s1) -> relu(conv_a + conv_b)
    for s in range(len(ENC_CH)):
        a = apply_layer(h, specs[f"enc{s}_a"], params[f"enc{s}_a"],
                        relu=(s > 0))
        h = apply_layer(a, specs[f"enc{s}_b"], params[f"enc{s}_b"],
                        relu=True, residual=a)
    # Bottleneck: conv1_s1(relu) -> deconv1_s1(relu), fused into one kernel
    h = _fused_trans(h, params["trans1"], params["trans2"])
    # Decoder: alternating deconv4_s2 / deconv3_s1, BN + relu
    for d in range(len(DEC_CH)):
        h = apply_layer(h, specs[f"dec{d}"], params[f"dec{d}"], relu=True)
    return h.transpose(1, 0, 2, 3).astype(jnp.float32)   # -> NCHW f32


if __name__ == "__main__":
    key = jax.random.PRNGKey(0)
    kp, kx = jax.random.split(key)
    specs, params = build_model(kp)
    # 6 stride-2 stages require spatial divisible by 64; 64x64 is the smallest.
    x = jax.random.normal(kx, (2, 1, 64, 64), jnp.float32)
    fwd = jax.jit(functools.partial(_forward, specs))   # specs stays static
    out = fwd(params, x)
    out = jax.block_until_ready(out)
    assert out.shape == (2, 1, 64, 64), out.shape
    assert bool(jnp.all(jnp.isfinite(out)))
    print("KERNEL_OK")
</pallas_src>

<mosaic_0001>
module attributes {stable_mosaic.version = 11 : i64} {
  func.func @_gemm_kernel(%arg0: i32, %arg1: memref<2x16xbf16, #tpu.memory_space<vmem>>, %arg2: memref<16x2048xbf16, #tpu.memory_space<vmem>>, %arg3: memref<2x1xf32, #tpu.memory_space<vmem>>, %arg4: memref<2x2048xbf16, #tpu.memory_space<vmem>>) attributes {dimension_semantics = [#tpu.dimension_semantics<parallel>], iteration_bounds = array<i64: 1>, scalar_prefetch = 0 : i64, scratch_operands = 0 : i64, tpu.core_type = #tpu.core_type<tc>, window_params = [{pipeline_mode = #tpu.pipeline_mode<synchronous>, transform_indices = @transform_0, window_bounds = array<i64: 2, 16>}, {transform_indices = @transform_1, window_bounds = array<i64: 16, 2048>}, {pipeline_mode = #tpu.pipeline_mode<synchronous>, transform_indices = @transform_2, window_bounds = array<i64: 2, 1>}, {transform_indices = @transform_3, window_bounds = array<i64: 2, 2048>}]} {
    %c0 = arith.constant 0 : index
    %c0_0 = arith.constant 0 : index
    %0 = vector.load %arg1[%c0, %c0_0] : memref<2x16xbf16, #tpu.memory_space<vmem>>, vector<2x16xbf16>
    %c0_1 = arith.constant 0 : index
    %c0_2 = arith.constant 0 : index
    %1 = vector.load %arg2[%c0_1, %c0_2] : memref<16x2048xbf16, #tpu.memory_space<vmem>>, vector<16x2048xbf16>
    %cst = arith.constant dense<0.000000e+00> : vector<2x2048xf32>
    %2 = tpu.matmul %0, %1, %cst {dimension_numbers = #tpu.dot_dimension_numbers<[1], [0], [0], [1], [0, 0, 1, 1], [], []>} : vector<2x16xbf16>, vector<16x2048xbf16>, vector<2x2048xf32> -> vector<2x2048xf32>
    %c0_3 = arith.constant 0 : index
    %c0_4 = arith.constant 0 : index
    %3 = vector.load %arg3[%c0_3, %c0_4] : memref<2x1xf32, #tpu.memory_space<vmem>>, vector<2x1xf32>
    %4 = vector.broadcast %3 : vector<2x1xf32> to vector<2x2048xf32>
    %5 = arith.addf %2, %4 : vector<2x2048xf32>
    %6 = arith.truncf %5 : vector<2x2048xf32> to vector<2x2048xbf16>
    %c0_5 = arith.constant 0 : index
    %c0_6 = arith.constant 0 : index
    %7 = vector.load %arg4[%c0_5, %c0_6] : memref<2x2048xbf16, #tpu.memory_space<vmem>>, vector<2x2048xbf16>
    tpu.vector_store %arg4[%c0_5, %c0_6], %6 {strides = array<i32>} : memref<2x2048xbf16, #tpu.memory_space<vmem>>, vector<2x2048xbf16>,
    return
  }
  func.func @transform_0(%arg0: i32) -> (i32, i32) {
    %c0_i32 = arith.constant 0 : i32
    %c0_i32_0 = arith.constant 0 : i32
    %c0_i32_1 = arith.constant 0 : i32
    return %c0_i32, %c0_i32_0 : i32, i32
  }
  func.func @transform_1(%arg0: i32) -> (i32, i32) {
    %c0_i32 = arith.constant 0 : i32
    %c0_i32_0 = arith.constant 0 : i32
    return %c0_i32, %arg0 : i32, i32
  }
  func.func @transform_2(%arg0: i32) -> (i32, i32) {
    %c0_i32 = arith.constant 0 : i32
    %c0_i32_0 = arith.constant 0 : i32
    %c0_i32_1 = arith.constant 0 : i32
    return %c0_i32, %c0_i32_0 : i32, i32
  }
  func.func @transform_3(%arg0: i32) -> (i32, i32) {
    %c0_i32 = arith.constant 0 : i32
    %c0_i32_0 = arith.constant 0 : i32
    return %c0_i32, %arg0 : i32, i32
  }
}

module attributes {stable_mosaic.version = 11 : i64} {
  func.func @_gemm_res_kernel(%arg0: i32, %arg1: memref<2x18xbf16, #tpu.memory_space<vmem>>, %arg2: memref<18x2048xbf16, #tpu.memory_space<vmem>>, %arg3: memref<2x1xf32, #tpu.memory_space<vmem>>, %arg4: memref<2x2048xbf16, #tpu.memory_space<vmem>>, %arg5: memref<2x2048xbf16, #tpu.memory_space<vmem>>) attributes {dimension_semantics = [#tpu.dimension_semantics<parallel>], iteration_bounds = array<i64: 1>, scalar_prefetch = 0 : i64, scratch_operands = 0 : i64, tpu.core_type = #tpu.core_type<tc>, window_params = [{pipeline_mode = #tpu.pipeline_mode<synchronous>, transform_indices = @transform_0, window_bounds = array<i64: 2, 18>}, {transform_indices = @transform_1, window_bounds = array<i64: 18, 2048>}, {pipeline_mode = #tpu.pipeline_mode<synchronous>, transform_indices = @transform_2, window_bounds = array<i64: 2, 1>}, {transform_indices = @transform_3, window_bounds = array<i64: 2, 2048>}, {transform_indices = @transform_4, window_bounds = array<i64: 2, 2048>}]} {
    %c0 = arith.constant 0 : index
    %c0_0 = arith.constant 0 : index
    %0 = vector.load %arg1[%c0, %c0_0] : memref<2x18xbf16, #tpu.memory_space<vmem>>, vector<2x18xbf16>
    %c0_1 = arith.constant 0 : index
    %c0_2 = arith.constant 0 : index
    %1 = vector.load %arg2[%c0_1, %c0_2] : memref<18x2048xbf16, #tpu.memory_space<vmem>>, vector<18x2048xbf16>
    %cst = arith.constant dense<0.000000e+00> : vector<2x2048xf32>
    %2 = tpu.matmul %0, %1, %cst {dimension_numbers = #tpu.dot_dimension_numbers<[1], [0], [0], [1], [0, 0, 1, 1], [], []>} : vector<2x18xbf16>, vector<18x2048xbf16>, vector<2x2048xf32> -> vector<2x2048xf32>
    %c0_3 = arith.constant 0 : index
    %c0_4 = arith.constant 0 : index
    %3 = vector.load %arg3[%c0_3, %c0_4] : memref<2x1xf32, #tpu.memory_space<vmem>>, vector<2x1xf32>
    %4 = vector.broadcast %3 : vector<2x1xf32> to vector<2x2048xf32>
    %5 = arith.addf %2, %4 : vector<2x2048xf32>
    %c0_5 = arith.constant 0 : index
    %c0_6 = arith.constant 0 : index
    %6 = vector.load %arg4[%c0_5, %c0_6] : memref<2x2048xbf16, #tpu.memory_space<vmem>>, vector<2x2048xbf16>
    %7 = arith.extf %6 : vector<2x2048xbf16> to vector<2x2048xf32>
    %8 = arith.addf %5, %7 : vector<2x2048xf32>
    %cst_7 = arith.constant 0.000000e+00 : f32
    %9 = vector.broadcast %cst_7 : f32 to vector<2x2048xf32>
    %10 = arith.maximumf %8, %9 : vector<2x2048xf32>
    %11 = arith.truncf %10 : vector<2x2048xf32> to vector<2x2048xbf16>
    %c0_8 = arith.constant 0 : index
    %c0_9 = arith.constant 0 : index
    %12 = vector.load %arg5[%c0_8, %c0_9] : memref<2x2048xbf16, #tpu.memory_space<vmem>>, vector<2x2048xbf16>
    tpu.vector_store %arg5[%c0_8, %c0_9], %11 {strides = array<i32>} : memref<2x2048xbf16, #tpu.memory_space<vmem>>, vector<2x2048xbf16>,
    return
  }
  func.func @transform_0(%arg0: i32) -> (i32, i32) {
    %c0_i32 = arith.constant 0 : i32
    %c0_i32_0 = arith.constant 0 : i32
    %c0_i32_1 = arith.constant 0 : i32
    return %c0_i32, %c0_i32_0 : i32, i32
  }
  func.func @transform_1(%arg0: i32) -> (i32, i32) {
    %c0_i32 = arith.constant 0 : i32
    %c0_i32_0 = arith.constant 0 : i32
    return %c0_i32, %arg0 : i32, i32
  }
  func.func @transform_2(%arg0: i32) -> (i32, i32) {
    %c0_i32 = arith.constant 0 : i32
    %c0_i32_0 = arith.constant 0 : i32
    %c0_i32_1 = arith.constant 0 : i32
    return %c0_i32, %c0_i32_0 : i32, i32
  }
  func.func @transform_3(%arg0: i32) -> (i32, i32) {
    %c0_i32 = arith.constant 0 : i32
    %c0_i32_0 = arith.constant 0 : i32
    return %c0_i32, %arg0 : i32, i32
  }
  func.func @transform_4(%arg0: i32) -> (i32, i32) {
    %c0_i32 = arith.constant 0 : i32
    %c0_i32_0 = arith.constant 0 : i32
    return %c0_i32, %arg0 : i32, i32
  }
}

module attributes {stable_mosaic.version = 11 : i64} {
  func.func @_gemm_kernel(%arg0: i32, %arg1: memref<4x32xbf16, #tpu.memory_space<vmem>>, %arg2: memref<32x512xbf16, #tpu.memory_space<vmem>>, %arg3: memref<4x1xf32, #tpu.memory_space<vmem>>, %arg4: memref<4x512xbf16, #tpu.memory_space<vmem>>) attributes {dimension_semantics = [#tpu.dimension_semantics<parallel>], iteration_bounds = array<i64: 1>, scalar_prefetch = 0 : i64, scratch_operands = 0 : i64, tpu.core_type = #tpu.core_type<tc>, window_params = [{pipeline_mode = #tpu.pipeline_mode<synchronous>, transform_indices = @transform_0, window_bounds = array<i64: 4, 32>}, {transform_indices = @transform_1, window_bounds = array<i64: 32, 512>}, {pipeline_mode = #tpu.pipeline_mode<synchronous>, transform_indices = @transform_2, window_bounds = array<i64: 4, 1>}, {transform_indices = @transform_3, window_bounds = array<i64: 4, 512>}]} {
    %c0 = arith.constant 0 : index
    %c0_0 = arith.constant 0 : index
    %0 = vector.load %arg1[%c0, %c0_0] : memref<4x32xbf16, #tpu.memory_space<vmem>>, vector<4x32xbf16>
    %c0_1 = arith.constant 0 : index
    %c0_2 = arith.constant 0 : index
    %1 = vector.load %arg2[%c0_1, %c0_2] : memref<32x512xbf16, #tpu.memory_space<vmem>>, vector<32x512xbf16>
    %cst = arith.constant dense<0.000000e+00> : vector<4x512xf32>
    %2 = tpu.matmul %0, %1, %cst {dimension_numbers = #tpu.dot_dimension_numbers<[1], [0], [0], [1], [0, 0, 1, 1], [], []>} : vector<4x32xbf16>, vector<32x512xbf16>, vector<4x512xf32> -> vector<4x512xf32>
    %c0_3 = arith.constant 0 : index
    %c0_4 = arith.constant 0 : index
    %3 = vector.load %arg3[%c0_3, %c0_4] : memref<4x1xf32, #tpu.memory_space<vmem>>, vector<4x1xf32>
    %4 = vector.broadcast %3 : vector<4x1xf32> to vector<4x512xf32>
    %5 = arith.addf %2, %4 : vector<4x512xf32>
    %cst_5 = arith.constant 0.000000e+00 : f32
    %6 = vector.broadcast %cst_5 : f32 to vector<4x512xf32>
    %7 = arith.maximumf %5, %6 : vector<4x512xf32>
    %8 = arith.truncf %7 : vector<4x512xf32> to vector<4x512xbf16>
    %c0_6 = arith.constant 0 : index
    %c0_7 = arith.constant 0 : index
    %9 = vector.load %arg4[%c0_6, %c0_7] : memref<4x512xbf16, #tpu.memory_space<vmem>>, vector<4x512xbf16>
    tpu.vector_store %arg4[%c0_6, %c0_7], %8 {strides = array<i32>} : memref<4x512xbf16, #tpu.memory_space<vmem>>, vector<4x512xbf16>,
    return
  }
  func.func @transform_0(%arg0: i32) -> (i32, i32) {
    %c0_i32 = arith.constant 0 : i32
    %c0_i32_0 = arith.constant 0 : i32
    %c0_i32_1 = arith.constant 0 : i32
    return %c0_i32, %c0_i32_0 : i32, i32
  }
  func.func @transform_1(%arg0: i32) -> (i32, i32) {
    %c0_i32 = arith.constant 0 : i32
    %c0_i32_0 = arith.constant 0 : i32
    return %c0_i32, %arg0 : i32, i32
  }
  func.func @transform_2(%arg0: i32) -> (i32, i32) {
    %c0_i32 = arith.constant 0 : i32
    %c0_i32_0 = arith.constant 0 : i32
    %c0_i32_1 = arith.constant 0 : i32
    return %c0_i32, %c0_i32_0 : i32, i32
  }
  func.func @transform_3(%arg0: i32) -> (i32, i32) {
    %c0_i32 = arith.constant 0 : i32
    %c0_i32_0 = arith.constant 0 : i32
    return %c0_i32, %arg0 : i32, i32
  }
}

module attributes {stable_mosaic.version = 11 : i64} {
  func.func @_gemm_res_kernel(%arg0: i32, %arg1: memref<4x36xbf16, #tpu.memory_space<vmem>>, %arg2: memref<36x512xbf16, #tpu.memory_space<vmem>>, %arg3: memref<4x1xf32, #tpu.memory_space<vmem>>, %arg4: memref<4x512xbf16, #tpu.memory_space<vmem>>, %arg5: memref<4x512xbf16, #tpu.memory_space<vmem>>) attributes {dimension_semantics = [#tpu.dimension_semantics<parallel>], iteration_bounds = array<i64: 1>, scalar_prefetch = 0 : i64, scratch_operands = 0 : i64, tpu.core_type = #tpu.core_type<tc>, window_params = [{pipeline_mode = #tpu.pipeline_mode<synchronous>, transform_indices = @transform_0, window_bounds = array<i64: 4, 36>}, {transform_indices = @transform_1, window_bounds = array<i64: 36, 512>}, {pipeline_mode = #tpu.pipeline_mode<synchronous>, transform_indices = @transform_2, window_bounds = array<i64: 4, 1>}, {transform_indices = @transform_3, window_bounds = array<i64: 4, 512>}, {transform_indices = @transform_4, window_bounds = array<i64: 4, 512>}]} {
    %c0 = arith.constant 0 : index
    %c0_0 = arith.constant 0 : index
    %0 = vector.load %arg1[%c0, %c0_0] : memref<4x36xbf16, #tpu.memory_space<vmem>>, vector<4x36xbf16>
    %c0_1 = arith.constant 0 : index
    %c0_2 = arith.constant 0 : index
    %1 = vector.load %arg2[%c0_1, %c0_2] : memref<36x512xbf16, #tpu.memory_space<vmem>>, vector<36x512xbf16>
    %cst = arith.constant dense<0.000000e+00> : vector<4x512xf32>
    %2 = tpu.matmul %0, %1, %cst {dimension_numbers = #tpu.dot_dimension_numbers<[1], [0], [0], [1], [0, 0, 1, 1], [], []>} : vector<4x36xbf16>, vector<36x512xbf16>, vector<4x512xf32> -> vector<4x512xf32>
    %c0_3 = arith.constant 0 : index
    %c0_4 = arith.constant 0 : index
    %3 = vector.load %arg3[%c0_3, %c0_4] : memref<4x1xf32, #tpu.memory_space<vmem>>, vector<4x1xf32>
    %4 = vector.broadcast %3 : vector<4x1xf32> to vector<4x512xf32>
    %5 = arith.addf %2, %4 : vector<4x512xf32>
    %c0_5 = arith.constant 0 : index
    %c0_6 = arith.constant 0 : index
    %6 = vector.load %arg4[%c0_5, %c0_6] : memref<4x512xbf16, #tpu.memory_space<vmem>>, vector<4x512xbf16>
    %7 = arith.extf %6 : vector<4x512xbf16> to vector<4x512xf32>
    %8 = arith.addf %5, %7 : vector<4x512xf32>
    %cst_7 = arith.constant 0.000000e+00 : f32
    %9 = vector.broadcast %cst_7 : f32 to vector<4x512xf32>
    %10 = arith.maximumf %8, %9 : vector<4x512xf32>
    %11 = arith.truncf %10 : vector<4x512xf32> to vector<4x512xbf16>
    %c0_8 = arith.constant 0 : index
    %c0_9 = arith.constant 0 : index
    %12 = vector.load %arg5[%c0_8, %c0_9] : memref<4x512xbf16, #tpu.memory_space<vmem>>, vector<4x512xbf16>
    tpu.vector_store %arg5[%c0_8, %c0_9], %11 {strides = array<i32>} : memref<4x512xbf16, #tpu.memory_space<vmem>>, vector<4x512xbf16>,
    return
  }
  func.func @transform_0(%arg0: i32) -> (i32, i32) {
    %c0_i32 = arith.constant 0 : i32
    %c0_i32_0 = arith.constant 0 : i32
    %c0_i32_1 = arith.constant 0 : i32
    return %c0_i32, %c0_i32_0 : i32, i32
  }
  func.func @transform_1(%arg0: i32) -> (i32, i32) {
    %c0_i32 = arith.constant 0 : i32
    %c0_i32_0 = arith.constant 0 : i32
    return %c0_i32, %arg0 : i32, i32
  }
  func.func @transform_2(%arg0: i32) -> (i32, i32) {
    %c0_i32 = arith.constant 0 : i32
    %c0_i32_0 = arith.constant 0 : i32
    %c0_i32_1 = arith.constant 0 : i32
    return %c0_i32, %c0_i32_0 : i32, i32
  }
  func.func @transform_3(%arg0: i32) -> (i32, i32) {
    %c0_i32 = arith.constant 0 : i32
    %c0_i32_0 = arith.constant 0 : i32
    return %c0_i32, %arg0 : i32, i32
  }
  func.func @transform_4(%arg0: i32) -> (i32, i32) {
    %c0_i32 = arith.constant 0 : i32
    %c0_i32_0 = arith.constant 0 : i32
    return %c0_i32, %arg0 : i32, i32
  }
}

module attributes {stable_mosaic.version = 11 : i64} {
  func.func @_gemm_kernel(%arg0: i32, %arg1: memref<8x64xbf16, #tpu.memory_space<vmem>>, %arg2: memref<64x128xbf16, #tpu.memory_space<vmem>>, %arg3: memref<8x1xf32, #tpu.memory_space<vmem>>, %arg4: memref<8x128xbf16, #tpu.memory_space<vmem>>) attributes {dimension_semantics = [#tpu.dimension_semantics<parallel>], iteration_bounds = array<i64: 1>, scalar_prefetch = 0 : i64, scratch_operands = 0 : i64, tpu.core_type = #tpu.core_type<tc>, window_params = [{pipeline_mode = #tpu.pipeline_mode<synchronous>, transform_indices = @transform_0, window_bounds = array<i64: 8, 64>}, {transform_indices = @transform_1, window_bounds = array<i64: 64, 128>}, {pipeline_mode = #tpu.pipeline_mode<synchronous>, transform_indices = @transform_2, window_bounds = array<i64: 8, 1>}, {transform_indices = @transform_3, window_bounds = array<i64: 8, 128>}]} {
    %c0 = arith.constant 0 : index
    %c0_0 = arith.constant 0 : index
    %0 = vector.load %arg1[%c0, %c0_0] : memref<8x64xbf16, #tpu.memory_space<vmem>>, vector<8x64xbf16>
    %c0_1 = arith.constant 0 : index
    %c0_2 = arith.constant 0 : index
    %1 = vector.load %arg2[%c0_1, %c0_2] : memref<64x128xbf16, #tpu.memory_space<vmem>>, vector<64x128xbf16>
    %cst = arith.constant dense<0.000000e+00> : vector<8x128xf32>
    %2 = tpu.matmul %0, %1, %cst {dimension_numbers = #tpu.dot_dimension_numbers<[1], [0], [0], [1], [0, 0, 1, 1], [], []>} : vector<8x64xbf16>, vector<64x128xbf16>, vector<8x128xf32> -> vector<8x128xf32>
    %c0_3 = arith.constant 0 : index
    %c0_4 = arith.constant 0 : index
    %3 = vector.load %arg3[%c0_3, %c0_4] : memref<8x1xf32, #tpu.memory_space<vmem>>, vector<8x1xf32>
    %4 = vector.broadcast %3 : vector<8x1xf32> to vector<8x128xf32>
    %5 = arith.addf %2, %4 : vector<8x128xf32>
    %cst_5 = arith.constant 0.000000e+00 : f32
    %6 = vector.broadcast %cst_5 : f32 to vector<8x128xf32>
    %7 = arith.maximumf %5, %6 : vector<8x128xf32>
    %8 = arith.truncf %7 : vector<8x128xf32> to vector<8x128xbf16>
    %c0_6 = arith.constant 0 : index
    %c0_7 = arith.constant 0 : index
    %9 = vector.load %arg4[%c0_6, %c0_7] : memref<8x128xbf16, #tpu.memory_space<vmem>>, vector<8x128xbf16>
    tpu.vector_store %arg4[%c0_6, %c0_7], %8 {strides = array<i32>} : memref<8x128xbf16, #tpu.memory_space<vmem>>, vector<8x128xbf16>,
    return
  }
  func.func @transform_0(%arg0: i32) -> (i32, i32) {
    %c0_i32 = arith.constant 0 : i32
    %c0_i32_0 = arith.constant 0 : i32
    %c0_i32_1 = arith.constant 0 : i32
    return %c0_i32, %c0_i32_0 : i32, i32
  }
  func.func @transform_1(%arg0: i32) -> (i32, i32) {
    %c0_i32 = arith.constant 0 : i32
    %c0_i32_0 = arith.constant 0 : i32
    return %c0_i32, %arg0 : i32, i32
  }
  func.func @transform_2(%arg0: i32) -> (i32, i32) {
    %c0_i32 = arith.constant 0 : i32
    %c0_i32_0 = arith.constant 0 : i32
    %c0_i32_1 = arith.constant 0 : i32
    return %c0_i32, %c0_i32_0 : i32, i32
  }
  func.func @transform_3(%arg0: i32) -> (i32, i32) {
    %c0_i32 = arith.constant 0 : i32
    %c0_i32_0 = arith.constant 0 : i32
    return %c0_i32, %arg0 : i32, i32
  }
}

module attributes {stable_mosaic.version = 11 : i64} {
  func.func @_gemm_res_kernel(%arg0: i32, %arg1: memref<8x72xbf16, #tpu.memory_space<vmem>>, %arg2: memref<72x128xbf16, #tpu.memory_space<vmem>>, %arg3: memref<8x1xf32, #tpu.memory_space<vmem>>, %arg4: memref<8x128xbf16, #tpu.memory_space<vmem>>, %arg5: memref<8x128xbf16, #tpu.memory_space<vmem>>) attributes {dimension_semantics = [#tpu.dimension_semantics<parallel>], iteration_bounds = array<i64: 1>, scalar_prefetch = 0 : i64, scratch_operands = 0 : i64, tpu.core_type = #tpu.core_type<tc>, window_params = [{pipeline_mode = #tpu.pipeline_mode<synchronous>, transform_indices = @transform_0, window_bounds = array<i64: 8, 72>}, {transform_indices = @transform_1, window_bounds = array<i64: 72, 128>}, {pipeline_mode = #tpu.pipeline_mode<synchronous>, transform_indices = @transform_2, window_bounds = array<i64: 8, 1>}, {transform_indices = @transform_3, window_bounds = array<i64: 8, 128>}, {transform_indices = @transform_4, window_bounds = array<i64: 8, 128>}]} {
    %c0 = arith.constant 0 : index
    %c0_0 = arith.constant 0 : index
    %0 = vector.load %arg1[%c0, %c0_0] : memref<8x72xbf16, #tpu.memory_space<vmem>>, vector<8x72xbf16>
    %c0_1 = arith.constant 0 : index
    %c0_2 = arith.constant 0 : index
    %1 = vector.load %arg2[%c0_1, %c0_2] : memref<72x128xbf16, #tpu.memory_space<vmem>>, vector<72x128xbf16>
    %cst = arith.constant dense<0.000000e+00> : vector<8x128xf32>
    %2 = tpu.matmul %0, %1, %cst {dimension_numbers = #tpu.dot_dimension_numbers<[1], [0], [0], [1], [0, 0, 1, 1], [], []>} : vector<8x72xbf16>, vector<72x128xbf16>, vector<8x128xf32> -> vector<8x128xf32>
    %c0_3 = arith.constant 0 : index
    %c0_4 = arith.constant 0 : index
    %3 = vector.load %arg3[%c0_3, %c0_4] : memref<8x1xf32, #tpu.memory_space<vmem>>, vector<8x1xf32>
    %4 = vector.broadcast %3 : vector<8x1xf32> to vector<8x128xf32>
    %5 = arith.addf %2, %4 : vector<8x128xf32>
    %c0_5 = arith.constant 0 : index
    %c0_6 = arith.constant 0 : index
    %6 = vector.load %arg4[%c0_5, %c0_6] : memref<8x128xbf16, #tpu.memory_space<vmem>>, vector<8x128xbf16>
    %7 = arith.extf %6 : vector<8x128xbf16> to vector<8x128xf32>
    %8 = arith.addf %5, %7 : vector<8x128xf32>
    %cst_7 = arith.constant 0.000000e+00 : f32
    %9 = vector.broadcast %cst_7 : f32 to vector<8x128xf32>
    %10 = arith.maximumf %8, %9 : vector<8x128xf32>
    %11 = arith.truncf %10 : vector<8x128xf32> to vector<8x128xbf16>
    %c0_8 = arith.constant 0 : index
    %c0_9 = arith.constant 0 : index
    %12 = vector.load %arg5[%c0_8, %c0_9] : memref<8x128xbf16, #tpu.memory_space<vmem>>, vector<8x128xbf16>
    tpu.vector_store %arg5[%c0_8, %c0_9], %11 {strides = array<i32>} : memref<8x128xbf16, #tpu.memory_space<vmem>>, vector<8x128xbf16>,
    return
  }
  func.func @transform_0(%arg0: i32) -> (i32, i32) {
    %c0_i32 = arith.constant 0 : i32
    %c0_i32_0 = arith.constant 0 : i32
    %c0_i32_1 = arith.constant 0 : i32
    return %c0_i32, %c0_i32_0 : i32, i32
  }
  func.func @transform_1(%arg0: i32) -> (i32, i32) {
    %c0_i32 = arith.constant 0 : i32
    %c0_i32_0 = arith.constant 0 : i32
    return %c0_i32, %arg0 : i32, i32
  }
  func.func @transform_2(%arg0: i32) -> (i32, i32) {
    %c0_i32 = arith.constant 0 : i32
    %c0_i32_0 = arith.constant 0 : i32
    %c0_i32_1 = arith.constant 0 : i32
    return %c0_i32, %c0_i32_0 : i32, i32
  }
  func.func @transform_3(%arg0: i32) -> (i32, i32) {
    %c0_i32 = arith.constant 0 : i32
    %c0_i32_0 = arith.constant 0 : i32
    return %c0_i32, %arg0 : i32, i32
  }
  func.func @transform_4(%arg0: i32) -> (i32, i32) {
    %c0_i32 = arith.constant 0 : i32
    %c0_i32_0 = arith.constant 0 : i32
    return %c0_i32, %arg0 : i32, i32
  }
}

module attributes {stable_mosaic.version = 11 : i64} {
  func.func @_gemm_kernel(%arg0: i32, %arg1: memref<16x128xbf16, #tpu.memory_space<vmem>>, %arg2: memref<128x32xbf16, #tpu.memory_space<vmem>>, %arg3: memref<16x1xf32, #tpu.memory_space<vmem>>, %arg4: memref<16x32xbf16, #tpu.memory_space<vmem>>) attributes {dimension_semantics = [#tpu.dimension_semantics<parallel>], iteration_bounds = array<i64: 1>, scalar_prefetch = 0 : i64, scratch_operands = 0 : i64, tpu.core_type = #tpu.core_type<tc>, window_params = [{pipeline_mode = #tpu.pipeline_mode<synchronous>, transform_indices = @transform_0, window_bounds = array<i64: 16, 128>}, {transform_indices = @transform_1, window_bounds = array<i64: 128, 32>}, {pipeline_mode = #tpu.pipeline_mode<synchronous>, transform_indices = @transform_2, window_bounds = array<i64: 16, 1>}, {transform_indices = @transform_3, window_bounds = array<i64: 16, 32>}]} {
    %c0 = arith.constant 0 : index
    %c0_0 = arith.constant 0 : index
    %0 = vector.load %arg1[%c0, %c0_0] : memref<16x128xbf16, #tpu.memory_space<vmem>>, vector<16x128xbf16>
    %c0_1 = arith.constant 0 : index
    %c0_2 = arith.constant 0 : index
    %1 = vector.load %arg2[%c0_1, %c0_2] : memref<128x32xbf16, #tpu.memory_space<vmem>>, vector<128x32xbf16>
    %cst = arith.constant dense<0.000000e+00> : vector<16x32xf32>
    %2 = tpu.matmul %0, %1, %cst {dimension_numbers = #tpu.dot_dimension_numbers<[1], [0], [0], [1], [0, 0, 1, 1], [], []>} : vector<16x128xbf16>, vector<128x32xbf16>, vector<16x32xf32> -> vector<16x32xf32>
    %c0_3 = arith.constant 0 : index
    %c0_4 = arith.constant 0 : index
    %3 = vector.load %arg3[%c0_3, %c0_4] : memref<16x1xf32, #tpu.memory_space<vmem>>, vector<16x1xf32>
    %4 = vector.broadcast %3 : vector<16x1xf32> to vector<16x32xf32>
    %5 = arith.addf %2, %4 : vector<16x32xf32>
    %cst_5 = arith.constant 0.000000e+00 : f32
    %6 = vector.broadcast %cst_5 : f32 to vector<16x32xf32>
    %7 = arith.maximumf %5, %6 : vector<16x32xf32>
    %8 = arith.truncf %7 : vector<16x32xf32> to vector<16x32xbf16>
    %c0_6 = arith.constant 0 : index
    %c0_7 = arith.constant 0 : index
    %9 = vector.load %arg4[%c0_6, %c0_7] : memref<16x32xbf16, #tpu.memory_space<vmem>>, vector<16x32xbf16>
    tpu.vector_store %arg4[%c0_6, %c0_7], %8 {strides = array<i32>} : memref<16x32xbf16, #tpu.memory_space<vmem>>, vector<16x32xbf16>,
    return
  }
  func.func @transform_0(%arg0: i32) -> (i32, i32) {
    %c0_i32 = arith.constant 0 : i32
    %c0_i32_0 = arith.constant 0 : i32
    %c0_i32_1 = arith.constant 0 : i32
    return %c0_i32, %c0_i32_0 : i32, i32
  }
  func.func @transform_1(%arg0: i32) -> (i32, i32) {
    %c0_i32 = arith.constant 0 : i32
    %c0_i32_0 = arith.constant 0 : i32
    return %c0_i32, %arg0 : i32, i32
  }
  func.func @transform_2(%arg0: i32) -> (i32, i32) {
    %c0_i32 = arith.constant 0 : i32
    %c0_i32_0 = arith.constant 0 : i32
    %c0_i32_1 = arith.constant 0 : i32
    return %c0_i32, %c0_i32_0 : i32, i32
  }
  func.func @transform_3(%arg0: i32) -> (i32, i32) {
    %c0_i32 = arith.constant 0 : i32
    %c0_i32_0 = arith.constant 0 : i32
    return %c0_i32, %arg0 : i32, i32
  }
}

module attributes {stable_mosaic.version = 11 : i64} {
  func.func @_gemm_res_kernel(%arg0: i32, %arg1: memref<16x144xbf16, #tpu.memory_space<vmem>>, %arg2: memref<144x32xbf16, #tpu.memory_space<vmem>>, %arg3: memref<16x1xf32, #tpu.memory_space<vmem>>, %arg4: memref<16x32xbf16, #tpu.memory_space<vmem>>, %arg5: memref<16x32xbf16, #tpu.memory_space<vmem>>) attributes {dimension_semantics = [#tpu.dimension_semantics<parallel>], iteration_bounds = array<i64: 1>, scalar_prefetch = 0 : i64, scratch_operands = 0 : i64, tpu.core_type = #tpu.core_type<tc>, window_params = [{pipeline_mode = #tpu.pipeline_mode<synchronous>, transform_indices = @transform_0, window_bounds = array<i64: 16, 144>}, {transform_indices = @transform_1, window_bounds = array<i64: 144, 32>}, {pipeline_mode = #tpu.pipeline_mode<synchronous>, transform_indices = @transform_2, window_bounds = array<i64: 16, 1>}, {transform_indices = @transform_3, window_bounds = array<i64: 16, 32>}, {transform_indices = @transform_4, window_bounds = array<i64: 16, 32>}]} {
    %c0 = arith.constant 0 : index
    %c0_0 = arith.constant 0 : index
    %0 = vector.load %arg1[%c0, %c0_0] : memref<16x144xbf16, #tpu.memory_space<vmem>>, vector<16x144xbf16>
    %c0_1 = arith.constant 0 : index
    %c0_2 = arith.constant 0 : index
    %1 = vector.load %arg2[%c0_1, %c0_2] : memref<144x32xbf16, #tpu.memory_space<vmem>>, vector<144x32xbf16>
    %cst = arith.constant dense<0.000000e+00> : vector<16x32xf32>
    %2 = tpu.matmul %0, %1, %cst {dimension_numbers = #tpu.dot_dimension_numbers<[1], [0], [0], [1], [0, 0, 1, 1], [], []>} : vector<16x144xbf16>, vector<144x32xbf16>, vector<16x32xf32> -> vector<16x32xf32>
    %c0_3 = arith.constant 0 : index
    %c0_4 = arith.constant 0 : index
    %3 = vector.load %arg3[%c0_3, %c0_4] : memref<16x1xf32, #tpu.memory_space<vmem>>, vector<16x1xf32>
    %4 = vector.broadcast %3 : vector<16x1xf32> to vector<16x32xf32>
    %5 = arith.addf %2, %4 : vector<16x32xf32>
    %c0_5 = arith.constant 0 : index
    %c0_6 = arith.constant 0 : index
    %6 = vector.load %arg4[%c0_5, %c0_6] : memref<16x32xbf16, #tpu.memory_space<vmem>>, vector<16x32xbf16>
    %7 = arith.extf %6 : vector<16x32xbf16> to vector<16x32xf32>
    %8 = arith.addf %5, %7 : vector<16x32xf32>
    %cst_7 = arith.constant 0.000000e+00 : f32
    %9 = vector.broadcast %cst_7 : f32 to vector<16x32xf32>
    %10 = arith.maximumf %8, %9 : vector<16x32xf32>
    %11 = arith.truncf %10 : vector<16x32xf32> to vector<16x32xbf16>
    %c0_8 = arith.constant 0 : index
    %c0_9 = arith.constant 0 : index
    %12 = vector.load %arg5[%c0_8, %c0_9] : memref<16x32xbf16, #tpu.memory_space<vmem>>, vector<16x32xbf16>
    tpu.vector_store %arg5[%c0_8, %c0_9], %11 {strides = array<i32>} : memref<16x32xbf16, #tpu.memory_space<vmem>>, vector<16x32xbf16>,
    return
  }
  func.func @transform_0(%arg0: i32) -> (i32, i32) {
    %c0_i32 = arith.constant 0 : i32
    %c0_i32_0 = arith.constant 0 : i32
    %c0_i32_1 = arith.constant 0 : i32
    return %c0_i32, %c0_i32_0 : i32, i32
  }
  func.func @transform_1(%arg0: i32) -> (i32, i32) {
    %c0_i32 = arith.constant 0 : i32
    %c0_i32_0 = arith.constant 0 : i32
    return %c0_i32, %arg0 : i32, i32
  }
  func.func @transform_2(%arg0: i32) -> (i32, i32) {
    %c0_i32 = arith.constant 0 : i32
    %c0_i32_0 = arith.constant 0 : i32
    %c0_i32_1 = arith.constant 0 : i32
    return %c0_i32, %c0_i32_0 : i32, i32
  }
  func.func @transform_3(%arg0: i32) -> (i32, i32) {
    %c0_i32 = arith.constant 0 : i32
    %c0_i32_0 = arith.constant 0 : i32
    return %c0_i32, %arg0 : i32, i32
  }
  func.func @transform_4(%arg0: i32) -> (i32, i32) {
    %c0_i32 = arith.constant 0 : i32
    %c0_i32_0 = arith.constant 0 : i32
    return %c0_i32, %arg0 : i32, i32
  }
}

module attributes {stable_mosaic.version = 11 : i64} {
  func.func @_gemm_kernel(%arg0: i32, %arg1: memref<32x256xbf16, #tpu.memory_space<vmem>>, %arg2: memref<256x8xbf16, #tpu.memory_space<vmem>>, %arg3: memref<32x1xf32, #tpu.memory_space<vmem>>, %arg4: memref<32x8xbf16, #tpu.memory_space<vmem>>) attributes {dimension_semantics = [#tpu.dimension_semantics<parallel>], iteration_bounds = array<i64: 1>, scalar_prefetch = 0 : i64, scratch_operands = 0 : i64, tpu.core_type = #tpu.core_type<tc>, window_params = [{pipeline_mode = #tpu.pipeline_mode<synchronous>, transform_indices = @transform_0, window_bounds = array<i64: 32, 256>}, {transform_indices = @transform_1, window_bounds = array<i64: 256, 8>}, {pipeline_mode = #tpu.pipeline_mode<synchronous>, transform_indices = @transform_2, window_bounds = array<i64: 32, 1>}, {transform_indices = @transform_3, window_bounds = array<i64: 32, 8>}]} {
    %c0 = arith.constant 0 : index
    %c0_0 = arith.constant 0 : index
    %0 = vector.load %arg1[%c0, %c0_0] : memref<32x256xbf16, #tpu.memory_space<vmem>>, vector<32x256xbf16>
    %c0_1 = arith.constant 0 : index
    %c0_2 = arith.constant 0 : index
    %1 = vector.load %arg2[%c0_1, %c0_2] : memref<256x8xbf16, #tpu.memory_space<vmem>>, vector<256x8xbf16>
    %cst = arith.constant dense<0.000000e+00> : vector<32x8xf32>
    %2 = tpu.matmul %0, %1, %cst {dimension_numbers = #tpu.dot_dimension_numbers<[1], [0], [0], [1], [0, 0, 1, 1], [], []>} : vector<32x256xbf16>, vector<256x8xbf16>, vector<32x8xf32> -> vector<32x8xf32>
    %c0_3 = arith.constant 0 : index
    %c0_4 = arith.constant 0 : index
    %3 = vector.load %arg3[%c0_3, %c0_4] : memref<32x1xf32, #tpu.memory_space<vmem>>, vector<32x1xf32>
    %4 = vector.broadcast %3 : vector<32x1xf32> to vector<32x8xf32>
    %5 = arith.addf %2, %4 : vector<32x8xf32>
    %cst_5 = arith.constant 0.000000e+00 : f32
    %6 = vector.broadcast %cst_5 : f32 to vector<32x8xf32>
    %7 = arith.maximumf %5, %6 : vector<32x8xf32>
    %8 = arith.truncf %7 : vector<32x8xf32> to vector<32x8xbf16>
    %c0_6 = arith.constant 0 : index
    %c0_7 = arith.constant 0 : index
    %9 = vector.load %arg4[%c0_6, %c0_7] : memref<32x8xbf16, #tpu.memory_space<vmem>>, vector<32x8xbf16>
    tpu.vector_store %arg4[%c0_6, %c0_7], %8 {strides = array<i32>} : memref<32x8xbf16, #tpu.memory_space<vmem>>, vector<32x8xbf16>,
    return
  }
  func.func @transform_0(%arg0: i32) -> (i32, i32) {
    %c0_i32 = arith.constant 0 : i32
    %c0_i32_0 = arith.constant 0 : i32
    %c0_i32_1 = arith.constant 0 : i32
    return %c0_i32, %c0_i32_0 : i32, i32
  }
  func.func @transform_1(%arg0: i32) -> (i32, i32) {
    %c0_i32 = arith.constant 0 : i32
    %c0_i32_0 = arith.constant 0 : i32
    return %c0_i32, %arg0 : i32, i32
  }
  func.func @transform_2(%arg0: i32) -> (i32, i32) {
    %c0_i32 = arith.constant 0 : i32
    %c0_i32_0 = arith.constant 0 : i32
    %c0_i32_1 = arith.constant 0 : i32
    return %c0_i32, %c0_i32_0 : i32, i32
  }
  func.func @transform_3(%arg0: i32) -> (i32, i32) {
    %c0_i32 = arith.constant 0 : i32
    %c0_i32_0 = arith.constant 0 : i32
    return %c0_i32, %arg0 : i32, i32
  }
}

module attributes {stable_mosaic.version = 11 : i64} {
  func.func @_gemm_res_kernel(%arg0: i32, %arg1: memref<32x288xbf16, #tpu.memory_space<vmem>>, %arg2: memref<288x8xbf16, #tpu.memory_space<vmem>>, %arg3: memref<32x1xf32, #tpu.memory_space<vmem>>, %arg4: memref<32x8xbf16, #tpu.memory_space<vmem>>, %arg5: memref<32x8xbf16, #tpu.memory_space<vmem>>) attributes {dimension_semantics = [#tpu.dimension_semantics<parallel>], iteration_bounds = array<i64: 1>, scalar_prefetch = 0 : i64, scratch_operands = 0 : i64, tpu.core_type = #tpu.core_type<tc>, window_params = [{pipeline_mode = #tpu.pipeline_mode<synchronous>, transform_indices = @transform_0, window_bounds = array<i64: 32, 288>}, {transform_indices = @transform_1, window_bounds = array<i64: 288, 8>}, {pipeline_mode = #tpu.pipeline_mode<synchronous>, transform_indices = @transform_2, window_bounds = array<i64: 32, 1>}, {transform_indices = @transform_3, window_bounds = array<i64: 32, 8>}, {transform_indices = @transform_4, window_bounds = array<i64: 32, 8>}]} {
    %c0 = arith.constant 0 : index
    %c0_0 = arith.constant 0 : index
    %0 = vector.load %arg1[%c0, %c0_0] : memref<32x288xbf16, #tpu.memory_space<vmem>>, vector<32x288xbf16>
    %c0_1 = arith.constant 0 : index
    %c0_2 = arith.constant 0 : index
    %1 = vector.load %arg2[%c0_1, %c0_2] : memref<288x8xbf16, #tpu.memory_space<vmem>>, vector<288x8xbf16>
    %cst = arith.constant dense<0.000000e+00> : vector<32x8xf32>
    %2 = tpu.matmul %0, %1, %cst {dimension_numbers = #tpu.dot_dimension_numbers<[1], [0], [0], [1], [0, 0, 1, 1], [], []>} : vector<32x288xbf16>, vector<288x8xbf16>, vector<32x8xf32> -> vector<32x8xf32>
    %c0_3 = arith.constant 0 : index
    %c0_4 = arith.constant 0 : index
    %3 = vector.load %arg3[%c0_3, %c0_4] : memref<32x1xf32, #tpu.memory_space<vmem>>, vector<32x1xf32>
    %4 = vector.broadcast %3 : vector<32x1xf32> to vector<32x8xf32>
    %5 = arith.addf %2, %4 : vector<32x8xf32>
    %c0_5 = arith.constant 0 : index
    %c0_6 = arith.constant 0 : index
    %6 = vector.load %arg4[%c0_5, %c0_6] : memref<32x8xbf16, #tpu.memory_space<vmem>>, vector<32x8xbf16>
    %7 = arith.extf %6 : vector<32x8xbf16> to vector<32x8xf32>
    %8 = arith.addf %5, %7 : vector<32x8xf32>
    %cst_7 = arith.constant 0.000000e+00 : f32
    %9 = vector.broadcast %cst_7 : f32 to vector<32x8xf32>
    %10 = arith.maximumf %8, %9 : vector<32x8xf32>
    %11 = arith.truncf %10 : vector<32x8xf32> to vector<32x8xbf16>
    %c0_8 = arith.constant 0 : index
    %c0_9 = arith.constant 0 : index
    %12 = vector.load %arg5[%c0_8, %c0_9] : memref<32x8xbf16, #tpu.memory_space<vmem>>, vector<32x8xbf16>
    tpu.vector_store %arg5[%c0_8, %c0_9], %11 {strides = array<i32>} : memref<32x8xbf16, #tpu.memory_space<vmem>>, vector<32x8xbf16>,
    return
  }
  func.func @transform_0(%arg0: i32) -> (i32, i32) {
    %c0_i32 = arith.constant 0 : i32
    %c0_i32_0 = arith.constant 0 : i32
    %c0_i32_1 = arith.constant 0 : i32
    return %c0_i32, %c0_i32_0 : i32, i32
  }
  func.func @transform_1(%arg0: i32) -> (i32, i32) {
    %c0_i32 = arith.constant 0 : i32
    %c0_i32_0 = arith.constant 0 : i32
    return %c0_i32, %arg0 : i32, i32
  }
  func.func @transform_2(%arg0: i32) -> (i32, i32) {
    %c0_i32 = arith.constant 0 : i32
    %c0_i32_0 = arith.constant 0 : i32
    %c0_i32_1 = arith.constant 0 : i32
    return %c0_i32, %c0_i32_0 : i32, i32
  }
  func.func @transform_3(%arg0: i32) -> (i32, i32) {
    %c0_i32 = arith.constant 0 : i32
    %c0_i32_0 = arith.constant 0 : i32
    return %c0_i32, %arg0 : i32, i32
  }
  func.func @transform_4(%arg0: i32) -> (i32, i32) {
    %c0_i32 = arith.constant 0 : i32
    %c0_i32_0 = arith.constant 0 : i32
    return %c0_i32, %arg0 : i32, i32
  }
}

module attributes {stable_mosaic.version = 11 : i64} {
  func.func @_gemm_kernel(%arg0: i32, %arg1: memref<64x512xbf16, #tpu.memory_space<vmem>>, %arg2: memref<512x2xbf16, #tpu.memory_space<vmem>>, %arg3: memref<64x1xf32, #tpu.memory_space<vmem>>, %arg4: memref<64x2xbf16, #tpu.memory_space<vmem>>) attributes {dimension_semantics = [#tpu.dimension_semantics<parallel>], iteration_bounds = array<i64: 1>, scalar_prefetch = 0 : i64, scratch_operands = 0 : i64, tpu.core_type = #tpu.core_type<tc>, window_params = [{pipeline_mode = #tpu.pipeline_mode<synchronous>, transform_indices = @transform_0, window_bounds = array<i64: 64, 512>}, {transform_indices = @transform_1, window_bounds = array<i64: 512, 2>}, {pipeline_mode = #tpu.pipeline_mode<synchronous>, transform_indices = @transform_2, window_bounds = array<i64: 64, 1>}, {transform_indices = @transform_3, window_bounds = array<i64: 64, 2>}]} {
    %c0 = arith.constant 0 : index
    %c0_0 = arith.constant 0 : index
    %0 = vector.load %arg1[%c0, %c0_0] : memref<64x512xbf16, #tpu.memory_space<vmem>>, vector<64x512xbf16>
    %c0_1 = arith.constant 0 : index
    %c0_2 = arith.constant 0 : index
    %1 = vector.load %arg2[%c0_1, %c0_2] : memref<512x2xbf16, #tpu.memory_space<vmem>>, vector<512x2xbf16>
    %cst = arith.constant dense<0.000000e+00> : vector<64x2xf32>
    %2 = tpu.matmul %0, %1, %cst {dimension_numbers = #tpu.dot_dimension_numbers<[1], [0], [0], [1], [0, 0, 1, 1], [], []>} : vector<64x512xbf16>, vector<512x2xbf16>, vector<64x2xf32> -> vector<64x2xf32>
    %c0_3 = arith.constant 0 : index
    %c0_4 = arith.constant 0 : index
    %3 = vector.load %arg3[%c0_3, %c0_4] : memref<64x1xf32, #tpu.memory_space<vmem>>, vector<64x1xf32>
    %4 = vector.broadcast %3 : vector<64x1xf32> to vector<64x2xf32>
    %5 = arith.addf %2, %4 : vector<64x2xf32>
    %cst_5 = arith.constant 0.000000e+00 : f32
    %6 = vector.broadcast %cst_5 : f32 to vector<64x2xf32>
    %7 = arith.maximumf %5, %6 : vector<64x2xf32>
    %8 = arith.truncf %7 : vector<64x2xf32> to vector<64x2xbf16>
    %c0_6 = arith.constant 0 : index
    %c0_7 = arith.constant 0 : index
    %9 = vector.load %arg4[%c0_6, %c0_7] : memref<64x2xbf16, #tpu.memory_space<vmem>>, vector<64x2xbf16>
    tpu.vector_store %arg4[%c0_6, %c0_7], %8 {strides = array<i32>} : memref<64x2xbf16, #tpu.memory_space<vmem>>, vector<64x2xbf16>,
    return
  }
  func.func @transform_0(%arg0: i32) -> (i32, i32) {
    %c0_i32 = arith.constant 0 : i32
    %c0_i32_0 = arith.constant 0 : i32
    %c0_i32_1 = arith.constant 0 : i32
    return %c0_i32, %c0_i32_0 : i32, i32
  }
  func.func @transform_1(%arg0: i32) -> (i32, i32) {
    %c0_i32 = arith.constant 0 : i32
    %c0_i32_0 = arith.constant 0 : i32
    return %c0_i32, %arg0 : i32, i32
  }
  func.func @transform_2(%arg0: i32) -> (i32, i32) {
    %c0_i32 = arith.constant 0 : i32
    %c0_i32_0 = arith.constant 0 : i32
    %c0_i32_1 = arith.constant 0 : i32
    return %c0_i32, %c0_i32_0 : i32, i32
  }
  func.func @transform_3(%arg0: i32) -> (i32, i32) {
    %c0_i32 = arith.constant 0 : i32
    %c0_i32_0 = arith.constant 0 : i32
    return %c0_i32, %arg0 : i32, i32
  }
}

module attributes {stable_mosaic.version = 11 : i64} {
  func.func @_gemm_res_kernel(%arg0: i32, %arg1: memref<64x576xbf16, #tpu.memory_space<vmem>>, %arg2: memref<576x2xbf16, #tpu.memory_space<vmem>>, %arg3: memref<64x1xf32, #tpu.memory_space<vmem>>, %arg4: memref<64x2xbf16, #tpu.memory_space<vmem>>, %arg5: memref<64x2xbf16, #tpu.memory_space<vmem>>) attributes {dimension_semantics = [#tpu.dimension_semantics<parallel>], iteration_bounds = array<i64: 1>, scalar_prefetch = 0 : i64, scratch_operands = 0 : i64, tpu.core_type = #tpu.core_type<tc>, window_params = [{pipeline_mode = #tpu.pipeline_mode<synchronous>, transform_indices = @transform_0, window_bounds = array<i64: 64, 576>}, {transform_indices = @transform_1, window_bounds = array<i64: 576, 2>}, {pipeline_mode = #tpu.pipeline_mode<synchronous>, transform_indices = @transform_2, window_bounds = array<i64: 64, 1>}, {transform_indices = @transform_3, window_bounds = array<i64: 64, 2>}, {transform_indices = @transform_4, window_bounds = array<i64: 64, 2>}]} {
    %c0 = arith.constant 0 : index
    %c0_0 = arith.constant 0 : index
    %0 = vector.load %arg1[%c0, %c0_0] : memref<64x576xbf16, #tpu.memory_space<vmem>>, vector<64x576xbf16>
    %c0_1 = arith.constant 0 : index
    %c0_2 = arith.constant 0 : index
    %1 = vector.load %arg2[%c0_1, %c0_2] : memref<576x2xbf16, #tpu.memory_space<vmem>>, vector<576x2xbf16>
    %cst = arith.constant dense<0.000000e+00> : vector<64x2xf32>
    %2 = tpu.matmul %0, %1, %cst {dimension_numbers = #tpu.dot_dimension_numbers<[1], [0], [0], [1], [0, 0, 1, 1], [], []>} : vector<64x576xbf16>, vector<576x2xbf16>, vector<64x2xf32> -> vector<64x2xf32>
    %c0_3 = arith.constant 0 : index
    %c0_4 = arith.constant 0 : index
    %3 = vector.load %arg3[%c0_3, %c0_4] : memref<64x1xf32, #tpu.memory_space<vmem>>, vector<64x1xf32>
    %4 = vector.broadcast %3 : vector<64x1xf32> to vector<64x2xf32>
    %5 = arith.addf %2, %4 : vector<64x2xf32>
    %c0_5 = arith.constant 0 : index
    %c0_6 = arith.constant 0 : index
    %6 = vector.load %arg4[%c0_5, %c0_6] : memref<64x2xbf16, #tpu.memory_space<vmem>>, vector<64x2xbf16>
    %7 = arith.extf %6 : vector<64x2xbf16> to vector<64x2xf32>
    %8 = arith.addf %5, %7 : vector<64x2xf32>
    %cst_7 = arith.constant 0.000000e+00 : f32
    %9 = vector.broadcast %cst_7 : f32 to vector<64x2xf32>
    %10 = arith.maximumf %8, %9 : vector<64x2xf32>
    %11 = arith.truncf %10 : vector<64x2xf32> to vector<64x2xbf16>
    %c0_8 = arith.constant 0 : index
    %c0_9 = arith.constant 0 : index
    %12 = vector.load %arg5[%c0_8, %c0_9] : memref<64x2xbf16, #tpu.memory_space<vmem>>, vector<64x2xbf16>
    tpu.vector_store %arg5[%c0_8, %c0_9], %11 {strides = array<i32>} : memref<64x2xbf16, #tpu.memory_space<vmem>>, vector<64x2xbf16>,
    return
  }
  func.func @transform_0(%arg0: i32) -> (i32, i32) {
    %c0_i32 = arith.constant 0 : i32
    %c0_i32_0 = arith.constant 0 : i32
    %c0_i32_1 = arith.constant 0 : i32
    return %c0_i32, %c0_i32_0 : i32, i32
  }
  func.func @transform_1(%arg0: i32) -> (i32, i32) {
    %c0_i32 = arith.constant 0 : i32
    %c0_i32_0 = arith.constant 0 : i32
    return %c0_i32, %arg0 : i32, i32
  }
  func.func @transform_2(%arg0: i32) -> (i32, i32) {
    %c0_i32 = arith.constant 0 : i32
    %c0_i32_0 = arith.constant 0 : i32
    %c0_i32_1 = arith.constant 0 : i32
    return %c0_i32, %c0_i32_0 : i32, i32
  }
  func.func @transform_3(%arg0: i32) -> (i32, i32) {
    %c0_i32 = arith.constant 0 : i32
    %c0_i32_0 = arith.constant 0 : i32
    return %c0_i32, %arg0 : i32, i32
  }
  func.func @transform_4(%arg0: i32) -> (i32, i32) {
    %c0_i32 = arith.constant 0 : i32
    %c0_i32_0 = arith.constant 0 : i32
    return %c0_i32, %arg0 : i32, i32
  }
}

module attributes {stable_mosaic.version = 11 : i64} {
  func.func @_trans_kernel(%arg0: i32, %arg1: memref<64x2xbf16, #tpu.memory_space<vmem>>, %arg2: memref<64x64xbf16, #tpu.memory_space<vmem>>, %arg3: memref<64x1xf32, #tpu.memory_space<vmem>>, %arg4: memref<64x64xbf16, #tpu.memory_space<vmem>>, %arg5: memref<64x1xf32, #tpu.memory_space<vmem>>, %arg6: memref<64x2xbf16, #tpu.memory_space<vmem>>) attributes {dimension_semantics = [#tpu.dimension_semantics<arbitrary>], iteration_bounds = array<i64: 1>, scalar_prefetch = 0 : i64, scratch_operands = 0 : i64, tpu.core_type = #tpu.core_type<tc>, window_params = [{pipeline_mode = #tpu.pipeline_mode<synchronous>, transform_indices = @transform_0, window_bounds = array<i64: 64, 2>}, {pipeline_mode = #tpu.pipeline_mode<synchronous>, transform_indices = @transform_1, window_bounds = array<i64: 64, 64>}, {pipeline_mode = #tpu.pipeline_mode<synchronous>, transform_indices = @transform_2, window_bounds = array<i64: 64, 1>}, {pipeline_mode = #tpu.pipeline_mode<synchronous>, transform_indices = @transform_3, window_bounds = array<i64: 64, 64>}, {pipeline_mode = #tpu.pipeline_mode<synchronous>, transform_indices = @transform_4, window_bounds = array<i64: 64, 1>}, {pipeline_mode = #tpu.pipeline_mode<synchronous>, transform_indices = @transform_5, window_bounds = array<i64: 64, 2>}]} {
    %c0 = arith.constant 0 : index
    %c0_0 = arith.constant 0 : index
    %0 = vector.load %arg2[%c0, %c0_0] : memref<64x64xbf16, #tpu.memory_space<vmem>>, vector<64x64xbf16>
    %c0_1 = arith.constant 0 : index
    %c0_2 = arith.constant 0 : index
    %1 = vector.load %arg1[%c0_1, %c0_2] : memref<64x2xbf16, #tpu.memory_space<vmem>>, vector<64x2xbf16>
    %cst = arith.constant dense<0.000000e+00> : vector<64x2xf32>
    %2 = tpu.matmul %0, %1, %cst {dimension_numbers = #tpu.dot_dimension_numbers<[1], [0], [0], [1], [0, 0, 1, 1], [], []>} : vector<64x64xbf16>, vector<64x2xbf16>, vector<64x2xf32> -> vector<64x2xf32>
    %c0_3 = arith.constant 0 : index
    %c0_4 = arith.constant 0 : index
    %3 = vector.load %arg3[%c0_3, %c0_4] : memref<64x1xf32, #tpu.memory_space<vmem>>, vector<64x1xf32>
    %4 = vector.broadcast %3 : vector<64x1xf32> to vector<64x2xf32>
    %5 = arith.addf %2, %4 : vector<64x2xf32>
    %cst_5 = arith.constant 0.000000e+00 : f32
    %6 = vector.broadcast %cst_5 : f32 to vector<64x2xf32>
    %7 = arith.maximumf %5, %6 : vector<64x2xf32>
    %8 = arith.truncf %7 : vector<64x2xf32> to vector<64x2xbf16>
    %c0_6 = arith.constant 0 : index
    %c0_7 = arith.constant 0 : index
    %9 = vector.load %arg4[%c0_6, %c0_7] : memref<64x64xbf16, #tpu.memory_space<vmem>>, vector<64x64xbf16>
    %cst_8 = arith.constant dense<0.000000e+00> : vector<64x2xf32>
    %10 = tpu.matmul %9, %8, %cst_8 {dimension_numbers = #tpu.dot_dimension_numbers<[1], [0], [0], [1], [0, 0, 1, 1], [], []>} : vector<64x64xbf16>, vector<64x2xbf16>, vector<64x2xf32> -> vector<64x2xf32>
    %c0_9 = arith.constant 0 : index
    %c0_10 = arith.constant 0 : index
    %11 = vector.load %arg5[%c0_9, %c0_10] : memref<64x1xf32, #tpu.memory_space<vmem>>, vector<64x1xf32>
    %12 = vector.broadcast %11 : vector<64x1xf32> to vector<64x2xf32>
    %13 = arith.addf %10, %12 : vector<64x2xf32>
    %cst_11 = arith.constant 0.000000e+00 : f32
    %14 = vector.broadcast %cst_11 : f32 to vector<64x2xf32>
    %15 = arith.maximumf %13, %14 : vector<64x2xf32>
    %16 = arith.truncf %15 : vector<64x2xf32> to vector<64x2xbf16>
    %c0_12 = arith.constant 0 : index
    %c0_13 = arith.constant 0 : index
    %17 = vector.load %arg6[%c0_12, %c0_13] : memref<64x2xbf16, #tpu.memory_space<vmem>>, vector<64x2xbf16>
    tpu.vector_store %arg6[%c0_12, %c0_13], %16 {strides = array<i32>} : memref<64x2xbf16, #tpu.memory_space<vmem>>, vector<64x2xbf16>,
    return
  }
  func.func @transform_0(%arg0: i32) -> (i32, i32) {
    %c0_i32 = arith.constant 0 : i32
    %c0_i32_0 = arith.constant 0 : i32
    %c0_i32_1 = arith.constant 0 : i32
    return %c0_i32, %c0_i32_0 : i32, i32
  }
  func.func @transform_1(%arg0: i32) -> (i32, i32) {
    %c0_i32 = arith.constant 0 : i32
    %c0_i32_0 = arith.constant 0 : i32
    %c0_i32_1 = arith.constant 0 : i32
    return %c0_i32, %c0_i32_0 : i32, i32
  }
  func.func @transform_2(%arg0: i32) -> (i32, i32) {
    %c0_i32 = arith.constant 0 : i32
    %c0_i32_0 = arith.constant 0 : i32
    %c0_i32_1 = arith.constant 0 : i32
    return %c0_i32, %c0_i32_0 : i32, i32
  }
  func.func @transform_3(%arg0: i32) -> (i32, i32) {
    %c0_i32 = arith.constant 0 : i32
    %c0_i32_0 = arith.constant 0 : i32
    %c0_i32_1 = arith.constant 0 : i32
    return %c0_i32, %c0_i32_0 : i32, i32
  }
  func.func @transform_4(%arg0: i32) -> (i32, i32) {
    %c0_i32 = arith.constant 0 : i32
    %c0_i32_0 = arith.constant 0 : i32
    %c0_i32_1 = arith.constant 0 : i32
    return %c0_i32, %c0_i32_0 : i32, i32
  }
  func.func @transform_5(%arg0: i32) -> (i32, i32) {
    %c0_i32 = arith.constant 0 : i32
    %c0_i32_0 = arith.constant 0 : i32
    %c0_i32_1 = arith.constant 0 : i32
    return %c0_i32, %c0_i32_0 : i32, i32
  }
}

module attributes {stable_mosaic.version = 11 : i64} {
  func.func @_gemm_kernel(%arg0: i32, %arg1: memref<128x576xbf16, #tpu.memory_space<vmem>>, %arg2: memref<576x2xbf16, #tpu.memory_space<vmem>>, %arg3: memref<128x1xf32, #tpu.memory_space<vmem>>, %arg4: memref<128x2xbf16, #tpu.memory_space<vmem>>) attributes {dimension_semantics = [#tpu.dimension_semantics<parallel>], iteration_bounds = array<i64: 1>, scalar_prefetch = 0 : i64, scratch_operands = 0 : i64, tpu.core_type = #tpu.core_type<tc>, window_params = [{pipeline_mode = #tpu.pipeline_mode<synchronous>, transform_indices = @transform_0, window_bounds = array<i64: 128, 576>}, {transform_indices = @transform_1, window_bounds = array<i64: 576, 2>}, {pipeline_mode = #tpu.pipeline_mode<synchronous>, transform_indices = @transform_2, window_bounds = array<i64: 128, 1>}, {transform_indices = @transform_3, window_bounds = array<i64: 128, 2>}]} {
    %c0 = arith.constant 0 : index
    %c0_0 = arith.constant 0 : index
    %0 = vector.load %arg1[%c0, %c0_0] : memref<128x576xbf16, #tpu.memory_space<vmem>>, vector<128x576xbf16>
    %c0_1 = arith.constant 0 : index
    %c0_2 = arith.constant 0 : index
    %1 = vector.load %arg2[%c0_1, %c0_2] : memref<576x2xbf16, #tpu.memory_space<vmem>>, vector<576x2xbf16>
    %cst = arith.constant dense<0.000000e+00> : vector<128x2xf32>
    %2 = tpu.matmul %0, %1, %cst {dimension_numbers = #tpu.dot_dimension_numbers<[1], [0], [0], [1], [0, 0, 1, 1], [], []>} : vector<128x576xbf16>, vector<576x2xbf16>, vector<128x2xf32> -> vector<128x2xf32>
    %c0_3 = arith.constant 0 : index
    %c0_4 = arith.constant 0 : index
    %3 = vector.load %arg3[%c0_3, %c0_4] : memref<128x1xf32, #tpu.memory_space<vmem>>, vector<128x1xf32>
    %4 = vector.broadcast %3 : vector<128x1xf32> to vector<128x2xf32>
    %5 = arith.addf %2, %4 : vector<128x2xf32>
    %cst_5 = arith.constant 0.000000e+00 : f32
    %6 = vector.broadcast %cst_5 : f32 to vector<128x2xf32>
    %7 = arith.maximumf %5, %6 : vector<128x2xf32>
    %8 = arith.truncf %7 : vector<128x2xf32> to vector<128x2xbf16>
    %c0_6 = arith.constant 0 : index
    %c0_7 = arith.constant 0 : index
    %9 = vector.load %arg4[%c0_6, %c0_7] : memref<128x2xbf16, #tpu.memory_space<vmem>>, vector<128x2xbf16>
    tpu.vector_store %arg4[%c0_6, %c0_7], %8 {strides = array<i32>} : memref<128x2xbf16, #tpu.memory_space<vmem>>, vector<128x2xbf16>,
    return
  }
  func.func @transform_0(%arg0: i32) -> (i32, i32) {
    %c0_i32 = arith.constant 0 : i32
    %c0_i32_0 = arith.constant 0 : i32
    %c0_i32_1 = arith.constant 0 : i32
    return %c0_i32, %c0_i32_0 : i32, i32
  }
  func.func @transform_1(%arg0: i32) -> (i32, i32) {
    %c0_i32 = arith.constant 0 : i32
    %c0_i32_0 = arith.constant 0 : i32
    return %c0_i32, %arg0 : i32, i32
  }
  func.func @transform_2(%arg0: i32) -> (i32, i32) {
    %c0_i32 = arith.constant 0 : i32
    %c0_i32_0 = arith.constant 0 : i32
    %c0_i32_1 = arith.constant 0 : i32
    return %c0_i32, %c0_i32_0 : i32, i32
  }
  func.func @transform_3(%arg0: i32) -> (i32, i32) {
    %c0_i32 = arith.constant 0 : i32
    %c0_i32_0 = arith.constant 0 : i32
    return %c0_i32, %arg0 : i32, i32
  }
}

module attributes {stable_mosaic.version = 11 : i64} {
  func.func @_gemm_kernel(%arg0: i32, %arg1: memref<32x288xbf16, #tpu.memory_space<vmem>>, %arg2: memref<288x8xbf16, #tpu.memory_space<vmem>>, %arg3: memref<32x1xf32, #tpu.memory_space<vmem>>, %arg4: memref<32x8xbf16, #tpu.memory_space<vmem>>) attributes {dimension_semantics = [#tpu.dimension_semantics<parallel>], iteration_bounds = array<i64: 1>, scalar_prefetch = 0 : i64, scratch_operands = 0 : i64, tpu.core_type = #tpu.core_type<tc>, window_params = [{pipeline_mode = #tpu.pipeline_mode<synchronous>, transform_indices = @transform_0, window_bounds = array<i64: 32, 288>}, {transform_indices = @transform_1, window_bounds = array<i64: 288, 8>}, {pipeline_mode = #tpu.pipeline_mode<synchronous>, transform_indices = @transform_2, window_bounds = array<i64: 32, 1>}, {transform_indices = @transform_3, window_bounds = array<i64: 32, 8>}]} {
    %c0 = arith.constant 0 : index
    %c0_0 = arith.constant 0 : index
    %0 = vector.load %arg1[%c0, %c0_0] : memref<32x288xbf16, #tpu.memory_space<vmem>>, vector<32x288xbf16>
    %c0_1 = arith.constant 0 : index
    %c0_2 = arith.constant 0 : index
    %1 = vector.load %arg2[%c0_1, %c0_2] : memref<288x8xbf16, #tpu.memory_space<vmem>>, vector<288x8xbf16>
    %cst = arith.constant dense<0.000000e+00> : vector<32x8xf32>
    %2 = tpu.matmul %0, %1, %cst {dimension_numbers = #tpu.dot_dimension_numbers<[1], [0], [0], [1], [0, 0, 1, 1], [], []>} : vector<32x288xbf16>, vector<288x8xbf16>, vector<32x8xf32> -> vector<32x8xf32>
    %c0_3 = arith.constant 0 : index
    %c0_4 = arith.constant 0 : index
    %3 = vector.load %arg3[%c0_3, %c0_4] : memref<32x1xf32, #tpu.memory_space<vmem>>, vector<32x1xf32>
    %4 = vector.broadcast %3 : vector<32x1xf32> to vector<32x8xf32>
    %5 = arith.addf %2, %4 : vector<32x8xf32>
    %cst_5 = arith.constant 0.000000e+00 : f32
    %6 = vector.broadcast %cst_5 : f32 to vector<32x8xf32>
    %7 = arith.maximumf %5, %6 : vector<32x8xf32>
    %8 = arith.truncf %7 : vector<32x8xf32> to vector<32x8xbf16>
    %c0_6 = arith.constant 0 : index
    %c0_7 = arith.constant 0 : index
    %9 = vector.load %arg4[%c0_6, %c0_7] : memref<32x8xbf16, #tpu.memory_space<vmem>>, vector<32x8xbf16>
    tpu.vector_store %arg4[%c0_6, %c0_7], %8 {strides = array<i32>} : memref<32x8xbf16, #tpu.memory_space<vmem>>, vector<32x8xbf16>,
    return
  }
  func.func @transform_0(%arg0: i32) -> (i32, i32) {
    %c0_i32 = arith.constant 0 : i32
    %c0_i32_0 = arith.constant 0 : i32
    %c0_i32_1 = arith.constant 0 : i32
    return %c0_i32, %c0_i32_0 : i32, i32
  }
  func.func @transform_1(%arg0: i32) -> (i32, i32) {
    %c0_i32 = arith.constant 0 : i32
    %c0_i32_0 = arith.constant 0 : i32
    return %c0_i32, %arg0 : i32, i32
  }
  func.func @transform_2(%arg0: i32) -> (i32, i32) {
    %c0_i32 = arith.constant 0 : i32
    %c0_i32_0 = arith.constant 0 : i32
    %c0_i32_1 = arith.constant 0 : i32
    return %c0_i32, %c0_i32_0 : i32, i32
  }
  func.func @transform_3(%arg0: i32) -> (i32, i32) {
    %c0_i32 = arith.constant 0 : i32
    %c0_i32_0 = arith.constant 0 : i32
    return %c0_i32, %arg0 : i32, i32
  }
}

module attributes {stable_mosaic.version = 11 : i64} {
  func.func @_gemm_kernel(%arg0: i32, %arg1: memref<64x288xbf16, #tpu.memory_space<vmem>>, %arg2: memref<288x8xbf16, #tpu.memory_space<vmem>>, %arg3: memref<64x1xf32, #tpu.memory_space<vmem>>, %arg4: memref<64x8xbf16, #tpu.memory_space<vmem>>) attributes {dimension_semantics = [#tpu.dimension_semantics<parallel>], iteration_bounds = array<i64: 1>, scalar_prefetch = 0 : i64, scratch_operands = 0 : i64, tpu.core_type = #tpu.core_type<tc>, window_params = [{pipeline_mode = #tpu.pipeline_mode<synchronous>, transform_indices = @transform_0, window_bounds = array<i64: 64, 288>}, {transform_indices = @transform_1, window_bounds = array<i64: 288, 8>}, {pipeline_mode = #tpu.pipeline_mode<synchronous>, transform_indices = @transform_2, window_bounds = array<i64: 64, 1>}, {transform_indices = @transform_3, window_bounds = array<i64: 64, 8>}]} {
    %c0 = arith.constant 0 : index
    %c0_0 = arith.constant 0 : index
    %0 = vector.load %arg1[%c0, %c0_0] : memref<64x288xbf16, #tpu.memory_space<vmem>>, vector<64x288xbf16>
    %c0_1 = arith.constant 0 : index
    %c0_2 = arith.constant 0 : index
    %1 = vector.load %arg2[%c0_1, %c0_2] : memref<288x8xbf16, #tpu.memory_space<vmem>>, vector<288x8xbf16>
    %cst = arith.constant dense<0.000000e+00> : vector<64x8xf32>
    %2 = tpu.matmul %0, %1, %cst {dimension_numbers = #tpu.dot_dimension_numbers<[1], [0], [0], [1], [0, 0, 1, 1], [], []>} : vector<64x288xbf16>, vector<288x8xbf16>, vector<64x8xf32> -> vector<64x8xf32>
    %c0_3 = arith.constant 0 : index
    %c0_4 = arith.constant 0 : index
    %3 = vector.load %arg3[%c0_3, %c0_4] : memref<64x1xf32, #tpu.memory_space<vmem>>, vector<64x1xf32>
    %4 = vector.broadcast %3 : vector<64x1xf32> to vector<64x8xf32>
    %5 = arith.addf %2, %4 : vector<64x8xf32>
    %cst_5 = arith.constant 0.000000e+00 : f32
    %6 = vector.broadcast %cst_5 : f32 to vector<64x8xf32>
    %7 = arith.maximumf %5, %6 : vector<64x8xf32>
    %8 = arith.truncf %7 : vector<64x8xf32> to vector<64x8xbf16>
    %c0_6 = arith.constant 0 : index
    %c0_7 = arith.constant 0 : index
    %9 = vector.load %arg4[%c0_6, %c0_7] : memref<64x8xbf16, #tpu.memory_space<vmem>>, vector<64x8xbf16>
    tpu.vector_store %arg4[%c0_6, %c0_7], %8 {strides = array<i32>} : memref<64x8xbf16, #tpu.memory_space<vmem>>, vector<64x8xbf16>,
    return
  }
  func.func @transform_0(%arg0: i32) -> (i32, i32) {
    %c0_i32 = arith.constant 0 : i32
    %c0_i32_0 = arith.constant 0 : i32
    %c0_i32_1 = arith.constant 0 : i32
    return %c0_i32, %c0_i32_0 : i32, i32
  }
  func.func @transform_1(%arg0: i32) -> (i32, i32) {
    %c0_i32 = arith.constant 0 : i32
    %c0_i32_0 = arith.constant 0 : i32
    return %c0_i32, %arg0 : i32, i32
  }
  func.func @transform_2(%arg0: i32) -> (i32, i32) {
    %c0_i32 = arith.constant 0 : i32
    %c0_i32_0 = arith.constant 0 : i32
    %c0_i32_1 = arith.constant 0 : i32
    return %c0_i32, %c0_i32_0 : i32, i32
  }
  func.func @transform_3(%arg0: i32) -> (i32, i32) {
    %c0_i32 = arith.constant 0 : i32
    %c0_i32_0 = arith.constant 0 : i32
    return %c0_i32, %arg0 : i32, i32
  }
}

module attributes {stable_mosaic.version = 11 : i64} {
  func.func @_gemm_kernel(%arg0: i32, %arg1: memref<32x144xbf16, #tpu.memory_space<vmem>>, %arg2: memref<144x32xbf16, #tpu.memory_space<vmem>>, %arg3: memref<32x1xf32, #tpu.memory_space<vmem>>, %arg4: memref<32x32xbf16, #tpu.memory_space<vmem>>) attributes {dimension_semantics = [#tpu.dimension_semantics<parallel>], iteration_bounds = array<i64: 1>, scalar_prefetch = 0 : i64, scratch_operands = 0 : i64, tpu.core_type = #tpu.core_type<tc>, window_params = [{pipeline_mode = #tpu.pipeline_mode<synchronous>, transform_indices = @transform_0, window_bounds = array<i64: 32, 144>}, {transform_indices = @transform_1, window_bounds = array<i64: 144, 32>}, {pipeline_mode = #tpu.pipeline_mode<synchronous>, transform_indices = @transform_2, window_bounds = array<i64: 32, 1>}, {transform_indices = @transform_3, window_bounds = array<i64: 32, 32>}]} {
    %c0 = arith.constant 0 : index
    %c0_0 = arith.constant 0 : index
    %0 = vector.load %arg1[%c0, %c0_0] : memref<32x144xbf16, #tpu.memory_space<vmem>>, vector<32x144xbf16>
    %c0_1 = arith.constant 0 : index
    %c0_2 = arith.constant 0 : index
    %1 = vector.load %arg2[%c0_1, %c0_2] : memref<144x32xbf16, #tpu.memory_space<vmem>>, vector<144x32xbf16>
    %cst = arith.constant dense<0.000000e+00> : vector<32x32xf32>
    %2 = tpu.matmul %0, %1, %cst {dimension_numbers = #tpu.dot_dimension_numbers<[1], [0], [0], [1], [0, 0, 1, 1], [], []>} : vector<32x144xbf16>, vector<144x32xbf16>, vector<32x32xf32> -> vector<32x32xf32>
    %c0_3 = arith.constant 0 : index
    %c0_4 = arith.constant 0 : index
    %3 = vector.load %arg3[%c0_3, %c0_4] : memref<32x1xf32, #tpu.memory_space<vmem>>, vector<32x1xf32>
    %4 = vector.broadcast %3 : vector<32x1xf32> to vector<32x32xf32>
    %5 = arith.addf %2, %4 : vector<32x32xf32>
    %cst_5 = arith.constant 0.000000e+00 : f32
    %6 = vector.broadcast %cst_5 : f32 to vector<32x32xf32>
    %7 = arith.maximumf %5, %6 : vector<32x32xf32>
    %8 = arith.truncf %7 : vector<32x32xf32> to vector<32x32xbf16>
    %c0_6 = arith.constant 0 : index
    %c0_7 = arith.constant 0 : index
    %9 = vector.load %arg4[%c0_6, %c0_7] : memref<32x32xbf16, #tpu.memory_space<vmem>>, vector<32x32xbf16>
    tpu.vector_store %arg4[%c0_6, %c0_7], %8 {strides = array<i32>} : memref<32x32xbf16, #tpu.memory_space<vmem>>, vector<32x32xbf16>,
    return
  }
  func.func @transform_0(%arg0: i32) -> (i32, i32) {
    %c0_i32 = arith.constant 0 : i32
    %c0_i32_0 = arith.constant 0 : i32
    %c0_i32_1 = arith.constant 0 : i32
    return %c0_i32, %c0_i32_0 : i32, i32
  }
  func.func @transform_1(%arg0: i32) -> (i32, i32) {
    %c0_i32 = arith.constant 0 : i32
    %c0_i32_0 = arith.constant 0 : i32
    return %c0_i32, %arg0 : i32, i32
  }
  func.func @transform_2(%arg0: i32) -> (i32, i32) {
    %c0_i32 = arith.constant 0 : i32
    %c0_i32_0 = arith.constant 0 : i32
    %c0_i32_1 = arith.constant 0 : i32
    return %c0_i32, %c0_i32_0 : i32, i32
  }
  func.func @transform_3(%arg0: i32) -> (i32, i32) {
    %c0_i32 = arith.constant 0 : i32
    %c0_i32_0 = arith.constant 0 : i32
    return %c0_i32, %arg0 : i32, i32
  }
}

module attributes {stable_mosaic.version = 11 : i64} {
  func.func @_gemm_kernel(%arg0: i32, %arg1: memref<16x144xbf16, #tpu.memory_space<vmem>>, %arg2: memref<144x32xbf16, #tpu.memory_space<vmem>>, %arg3: memref<16x1xf32, #tpu.memory_space<vmem>>, %arg4: memref<16x32xbf16, #tpu.memory_space<vmem>>) attributes {dimension_semantics = [#tpu.dimension_semantics<parallel>], iteration_bounds = array<i64: 1>, scalar_prefetch = 0 : i64, scratch_operands = 0 : i64, tpu.core_type = #tpu.core_type<tc>, window_params = [{pipeline_mode = #tpu.pipeline_mode<synchronous>, transform_indices = @transform_0, window_bounds = array<i64: 16, 144>}, {transform_indices = @transform_1, window_bounds = array<i64: 144, 32>}, {pipeline_mode = #tpu.pipeline_mode<synchronous>, transform_indices = @transform_2, window_bounds = array<i64: 16, 1>}, {transform_indices = @transform_3, window_bounds = array<i64: 16, 32>}]} {
    %c0 = arith.constant 0 : index
    %c0_0 = arith.constant 0 : index
    %0 = vector.load %arg1[%c0, %c0_0] : memref<16x144xbf16, #tpu.memory_space<vmem>>, vector<16x144xbf16>
    %c0_1 = arith.constant 0 : index
    %c0_2 = arith.constant 0 : index
    %1 = vector.load %arg2[%c0_1, %c0_2] : memref<144x32xbf16, #tpu.memory_space<vmem>>, vector<144x32xbf16>
    %cst = arith.constant dense<0.000000e+00> : vector<16x32xf32>
    %2 = tpu.matmul %0, %1, %cst {dimension_numbers = #tpu.dot_dimension_numbers<[1], [0], [0], [1], [0, 0, 1, 1], [], []>} : vector<16x144xbf16>, vector<144x32xbf16>, vector<16x32xf32> -> vector<16x32xf32>
    %c0_3 = arith.constant 0 : index
    %c0_4 = arith.constant 0 : index
    %3 = vector.load %arg3[%c0_3, %c0_4] : memref<16x1xf32, #tpu.memory_space<vmem>>, vector<16x1xf32>
    %4 = vector.broadcast %3 : vector<16x1xf32> to vector<16x32xf32>
    %5 = arith.addf %2, %4 : vector<16x32xf32>
    %cst_5 = arith.constant 0.000000e+00 : f32
    %6 = vector.broadcast %cst_5 : f32 to vector<16x32xf32>
    %7 = arith.maximumf %5, %6 : vector<16x32xf32>
    %8 = arith.truncf %7 : vector<16x32xf32> to vector<16x32xbf16>
    %c0_6 = arith.constant 0 : index
    %c0_7 = arith.constant 0 : index
    %9 = vector.load %arg4[%c0_6, %c0_7] : memref<16x32xbf16, #tpu.memory_space<vmem>>, vector<16x32xbf16>
    tpu.vector_store %arg4[%c0_6, %c0_7], %8 {strides = array<i32>} : memref<16x32xbf16, #tpu.memory_space<vmem>>, vector<16x32xbf16>,
    return
  }
  func.func @transform_0(%arg0: i32) -> (i32, i32) {
    %c0_i32 = arith.constant 0 : i32
    %c0_i32_0 = arith.constant 0 : i32
    %c0_i32_1 = arith.constant 0 : i32
    return %c0_i32, %c0_i32_0 : i32, i32
  }
  func.func @transform_1(%arg0: i32) -> (i32, i32) {
    %c0_i32 = arith.constant 0 : i32
    %c0_i32_0 = arith.constant 0 : i32
    return %c0_i32, %arg0 : i32, i32
  }
  func.func @transform_2(%arg0: i32) -> (i32, i32) {
    %c0_i32 = arith.constant 0 : i32
    %c0_i32_0 = arith.constant 0 : i32
    %c0_i32_1 = arith.constant 0 : i32
    return %c0_i32, %c0_i32_0 : i32, i32
  }
  func.func @transform_3(%arg0: i32) -> (i32, i32) {
    %c0_i32 = arith.constant 0 : i32
    %c0_i32_0 = arith.constant 0 : i32
    return %c0_i32, %arg0 : i32, i32
  }
}

module attributes {stable_mosaic.version = 11 : i64} {
  func.func @_gemm_kernel(%arg0: i32, %arg1: memref<8x72xbf16, #tpu.memory_space<vmem>>, %arg2: memref<72x128xbf16, #tpu.memory_space<vmem>>, %arg3: memref<8x1xf32, #tpu.memory_space<vmem>>, %arg4: memref<8x128xbf16, #tpu.memory_space<vmem>>) attributes {dimension_semantics = [#tpu.dimension_semantics<parallel>], iteration_bounds = array<i64: 1>, scalar_prefetch = 0 : i64, scratch_operands = 0 : i64, tpu.core_type = #tpu.core_type<tc>, window_params = [{pipeline_mode = #tpu.pipeline_mode<synchronous>, transform_indices = @transform_0, window_bounds = array<i64: 8, 72>}, {transform_indices = @transform_1, window_bounds = array<i64: 72, 128>}, {pipeline_mode = #tpu.pipeline_mode<synchronous>, transform_indices = @transform_2, window_bounds = array<i64: 8, 1>}, {transform_indices = @transform_3, window_bounds = array<i64: 8, 128>}]} {
    %c0 = arith.constant 0 : index
    %c0_0 = arith.constant 0 : index
    %0 = vector.load %arg1[%c0, %c0_0] : memref<8x72xbf16, #tpu.memory_space<vmem>>, vector<8x72xbf16>
    %c0_1 = arith.constant 0 : index
    %c0_2 = arith.constant 0 : index
    %1 = vector.load %arg2[%c0_1, %c0_2] : memref<72x128xbf16, #tpu.memory_space<vmem>>, vector<72x128xbf16>
    %cst = arith.constant dense<0.000000e+00> : vector<8x128xf32>
    %2 = tpu.matmul %0, %1, %cst {dimension_numbers = #tpu.dot_dimension_numbers<[1], [0], [0], [1], [0, 0, 1, 1], [], []>} : vector<8x72xbf16>, vector<72x128xbf16>, vector<8x128xf32> -> vector<8x128xf32>
    %c0_3 = arith.constant 0 : index
    %c0_4 = arith.constant 0 : index
    %3 = vector.load %arg3[%c0_3, %c0_4] : memref<8x1xf32, #tpu.memory_space<vmem>>, vector<8x1xf32>
    %4 = vector.broadcast %3 : vector<8x1xf32> to vector<8x128xf32>
    %5 = arith.addf %2, %4 : vector<8x128xf32>
    %cst_5 = arith.constant 0.000000e+00 : f32
    %6 = vector.broadcast %cst_5 : f32 to vector<8x128xf32>
    %7 = arith.maximumf %5, %6 : vector<8x128xf32>
    %8 = arith.truncf %7 : vector<8x128xf32> to vector<8x128xbf16>
    %c0_6 = arith.constant 0 : index
    %c0_7 = arith.constant 0 : index
    %9 = vector.load %arg4[%c0_6, %c0_7] : memref<8x128xbf16, #tpu.memory_space<vmem>>, vector<8x128xbf16>
    tpu.vector_store %arg4[%c0_6, %c0_7], %8 {strides = array<i32>} : memref<8x128xbf16, #tpu.memory_space<vmem>>, vector<8x128xbf16>,
    return
  }
  func.func @transform_0(%arg0: i32) -> (i32, i32) {
    %c0_i32 = arith.constant 0 : i32
    %c0_i32_0 = arith.constant 0 : i32
    %c0_i32_1 = arith.constant 0 : i32
    return %c0_i32, %c0_i32_0 : i32, i32
  }
  func.func @transform_1(%arg0: i32) -> (i32, i32) {
    %c0_i32 = arith.constant 0 : i32
    %c0_i32_0 = arith.constant 0 : i32
    return %c0_i32, %arg0 : i32, i32
  }
  func.func @transform_2(%arg0: i32) -> (i32, i32) {
    %c0_i32 = arith.constant 0 : i32
    %c0_i32_0 = arith.constant 0 : i32
    %c0_i32_1 = arith.constant 0 : i32
    return %c0_i32, %c0_i32_0 : i32, i32
  }
  func.func @transform_3(%arg0: i32) -> (i32, i32) {
    %c0_i32 = arith.constant 0 : i32
    %c0_i32_0 = arith.constant 0 : i32
    return %c0_i32, %arg0 : i32, i32
  }
}

module attributes {stable_mosaic.version = 11 : i64} {
  func.func @_gemm_kernel(%arg0: i32, %arg1: memref<16x72xbf16, #tpu.memory_space<vmem>>, %arg2: memref<72x128xbf16, #tpu.memory_space<vmem>>, %arg3: memref<16x1xf32, #tpu.memory_space<vmem>>, %arg4: memref<16x128xbf16, #tpu.memory_space<vmem>>) attributes {dimension_semantics = [#tpu.dimension_semantics<parallel>], iteration_bounds = array<i64: 1>, scalar_prefetch = 0 : i64, scratch_operands = 0 : i64, tpu.core_type = #tpu.core_type<tc>, window_params = [{pipeline_mode = #tpu.pipeline_mode<synchronous>, transform_indices = @transform_0, window_bounds = array<i64: 16, 72>}, {transform_indices = @transform_1, window_bounds = array<i64: 72, 128>}, {pipeline_mode = #tpu.pipeline_mode<synchronous>, transform_indices = @transform_2, window_bounds = array<i64: 16, 1>}, {transform_indices = @transform_3, window_bounds = array<i64: 16, 128>}]} {
    %c0 = arith.constant 0 : index
    %c0_0 = arith.constant 0 : index
    %0 = vector.load %arg1[%c0, %c0_0] : memref<16x72xbf16, #tpu.memory_space<vmem>>, vector<16x72xbf16>
    %c0_1 = arith.constant 0 : index
    %c0_2 = arith.constant 0 : index
    %1 = vector.load %arg2[%c0_1, %c0_2] : memref<72x128xbf16, #tpu.memory_space<vmem>>, vector<72x128xbf16>
    %cst = arith.constant dense<0.000000e+00> : vector<16x128xf32>
    %2 = tpu.matmul %0, %1, %cst {dimension_numbers = #tpu.dot_dimension_numbers<[1], [0], [0], [1], [0, 0, 1, 1], [], []>} : vector<16x72xbf16>, vector<72x128xbf16>, vector<16x128xf32> -> vector<16x128xf32>
    %c0_3 = arith.constant 0 : index
    %c0_4 = arith.constant 0 : index
    %3 = vector.load %arg3[%c0_3, %c0_4] : memref<16x1xf32, #tpu.memory_space<vmem>>, vector<16x1xf32>
    %4 = vector.broadcast %3 : vector<16x1xf32> to vector<16x128xf32>
    %5 = arith.addf %2, %4 : vector<16x128xf32>
    %cst_5 = arith.constant 0.000000e+00 : f32
    %6 = vector.broadcast %cst_5 : f32 to vector<16x128xf32>
    %7 = arith.maximumf %5, %6 : vector<16x128xf32>
    %8 = arith.truncf %7 : vector<16x128xf32> to vector<16x128xbf16>
    %c0_6 = arith.constant 0 : index
    %c0_7 = arith.constant 0 : index
    %9 = vector.load %arg4[%c0_6, %c0_7] : memref<16x128xbf16, #tpu.memory_space<vmem>>, vector<16x128xbf16>
    tpu.vector_store %arg4[%c0_6, %c0_7], %8 {strides = array<i32>} : memref<16x128xbf16, #tpu.memory_space<vmem>>, vector<16x128xbf16>,
    return
  }
  func.func @transform_0(%arg0: i32) -> (i32, i32) {
    %c0_i32 = arith.constant 0 : i32
    %c0_i32_0 = arith.constant 0 : i32
    %c0_i32_1 = arith.constant 0 : i32
    return %c0_i32, %c0_i32_0 : i32, i32
  }
  func.func @transform_1(%arg0: i32) -> (i32, i32) {
    %c0_i32 = arith.constant 0 : i32
    %c0_i32_0 = arith.constant 0 : i32
    return %c0_i32, %arg0 : i32, i32
  }
  func.func @transform_2(%arg0: i32) -> (i32, i32) {
    %c0_i32 = arith.constant 0 : i32
    %c0_i32_0 = arith.constant 0 : i32
    %c0_i32_1 = arith.constant 0 : i32
    return %c0_i32, %c0_i32_0 : i32, i32
  }
  func.func @transform_3(%arg0: i32) -> (i32, i32) {
    %c0_i32 = arith.constant 0 : i32
    %c0_i32_0 = arith.constant 0 : i32
    return %c0_i32, %arg0 : i32, i32
  }
}

module attributes {stable_mosaic.version = 11 : i64} {
  func.func @_gemm_kernel(%arg0: i32, %arg1: memref<4x36xbf16, #tpu.memory_space<vmem>>, %arg2: memref<36x512xbf16, #tpu.memory_space<vmem>>, %arg3: memref<4x1xf32, #tpu.memory_space<vmem>>, %arg4: memref<4x512xbf16, #tpu.memory_space<vmem>>) attributes {dimension_semantics = [#tpu.dimension_semantics<parallel>], iteration_bounds = array<i64: 1>, scalar_prefetch = 0 : i64, scratch_operands = 0 : i64, tpu.core_type = #tpu.core_type<tc>, window_params = [{pipeline_mode = #tpu.pipeline_mode<synchronous>, transform_indices = @transform_0, window_bounds = array<i64: 4, 36>}, {transform_indices = @transform_1, window_bounds = array<i64: 36, 512>}, {pipeline_mode = #tpu.pipeline_mode<synchronous>, transform_indices = @transform_2, window_bounds = array<i64: 4, 1>}, {transform_indices = @transform_3, window_bounds = array<i64: 4, 512>}]} {
    %c0 = arith.constant 0 : index
    %c0_0 = arith.constant 0 : index
    %0 = vector.load %arg1[%c0, %c0_0] : memref<4x36xbf16, #tpu.memory_space<vmem>>, vector<4x36xbf16>
    %c0_1 = arith.constant 0 : index
    %c0_2 = arith.constant 0 : index
    %1 = vector.load %arg2[%c0_1, %c0_2] : memref<36x512xbf16, #tpu.memory_space<vmem>>, vector<36x512xbf16>
    %cst = arith.constant dense<0.000000e+00> : vector<4x512xf32>
    %2 = tpu.matmul %0, %1, %cst {dimension_numbers = #tpu.dot_dimension_numbers<[1], [0], [0], [1], [0, 0, 1, 1], [], []>} : vector<4x36xbf16>, vector<36x512xbf16>, vector<4x512xf32> -> vector<4x512xf32>
    %c0_3 = arith.constant 0 : index
    %c0_4 = arith.constant 0 : index
    %3 = vector.load %arg3[%c0_3, %c0_4] : memref<4x1xf32, #tpu.memory_space<vmem>>, vector<4x1xf32>
    %4 = vector.broadcast %3 : vector<4x1xf32> to vector<4x512xf32>
    %5 = arith.addf %2, %4 : vector<4x512xf32>
    %cst_5 = arith.constant 0.000000e+00 : f32
    %6 = vector.broadcast %cst_5 : f32 to vector<4x512xf32>
    %7 = arith.maximumf %5, %6 : vector<4x512xf32>
    %8 = arith.truncf %7 : vector<4x512xf32> to vector<4x512xbf16>
    %c0_6 = arith.constant 0 : index
    %c0_7 = arith.constant 0 : index
    %9 = vector.load %arg4[%c0_6, %c0_7] : memref<4x512xbf16, #tpu.memory_space<vmem>>, vector<4x512xbf16>
    tpu.vector_store %arg4[%c0_6, %c0_7], %8 {strides = array<i32>} : memref<4x512xbf16, #tpu.memory_space<vmem>>, vector<4x512xbf16>,
    return
  }
  func.func @transform_0(%arg0: i32) -> (i32, i32) {
    %c0_i32 = arith.constant 0 : i32
    %c0_i32_0 = arith.constant 0 : i32
    %c0_i32_1 = arith.constant 0 : i32
    return %c0_i32, %c0_i32_0 : i32, i32
  }
  func.func @transform_1(%arg0: i32) -> (i32, i32) {
    %c0_i32 = arith.constant 0 : i32
    %c0_i32_0 = arith.constant 0 : i32
    return %c0_i32, %arg0 : i32, i32
  }
  func.func @transform_2(%arg0: i32) -> (i32, i32) {
    %c0_i32 = arith.constant 0 : i32
    %c0_i32_0 = arith.constant 0 : i32
    %c0_i32_1 = arith.constant 0 : i32
    return %c0_i32, %c0_i32_0 : i32, i32
  }
  func.func @transform_3(%arg0: i32) -> (i32, i32) {
    %c0_i32 = arith.constant 0 : i32
    %c0_i32_0 = arith.constant 0 : i32
    return %c0_i32, %arg0 : i32, i32
  }
}

module attributes {stable_mosaic.version = 11 : i64} {
  func.func @_gemm_kernel(%arg0: i32, %arg1: memref<8x36xbf16, #tpu.memory_space<vmem>>, %arg2: memref<36x512xbf16, #tpu.memory_space<vmem>>, %arg3: memref<8x1xf32, #tpu.memory_space<vmem>>, %arg4: memref<8x512xbf16, #tpu.memory_space<vmem>>) attributes {dimension_semantics = [#tpu.dimension_semantics<parallel>], iteration_bounds = array<i64: 1>, scalar_prefetch = 0 : i64, scratch_operands = 0 : i64, tpu.core_type = #tpu.core_type<tc>, window_params = [{pipeline_mode = #tpu.pipeline_mode<synchronous>, transform_indices = @transform_0, window_bounds = array<i64: 8, 36>}, {transform_indices = @transform_1, window_bounds = array<i64: 36, 512>}, {pipeline_mode = #tpu.pipeline_mode<synchronous>, transform_indices = @transform_2, window_bounds = array<i64: 8, 1>}, {transform_indices = @transform_3, window_bounds = array<i64: 8, 512>}]} {
    %c0 = arith.constant 0 : index
    %c0_0 = arith.constant 0 : index
    %0 = vector.load %arg1[%c0, %c0_0] : memref<8x36xbf16, #tpu.memory_space<vmem>>, vector<8x36xbf16>
    %c0_1 = arith.constant 0 : index
    %c0_2 = arith.constant 0 : index
    %1 = vector.load %arg2[%c0_1, %c0_2] : memref<36x512xbf16, #tpu.memory_space<vmem>>, vector<36x512xbf16>
    %cst = arith.constant dense<0.000000e+00> : vector<8x512xf32>
    %2 = tpu.matmul %0, %1, %cst {dimension_numbers = #tpu.dot_dimension_numbers<[1], [0], [0], [1], [0, 0, 1, 1], [], []>} : vector<8x36xbf16>, vector<36x512xbf16>, vector<8x512xf32> -> vector<8x512xf32>
    %c0_3 = arith.constant 0 : index
    %c0_4 = arith.constant 0 : index
    %3 = vector.load %arg3[%c0_3, %c0_4] : memref<8x1xf32, #tpu.memory_space<vmem>>, vector<8x1xf32>
    %4 = vector.broadcast %3 : vector<8x1xf32> to vector<8x512xf32>
    %5 = arith.addf %2, %4 : vector<8x512xf32>
    %cst_5 = arith.constant 0.000000e+00 : f32
    %6 = vector.broadcast %cst_5 : f32 to vector<8x512xf32>
    %7 = arith.maximumf %5, %6 : vector<8x512xf32>
    %8 = arith.truncf %7 : vector<8x512xf32> to vector<8x512xbf16>
    %c0_6 = arith.constant 0 : index
    %c0_7 = arith.constant 0 : index
    %9 = vector.load %arg4[%c0_6, %c0_7] : memref<8x512xbf16, #tpu.memory_space<vmem>>, vector<8x512xbf16>
    tpu.vector_store %arg4[%c0_6, %c0_7], %8 {strides = array<i32>} : memref<8x512xbf16, #tpu.memory_space<vmem>>, vector<8x512xbf16>,
    return
  }
  func.func @transform_0(%arg0: i32) -> (i32, i32) {
    %c0_i32 = arith.constant 0 : i32
    %c0_i32_0 = arith.constant 0 : i32
    %c0_i32_1 = arith.constant 0 : i32
    return %c0_i32, %c0_i32_0 : i32, i32
  }
  func.func @transform_1(%arg0: i32) -> (i32, i32) {
    %c0_i32 = arith.constant 0 : i32
    %c0_i32_0 = arith.constant 0 : i32
    return %c0_i32, %arg0 : i32, i32
  }
  func.func @transform_2(%arg0: i32) -> (i32, i32) {
    %c0_i32 = arith.constant 0 : i32
    %c0_i32_0 = arith.constant 0 : i32
    %c0_i32_1 = arith.constant 0 : i32
    return %c0_i32, %c0_i32_0 : i32, i32
  }
  func.func @transform_3(%arg0: i32) -> (i32, i32) {
    %c0_i32 = arith.constant 0 : i32
    %c0_i32_0 = arith.constant 0 : i32
    return %c0_i32, %arg0 : i32, i32
  }
}

module attributes {stable_mosaic.version = 11 : i64} {
  func.func @_gemm_kernel(%arg0: i32, %arg1: memref<2x18xbf16, #tpu.memory_space<vmem>>, %arg2: memref<18x2048xbf16, #tpu.memory_space<vmem>>, %arg3: memref<2x1xf32, #tpu.memory_space<vmem>>, %arg4: memref<2x2048xbf16, #tpu.memory_space<vmem>>) attributes {dimension_semantics = [#tpu.dimension_semantics<parallel>], iteration_bounds = array<i64: 1>, scalar_prefetch = 0 : i64, scratch_operands = 0 : i64, tpu.core_type = #tpu.core_type<tc>, window_params = [{pipeline_mode = #tpu.pipeline_mode<synchronous>, transform_indices = @transform_0, window_bounds = array<i64: 2, 18>}, {transform_indices = @transform_1, window_bounds = array<i64: 18, 2048>}, {pipeline_mode = #tpu.pipeline_mode<synchronous>, transform_indices = @transform_2, window_bounds = array<i64: 2, 1>}, {transform_indices = @transform_3, window_bounds = array<i64: 2, 2048>}]} {
    %c0 = arith.constant 0 : index
    %c0_0 = arith.constant 0 : index
    %0 = vector.load %arg1[%c0, %c0_0] : memref<2x18xbf16, #tpu.memory_space<vmem>>, vector<2x18xbf16>
    %c0_1 = arith.constant 0 : index
    %c0_2 = arith.constant 0 : index
    %1 = vector.load %arg2[%c0_1, %c0_2] : memref<18x2048xbf16, #tpu.memory_space<vmem>>, vector<18x2048xbf16>
    %cst = arith.constant dense<0.000000e+00> : vector<2x2048xf32>
    %2 = tpu.matmul %0, %1, %cst {dimension_numbers = #tpu.dot_dimension_numbers<[1], [0], [0], [1], [0, 0, 1, 1], [], []>} : vector<2x18xbf16>, vector<18x2048xbf16>, vector<2x2048xf32> -> vector<2x2048xf32>
    %c0_3 = arith.constant 0 : index
    %c0_4 = arith.constant 0 : index
    %3 = vector.load %arg3[%c0_3, %c0_4] : memref<2x1xf32, #tpu.memory_space<vmem>>, vector<2x1xf32>
    %4 = vector.broadcast %3 : vector<2x1xf32> to vector<2x2048xf32>
    %5 = arith.addf %2, %4 : vector<2x2048xf32>
    %cst_5 = arith.constant 0.000000e+00 : f32
    %6 = vector.broadcast %cst_5 : f32 to vector<2x2048xf32>
    %7 = arith.maximumf %5, %6 : vector<2x2048xf32>
    %8 = arith.truncf %7 : vector<2x2048xf32> to vector<2x2048xbf16>
    %c0_6 = arith.constant 0 : index
    %c0_7 = arith.constant 0 : index
    %9 = vector.load %arg4[%c0_6, %c0_7] : memref<2x2048xbf16, #tpu.memory_space<vmem>>, vector<2x2048xbf16>
    tpu.vector_store %arg4[%c0_6, %c0_7], %8 {strides = array<i32>} : memref<2x2048xbf16, #tpu.memory_space<vmem>>, vector<2x2048xbf16>,
    return
  }
  func.func @transform_0(%arg0: i32) -> (i32, i32) {
    %c0_i32 = arith.constant 0 : i32
    %c0_i32_0 = arith.constant 0 : i32
    %c0_i32_1 = arith.constant 0 : i32
    return %c0_i32, %c0_i32_0 : i32, i32
  }
  func.func @transform_1(%arg0: i32) -> (i32, i32) {
    %c0_i32 = arith.constant 0 : i32
    %c0_i32_0 = arith.constant 0 : i32
    return %c0_i32, %arg0 : i32, i32
  }
  func.func @transform_2(%arg0: i32) -> (i32, i32) {
    %c0_i32 = arith.constant 0 : i32
    %c0_i32_0 = arith.constant 0 : i32
    %c0_i32_1 = arith.constant 0 : i32
    return %c0_i32, %c0_i32_0 : i32, i32
  }
  func.func @transform_3(%arg0: i32) -> (i32, i32) {
    %c0_i32 = arith.constant 0 : i32
    %c0_i32_0 = arith.constant 0 : i32
    return %c0_i32, %arg0 : i32, i32
  }
}

module attributes {stable_mosaic.version = 11 : i64} {
  func.func @_gemm_kernel(%arg0: i32, %arg1: memref<4x18xbf16, #tpu.memory_space<vmem>>, %arg2: memref<18x2048xbf16, #tpu.memory_space<vmem>>, %arg3: memref<4x1xf32, #tpu.memory_space<vmem>>, %arg4: memref<4x2048xbf16, #tpu.memory_space<vmem>>) attributes {dimension_semantics = [#tpu.dimension_semantics<parallel>], iteration_bounds = array<i64: 1>, scalar_prefetch = 0 : i64, scratch_operands = 0 : i64, tpu.core_type = #tpu.core_type<tc>, window_params = [{pipeline_mode = #tpu.pipeline_mode<synchronous>, transform_indices = @transform_0, window_bounds = array<i64: 4, 18>}, {transform_indices = @transform_1, window_bounds = array<i64: 18, 2048>}, {pipeline_mode = #tpu.pipeline_mode<synchronous>, transform_indices = @transform_2, window_bounds = array<i64: 4, 1>}, {transform_indices = @transform_3, window_bounds = array<i64: 4, 2048>}]} {
    %c0 = arith.constant 0 : index
    %c0_0 = arith.constant 0 : index
    %0 = vector.load %arg1[%c0, %c0_0] : memref<4x18xbf16, #tpu.memory_space<vmem>>, vector<4x18xbf16>
    %c0_1 = arith.constant 0 : index
    %c0_2 = arith.constant 0 : index
    %1 = vector.load %arg2[%c0_1, %c0_2] : memref<18x2048xbf16, #tpu.memory_space<vmem>>, vector<18x2048xbf16>
    %cst = arith.constant dense<0.000000e+00> : vector<4x2048xf32>
    %2 = tpu.matmul %0, %1, %cst {dimension_numbers = #tpu.dot_dimension_numbers<[1], [0], [0], [1], [0, 0, 1, 1], [], []>} : vector<4x18xbf16>, vector<18x2048xbf16>, vector<4x2048xf32> -> vector<4x2048xf32>
    %c0_3 = arith.constant 0 : index
    %c0_4 = arith.constant 0 : index
    %3 = vector.load %arg3[%c0_3, %c0_4] : memref<4x1xf32, #tpu.memory_space<vmem>>, vector<4x1xf32>
    %4 = vector.broadcast %3 : vector<4x1xf32> to vector<4x2048xf32>
    %5 = arith.addf %2, %4 : vector<4x2048xf32>
    %cst_5 = arith.constant 0.000000e+00 : f32
    %6 = vector.broadcast %cst_5 : f32 to vector<4x2048xf32>
    %7 = arith.maximumf %5, %6 : vector<4x2048xf32>
    %8 = arith.truncf %7 : vector<4x2048xf32> to vector<4x2048xbf16>
    %c0_6 = arith.constant 0 : index
    %c0_7 = arith.constant 0 : index
    %9 = vector.load %arg4[%c0_6, %c0_7] : memref<4x2048xbf16, #tpu.memory_space<vmem>>, vector<4x2048xbf16>
    tpu.vector_store %arg4[%c0_6, %c0_7], %8 {strides = array<i32>} : memref<4x2048xbf16, #tpu.memory_space<vmem>>, vector<4x2048xbf16>,
    return
  }
  func.func @transform_0(%arg0: i32) -> (i32, i32) {
    %c0_i32 = arith.constant 0 : i32
    %c0_i32_0 = arith.constant 0 : i32
    %c0_i32_1 = arith.constant 0 : i32
    return %c0_i32, %c0_i32_0 : i32, i32
  }
  func.func @transform_1(%arg0: i32) -> (i32, i32) {
    %c0_i32 = arith.constant 0 : i32
    %c0_i32_0 = arith.constant 0 : i32
    return %c0_i32, %arg0 : i32, i32
  }
  func.func @transform_2(%arg0: i32) -> (i32, i32) {
    %c0_i32 = arith.constant 0 : i32
    %c0_i32_0 = arith.constant 0 : i32
    %c0_i32_1 = arith.constant 0 : i32
    return %c0_i32, %c0_i32_0 : i32, i32
  }
  func.func @transform_3(%arg0: i32) -> (i32, i32) {
    %c0_i32 = arith.constant 0 : i32
    %c0_i32_0 = arith.constant 0 : i32
    return %c0_i32, %arg0 : i32, i32
  }
}

module attributes {stable_mosaic.version = 11 : i64} {
  func.func @_gemm_kernel(%arg0: i32, %arg1: memref<1x9xbf16, #tpu.memory_space<vmem>>, %arg2: memref<9x4096xbf16, #tpu.memory_space<vmem>>, %arg3: memref<1x1xf32, #tpu.memory_space<vmem>>, %arg4: memref<1x4096xbf16, #tpu.memory_space<vmem>>) attributes {dimension_semantics = [#tpu.dimension_semantics<parallel>], iteration_bounds = array<i64: 2>, scalar_prefetch = 0 : i64, scratch_operands = 0 : i64, tpu.core_type = #tpu.core_type<tc>, window_params = [{pipeline_mode = #tpu.pipeline_mode<synchronous>, transform_indices = @transform_0, window_bounds = array<i64: 1, 9>}, {transform_indices = @transform_1, window_bounds = array<i64: 9, 4096>}, {pipeline_mode = #tpu.pipeline_mode<synchronous>, transform_indices = @transform_2, window_bounds = array<i64: 1, 1>}, {transform_indices = @transform_3, window_bounds = array<i64: 1, 4096>}]} {
    %c0 = arith.constant 0 : index
    %c0_0 = arith.constant 0 : index
    %0 = vector.load %arg1[%c0, %c0_0] : memref<1x9xbf16, #tpu.memory_space<vmem>>, vector<1x9xbf16>
    %c0_1 = arith.constant 0 : index
    %c0_2 = arith.constant 0 : index
    %1 = vector.load %arg2[%c0_1, %c0_2] : memref<9x4096xbf16, #tpu.memory_space<vmem>>, vector<9x4096xbf16>
    %cst = arith.constant dense<0.000000e+00> : vector<1x4096xf32>
    %2 = tpu.matmul %0, %1, %cst {dimension_numbers = #tpu.dot_dimension_numbers<[1], [0], [0], [1], [0, 0, 1, 1], [], []>} : vector<1x9xbf16>, vector<9x4096xbf16>, vector<1x4096xf32> -> vector<1x4096xf32>
    %c0_3 = arith.constant 0 : index
    %c0_4 = arith.constant 0 : index
    %3 = vector.load %arg3[%c0_3, %c0_4] : memref<1x1xf32, #tpu.memory_space<vmem>>, vector<1x1xf32>
    %4 = vector.broadcast %3 : vector<1x1xf32> to vector<1x4096xf32>
    %5 = arith.addf %2, %4 : vector<1x4096xf32>
    %cst_5 = arith.constant 0.000000e+00 : f32
    %6 = vector.broadcast %cst_5 : f32 to vector<1x4096xf32>
    %7 = arith.maximumf %5, %6 : vector<1x4096xf32>
    %8 = arith.truncf %7 : vector<1x4096xf32> to vector<1x4096xbf16>
    %c0_6 = arith.constant 0 : index
    %c0_7 = arith.constant 0 : index
    %9 = vector.load %arg4[%c0_6, %c0_7] : memref<1x4096xbf16, #tpu.memory_space<vmem>>, vector<1x4096xbf16>
    tpu.vector_store %arg4[%c0_6, %c0_7], %8 {strides = array<i32>} : memref<1x4096xbf16, #tpu.memory_space<vmem>>, vector<1x4096xbf16>,
    return
  }
  func.func @transform_0(%arg0: i32) -> (i32, i32) {
    %c0_i32 = arith.constant 0 : i32
    %c0_i32_0 = arith.constant 0 : i32
    %c0_i32_1 = arith.constant 0 : i32
    return %c0_i32, %c0_i32_0 : i32, i32
  }
  func.func @transform_1(%arg0: i32) -> (i32, i32) {
    %c0_i32 = arith.constant 0 : i32
    %c0_i32_0 = arith.constant 0 : i32
    return %c0_i32, %arg0 : i32, i32
  }
  func.func @transform_2(%arg0: i32) -> (i32, i32) {
    %c0_i32 = arith.constant 0 : i32
    %c0_i32_0 = arith.constant 0 : i32
    %c0_i32_1 = arith.constant 0 : i32
    return %c0_i32, %c0_i32_0 : i32, i32
  }
  func.func @transform_3(%arg0: i32) -> (i32, i32) {
    %c0_i32 = arith.constant 0 : i32
    %c0_i32_0 = arith.constant 0 : i32
    return %c0_i32, %arg0 : i32, i32
  }
}

</mosaic_0001>

<bundles_post_ra>
// kernel: _forward.25
= control target key start
LH: loop header
LB: loop body
LE: loop exit
PB: predicated region body
PF: predicated region fallthrough
CT: control target
= control target key end

     0   :  { %v623_v3 = vmov 0   ;;  %vm118_vm0 = vcmask 130048   ;;  %v624_v36 = vmov 1966171168   ;;  %v489_v38 = vlaneseq  ;;  %s740_s1 = inlined_call_operand.vmem [shape: bf16[16,2048], index: 1, kind: input, shape index: {}]   ;;  %s741_s0 = inlined_call_operand.vmem [shape: bf16[2,16], index: 0, kind: input, shape index: {}]   ;;  %s742_s2 = inlined_call_operand.vmem [shape: f32[2,1], index: 2, kind: input, shape index: {}]   ;;  %s743_s3 = inlined_call_operand.vmem [shape: bf16[2,2048], index: 3, kind: output, shape index: {}]  }
   0x1   :  { %v16_v0 = vld [vmem:[%s740_s1] sm:$0xff]  ;;  %v17_v2 = vld [vmem:[%s740_s1 + $0x8] sm:$0xff]  ;;  %154 = vmatprep.mubr.bf16.mxu0 %v623_v3  ;;  %195 = vmatprep.mubr.bf16.mxu1 %v623_v3  ;;  %v18_v7 = vld [vmem:[%s740_s1 + $0x10] sm:$0xff]  ;;  %v487_v37 = vunpack.c.l.s4 %v624_v36 }
   0x2   :  { %v24_v1 = vld [vmem:[%s740_s1 + $0x40] sm:$0xff]  ;;  %v25_v5 = vld [vmem:[%s740_s1 + $0x48] sm:$0xff]  ;;  %622 = vset.pattern.permute.xlu0 %v623_v3  ;;  %v26_v10 = vld [vmem:[%s740_s1 + $0x50] sm:$0xff]  ;;  %v490_v45 = vshrl.u32 %v489_v38, 7 }
   0x3   :  { %v589_v4 = vcombine.high %v16_v0, %v24_v1  ;;  %v588_v6 = vcombine.low %v16_v0, %v24_v1  ;;  %v591_v8 = vcombine.high %v17_v2, %v25_v5  ;;  %v590_v9 = vcombine.low %v17_v2, %v25_v5  ;;  %v19_v11 = vld [vmem:[%s740_s1 + $0x18] sm:$0xff]  ;;  %v20_v15 = vld [vmem:[%s740_s1 + $0x20] sm:$0xff]  ;;  %v21_v19 = vld [vmem:[%s740_s1 + $0x28] sm:$0xff] }
   0x4   :  { %v27_v12 = vld [vmem:[%s740_s1 + $0x58] sm:$0xff]  ;;  %v593_v13 = vcombine.high %v18_v7, %v26_v10  ;;  %v28_v16 = vld [vmem:[%s740_s1 + $0x60] sm:$0xff]  ;;  %v592_v18 = vcombine.low %v18_v7, %v26_v10  ;;  %v29_v20 = vld [vmem:[%s740_s1 + $0x68] sm:$0xff]  ;;  %v488_v44 = vunpack.c.0.s8 %v487_v37 }
   0x5   :  { %136 = vmatprep.subr.bf16.mxu0 %v589_v4  ;;  %v595_v14 = vcombine.high %v19_v11, %v27_v12  ;;  %177 = vmatprep.subr.bf16.mxu1 %v591_v8  ;;  %v15_v17 = vld [vmem:[%s741_s0] sm:$0x1]  ;;  %v594_v21 = vcombine.low %v19_v11, %v27_v12  ;;  %v597_v23 = vcombine.high %v20_v15, %v28_v16  ;;  %v22_v25 = vld [vmem:[%s740_s1 + $0x30] sm:$0xff]  ;;  %v23_v28 = vld [vmem:[%s740_s1 + $0x38] sm:$0xff] }
   0x6   :  { %137 = vmatpush1.bf16.msra.mxu0 %v588_v6  ;;  %178 = vmatpush1.bf16.msra.mxu1 %v590_v9  ;;  %v32_v22 = vld [vmem:[%s742_s2] sm:$0x3]  ;;  %v599_v24 = vcombine.high %v21_v19, %v29_v20  ;;  %v30_v26 = vld [vmem:[%s740_s1 + $0x70] sm:$0xff]  ;;  %v596_v27 = vcombine.low %v20_v15, %v28_v16  ;;  %v31_v29 = vld [vmem:[%s740_s1 + $0x78] sm:$0xff]  ;;  %v598_v30 = vcombine.low %v21_v19, %v29_v20 }
   0x7   :  { %218 = vmatprep.subr.bf16.mxu0 %v593_v13  ;;  %259 = vmatprep.subr.bf16.mxu1 %v595_v14  ;;  %v601_v31 = vcombine.high %v22_v25, %v30_v26  ;;  %v603_v32 = vcombine.high %v23_v28, %v31_v29  ;;  %v600_v33 = vcombine.low %v22_v25, %v30_v26 }
   0x8   :  { %35 = vperm.xlu0 %622, %v32_v22   ;;  %v602_v34 = vcombine.low %v23_v28, %v31_v29  ;;  %v491_v54 = vsub.s32 %v488_v44, %v490_v45 }
   0x9   :  { %604 = vmatmul.mubr.msk.bf16.vlgmr.msra.gmra.mxu0 %vm118_vm0, %v15_v17  ;;  %605 = vmatmul.mubr.msk.bf16.vlgmr.msra.gmra.mxu1 %vm118_vm0, %v15_v17 }
   0xa   :  { %219 = vmatpush1.bf16.msra.mxu0 %v592_v18  ;;  %260 = vmatpush1.bf16.msra.mxu1 %v594_v21 }
   0xb   :  { %236 = vmatprep.mubr.bf16.mxu0 %v623_v3  ;;  %277 = vmatprep.mubr.bf16.mxu1 %v623_v3 }
   0xc   :  { %300 = vmatprep.subr.bf16.mxu0 %v597_v23  ;;  %341 = vmatprep.subr.bf16.mxu1 %v599_v24 }
  0x11   :  { %606 = vmatmul.mubr.msk.bf16.vlgmr.msra.gmra.mxu0 %vm118_vm0, %v15_v17  ;;  %607 = vmatmul.mubr.msk.bf16.vlgmr.msra.gmra.mxu1 %vm118_vm0, %v15_v17 }
  0x12   :  { %301 = vmatpush1.bf16.msra.mxu0 %v596_v27  ;;  %342 = vmatpush1.bf16.msra.mxu1 %v598_v30 }
  0x13   :  { %318 = vmatprep.mubr.bf16.mxu0 %v623_v3  ;;  %359 = vmatprep.mubr.bf16.mxu1 %v623_v3 }
  0x14   :  { %382 = vmatprep.subr.bf16.mxu0 %v601_v31  ;;  %423 = vmatprep.subr.bf16.mxu1 %v603_v32 }
  0x19   :  { %608 = vmatmul.mubr.msk.bf16.vlgmr.msra.gmra.mxu0 %vm118_vm0, %v15_v17  ;;  %609 = vmatmul.mubr.msk.bf16.vlgmr.msra.gmra.mxu1 %vm118_vm0, %v15_v17 }
  0x1a   :  { %383 = vmatpush1.bf16.msra.mxu0 %v600_v33  ;;  %424 = vmatpush1.bf16.msra.mxu1 %v602_v34 }
  0x1b   :  { %400 = vmatprep.mubr.bf16.mxu0 %v623_v3  ;;  %441 = vmatprep.mubr.bf16.mxu1 %v623_v3 }
  0x21   :  { %610 = vmatmul.mubr.msk.bf16.vlgmr.msra.gmra.mxu0 %vm118_vm0, %v15_v17  ;;  %611 = vmatmul.mubr.msk.bf16.vlgmr.msra.gmra.mxu1 %vm118_vm0, %v15_v17 }
  0x83   :  { %v716_v41 = vpop.permute.xlu0 %35 }
  0xc9   :  { %v156_v35 = vpop.f32.mrf.mxu0  ;;  %v197_v39 = vpop.f32.mrf.mxu1 }
  0xca   :  { %v157_v49 = vadd.f32 %v156_v35, %v716_v41  ;;  %v198_v50 = vadd.f32 %v197_v39, %v716_v41 }
  0xcb   :  { %v158_v40 = vpop.f32.mrf.mxu0  ;;  %v199_v42 = vpop.f32.mrf.mxu1 }
  0xcc   :  { %v159_v43 = vadd.f32 %v158_v40, %v716_v41  ;;  %v200_v46 = vadd.f32 %v199_v42, %v716_v41 }
  0xcd   :  { %v160_v47 = vpop.f32.mrf.mxu0  ;;  %v201_v48 = vpop.f32.mrf.mxu1 }
  0xce   :  { %v612_v53 = vpack.c.bf16 %v159_v43, %v157_v49  ;;  %v613_v55 = vpack.c.bf16 %v200_v46, %v198_v50 }
  0xcf   :  { %v161_v51 = vpop.f32.mrf.mxu0  ;;  %v202_v52 = vpop.f32.mrf.mxu1 }
  0xd0   :  { %v492_v62 = vrot.slane %v612_v53, %v491_v54  ;;  %v499_v63 = vrot.slane %v613_v55, %v491_v54 }
  0xd1   :  { %v238_v56 = vpop.f32.mrf.mxu0  ;;  %v279_v57 = vpop.f32.mrf.mxu1 }
  0xd2   :  { %v239_v59 = vadd.f32 %v238_v56, %v716_v41  ;;  %v280_v0 = vadd.f32 %v279_v57, %v716_v41  ;;  %v514_v9 = vcombine.low %v492_v62, %v499_v63 }
  0xd3   :  { %v240_v58 = vpop.f32.mrf.mxu0  ;;  %v281_v61 = vpop.f32.mrf.mxu1 }
  0xd4   :  { %v241_v60 = vadd.f32 %v240_v58, %v716_v41  ;;  %v282_v1 = vadd.f32 %v281_v61, %v716_v41  ;;  %v522_v16 = vrot.slane %v514_v9, %v491_v54 }
  0xd5   :  { %v242_v2 = vpop.f32.mrf.mxu0  ;;  %v283_v4 = vpop.f32.mrf.mxu1 }
  0xd6   :  { %v614_v3 = vpack.c.bf16 %v241_v60, %v239_v59  ;;  %v615_v5 = vpack.c.bf16 %v282_v1, %v280_v0 }
  0xd7   :  { %v243_v6 = vpop.f32.mrf.mxu0  ;;  %v284_v8 = vpop.f32.mrf.mxu1 }
  0xd8   :  { %v506_v7 = vrot.slane %v614_v3, %v491_v54  ;;  %v513_v10 = vrot.slane %v615_v5, %v491_v54 }
  0xd9   :  { %v320_v11 = vpop.f32.mrf.mxu0  ;;  %v361_v12 = vpop.f32.mrf.mxu1 }
  0xda   :  { %v515_v13 = vcombine.low %v506_v7, %v513_v10  ;;  %v321_v23 = vadd.f32 %v320_v11, %v716_v41  ;;  %v362_v24 = vadd.f32 %v361_v12, %v716_v41 }
  0xdb   :  { %v322_v14 = vpop.f32.mrf.mxu0  ;;  %v363_v15 = vpop.f32.mrf.mxu1 }
  0xdc   :  { %v529_v17 = vrot.slane %v515_v13, %v491_v54  ;;  %v323_v18 = vadd.f32 %v322_v14, %v716_v41  ;;  %v364_v19 = vadd.f32 %v363_v15, %v716_v41 }
  0xdd   :  { %v324_v20 = vpop.f32.mrf.mxu0  ;;  %v365_v21 = vpop.f32.mrf.mxu1 }
  0xde   :  { %v530_v22 = vcombine.low %v522_v16, %v529_v17  ;;  %v616_v27 = vpack.c.bf16 %v323_v18, %v321_v23  ;;  %v617_v28 = vpack.c.bf16 %v364_v19, %v362_v24 }
  0xdf   :  { %v325_v25 = vpop.f32.mrf.mxu0  ;;  %v366_v26 = vpop.f32.mrf.mxu1 }
  0xe0   :  { %582 = vst [vmem:[%s743_s3] sm:$0xff] %v530_v22  ;;  %v541_v35 = vrot.slane %v616_v27, %v491_v54  ;;  %v548_v36 = vrot.slane %v617_v28, %v491_v54 }
  0xe1   :  { %v402_v29 = vpop.f32.mrf.mxu0  ;;  %v443_v30 = vpop.f32.mrf.mxu1 }
  0xe2   :  { %v403_v32 = vadd.f32 %v402_v29, %v716_v41  ;;  %v444_v37 = vadd.f32 %v443_v30, %v716_v41  ;;  %v563_v47 = vcombine.low %v541_v35, %v548_v36 }
  0xe3   :  { %v404_v31 = vpop.f32.mrf.mxu0  ;;  %v445_v34 = vpop.f32.mrf.mxu1 }
  0xe4   :  { %v405_v33 = vadd.f32 %v404_v31, %v716_v41  ;;  %v446_v38 = vadd.f32 %v445_v34, %v716_v41  ;;  %v571_v50 = vrot.slane %v563_v47, %v491_v54 }
  0xe5   :  { %v406_v39 = vpop.f32.mrf.mxu0  ;;  %v447_v42 = vpop.f32.mrf.mxu1 }
  0xe6   :  { %v618_v40 = vpack.c.bf16 %v405_v33, %v403_v32  ;;  %v619_v43 = vpack.c.bf16 %v446_v38, %v444_v37 }
  0xe7   :  { %v407_v44 = vpop.f32.mrf.mxu0  ;;  %v448_v46 = vpop.f32.mrf.mxu1 }
  0xe8   :  { %v555_v45 = vrot.slane %v618_v40, %v491_v54  ;;  %v562_v48 = vrot.slane %v619_v43, %v491_v54 }
  0xea   :  { %v564_v49 = vcombine.low %v555_v45, %v562_v48 }
  0xec   :  { %v578_v51 = vrot.slane %v564_v49, %v491_v54 }
  0xee   :  { %v579_v52 = vcombine.low %v571_v50, %v578_v51 }
  0xf0   :  { %583 = vst [vmem:[%s743_s3 + $0x8] sm:$0xff] %v579_v52 }

// kernel: _forward.26
= control target key start
LH: loop header
LB: loop body
LE: loop exit
PB: predicated region body
PF: predicated region fallthrough
CT: control target
= control target key end

     0   :  { %vm173_vm0 = vcmask 1040384   ;;  %v890_v3 = vmov 0   ;;  %vm169_vm1 = vcmask 146432   ;;  %s1093_s1 = inlined_call_operand.vmem [shape: bf16[18,2048], index: 1, kind: input, shape index: {}]   ;;  %s1094_s0 = inlined_call_operand.vmem [shape: bf16[2,18], index: 0, kind: input, shape index: {}]   ;;  %s1095_s2 = inlined_call_operand.vmem [shape: f32[2,1], index: 2, kind: input, shape index: {}]   ;;  %s1096_s3 = inlined_call_operand.vmem [shape: bf16[2,2048], index: 3, kind: input, shape index: {}]   ;;  %s1097_s4 = inlined_call_operand.vmem [shape: bf16[2,2048], index: 4, kind: output, shape index: {}]  }
   0x1   :  { %v35_v0 = vld [vmem:[%s1093_s1 + $0x80] sm:$0x11]  ;;  %v36_v1 = vld [vmem:[%s1093_s1 + $0x88] sm:$0x11]  ;;  %254 = vmatprep.mubr.bf16.mxu0 %v890_v3  ;;  %295 = vmatprep.mubr.bf16.mxu1 %v890_v3  ;;  %v37_v13 = vld [vmem:[%s1093_s1 + $0x90] sm:$0x11] }
   0x2   :  { %v19_v2 = vld [vmem:[%s1093_s1] sm:$0xff]  ;;  %v831_v4 = vcombine.high %v35_v0, %v35_v0  ;;  %v833_v5 = vcombine.high %v36_v1, %v36_v1  ;;  %v830_v6 = vcombine.low %v35_v0, %v35_v0  ;;  %v832_v7 = vcombine.low %v36_v1, %v36_v1  ;;  %v20_v9 = vld [vmem:[%s1093_s1 + $0x8] sm:$0xff]  ;;  %873 = vset.pattern.permute.xlu0 %v890_v3  ;;  %v38_v14 = vld [vmem:[%s1093_s1 + $0x98] sm:$0x11] }
   0x3   :  { %v27_v8 = vld [vmem:[%s1093_s1 + $0x40] sm:$0xff]  ;;  %v28_v10 = vld [vmem:[%s1093_s1 + $0x48] sm:$0xff]  ;;  %v835_v19 = vcombine.high %v37_v13, %v37_v13  ;;  %v837_v20 = vcombine.high %v38_v14, %v38_v14  ;;  %v834_v21 = vcombine.low %v37_v13, %v37_v13  ;;  %v836_v22 = vcombine.low %v38_v14, %v38_v14  ;;  %v21_v23 = vld [vmem:[%s1093_s1 + $0x10] sm:$0xff] }
   0x4   :  { %v815_v11 = vcombine.high %v19_v2, %v27_v8  ;;  %v817_v12 = vcombine.high %v20_v9, %v28_v10  ;;  %846 = vmatprep.subr.msk.bf16.mxu0 %vm173_vm0, %v831_v4  ;;  %848 = vmatprep.subr.msk.bf16.mxu1 %vm173_vm0, %v833_v5  ;;  %v175_v15 = vsel %vm173_vm0, %v830_v6, 0  ;;  %v181_v16 = vsel %vm173_vm0, %v832_v7, 0  ;;  %v29_v24 = vld [vmem:[%s1093_s1 + $0x50] sm:$0xff]  ;;  %v22_v25 = vld [vmem:[%s1093_s1 + $0x18] sm:$0xff]  ;;  %v964_v27 = vld [vmem:[%s1094_s0] sm:$0x1] }
   0x5   :  { %235 = vmatpush1.bf16.msra.mxu0 %v175_v15  ;;  %276 = vmatpush1.bf16.msra.mxu1 %v181_v16  ;;  %v814_v17 = vcombine.low %v19_v2, %v27_v8  ;;  %v816_v18 = vcombine.low %v20_v9, %v28_v10  ;;  %v30_v26 = vld [vmem:[%s1093_s1 + $0x58] sm:$0xff]  ;;  %v43_v28 = vld [vmem:[%s1095_s2] sm:$0x3]  ;;  %v187_v29 = vsel %vm173_vm0, %v834_v21, 0  ;;  %v193_v30 = vsel %vm173_vm0, %v836_v22, 0  ;;  %v24_v43 = vld [vmem:[%s1093_s1 + $0x28] sm:$0xff] }
   0x6   :  { %236 = vmatprep.subr.bf16.mxu0 %v815_v11  ;;  %277 = vmatprep.subr.bf16.mxu1 %v817_v12  ;;  %v819_v31 = vcombine.high %v21_v23, %v29_v24  ;;  %v821_v32 = vcombine.high %v22_v25, %v30_v26  ;;  %v39_v33 = vld [vmem:[%s1093_s1 + $0xa0] sm:$0x11]  ;;  %v40_v34 = vld [vmem:[%s1093_s1 + $0xa8] sm:$0x11]  ;;  %v818_v35 = vcombine.low %v21_v23, %v29_v24  ;;  %v41_v49 = vld [vmem:[%s1093_s1 + $0xb0] sm:$0x11]  ;;  %v564_v6 = vlaneseq }
   0x7   :  { %46 = vperm.xlu0 %873, %v43_v28   ;;  %v820_v36 = vcombine.low %v22_v25, %v30_v26  ;;  %v839_v37 = vcombine.high %v39_v33, %v39_v33  ;;  %v841_v38 = vcombine.high %v40_v34, %v40_v34  ;;  %v838_v39 = vcombine.low %v39_v33, %v39_v33  ;;  %v23_v41 = vld [vmem:[%s1093_s1 + $0x20] sm:$0xff]  ;;  %v32_v44 = vld [vmem:[%s1093_s1 + $0x68] sm:$0xff]  ;;  %v42_v50 = vld [vmem:[%s1093_s1 + $0xb8] sm:$0x11] }
   0x8   :  { %v840_v40 = vcombine.low %v40_v34, %v40_v34  ;;  %v31_v42 = vld [vmem:[%s1093_s1 + $0x60] sm:$0xff]  ;;  %v825_v48 = vcombine.high %v24_v43, %v32_v44  ;;  %v824_v52 = vcombine.low %v24_v43, %v32_v44  ;;  %v843_v53 = vcombine.high %v41_v49, %v41_v49  ;;  %v25_v57 = vld [vmem:[%s1093_s1 + $0x30] sm:$0xff]  ;;  %v26_v59 = vld [vmem:[%s1093_s1 + $0x38] sm:$0xff] }
   0x9   :  { %237 = vmatpush1.bf16.msra.mxu0 %v814_v17  ;;  %278 = vmatpush1.bf16.msra.mxu1 %v816_v18  ;;  %v199_v45 = vsel %vm173_vm0, %v838_v39, 0  ;;  %v823_v47 = vcombine.high %v23_v41, %v31_v42  ;;  %v822_v51 = vcombine.low %v23_v41, %v31_v42  ;;  %v845_v54 = vcombine.high %v42_v50, %v42_v50  ;;  %v33_v58 = vld [vmem:[%s1093_s1 + $0x70] sm:$0xff]  ;;  %v34_v60 = vld [vmem:[%s1093_s1 + $0x78] sm:$0xff]  ;;  %v550_v7 = vld [vmem:[%s1096_s3] sm:$0xff] }
   0xa   :  { %850 = vmatprep.subr.msk.bf16.mxu0 %vm173_vm0, %v835_v19  ;;  %852 = vmatprep.subr.msk.bf16.mxu1 %vm173_vm0, %v837_v20  ;;  %v205_v46 = vsel %vm173_vm0, %v840_v40, 0  ;;  %v842_v55 = vcombine.low %v41_v49, %v41_v49  ;;  %v844_v56 = vcombine.low %v42_v50, %v42_v50  ;;  %v827_v63 = vcombine.high %v25_v57, %v33_v58  ;;  %v551_v22 = vld [vmem:[%s1096_s3 + $0x8] sm:$0xff] }
   0xb   :  { %v829_v0 = vcombine.high %v26_v59, %v34_v60  ;;  %v826_v1 = vcombine.low %v25_v57, %v33_v58  ;;  %v828_v2 = vcombine.low %v26_v59, %v34_v60  ;;  %v891_v4 = vmov 1983009808  }
   0xc   :  { %847 = vmatmul.mubr.msk.bf16.vlgmr.msra.gmra.mxu0 %vm169_vm1, %v964_v27  ;;  %849 = vmatmul.mubr.msk.bf16.vlgmr.msra.gmra.mxu1 %vm169_vm1, %v964_v27  ;;  %v211_v61 = vsel %vm173_vm0, %v842_v55, 0  ;;  %v217_v62 = vsel %vm173_vm0, %v844_v56, 0  ;;  %v562_v5 = vunpack.c.l.s4 %v891_v4  ;;  %v552_v8 = vunpack.c.l.bf16 %v550_v7 }
   0xd   :  { %317 = vmatpush1.bf16.msra.mxu0 %v187_v29  ;;  %358 = vmatpush1.bf16.msra.mxu1 %v193_v30  ;;  %v565_v10 = vshrl.u32 %v564_v6, 7  ;;  %v553_v15 = vunpack.c.h.bf16 %v550_v7  ;;  %v555_v7 = vunpack.c.h.bf16 %v551_v22 }
   0xe   :  { %318 = vmatprep.subr.bf16.mxu0 %v819_v31  ;;  %359 = vmatprep.subr.bf16.mxu1 %v821_v32  ;;  %v563_v9 = vunpack.c.0.s8 %v562_v5  ;;  %v554_v32 = vunpack.c.l.bf16 %v551_v22 }
   0xf   :  { %336 = vmatprep.mubr.bf16.mxu0 %v890_v3  ;;  %377 = vmatprep.mubr.bf16.mxu1 %v890_v3  ;;  %v577_v25 = vcombine.high %v553_v15, %v553_v15 }
  0x10   :  { %v1042_v11 = vsub.s32 %v563_v9, %v565_v10 }
  0x11   :  { %319 = vmatpush1.bf16.msra.mxu0 %v818_v35  ;;  %360 = vmatpush1.bf16.msra.mxu1 %v820_v36 }
  0x12   :  { %854 = vmatprep.subr.msk.bf16.mxu0 %vm173_vm0, %v839_v37  ;;  %856 = vmatprep.subr.msk.bf16.mxu1 %vm173_vm0, %v841_v38  ;;  %v567_v12 = vrot.slane %v552_v8, %v1042_v11  ;;  %v584_v39 = vrot.slane %v553_v15, %v1042_v11  ;;  %v591_v40 = vrot.slane %v577_v25, %v1042_v11 }
  0x13   :  { %v611_v25 = vcombine.high %v555_v7, %v555_v7 }
  0x14   :  { %851 = vmatmul.mubr.msk.bf16.vlgmr.msra.gmra.mxu0 %vm169_vm1, %v964_v27  ;;  %853 = vmatmul.mubr.msk.bf16.vlgmr.msra.gmra.mxu1 %vm169_vm1, %v964_v27  ;;  %v575_v19 = vcombine.high %v567_v12, %v567_v12 }
  0x15   :  { %399 = vmatpush1.bf16.msra.mxu0 %v199_v45  ;;  %440 = vmatpush1.bf16.msra.mxu1 %v205_v46  ;;  %v594_v46 = vcombine.high %v554_v32, %v554_v32 }
  0x16   :  { %400 = vmatprep.subr.bf16.mxu0 %v823_v47  ;;  %441 = vmatprep.subr.bf16.mxu1 %v825_v48 }
  0x17   :  { %418 = vmatprep.mubr.bf16.mxu0 %v890_v3  ;;  %459 = vmatprep.mubr.bf16.mxu1 %v890_v3 }
  0x19   :  { %401 = vmatpush1.bf16.msra.mxu0 %v822_v51  ;;  %442 = vmatpush1.bf16.msra.mxu1 %v824_v52  ;;  %v592_v52 = vcombine.high %v584_v39, %v584_v39 }
  0x1a   :  { %858 = vmatprep.subr.msk.bf16.mxu0 %vm173_vm0, %v843_v53  ;;  %860 = vmatprep.subr.msk.bf16.mxu1 %vm173_vm0, %v845_v54  ;;  %v593_v54 = vcombine.high %v591_v40, %v591_v40 }
  0x1c   :  { %855 = vmatmul.mubr.msk.bf16.vlgmr.msra.gmra.mxu0 %vm169_vm1, %v964_v27  ;;  %857 = vmatmul.mubr.msk.bf16.vlgmr.msra.gmra.mxu1 %vm169_vm1, %v964_v27 }
  0x1d   :  { %481 = vmatpush1.bf16.msra.mxu0 %v211_v61  ;;  %522 = vmatpush1.bf16.msra.mxu1 %v217_v62 }
  0x1e   :  { %482 = vmatprep.subr.bf16.mxu0 %v827_v63  ;;  %523 = vmatprep.subr.bf16.mxu1 %v829_v0  ;;  %v601_v0 = vrot.slane %v554_v32, %v1042_v11 }
  0x1f   :  { %500 = vmatprep.mubr.bf16.mxu0 %v890_v3  ;;  %541 = vmatprep.mubr.bf16.mxu1 %v890_v3  ;;  %v560_v3 = vcombine.high %v552_v8, %v552_v8 }
  0x21   :  { %483 = vmatpush1.bf16.msra.mxu0 %v826_v1  ;;  %524 = vmatpush1.bf16.msra.mxu1 %v828_v2  ;;  %v574_v13 = vrot.slane %v560_v3, %v1042_v11  ;;  %v608_v1 = vrot.slane %v594_v46, %v1042_v11 }
  0x23   :  { %v576_v21 = vcombine.high %v574_v13, %v574_v13 }
  0x24   :  { %859 = vmatmul.mubr.msk.bf16.vlgmr.msra.gmra.mxu0 %vm169_vm1, %v964_v27  ;;  %861 = vmatmul.mubr.msk.bf16.vlgmr.msra.gmra.mxu1 %vm169_vm1, %v964_v27  ;;  %v892_v27 = vmov 1966171168  }
  0x25   :  { %v713_v28 = vunpack.c.l.s4 %v892_v27 }
  0x27   :  { %v714_v42 = vunpack.c.0.s8 %v713_v28 }
  0x29   :  { %v1059_v56 = vsub.s32 %v714_v42, %v565_v10 }
  0x82   :  { %v1046_v14 = vpop.permute.xlu0 %46 }
  0xcc   :  { %v256_v16 = vpop.f32.mrf.mxu0  ;;  %v297_v17 = vpop.f32.mrf.mxu1 }
  0xcd   :  { %v257_v18 = vadd.f32 %v256_v16, %v1046_v14  ;;  %v298_v20 = vadd.f32 %v297_v17, %v1046_v14 }
  0xce   :  { %v258_v23 = vpop.f32.mrf.mxu0  ;;  %v299_v24 = vpop.f32.mrf.mxu1 }
  0xcf   :  { %v259_v26 = vadd.f32 %v258_v23, %v1046_v14  ;;  %v300_v29 = vadd.f32 %v299_v24, %v1046_v14  ;;  %v644_v33 = vadd.f32 %v567_v12, %v257_v18  ;;  %v646_v35 = vadd.f32 %v574_v13, %v298_v20 }
  0xd0   :  { %v260_v30 = vpop.f32.mrf.mxu0  ;;  %v301_v31 = vpop.f32.mrf.mxu1  ;;  %v610_v20 = vcombine.high %v608_v1, %v608_v1 }
  0xd1   :  { %v645_v34 = vadd.f32 %v575_v19, %v259_v26  ;;  %v647_v36 = vadd.f32 %v576_v21, %v300_v29  ;;  %v660_v47 = vmax.f32 %v644_v33, 0.0  ;;  %v662_v48 = vmax.f32 %v646_v35, 0.0 }
  0xd2   :  { %v261_v37 = vpop.f32.mrf.mxu0  ;;  %v302_v38 = vpop.f32.mrf.mxu1  ;;  %v609_v19 = vcombine.high %v601_v0, %v601_v0 }
  0xd3   :  { %v661_v41 = vmax.f32 %v645_v34, 0.0  ;;  %v663_v43 = vmax.f32 %v647_v36, 0.0 }
  0xd4   :  { %v338_v44 = vpop.f32.mrf.mxu0  ;;  %v379_v45 = vpop.f32.mrf.mxu1 }
  0xd5   :  { %v339_v49 = vadd.f32 %v338_v44, %v1046_v14  ;;  %v380_v50 = vadd.f32 %v379_v45, %v1046_v14  ;;  %v862_v55 = vpack.c.bf16 %v661_v41, %v660_v47  ;;  %v863_v57 = vpack.c.bf16 %v663_v43, %v662_v48 }
  0xd6   :  { %v340_v51 = vpop.f32.mrf.mxu0  ;;  %v381_v53 = vpop.f32.mrf.mxu1  ;;  %v625_v41 = vrot.slane %v611_v25, %v1042_v11 }
  0xd7   :  { %v648_v58 = vadd.f32 %v584_v39, %v339_v49  ;;  %v650_v59 = vadd.f32 %v591_v40, %v380_v50  ;;  %v341_v60 = vadd.f32 %v340_v51, %v1046_v14  ;;  %v382_v61 = vadd.f32 %v381_v53, %v1046_v14 }
  0xd8   :  { %v342_v62 = vpop.f32.mrf.mxu0  ;;  %v383_v63 = vpop.f32.mrf.mxu1  ;;  %v718_v8 = vrot.slane %v862_v55, %v1059_v56  ;;  %v725_v9 = vrot.slane %v863_v57, %v1059_v56  ;;  %v618_v40 = vrot.slane %v555_v7, %v1042_v11  ;;  %v627_v57 = vcombine.high %v625_v41, %v625_v41 }
  0xd9   :  { %v649_v2 = vadd.f32 %v592_v52, %v341_v60  ;;  %v651_v4 = vadd.f32 %v593_v54, %v382_v61  ;;  %v664_v10 = vmax.f32 %v648_v58, 0.0  ;;  %v666_v3 = vmax.f32 %v650_v59, 0.0 }
  0xda   :  { %v343_v5 = vpop.f32.mrf.mxu0  ;;  %v384_v6 = vpop.f32.mrf.mxu1  ;;  %v740_v28 = vcombine.low %v718_v8, %v725_v9  ;;  %v626_v54 = vcombine.high %v618_v40, %v618_v40 }
  0xdb   :  { %v665_v12 = vmax.f32 %v649_v2, 0.0  ;;  %v667_v13 = vmax.f32 %v651_v4, 0.0 }
  0xdc   :  { %v420_v15 = vpop.f32.mrf.mxu0  ;;  %v461_v16 = vpop.f32.mrf.mxu1  ;;  %v748_v44 = vrot.slane %v740_v28, %v1059_v56 }
  0xdd   :  { %v421_v17 = vadd.f32 %v420_v15, %v1046_v14  ;;  %v462_v18 = vadd.f32 %v461_v16, %v1046_v14  ;;  %v864_v21 = vpack.c.bf16 %v665_v12, %v664_v10  ;;  %v865_v23 = vpack.c.bf16 %v667_v13, %v666_v3 }
  0xde   :  { %v422_v24 = vpop.f32.mrf.mxu0  ;;  %v463_v22 = vpop.f32.mrf.mxu1 }
  0xdf   :  { %v423_v26 = vadd.f32 %v422_v24, %v1046_v14  ;;  %v464_v27 = vadd.f32 %v463_v22, %v1046_v14  ;;  %v732_v29 = vrot.slane %v864_v21, %v1059_v56  ;;  %v739_v30 = vrot.slane %v865_v23, %v1059_v56 }
  0xe0   :  { %v424_v31 = vpop.f32.mrf.mxu0  ;;  %v465_v32 = vpop.f32.mrf.mxu1  ;;  %v652_v33 = vadd.f32 %v601_v0, %v421_v17  ;;  %v654_v34 = vadd.f32 %v608_v1, %v462_v18 }
  0xe1   :  { %v653_v35 = vadd.f32 %v609_v19, %v423_v26  ;;  %v655_v36 = vadd.f32 %v610_v20, %v464_v27  ;;  %v741_v37 = vcombine.low %v732_v29, %v739_v30 }
  0xe2   :  { %v425_v38 = vpop.f32.mrf.mxu0  ;;  %v466_v39 = vpop.f32.mrf.mxu1  ;;  %v668_v48 = vmax.f32 %v652_v33, 0.0  ;;  %v670_v49 = vmax.f32 %v654_v34, 0.0 }
  0xe3   :  { %v669_v42 = vmax.f32 %v653_v35, 0.0  ;;  %v671_v43 = vmax.f32 %v655_v36, 0.0  ;;  %v755_v45 = vrot.slane %v741_v37, %v1059_v56 }
  0xe4   :  { %v502_v46 = vpop.f32.mrf.mxu0  ;;  %v543_v47 = vpop.f32.mrf.mxu1 }
  0xe5   :  { %v503_v50 = vadd.f32 %v502_v46, %v1046_v14  ;;  %v544_v51 = vadd.f32 %v543_v47, %v1046_v14  ;;  %v756_v52 = vcombine.low %v748_v44, %v755_v45  ;;  %v866_v11 = vpack.c.bf16 %v669_v42, %v668_v48 }
  0xe6   :  { %v504_v53 = vpop.f32.mrf.mxu0  ;;  %v545_v55 = vpop.f32.mrf.mxu1  ;;  %v867_v58 = vpack.c.bf16 %v671_v43, %v670_v49 }
  0xe7   :  { %808 = vst [vmem:[%s1097_s4] sm:$0xff] %v756_v52  ;;  %v656_v59 = vadd.f32 %v618_v40, %v503_v50  ;;  %v658_v60 = vadd.f32 %v625_v41, %v544_v51  ;;  %v505_v61 = vadd.f32 %v504_v53, %v1046_v14  ;;  %v546_v62 = vadd.f32 %v545_v55, %v1046_v14 }
  0xe8   :  { %v506_v63 = vpop.f32.mrf.mxu0  ;;  %v547_v0 = vpop.f32.mrf.mxu1  ;;  %v767_v6 = vrot.slane %v866_v11, %v1059_v56  ;;  %v774_v7 = vrot.slane %v867_v58, %v1059_v56 }
  0xe9   :  { %v657_v1 = vadd.f32 %v626_v54, %v505_v61  ;;  %v659_v2 = vadd.f32 %v627_v57, %v546_v62  ;;  %v672_v8 = vmax.f32 %v656_v59, 0.0  ;;  %v674_v9 = vmax.f32 %v658_v60, 0.0 }
  0xea   :  { %v507_v4 = vpop.f32.mrf.mxu0  ;;  %v548_v5 = vpop.f32.mrf.mxu1  ;;  %v789_v15 = vcombine.low %v767_v6, %v774_v7 }
  0xeb   :  { %v673_v10 = vmax.f32 %v657_v1, 0.0  ;;  %v675_v3 = vmax.f32 %v659_v2, 0.0 }
  0xec   :  { %v797_v18 = vrot.slane %v789_v15, %v1059_v56 }
  0xed   :  { %v868_v12 = vpack.c.bf16 %v673_v10, %v672_v8  ;;  %v869_v13 = vpack.c.bf16 %v675_v3, %v674_v9 }
  0xef   :  { %v781_v16 = vrot.slane %v868_v12, %v1059_v56  ;;  %v788_v14 = vrot.slane %v869_v13, %v1059_v56 }
  0xf1   :  { %v790_v17 = vcombine.low %v781_v16, %v788_v14 }
  0xf3   :  { %v804_v19 = vrot.slane %v790_v17, %v1059_v56 }
  0xf5   :  { %v805_v20 = vcombine.low %v797_v18, %v804_v19 }
  0xf7   :  { %809 = vst [vmem:[%s1097_s4 + $0x8] sm:$0xff] %v805_v20 }

// kernel: _forward.27
= control target key start
LH: loop header
LB: loop body
LE: loop exit
PB: predicated region body
PF: predicated region fallthrough
CT: control target
= control target key end

     0   :  { %v218_v1 = vmov 0   ;;  %vm70_vm0 = vcmask 261120   ;;  %v219_v11 = vmov 1983009808   ;;  %v173_v13 = vlaneseq  ;;  %s273_s1 = inlined_call_operand.vmem [shape: bf16[32,512], index: 1, kind: input, shape index: {}]   ;;  %s274_s2 = inlined_call_operand.vmem [shape: f32[4,1], index: 2, kind: input, shape index: {}]   ;;  %s275_s0 = inlined_call_operand.vmem [shape: bf16[4,32], index: 0, kind: input, shape index: {}]   ;;  %s276_s3 = inlined_call_operand.vmem [shape: bf16[4,512], index: 3, kind: output, shape index: {}]  }
   0x1   :  { %v206_v0 = vld [vmem:[%s273_s1 + $0x24] ss:$16 sps:$4 sm:$0xff]   ;;  %106 = vmatprep.mubr.bf16.mxu0 %v218_v1  ;;  %147 = vmatprep.mubr.bf16.mxu1 %v218_v1  ;;  %v208_v2 = vld [vmem:[%s273_s1 + $0x2c] ss:$16 sps:$4 sm:$0xff]   ;;  %v210_v3 = vld [vmem:[%s273_s1 + $0x20] ss:$16 sps:$4 sm:$0xff]   ;;  %v171_v12 = vunpack.c.l.s4 %v219_v11 }
   0x2   :  { %205 = vset.pattern.permute.xlu0 %v218_v1  ;;  %86 = vmatprep.subr.bf16.mxu0 %v206_v0  ;;  %v211_v4 = vld [vmem:[%s273_s1 + $0x28] ss:$16 sps:$4 sm:$0xff]   ;;  %v212_v5 = vld [vmem:[%s273_s1 + $0x4] ss:$16 sps:$4 sm:$0xff]   ;;  %v214_v6 = vld [vmem:[%s273_s1 + $0xc] ss:$16 sps:$4 sm:$0xff]  }
   0x3   :  { %127 = vmatprep.subr.bf16.mxu1 %v208_v2  ;;  %87 = vmatpush1.bf16.msra.mxu0 %v210_v3  ;;  %v216_v7 = vld [vmem:[%s273_s1] ss:$16 sps:$4 sm:$0xff]   ;;  %v217_v8 = vld [vmem:[%s273_s1 + $0x8] ss:$16 sps:$4 sm:$0xff]   ;;  %v172_v17 = vunpack.c.0.s8 %v171_v12  ;;  %v174_v18 = vshrl.u32 %v173_v13, 7 }
   0x4   :  { %128 = vmatpush1.bf16.msra.mxu1 %v211_v4  ;;  %88 = vmatprep.subr.bf16.mxu0 %v212_v5  ;;  %v24_v9 = vld [vmem:[%s274_s2] sm:$0xf] }
   0x5   :  { %129 = vmatprep.subr.bf16.mxu1 %v214_v6  ;;  %27 = vperm.xlu0 %205, %v24_v9   ;;  %v15_v10 = vld [vmem:[%s275_s0] sm:$0x3]  ;;  %v175_v25 = vsub.s32 %v172_v17, %v174_v18 }
   0x7   :  { %89 = vmatpush1.bf16.msra.mxu0 %v216_v7 }
   0x8   :  { %130 = vmatpush1.bf16.msra.mxu1 %v217_v8 }
   0xa   :  { %199 = vmatmul.mubr.msk.bf16.vlgmr.msra.gmra.mxu0 %vm70_vm0, %v15_v10 }
   0xb   :  { %200 = vmatmul.mubr.msk.bf16.vlgmr.msra.gmra.mxu1 %vm70_vm0, %v15_v10 }
  0x80   :  { %v28_v14 = vpop.permute.xlu0 %27 }
  0xca   :  { %v108_v15 = vpop.f32.mrf.mxu0 }
  0xcb   :  { %v149_v16 = vpop.f32.mrf.mxu1  ;;  %v109_v19 = vadd.f32 %v108_v15, %v28_v14 }
  0xcc   :  { %v150_v20 = vadd.f32 %v149_v16, %v28_v14  ;;  %v110_v21 = vpop.f32.mrf.mxu0 }
  0xcd   :  { %v151_v22 = vpop.f32.mrf.mxu1  ;;  %v111_v23 = vadd.f32 %v110_v21, %v28_v14  ;;  %v156_v28 = vmax.f32 %v109_v19, 0.0 }
  0xce   :  { %v152_v24 = vadd.f32 %v151_v22, %v28_v14  ;;  %v112_v26 = vpop.f32.mrf.mxu0  ;;  %v158_v29 = vmax.f32 %v150_v20, 0.0 }
  0xcf   :  { %v153_v27 = vpop.f32.mrf.mxu1  ;;  %v157_v30 = vmax.f32 %v111_v23, 0.0 }
  0xd0   :  { %v159_v31 = vmax.f32 %v152_v24, 0.0  ;;  %v113_v32 = vpop.f32.mrf.mxu0 }
  0xd1   :  { %v154_v33 = vpop.f32.mrf.mxu1  ;;  %v201_v34 = vpack.c.bf16 %v157_v30, %v156_v28 }
  0xd2   :  { %v202_v35 = vpack.c.bf16 %v159_v31, %v158_v29 }
  0xd3   :  { %v176_v36 = vrot.slane %v201_v34, %v175_v25 }
  0xd4   :  { %v183_v37 = vrot.slane %v202_v35, %v175_v25 }
  0xd6   :  { %v184_v38 = vcombine.low %v176_v36, %v183_v37 }
  0xd8   :  { %186 = vst [vmem:[%s276_s3] sm:$0xff] %v184_v38 }

// kernel: _forward.28
= control target key start
LH: loop header
LB: loop body
LE: loop exit
PB: predicated region body
PF: predicated region fallthrough
CT: control target
= control target key end

     0   :  { %vm89_vm0 = vcmask 1041408   ;;  %v269_v2 = vmov 0   ;;  %vm85_vm1 = vcmask 293888   ;;  %v270_v23 = vmov 1983009808   ;;  %s338_s1 = inlined_call_operand.vmem [shape: bf16[36,512], index: 1, kind: input, shape index: {}]   ;;  %s339_s2 = inlined_call_operand.vmem [shape: f32[4,1], index: 2, kind: input, shape index: {}]   ;;  %s340_s0 = inlined_call_operand.vmem [shape: bf16[4,36], index: 0, kind: input, shape index: {}]   ;;  %s341_s3 = inlined_call_operand.vmem [shape: bf16[4,512], index: 3, kind: input, shape index: {}]   ;;  %s342_s4 = inlined_call_operand.vmem [shape: bf16[4,512], index: 4, kind: output, shape index: {}]  }
   0x1   :  { %v27_v0 = vld [vmem:[%s338_s1 + $0x40] sm:$0x33]  ;;  %v28_v1 = vld [vmem:[%s338_s1 + $0x48] sm:$0x33]  ;;  %134 = vmatprep.mubr.bf16.mxu0 %v269_v2  ;;  %175 = vmatprep.mubr.bf16.mxu1 %v269_v2  ;;  %v212_v24 = vunpack.c.l.s4 %v270_v23  ;;  %v214_v25 = vlaneseq }
   0x2   :  { %v241_v3 = vcombine.high %v27_v0, %v27_v0  ;;  %v243_v4 = vcombine.high %v28_v1, %v28_v1  ;;  %v240_v5 = vcombine.low %v27_v0, %v27_v0  ;;  %v242_v6 = vcombine.low %v28_v1, %v28_v1  ;;  %v257_v7 = vld [vmem:[%s338_s1 + $0x24] ss:$16 sps:$4 sm:$0xff]   ;;  %252 = vset.pattern.permute.xlu0 %v269_v2  ;;  %v259_v8 = vld [vmem:[%s338_s1 + $0x2c] ss:$16 sps:$4 sm:$0xff]   ;;  %v261_v11 = vld [vmem:[%s338_s1 + $0x20] ss:$16 sps:$4 sm:$0xff]  }
   0x3   :  { %v262_v12 = vld [vmem:[%s338_s1 + $0x28] ss:$16 sps:$4 sm:$0xff]   ;;  %v263_v13 = vld [vmem:[%s338_s1 + $0x4] ss:$16 sps:$4 sm:$0xff]   ;;  %v265_v14 = vld [vmem:[%s338_s1 + $0xc] ss:$16 sps:$4 sm:$0xff]   ;;  %v213_v33 = vunpack.c.0.s8 %v212_v24 }
   0x4   :  { %244 = vmatprep.subr.msk.bf16.mxu0 %vm89_vm0, %v241_v3  ;;  %246 = vmatprep.subr.msk.bf16.mxu1 %vm89_vm0, %v243_v4  ;;  %v91_v9 = vsel %vm89_vm0, %v240_v5, 0  ;;  %v97_v10 = vsel %vm89_vm0, %v242_v6, 0  ;;  %v29_v15 = vld [vmem:[%s339_s2] sm:$0xf]  ;;  %v268_v17 = vld [vmem:[%s338_s1 + $0x8] ss:$16 sps:$4 sm:$0xff]  }
   0x5   :  { %113 = vmatpush1.bf16.msra.mxu0 %v91_v9  ;;  %154 = vmatpush1.bf16.msra.mxu1 %v97_v10  ;;  %v267_v16 = vld [vmem:[%s338_s1] ss:$16 sps:$4 sm:$0xff]   ;;  %v215_v34 = vshrl.u32 %v214_v25, 7 }
   0x6   :  { %114 = vmatprep.subr.bf16.mxu0 %v257_v7  ;;  %155 = vmatprep.subr.bf16.mxu1 %v259_v8  ;;  %v18_v18 = vld [vmem:[%s340_s0] sm:$0x3] }
   0x7   :  { %32 = vperm.xlu0 %252, %v29_v15   ;;  %v184_v19 = vld [vmem:[%s341_s3] sm:$0xff]  ;;  %v216_v44 = vsub.s32 %v213_v33, %v215_v34 }
   0x8   :  { %v185_v20 = vunpack.c.l.bf16 %v184_v19  ;;  %v186_v21 = vunpack.c.h.bf16 %v184_v19 }
   0x9   :  { %115 = vmatpush1.bf16.msra.mxu0 %v261_v11  ;;  %156 = vmatpush1.bf16.msra.mxu1 %v262_v12 }
   0xa   :  { %116 = vmatprep.subr.bf16.mxu0 %v263_v13  ;;  %157 = vmatprep.subr.bf16.mxu1 %v265_v14  ;;  %v189_v30 = vcombine.high %v185_v20, %v185_v20  ;;  %v190_v31 = vcombine.high %v186_v21, %v186_v21 }
   0xd   :  { %117 = vmatpush1.bf16.msra.mxu0 %v267_v16  ;;  %158 = vmatpush1.bf16.msra.mxu1 %v268_v17 }
  0x10   :  { %245 = vmatmul.mubr.msk.bf16.vlgmr.msra.gmra.mxu0 %vm85_vm1, %v18_v18  ;;  %247 = vmatmul.mubr.msk.bf16.vlgmr.msra.gmra.mxu1 %vm85_vm1, %v18_v18 }
  0x82   :  { %v33_v22 = vpop.permute.xlu0 %32 }
  0xd0   :  { %v136_v26 = vpop.f32.mrf.mxu0  ;;  %v177_v27 = vpop.f32.mrf.mxu1 }
  0xd1   :  { %v137_v28 = vadd.f32 %v136_v26, %v33_v22  ;;  %v178_v29 = vadd.f32 %v177_v27, %v33_v22 }
  0xd2   :  { %v138_v32 = vpop.f32.mrf.mxu0  ;;  %v179_v35 = vpop.f32.mrf.mxu1 }
  0xd3   :  { %v193_v36 = vadd.f32 %v185_v20, %v137_v28  ;;  %v195_v37 = vadd.f32 %v186_v21, %v178_v29  ;;  %v139_v38 = vadd.f32 %v138_v32, %v33_v22  ;;  %v180_v39 = vadd.f32 %v179_v35, %v33_v22 }
  0xd4   :  { %v140_v40 = vpop.f32.mrf.mxu0  ;;  %v181_v41 = vpop.f32.mrf.mxu1 }
  0xd5   :  { %v194_v42 = vadd.f32 %v189_v30, %v139_v38  ;;  %v196_v43 = vadd.f32 %v190_v31, %v180_v39  ;;  %v197_v47 = vmax.f32 %v193_v36, 0.0  ;;  %v199_v48 = vmax.f32 %v195_v37, 0.0 }
  0xd6   :  { %v141_v45 = vpop.f32.mrf.mxu0  ;;  %v182_v46 = vpop.f32.mrf.mxu1 }
  0xd7   :  { %v198_v49 = vmax.f32 %v194_v42, 0.0  ;;  %v200_v50 = vmax.f32 %v196_v43, 0.0 }
  0xd9   :  { %v248_v51 = vpack.c.bf16 %v198_v49, %v197_v47  ;;  %v249_v52 = vpack.c.bf16 %v200_v50, %v199_v48 }
  0xdb   :  { %v217_v53 = vrot.slane %v248_v51, %v216_v44  ;;  %v224_v54 = vrot.slane %v249_v52, %v216_v44 }
  0xdd   :  { %v225_v55 = vcombine.low %v217_v53, %v224_v54 }
  0xdf   :  { %227 = vst [vmem:[%s342_s4] sm:$0xff] %v225_v55 }

// kernel: _forward.29
= control target key start
LH: loop header
LB: loop body
LE: loop exit
PB: predicated region body
PF: predicated region fallthrough
CT: control target
= control target key end

     0   :  { %v135_v0 = vmov 0.0   ;;  %vm136_vm0 = vmmov 0   ;;  %v137_v2 = vmov 0   ;;  %vm54_vm1 = vcmask 523264   ;;  %s179_s1 = inlined_call_operand.vmem [shape: bf16[64,128], index: 1, kind: input, shape index: {}]   ;;  %s180_s2 = inlined_call_operand.vmem [shape: f32[8,1], index: 2, kind: input, shape index: {}]   ;;  %s181_s0 = inlined_call_operand.vmem [shape: bf16[8,64], index: 0, kind: input, shape index: {}]   ;;  %s182_s3 = inlined_call_operand.vmem [shape: bf16[8,128], index: 3, kind: output, shape index: {}]  }
   0x1   :  { %115 = vmatprep.subr.bf16.mxu0 %v135_v0  ;;  %v131_v1 = vld [vmem:[%s179_s1 + $0x18] sm:$0xff]   ;;  %123 = vmatprep.mubr.msk.bf16.mxu0 %vm136_vm0, %v135_v0  ;;  %v132_v3 = vld [vmem:[%s179_s1 + $0x10] sm:$0xff]   ;;  %v24_v4 = vld [vmem:[%s180_s2] sm:$0xff] }
   0x2   :  { %130 = vset.pattern.permute.xlu0 %v137_v2  ;;  %116 = vmatpush3.bf16.msra.mxu0 %v131_v1  ;;  %v133_v5 = vld [vmem:[%s179_s1 + $0x8] sm:$0xff]   ;;  %v134_v6 = vld [vmem:[%s179_s1] sm:$0xff]  }
   0x3   :  { %117 = vmatprep.subr.bf16.mxu0 %v135_v0  ;;  %27 = vperm.xlu0 %130, %v24_v4   ;;  %v15_v7 = vld [vmem:[%s181_s0] sm:$0xf] }
   0x6   :  { %118 = vmatpush3.bf16.msra.mxu0 %v132_v3 }
   0x7   :  { %119 = vmatprep.subr.bf16.mxu0 %v135_v0 }
   0xa   :  { %120 = vmatpush3.bf16.msra.mxu0 %v133_v5 }
   0xb   :  { %121 = vmatprep.subr.bf16.mxu0 %v135_v0 }
   0xe   :  { %122 = vmatpush3.bf16.msra.mxu0 %v134_v6 }
  0x11   :  { %124 = vmatmul.mubr.msk.bf16.vlgmr.msra.gmra.mxu0 %vm54_vm1, %v15_v7 }
  0x7e   :  { %v28_v8 = vpop.permute.xlu0 %27 }
  0xd1   :  { %v92_v9 = vpop.f32.mrf.mxu0 }
  0xd2   :  { %v93_v10 = vadd.f32 %v92_v9, %v28_v8 }
  0xd3   :  { %v125_v11 = vpop.f32.mrf.mxu0 }
  0xd4   :  { %v98_v12 = vmax.f32 %v93_v10, 0.0 }
  0xd5   :  { %v95_v13 = vpop.f32.mrf.mxu0 }
  0xd6   :  { %v99_v14 = vpack.c.bf16 %v98_v12, %v98_v12 }
  0xd7   :  { %v126_v15 = vpop.f32.mrf.mxu0 }
  0xd8   :  { %100 = vst [vmem:[%s182_s3] sm:$0xf] %v99_v14 }

// kernel: _forward.30
= control target key start
LH: loop header
LB: loop body
LE: loop exit
PB: predicated region body
PF: predicated region fallthrough
CT: control target
= control target key end

     0   :  { %vm65_vm0 = vcmask 1043456   ;;  %v154_v0 = vmov 0.0   ;;  %vm155_vm1 = vmmov 0   ;;  %v156_v3 = vmov 0   ;;  %s209_s1 = inlined_call_operand.vmem [shape: bf16[72,128], index: 1, kind: input, shape index: {}]   ;;  %s210_s2 = inlined_call_operand.vmem [shape: f32[8,1], index: 2, kind: input, shape index: {}]   ;;  %s211_s0 = inlined_call_operand.vmem [shape: bf16[8,72], index: 0, kind: input, shape index: {}]   ;;  %s212_s3 = inlined_call_operand.vmem [shape: bf16[8,128], index: 3, kind: input, shape index: {}]   ;;  %s213_s4 = inlined_call_operand.vmem [shape: bf16[8,128], index: 4, kind: output, shape index: {}]  }
   0x1   :  { %131 = vmatprep.subr.bf16.mxu0 %v154_v0  ;;  %v149_v1 = vld [vmem:[%s209_s1 + $0x20] ss:$0 sps:$4 sm:$0xff]   ;;  %141 = vmatprep.mubr.msk.bf16.mxu0 %vm155_vm1, %v154_v0  ;;  %v150_v4 = vld [vmem:[%s209_s1 + $0x18] sm:$0xff]   ;;  %v151_v6 = vld [vmem:[%s209_s1 + $0x10] sm:$0xff]   ;;  %vm61_vm2 = vcmask 588800  }
   0x2   :  { %v67_v2 = vsel %vm65_vm0, %v149_v1, 0  ;;  %148 = vset.pattern.permute.xlu0 %v156_v3  ;;  %v28_v5 = vld [vmem:[%s210_s2] sm:$0xff]  ;;  %v152_v7 = vld [vmem:[%s209_s1 + $0x8] sm:$0xff]  }
   0x3   :  { %132 = vmatpush3.bf16.msra.mxu0 %v67_v2  ;;  %31 = vperm.xlu0 %148, %v28_v5   ;;  %v153_v8 = vld [vmem:[%s209_s1] sm:$0xff]  }
   0x4   :  { %133 = vmatprep.subr.bf16.mxu0 %v154_v0  ;;  %v18_v9 = vld [vmem:[%s211_s0] sm:$0xf] }
   0x5   :  { %v109_v10 = vld [vmem:[%s212_s3] sm:$0xf] }
   0x6   :  { %v110_v12 = vunpack.c.l.bf16 %v109_v10 }
   0x7   :  { %134 = vmatpush3.bf16.msra.mxu0 %v150_v4 }
   0x8   :  { %135 = vmatprep.subr.bf16.mxu0 %v154_v0 }
   0xb   :  { %136 = vmatpush3.bf16.msra.mxu0 %v151_v6 }
   0xc   :  { %137 = vmatprep.subr.bf16.mxu0 %v154_v0 }
   0xf   :  { %138 = vmatpush3.bf16.msra.mxu0 %v152_v7 }
  0x10   :  { %139 = vmatprep.subr.bf16.mxu0 %v154_v0 }
  0x13   :  { %140 = vmatpush3.bf16.msra.mxu0 %v153_v8 }
  0x16   :  { %142 = vmatmul.mubr.msk.bf16.vlgmr.msra.gmra.mxu0 %vm61_vm2, %v18_v9 }
  0x7e   :  { %v32_v11 = vpop.permute.xlu0 %31 }
  0xd6   :  { %v103_v13 = vpop.f32.mrf.mxu0 }
  0xd7   :  { %v104_v14 = vadd.f32 %v103_v13, %v32_v11 }
  0xd8   :  { %v143_v15 = vpop.f32.mrf.mxu0 }
  0xd9   :  { %v111_v16 = vadd.f32 %v110_v12, %v104_v14 }
  0xda   :  { %v106_v17 = vpop.f32.mrf.mxu0 }
  0xdb   :  { %v112_v18 = vmax.f32 %v111_v16, 0.0 }
  0xdc   :  { %v144_v19 = vpop.f32.mrf.mxu0 }
  0xdd   :  { %v113_v20 = vpack.c.bf16 %v112_v18, %v112_v18 }
  0xdf   :  { %114 = vst [vmem:[%s213_s4] sm:$0xf] %v113_v20 }

// kernel: _forward.31
= control target key start
LH: loop header
LB: loop body
LE: loop exit
PB: predicated region body
PF: predicated region fallthrough
CT: control target
= control target key end

     0   :  { %v212_v0 = vmov 0.0   ;;  %vm213_vm0 = vmmov 0   ;;  %v214_v2 = vmov 0   ;;  %vm150_vm1 = vcmask 257024   ;;  %s274_s1 = inlined_call_operand.vmem [shape: bf16[128,32], index: 1, kind: input, shape index: {}]   ;;  %s275_s2 = inlined_call_operand.vmem [shape: f32[16,1], index: 2, kind: input, shape index: {}]   ;;  %s276_s0 = inlined_call_operand.vmem [shape: bf16[16,128], index: 0, kind: input, shape index: {}]   ;;  %s277_s3 = inlined_call_operand.vmem [shape: bf16[16,32], index: 3, kind: output, shape index: {}]  }
   0x1   :  { %179 = vmatprep.subr.bf16.mxu0 %v212_v0  ;;  %v203_v1 = vld [vmem:[%s274_s1 + $0x38] sm:$0xff]   ;;  %195 = vmatprep.mubr.msk.bf16.mxu0 %vm213_vm0, %v212_v0  ;;  %v204_v3 = vld [vmem:[%s274_s1 + $0x30] sm:$0xff]   ;;  %v205_v4 = vld [vmem:[%s274_s1 + $0x28] sm:$0xff]  }
   0x2   :  { %202 = vset.pattern.permute.xlu0 %v214_v2  ;;  %180 = vmatpush3.bf16.msra.mxu0 %v203_v1  ;;  %v33_v5 = vld [vmem:[%s275_s2] sm:$0xff]  ;;  %v34_v7 = vld [vmem:[%s275_s2 + $0x8] sm:$0xff]  ;;  %v207_v8 = vld [vmem:[%s274_s1 + $0x18] sm:$0xff]  }
   0x3   :  { %181 = vmatprep.subr.bf16.mxu0 %v212_v0  ;;  %v206_v6 = vld [vmem:[%s274_s1 + $0x20] sm:$0xff]   ;;  %37 = vperm.xlu0 %202, %v33_v5   ;;  %v208_v9 = vld [vmem:[%s274_s1 + $0x10] sm:$0xff]   ;;  %v209_v10 = vld [vmem:[%s274_s1 + $0x8] sm:$0xff]  }
   0x4   :  { %v210_v11 = vld [vmem:[%s274_s1] sm:$0xff]  }
   0x5   :  { %v211_v12 = vld [vmem:[%s276_s0] sm:$0xff]  }
   0x6   :  { %182 = vmatpush3.bf16.msra.mxu0 %v204_v3 }
   0x7   :  { %183 = vmatprep.subr.bf16.mxu0 %v212_v0  ;;  %42 = vperm.xlu0 %202, %v34_v7  }
   0xa   :  { %184 = vmatpush3.bf16.msra.mxu0 %v205_v4 }
   0xb   :  { %185 = vmatprep.subr.bf16.mxu0 %v212_v0 }
   0xe   :  { %186 = vmatpush3.bf16.msra.mxu0 %v206_v6 }
   0xf   :  { %187 = vmatprep.subr.bf16.mxu0 %v212_v0 }
  0x12   :  { %188 = vmatpush3.bf16.msra.mxu0 %v207_v8 }
  0x13   :  { %189 = vmatprep.subr.bf16.mxu0 %v212_v0 }
  0x16   :  { %190 = vmatpush3.bf16.msra.mxu0 %v208_v9 }
  0x17   :  { %191 = vmatprep.subr.bf16.mxu0 %v212_v0 }
  0x1a   :  { %192 = vmatpush3.bf16.msra.mxu0 %v209_v10 }
  0x1b   :  { %193 = vmatprep.subr.bf16.mxu0 %v212_v0 }
  0x1e   :  { %194 = vmatpush3.bf16.msra.mxu0 %v210_v11 }
  0x21   :  { %196 = vmatmul.mubr.bf16.vlgmr.msra.gmra.mxu0 %v211_v12 }
  0x7e   :  { %v38_v13 = vpop.permute.xlu0 %37 }
  0x82   :  { %v43_v18 = vpop.permute.xlu0 %42 }
  0xe1   :  { %v133_v14 = vpop.f32.mrf.mxu0 }
  0xe2   :  { %v134_v15 = vadd.f32 %v133_v14, %v38_v13 }
  0xe3   :  { %v197_v16 = vpop.f32.mrf.mxu0 }
  0xe4   :  { %v140_v17 = vmax.f32 %v134_v15, 0.0 }
  0xe5   :  { %v136_v19 = vpop.f32.mrf.mxu0 }
  0xe6   :  { %v168_v20 = vpack.c.bf16 %v140_v17, %v140_v17  ;;  %v137_v21 = vadd.f32 %v136_v19, %v43_v18 }
  0xe7   :  { %v198_v22 = vpop.f32.mrf.mxu0 }
  0xe8   :  { %151 = vst.msk [vmem:[%s277_s3] sm:$0xf] %vm150_vm1, %v168_v20  ;;  %v141_v23 = vmax.f32 %v137_v21, 0.0 }
  0xea   :  { %v169_v24 = vpack.c.bf16 %v141_v23, %v141_v23 }
  0xec   :  { %152 = vst.msk [vmem:[%s277_s3 + $0x4] sm:$0xf] %vm150_vm1, %v169_v24 }

// kernel: _forward.32
= control target key start
LH: loop header
LB: loop body
LE: loop exit
PB: predicated region body
PF: predicated region fallthrough
CT: control target
= control target key end

     0   :  { %v215_v0 = vmov 0   ;;  %vm113_vm0 = vcmask 130048   ;;  %vm174_vm1 = vcmask 257024   ;;  %s289_s1 = inlined_call_operand.vmem [shape: bf16[144,32], index: 1, kind: input, shape index: {}]   ;;  %s290_s0 = inlined_call_operand.vmem [shape: bf16[16,144], index: 0, kind: input, shape index: {}]   ;;  %s291_s2 = inlined_call_operand.vmem [shape: f32[16,1], index: 2, kind: input, shape index: {}]   ;;  %s292_s3 = inlined_call_operand.vmem [shape: bf16[16,32], index: 3, kind: input, shape index: {}]   ;;  %s293_s4 = inlined_call_operand.vmem [shape: bf16[16,32], index: 4, kind: output, shape index: {}]  }
   0x1   :  { %117 = vmatprep.subr.bf16.mxu0 %v215_v0  ;;  %v203_v1 = vld [vmem:[%s289_s1 + $0x38] sm:$0xff]   ;;  %202 = vset.pattern.permute.xlu0 %v215_v0  ;;  %v204_v2 = vld [vmem:[%s289_s1 + $0x30] sm:$0xff]   ;;  %v205_v3 = vld [vmem:[%s289_s1 + $0x28] sm:$0xff]  }
   0x2   :  { %118 = vmatpush1.bf16.msra.mxu0 %v203_v1  ;;  %v206_v4 = vld [vmem:[%s289_s1 + $0x20] sm:$0xff]   ;;  %v39_v7 = vld [vmem:[%s291_s2 + $0x8] sm:$0xff]  ;;  %v207_v8 = vld [vmem:[%s289_s1 + $0x18] sm:$0xff]  }
   0x3   :  { %119 = vmatprep.subr.bf16.mxu0 %v215_v0  ;;  %v214_v5 = vld [vmem:[%s290_s0 + $0x4] ss:$8 sps:$4 sm:$0xff]   ;;  %v208_v9 = vld [vmem:[%s289_s1 + $0x10] sm:$0xff]   ;;  %v212_v13 = vld [vmem:[%s290_s0] ss:$8 sps:$4 sm:$0xff]  }
   0x4   :  { %v38_v6 = vld [vmem:[%s291_s2] sm:$0xff]  ;;  %192 = vmatprep.mubr.msk.bf16.mxu0 %vm113_vm0, %v214_v5  ;;  %v209_v10 = vld [vmem:[%s289_s1 + $0x8] sm:$0xff]  }
   0x5   :  { %42 = vperm.xlu0 %202, %v38_v6   ;;  %v210_v11 = vld [vmem:[%s289_s1] sm:$0xff]  }
   0x6   :  { %120 = vmatpush1.bf16.msra.mxu0 %v204_v2  ;;  %v211_v12 = vld [vmem:[%s289_s1 + $0x40] sm:$0xff]  }
   0x7   :  { %121 = vmatprep.subr.bf16.mxu0 %v215_v0  ;;  %v198_v14 = vld [vmem:[%s292_s3] sm:$0xff]  }
   0x8   :  { %v199_v16 = vunpack.c.l.bf16 %v198_v14  ;;  %v200_v21 = vunpack.c.h.bf16 %v198_v14 }
   0x9   :  { %47 = vperm.xlu0 %202, %v39_v7  }
   0xa   :  { %122 = vmatpush1.bf16.msra.mxu0 %v205_v3 }
   0xb   :  { %123 = vmatprep.subr.bf16.mxu0 %v215_v0 }
   0xe   :  { %124 = vmatpush1.bf16.msra.mxu0 %v206_v4 }
   0xf   :  { %125 = vmatprep.subr.bf16.mxu0 %v215_v0 }
  0x12   :  { %126 = vmatpush1.bf16.msra.mxu0 %v207_v8 }
  0x13   :  { %127 = vmatprep.subr.bf16.mxu0 %v215_v0 }
  0x16   :  { %128 = vmatpush1.bf16.msra.mxu0 %v208_v9 }
  0x17   :  { %129 = vmatprep.subr.bf16.mxu0 %v215_v0 }
  0x1a   :  { %130 = vmatpush1.bf16.msra.mxu0 %v209_v10 }
  0x1b   :  { %131 = vmatprep.subr.bf16.mxu0 %v215_v0 }
  0x1e   :  { %132 = vmatpush1.bf16.msra.mxu0 %v210_v11 }
  0x1f   :  { %147 = vmatprep.subr.bf16.mxu0 %v215_v0 }
  0x22   :  { %148 = vmatpush2.bf16.msra.mxu0 %v211_v12 }
  0x25   :  { %150 = vmatmul.mubr.bf16.vlgmr.msra.gmra.mxu0 %v212_v13 }
  0x80   :  { %v43_v15 = vpop.permute.xlu0 %42 }
  0x84   :  { %v48_v22 = vpop.permute.xlu0 %47 }
  0xe5   :  { %v151_v17 = vpop.f32.mrf.mxu0 }
  0xe6   :  { %v152_v18 = vadd.f32 %v151_v17, %v43_v15 }
  0xe7   :  { %v153_v19 = vpop.f32.mrf.mxu0 }
  0xe8   :  { %v162_v20 = vadd.f32 %v199_v16, %v152_v18 }
  0xe9   :  { %v154_v23 = vpop.f32.mrf.mxu0 }
  0xea   :  { %v164_v24 = vmax.f32 %v162_v20, 0.0  ;;  %v155_v25 = vadd.f32 %v154_v23, %v48_v22 }
  0xeb   :  { %v156_v26 = vpop.f32.mrf.mxu0 }
  0xec   :  { %v195_v27 = vpack.c.bf16 %v164_v24, %v164_v24  ;;  %v163_v28 = vadd.f32 %v200_v21, %v155_v25 }
  0xee   :  { %175 = vst.msk [vmem:[%s293_s4] sm:$0xf] %vm174_vm1, %v195_v27  ;;  %v165_v29 = vmax.f32 %v163_v28, 0.0 }
  0xf0   :  { %v196_v30 = vpack.c.bf16 %v165_v29, %v165_v29 }
  0xf2   :  { %176 = vst.msk [vmem:[%s293_s4 + $0x4] sm:$0xf] %vm174_vm1, %v196_v30 }

// kernel: _forward.33
= control target key start
LH: loop header
LB: loop body
LE: loop exit
PB: predicated region body
PF: predicated region fallthrough
CT: control target
= control target key end

     0   :  { %v366_v1 = vmov 0   ;;  %vm260_vm0 = vcmask 60416   ;;  %s471_s1 = inlined_call_operand.vmem [shape: bf16[256,8], index: 1, kind: input, shape index: {}]   ;;  %s472_s0 = inlined_call_operand.vmem [shape: bf16[32,256], index: 0, kind: input, shape index: {}]   ;;  %s473_s2 = inlined_call_operand.vmem [shape: f32[32,1], index: 2, kind: input, shape index: {}]   ;;  %s474_s3 = inlined_call_operand.vmem [shape: bf16[32,8], index: 3, kind: output, shape index: {}]  }
   0x1   :  { %v344_v0 = vld [vmem:[%s471_s1 + $0x78] sm:$0xff]   ;;  %343 = vset.pattern.permute.xlu1 %v366_v1  ;;  %342 = vset.pattern.permute.xlu0 %v366_v1  ;;  %v346_v3 = vld [vmem:[%s471_s1 + $0x70] sm:$0xff]   ;;  %v348_v5 = vld [vmem:[%s471_s1 + $0x68] sm:$0xff]  }
   0x2   :  { %v345_v2 = vld [vmem:[%s471_s1 + $0x38] sm:$0xff]   ;;  %297 = vmatprep.subr.bf16.mxu0 %v344_v0  ;;  %325 = vmatprep.subr.bf16.mxu1 %v344_v0  ;;  %v347_v4 = vld [vmem:[%s471_s1 + $0x30] sm:$0xff]   ;;  %v349_v6 = vld [vmem:[%s471_s1 + $0x28] sm:$0xff]  }
   0x3   :  { %298 = vmatpush3.bf16.msra.mxu0 %v345_v2  ;;  %333 = vmatpush3.bf16.msra.mxu1 %v345_v2  ;;  %v350_v7 = vld [vmem:[%s471_s1 + $0x60] sm:$0xff]   ;;  %v352_v9 = vld [vmem:[%s471_s1 + $0x58] sm:$0xff]   ;;  %v354_v11 = vld [vmem:[%s471_s1 + $0x50] sm:$0xff]  }
   0x4   :  { %299 = vmatprep.subr.bf16.mxu0 %v346_v3  ;;  %326 = vmatprep.subr.bf16.mxu1 %v346_v3  ;;  %v351_v8 = vld [vmem:[%s471_s1 + $0x20] sm:$0xff]   ;;  %v353_v10 = vld [vmem:[%s471_s1 + $0x18] sm:$0xff]   ;;  %v355_v14 = vld [vmem:[%s471_s1 + $0x10] sm:$0xff]  }
   0x5   :  { %v362_v12 = vld [vmem:[%s472_s0 + $0x4] ss:$8 sps:$4 sm:$0xff]   ;;  %v365_v13 = vld [vmem:[%s472_s0 + $0x14] ss:$8 sps:$4 sm:$0xff]   ;;  %v360_v23 = vld [vmem:[%s472_s0] ss:$8 sps:$4 sm:$0xff]  }
   0x6   :  { %v53_v15 = vld [vmem:[%s473_s2 + $0x10] sm:$0xff]  ;;  %v51_v16 = vld [vmem:[%s473_s2] sm:$0xff]  ;;  %v356_v17 = vld [vmem:[%s471_s1 + $0x48] sm:$0xff]   ;;  %223 = vmatprep.mubr.bf16.mxu0 %v362_v12  ;;  %231 = vmatprep.mubr.bf16.mxu1 %v365_v13 }
   0x7   :  { %300 = vmatpush3.bf16.msra.mxu0 %v347_v4  ;;  %334 = vmatpush3.bf16.msra.mxu1 %v347_v4  ;;  %v357_v18 = vld [vmem:[%s471_s1 + $0x8] sm:$0xff]   ;;  %v54_v19 = vld [vmem:[%s473_s2 + $0x18] sm:$0xff]  ;;  %v358_v21 = vld [vmem:[%s471_s1 + $0x40] sm:$0xff]  }
   0x8   :  { %301 = vmatprep.subr.bf16.mxu0 %v348_v5  ;;  %327 = vmatprep.subr.bf16.mxu1 %v348_v5  ;;  %v52_v20 = vld [vmem:[%s473_s2 + $0x8] sm:$0xff]  ;;  %v359_v22 = vld [vmem:[%s471_s1] sm:$0xff]   ;;  %v363_v24 = vld [vmem:[%s472_s0 + $0x10] ss:$8 sps:$4 sm:$0xff]  }
   0x9   :  { %67 = vperm.xlu1 %343, %v53_v15   ;;  %57 = vperm.xlu0 %342, %v51_v16  }
   0xb   :  { %302 = vmatpush3.bf16.msra.mxu0 %v349_v6  ;;  %335 = vmatpush3.bf16.msra.mxu1 %v349_v6 }
   0xc   :  { %303 = vmatprep.subr.bf16.mxu0 %v350_v7  ;;  %328 = vmatprep.subr.bf16.mxu1 %v350_v7 }
   0xd   :  { %72 = vperm.xlu1 %343, %v54_v19   ;;  %62 = vperm.xlu0 %342, %v52_v20  }
   0xf   :  { %304 = vmatpush3.bf16.msra.mxu0 %v351_v8  ;;  %336 = vmatpush3.bf16.msra.mxu1 %v351_v8 }
  0x10   :  { %305 = vmatprep.subr.bf16.mxu0 %v352_v9  ;;  %329 = vmatprep.subr.bf16.mxu1 %v352_v9 }
  0x13   :  { %306 = vmatpush3.bf16.msra.mxu0 %v353_v10  ;;  %337 = vmatpush3.bf16.msra.mxu1 %v353_v10 }
  0x14   :  { %307 = vmatprep.subr.bf16.mxu0 %v354_v11  ;;  %330 = vmatprep.subr.bf16.mxu1 %v354_v11 }
  0x17   :  { %308 = vmatpush3.bf16.msra.mxu0 %v355_v14  ;;  %338 = vmatpush3.bf16.msra.mxu1 %v355_v14 }
  0x18   :  { %309 = vmatprep.subr.bf16.mxu0 %v356_v17  ;;  %331 = vmatprep.subr.bf16.mxu1 %v356_v17 }
  0x1b   :  { %310 = vmatpush3.bf16.msra.mxu0 %v357_v18  ;;  %339 = vmatpush3.bf16.msra.mxu1 %v357_v18 }
  0x1c   :  { %311 = vmatprep.subr.bf16.mxu0 %v358_v21  ;;  %332 = vmatprep.subr.bf16.mxu1 %v358_v21 }
  0x1f   :  { %312 = vmatpush3.bf16.msra.mxu0 %v359_v22  ;;  %340 = vmatpush3.bf16.msra.mxu1 %v359_v22 }
  0x22   :  { %224 = vmatmul.mubr.bf16.vlgmr.msra.gmra.mxu0 %v360_v23  ;;  %232 = vmatmul.mubr.bf16.vlgmr.msra.gmra.mxu1 %v363_v24 }
  0x84   :  { %v68_v27 = vpop.permute.xlu1 %67  ;;  %v58_v28 = vpop.permute.xlu0 %57 }
  0x88   :  { %v73_v43 = vpop.permute.xlu1 %72  ;;  %v63_v44 = vpop.permute.xlu0 %62 }
  0xe2   :  { %v313_v25 = vpop.f32.mrf.mxu0  ;;  %v319_v26 = vpop.f32.mrf.mxu1 }
  0xe4   :  { %v314_v29 = vpop.f32.mrf.mxu0  ;;  %v320_v30 = vpop.f32.mrf.mxu1 }
  0xe5   :  { %v315_v31 = vadd.f32 %v314_v29, %v313_v25  ;;  %v321_v32 = vadd.f32 %v320_v30, %v319_v26 }
  0xe6   :  { %v316_v33 = vpop.f32.mrf.mxu0  ;;  %v322_v34 = vpop.f32.mrf.mxu1 }
  0xe7   :  { %v226_v35 = vadd.f32 %v315_v31, %v58_v28  ;;  %v234_v36 = vadd.f32 %v321_v32, %v68_v27 }
  0xe8   :  { %v317_v37 = vpop.f32.mrf.mxu0  ;;  %v323_v38 = vpop.f32.mrf.mxu1 }
  0xe9   :  { %v240_v39 = vmax.f32 %v226_v35, 0.0  ;;  %v242_v40 = vmax.f32 %v234_v36, 0.0  ;;  %v318_v41 = vadd.f32 %v317_v37, %v316_v33  ;;  %v324_v42 = vadd.f32 %v323_v38, %v322_v34 }
  0xeb   :  { %v293_v45 = vpack.c.bf16 %v240_v39, %v240_v39  ;;  %v295_v46 = vpack.c.bf16 %v242_v40, %v242_v40  ;;  %v229_v47 = vadd.f32 %v318_v41, %v63_v44  ;;  %v237_v48 = vadd.f32 %v324_v42, %v73_v43 }
  0xed   :  { %261 = vst.msk [vmem:[%s474_s3] sm:$0xf] %vm260_vm0, %v293_v45  ;;  %263 = vst.msk [vmem:[%s474_s3 + $0x8] sm:$0xf] %vm260_vm0, %v295_v46  ;;  %v241_v49 = vmax.f32 %v229_v47, 0.0  ;;  %v243_v50 = vmax.f32 %v237_v48, 0.0 }
  0xef   :  { %v294_v51 = vpack.c.bf16 %v241_v49, %v241_v49  ;;  %v296_v52 = vpack.c.bf16 %v243_v50, %v243_v50 }
  0xf1   :  { %262 = vst.msk [vmem:[%s474_s3 + $0x4] sm:$0xf] %vm260_vm0, %v294_v51  ;;  %264 = vst.msk [vmem:[%s474_s3 + $0xc] sm:$0xf] %vm260_vm0, %v296_v52 }

// kernel: _forward.34
= control target key start
LH: loop header
LB: loop body
LE: loop exit
PB: predicated region body
PF: predicated region fallthrough
CT: control target
= control target key end

     0   :  { %v482_v1 = vmov 0   ;;  %vm224_vm0 = vcmask 261120   ;;  %vm361_vm1 = vcmask 60416   ;;  %s616_s1 = inlined_call_operand.vmem [shape: bf16[288,8], index: 1, kind: input, shape index: {}]   ;;  %s617_s0 = inlined_call_operand.vmem [shape: bf16[32,288], index: 0, kind: input, shape index: {}]   ;;  %s618_s2 = inlined_call_operand.vmem [shape: f32[32,1], index: 2, kind: input, shape index: {}]   ;;  %s619_s3 = inlined_call_operand.vmem [shape: bf16[32,8], index: 3, kind: input, shape index: {}]   ;;  %s620_s4 = inlined_call_operand.vmem [shape: bf16[32,8], index: 4, kind: output, shape index: {}]  }
   0x1   :  { %v456_v0 = vld [vmem:[%s616_s1 + $0x78] sm:$0xff]   ;;  %454 = vset.pattern.permute.xlu0 %v482_v1  ;;  %455 = vset.pattern.permute.xlu1 %v482_v1  ;;  %v458_v3 = vld [vmem:[%s616_s1 + $0x70] sm:$0xff]   ;;  %v460_v5 = vld [vmem:[%s616_s1 + $0x68] sm:$0xff]  }
   0x2   :  { %v457_v2 = vld [vmem:[%s616_s1 + $0x38] sm:$0xff]   ;;  %413 = vmatprep.subr.bf16.mxu0 %v456_v0  ;;  %v459_v4 = vld [vmem:[%s616_s1 + $0x30] sm:$0xff]   ;;  %v461_v6 = vld [vmem:[%s616_s1 + $0x28] sm:$0xff]  }
   0x3   :  { %414 = vmatpush3.bf16.msra.mxu0 %v457_v2  ;;  %v462_v7 = vld [vmem:[%s616_s1 + $0x60] sm:$0xff]   ;;  %v464_v9 = vld [vmem:[%s616_s1 + $0x58] sm:$0xff]   ;;  %v471_v11 = vld [vmem:[%s616_s1 + $0x88] sm:$0xff]  }
   0x4   :  { %415 = vmatprep.subr.bf16.mxu0 %v458_v3  ;;  %v463_v8 = vld [vmem:[%s616_s1 + $0x20] sm:$0xff]   ;;  %v465_v10 = vld [vmem:[%s616_s1 + $0x18] sm:$0xff]   ;;  %v466_v12 = vld [vmem:[%s616_s1 + $0x50] sm:$0xff]   ;;  %445 = vmatprep.subr.bf16.mxu1 %v471_v11 }
   0x5   :  { %v467_v13 = vld [vmem:[%s616_s1 + $0x10] sm:$0xff]   ;;  %v468_v14 = vld [vmem:[%s616_s1 + $0x48] sm:$0xff]   ;;  %446 = vmatpush3.bf16.msra.mxu1 %v471_v11  ;;  %v476_v16 = vld [vmem:[%s616_s1 + $0x80] sm:$0xff]  }
   0x6   :  { %v475_v15 = vld [vmem:[%s617_s0 + $0x4] ss:$12 sps:$4 sm:$0xff]   ;;  %v477_v17 = vld [vmem:[%s617_s0 + $0x8] ss:$12 sps:$4 sm:$0xff]   ;;  %447 = vmatprep.subr.bf16.mxu1 %v476_v16  ;;  %v478_v18 = vld [vmem:[%s617_s0 + $0x20] ss:$12 sps:$4 sm:$0xff]  }
   0x7   :  { %416 = vmatpush3.bf16.msra.mxu0 %v459_v4  ;;  %263 = vmatprep.mubr.bf16.mxu0 %v475_v15  ;;  %v62_v19 = vld [vmem:[%s618_s2] sm:$0xff]  ;;  %v469_v20 = vld [vmem:[%s616_s1 + $0x8] sm:$0xff]   ;;  %v64_v21 = vld [vmem:[%s618_s2 + $0x10] sm:$0xff] }
   0x8   :  { %417 = vmatprep.subr.bf16.mxu0 %v460_v5  ;;  %449 = vmatprep.mubr.msk.bf16.mxu1 %vm224_vm0, %v477_v17  ;;  %v470_v22 = vld [vmem:[%s616_s1 + $0x40] sm:$0xff]   ;;  %v63_v23 = vld [vmem:[%s618_s2 + $0x8] sm:$0xff]  ;;  %v65_v24 = vld [vmem:[%s618_s2 + $0x18] sm:$0xff] }
   0x9   :  { %448 = vmatpush3.bf16.msra.mxu1 %v476_v16  ;;  %68 = vperm.xlu0 %454, %v62_v19   ;;  %v472_v25 = vld [vmem:[%s616_s1] sm:$0xff]   ;;  %v479_v27 = vld [vmem:[%s617_s0 + $0x1c] ss:$12 sps:$4 sm:$0xff]  }
   0xa   :  { %78 = vperm.xlu1 %455, %v64_v21   ;;  %v473_v26 = vld [vmem:[%s617_s0] ss:$12 sps:$4 sm:$0xff]   ;;  %v481_v28 = vld [vmem:[%s617_s0 + $0x18] ss:$12 sps:$4 sm:$0xff]  }
   0xb   :  { %418 = vmatpush3.bf16.msra.mxu0 %v461_v6  ;;  %v405_v34 = vld [vmem:[%s619_s3] sm:$0xff]   ;;  %v412_v49 = vld [vmem:[%s619_s3 + $0x8] sm:$0xff]  }
   0xc   :  { %419 = vmatprep.subr.bf16.mxu0 %v462_v7  ;;  %450 = vmatmul.mubr.msk.bf16.vlgmr.msra.gmra.mxu1 %vm224_vm0, %v478_v18  ;;  %v406_v39 = vunpack.c.l.bf16 %v405_v34  ;;  %v407_v48 = vunpack.c.h.bf16 %v405_v34  ;;  %v410_v58 = vunpack.c.l.bf16 %v412_v49  ;;  %v411_v4 = vunpack.c.h.bf16 %v412_v49 }
   0xd   :  { %73 = vperm.xlu0 %454, %v63_v23  }
   0xe   :  { %83 = vperm.xlu1 %455, %v65_v24  }
   0xf   :  { %420 = vmatpush3.bf16.msra.mxu0 %v463_v8 }
  0x10   :  { %421 = vmatprep.subr.bf16.mxu0 %v464_v9 }
  0x13   :  { %422 = vmatpush3.bf16.msra.mxu0 %v465_v10 }
  0x14   :  { %423 = vmatprep.subr.bf16.mxu0 %v466_v12 }
  0x17   :  { %424 = vmatpush3.bf16.msra.mxu0 %v467_v13 }
  0x18   :  { %425 = vmatprep.subr.bf16.mxu0 %v468_v14 }
  0x1b   :  { %426 = vmatpush3.bf16.msra.mxu0 %v469_v20 }
  0x1c   :  { %427 = vmatprep.subr.bf16.mxu0 %v470_v22 }
  0x1f   :  { %428 = vmatpush3.bf16.msra.mxu0 %v472_v25 }
  0x22   :  { %264 = vmatmul.mubr.bf16.vlgmr.msra.gmra.mxu0 %v473_v26 }
  0x23   :  { %271 = vmatprep.mubr.bf16.mxu0 %v479_v27 }
  0x2a   :  { %272 = vmatmul.mubr.bf16.gmra.mxu0 %v481_v28 }
  0x84   :  { %v69_v30 = vpop.permute.xlu0 %68 }
  0x85   :  { %v79_v50 = vpop.permute.xlu1 %78 }
  0x88   :  { %v74_v41 = vpop.permute.xlu0 %73 }
  0x89   :  { %v84_v0 = vpop.permute.xlu1 %83 }
  0xcc   :  { %v451_v29 = vpop.f32.mrf.mxu1 }
  0xce   :  { %v314_v32 = vpop.f32.mrf.mxu1 }
  0xd0   :  { %v452_v37 = vpop.f32.mrf.mxu1 }
  0xd2   :  { %v317_v45 = vpop.f32.mrf.mxu1 }
  0xe2   :  { %v429_v31 = vpop.f32.mrf.mxu0 }
  0xe4   :  { %v430_v33 = vpop.f32.mrf.mxu0 }
  0xe5   :  { %v431_v35 = vadd.f32 %v430_v33, %v429_v31 }
  0xe6   :  { %v432_v36 = vpop.f32.mrf.mxu0 }
  0xe7   :  { %v266_v38 = vadd.f32 %v431_v35, %v69_v30 }
  0xe8   :  { %v433_v40 = vpop.f32.mrf.mxu0 }
  0xe9   :  { %v434_v42 = vadd.f32 %v433_v40, %v432_v36  ;;  %v315_v43 = vadd.f32 %v314_v32, %v266_v38 }
  0xea   :  { %v435_v44 = vpop.f32.mrf.mxu0 }
  0xeb   :  { %v337_v46 = vadd.f32 %v406_v39, %v315_v43  ;;  %v269_v47 = vadd.f32 %v434_v42, %v74_v41 }
  0xec   :  { %v436_v51 = vpop.f32.mrf.mxu0 }
  0xed   :  { %v341_v52 = vmax.f32 %v337_v46, 0.0  ;;  %v437_v53 = vadd.f32 %v436_v51, %v435_v44  ;;  %v318_v54 = vadd.f32 %v317_v45, %v269_v47 }
  0xee   :  { %v438_v55 = vpop.f32.mrf.mxu0 }
  0xef   :  { %v400_v56 = vpack.c.bf16 %v341_v52, %v341_v52  ;;  %v274_v57 = vadd.f32 %v437_v53, %v79_v50  ;;  %v338_v59 = vadd.f32 %v407_v48, %v318_v54 }
  0xf0   :  { %v439_v60 = vpop.f32.mrf.mxu0 }
  0xf1   :  { %362 = vst.msk [vmem:[%s620_s4] sm:$0xf] %vm361_vm1, %v400_v56  ;;  %v323_v61 = vadd.f32 %v451_v29, %v274_v57  ;;  %v342_v62 = vmax.f32 %v338_v59, 0.0  ;;  %v440_v63 = vadd.f32 %v439_v60, %v438_v55 }
  0xf3   :  { %v339_v1 = vadd.f32 %v410_v58, %v323_v61  ;;  %v401_v2 = vpack.c.bf16 %v342_v62, %v342_v62  ;;  %v277_v3 = vadd.f32 %v440_v63, %v84_v0 }
  0xf5   :  { %v343_v5 = vmax.f32 %v339_v1, 0.0  ;;  %363 = vst.msk [vmem:[%s620_s4 + $0x4] sm:$0xf] %vm361_vm1, %v401_v2  ;;  %v326_v6 = vadd.f32 %v452_v37, %v277_v3 }
  0xf7   :  { %v402_v7 = vpack.c.bf16 %v343_v5, %v343_v5  ;;  %v340_v8 = vadd.f32 %v411_v4, %v326_v6 }
  0xf9   :  { %364 = vst.msk [vmem:[%s620_s4 + $0x8] sm:$0xf] %vm361_vm1, %v402_v7  ;;  %v344_v9 = vmax.f32 %v340_v8, 0.0 }
  0xfb   :  { %v403_v10 = vpack.c.bf16 %v344_v9, %v344_v9 }
  0xfd   :  { %365 = vst.msk [vmem:[%s620_s4 + $0xc] sm:$0xf] %vm361_vm1, %v403_v10 }

// kernel: _forward.35
= control target key start
LH: loop header
LB: loop body
LE: loop exit
PB: predicated region body
PF: predicated region fallthrough
CT: control target
= control target key end

     0   :  { %v801_v1 = vmov 0   ;;  %vm585_vm0 = vcmask 11264   ;;  %s1022_s1 = inlined_call_operand.vmem [shape: bf16[512,2], index: 1, kind: input, shape index: {}]   ;;  %s1023_s0 = inlined_call_operand.vmem [shape: bf16[64,512], index: 0, kind: input, shape index: {}]   ;;  %s1024_s2 = inlined_call_operand.vmem [shape: f32[64,1], index: 2, kind: input, shape index: {}]   ;;  %s1025_s3 = inlined_call_operand.vmem [shape: bf16[64,2], index: 3, kind: output, shape index: {}]  }
   0x1   :  { %v745_v0 = vld [vmem:[%s1022_s1 + $0x78] sm:$0xff]   ;;  %743 = vset.pattern.permute.xlu0 %v801_v1  ;;  %744 = vset.pattern.permute.xlu1 %v801_v1  ;;  %v749_v5 = vld [vmem:[%s1022_s1 + $0x70] sm:$0xff]   ;;  %v753_v9 = vld [vmem:[%s1022_s1 + $0x68] sm:$0xff]  }
   0x2   :  { %v746_v2 = vld [vmem:[%s1022_s1 + $0xf8] sm:$0xff]   ;;  %662 = vmatprep.subr.bf16.mxu0 %v745_v0  ;;  %v750_v6 = vld [vmem:[%s1022_s1 + $0xf0] sm:$0xff]   ;;  %v754_v10 = vld [vmem:[%s1022_s1 + $0xe8] sm:$0xff]  }
   0x3   :  { %v747_v3 = vld [vmem:[%s1022_s1 + $0x38] sm:$0xff]   ;;  %702 = vmatprep.subr.bf16.mxu1 %v746_v2  ;;  %v751_v7 = vld [vmem:[%s1022_s1 + $0x30] sm:$0xff]   ;;  %v755_v11 = vld [vmem:[%s1022_s1 + $0x28] sm:$0xff]  }
   0x4   :  { %v748_v4 = vld [vmem:[%s1022_s1 + $0xb8] sm:$0xff]   ;;  %663 = vmatpush3.bf16.msra.mxu0 %v747_v3  ;;  %v752_v8 = vld [vmem:[%s1022_s1 + $0xb0] sm:$0xff]   ;;  %v756_v12 = vld [vmem:[%s1022_s1 + $0xa8] sm:$0xff]  }
   0x5   :  { %703 = vmatpush3.bf16.msra.mxu1 %v748_v4  ;;  %664 = vmatprep.subr.bf16.mxu0 %v749_v5  ;;  %v757_v13 = vld [vmem:[%s1022_s1 + $0x60] sm:$0xff]   ;;  %v761_v17 = vld [vmem:[%s1022_s1 + $0x58] sm:$0xff]   ;;  %v765_v21 = vld [vmem:[%s1022_s1 + $0x50] sm:$0xff]  }
   0x6   :  { %704 = vmatprep.subr.bf16.mxu1 %v750_v6  ;;  %v758_v14 = vld [vmem:[%s1022_s1 + $0xe0] sm:$0xff]   ;;  %v762_v18 = vld [vmem:[%s1022_s1 + $0xd8] sm:$0xff]   ;;  %v766_v22 = vld [vmem:[%s1022_s1 + $0xd0] sm:$0xff]  }
   0x7   :  { %v759_v15 = vld [vmem:[%s1022_s1 + $0x20] sm:$0xff]   ;;  %v763_v19 = vld [vmem:[%s1022_s1 + $0x18] sm:$0xff]   ;;  %v767_v23 = vld [vmem:[%s1022_s1 + $0x10] sm:$0xff]  }
   0x8   :  { %665 = vmatpush3.bf16.msra.mxu0 %v751_v7  ;;  %v760_v16 = vld [vmem:[%s1022_s1 + $0xa0] sm:$0xff]   ;;  %v764_v20 = vld [vmem:[%s1022_s1 + $0x98] sm:$0xff]   ;;  %v768_v24 = vld [vmem:[%s1022_s1 + $0x90] sm:$0xff]  }
   0x9   :  { %705 = vmatpush3.bf16.msra.mxu1 %v752_v8  ;;  %666 = vmatprep.subr.bf16.mxu0 %v753_v9  ;;  %v769_v25 = vld [vmem:[%s1022_s1 + $0x48] sm:$0xff]   ;;  %v773_v29 = vld [vmem:[%s1022_s1 + $0x40] sm:$0xff]   ;;  %v97_v44 = vld [vmem:[%s1024_s2 + $0x10] sm:$0xff] }
   0xa   :  { %706 = vmatprep.subr.bf16.mxu1 %v754_v10  ;;  %v770_v26 = vld [vmem:[%s1022_s1 + $0xc8] sm:$0xff]   ;;  %v774_v30 = vld [vmem:[%s1022_s1 + $0xc0] sm:$0xff]   ;;  %115 = vperm.xlu1 %744, %v97_v44   ;;  %v98_v46 = vld [vmem:[%s1024_s2 + $0x18] sm:$0xff] }
   0xb   :  { %v771_v27 = vld [vmem:[%s1022_s1 + $0x8] sm:$0xff]   ;;  %v775_v31 = vld [vmem:[%s1022_s1] sm:$0xff]   ;;  %v101_v53 = vld [vmem:[%s1024_s2 + $0x30] sm:$0xff] }
   0xc   :  { %667 = vmatpush3.bf16.msra.mxu0 %v755_v11  ;;  %v772_v28 = vld [vmem:[%s1022_s1 + $0x88] sm:$0xff]   ;;  %v776_v32 = vld [vmem:[%s1022_s1 + $0x80] sm:$0xff]   ;;  %v102_v54 = vld [vmem:[%s1024_s2 + $0x38] sm:$0xff] }
   0xd   :  { %707 = vmatpush3.bf16.msra.mxu1 %v756_v12  ;;  %668 = vmatprep.subr.bf16.mxu0 %v757_v13  ;;  %v777_v33 = vld [vmem:[%s1023_s0] ss:$16 sps:$4 sm:$0xff]   ;;  %v779_v34 = vld [vmem:[%s1023_s0 + $0x4] ss:$16 sps:$4 sm:$0xff]   ;;  %v780_v35 = vld [vmem:[%s1023_s0 + $0x8] ss:$16 sps:$4 sm:$0xff]  }
   0xe   :  { %708 = vmatprep.subr.bf16.mxu1 %v758_v14  ;;  %v782_v36 = vld [vmem:[%s1023_s0 + $0xc] ss:$16 sps:$4 sm:$0xff]   ;;  %447 = vmatprep.mubr.bf16.mxu0 %v779_v34  ;;  %v783_v37 = vld [vmem:[%s1023_s0 + $0x24] ss:$16 sps:$4 sm:$0xff]   ;;  %v787_v39 = vld [vmem:[%s1023_s0 + $0x20] ss:$16 sps:$4 sm:$0xff]  }
   0xf   :  { %512 = vmatprep.mubr.bf16.mxu1 %v782_v36  ;;  %v785_v38 = vld [vmem:[%s1023_s0 + $0x2c] ss:$16 sps:$4 sm:$0xff]   ;;  %v788_v40 = vld [vmem:[%s1023_s0 + $0x28] ss:$16 sps:$4 sm:$0xff]   ;;  %v789_v41 = vld [vmem:[%s1023_s0 + $0x44] ss:$16 sps:$4 sm:$0xff]   ;;  %120 = vperm.xlu1 %744, %v98_v46  }
  0x10   :  { %669 = vmatpush3.bf16.msra.mxu0 %v759_v15  ;;  %v791_v42 = vld [vmem:[%s1023_s0 + $0x4c] ss:$16 sps:$4 sm:$0xff]   ;;  %v95_v43 = vld [vmem:[%s1024_s2] sm:$0xff]  ;;  %v794_v49 = vld [vmem:[%s1023_s0 + $0x48] ss:$16 sps:$4 sm:$0xff]  }
  0x11   :  { %709 = vmatpush3.bf16.msra.mxu1 %v760_v16  ;;  %670 = vmatprep.subr.bf16.mxu0 %v761_v17  ;;  %v96_v45 = vld [vmem:[%s1024_s2 + $0x8] sm:$0xff]  ;;  %v793_v47 = vld [vmem:[%s1023_s0 + $0x40] ss:$16 sps:$4 sm:$0xff]   ;;  %v795_v50 = vld [vmem:[%s1023_s0 + $0x64] ss:$16 sps:$4 sm:$0xff]  }
  0x12   :  { %710 = vmatprep.subr.bf16.mxu1 %v762_v18  ;;  %105 = vperm.xlu0 %743, %v95_v43   ;;  %v99_v48 = vld [vmem:[%s1024_s2 + $0x20] sm:$0xff]  ;;  %v100_v51 = vld [vmem:[%s1024_s2 + $0x28] sm:$0xff] }
  0x13   :  { %v797_v52 = vld [vmem:[%s1023_s0 + $0x6c] ss:$16 sps:$4 sm:$0xff]   ;;  %130 = vperm.xlu1 %744, %v100_v51   ;;  %v799_v55 = vld [vmem:[%s1023_s0 + $0x60] ss:$16 sps:$4 sm:$0xff]   ;;  %v800_v56 = vld [vmem:[%s1023_s0 + $0x68] ss:$16 sps:$4 sm:$0xff]  }
  0x14   :  { %671 = vmatpush3.bf16.msra.mxu0 %v763_v19 }
  0x15   :  { %711 = vmatpush3.bf16.msra.mxu1 %v764_v20  ;;  %672 = vmatprep.subr.bf16.mxu0 %v765_v21 }
  0x16   :  { %712 = vmatprep.subr.bf16.mxu1 %v766_v22  ;;  %110 = vperm.xlu0 %743, %v96_v45  }
  0x17   :  { %140 = vperm.xlu1 %744, %v102_v54  }
  0x18   :  { %673 = vmatpush3.bf16.msra.mxu0 %v767_v23 }
  0x19   :  { %713 = vmatpush3.bf16.msra.mxu1 %v768_v24  ;;  %674 = vmatprep.subr.bf16.mxu0 %v769_v25 }
  0x1a   :  { %714 = vmatprep.subr.bf16.mxu1 %v770_v26  ;;  %125 = vperm.xlu0 %743, %v99_v48  }
  0x1c   :  { %675 = vmatpush3.bf16.msra.mxu0 %v771_v27 }
  0x1d   :  { %715 = vmatpush3.bf16.msra.mxu1 %v772_v28  ;;  %676 = vmatprep.subr.bf16.mxu0 %v773_v29 }
  0x1e   :  { %716 = vmatprep.subr.bf16.mxu1 %v774_v30  ;;  %135 = vperm.xlu0 %743, %v101_v53  }
  0x20   :  { %677 = vmatpush3.bf16.msra.mxu0 %v775_v31 }
  0x21   :  { %717 = vmatpush3.bf16.msra.mxu1 %v776_v32 }
  0x23   :  { %448 = vmatmul.mubr.bf16.vlgmr.msra.gmra.mxu0 %v777_v33 }
  0x24   :  { %513 = vmatmul.mubr.bf16.vlgmr.msra.gmra.mxu1 %v780_v35  ;;  %455 = vmatprep.mubr.bf16.mxu0 %v783_v37 }
  0x25   :  { %520 = vmatprep.mubr.bf16.mxu1 %v785_v38 }
  0x2b   :  { %456 = vmatmul.mubr.bf16.gmra.mxu0 %v787_v39 }
  0x2c   :  { %521 = vmatmul.mubr.bf16.gmra.mxu1 %v788_v40  ;;  %463 = vmatprep.mubr.bf16.mxu0 %v789_v41 }
  0x2d   :  { %528 = vmatprep.mubr.bf16.mxu1 %v791_v42 }
  0x33   :  { %464 = vmatmul.mubr.bf16.gmra.mxu0 %v793_v47 }
  0x34   :  { %529 = vmatmul.mubr.bf16.gmra.mxu1 %v794_v49  ;;  %471 = vmatprep.mubr.bf16.mxu0 %v795_v50 }
  0x35   :  { %536 = vmatprep.mubr.bf16.mxu1 %v797_v52 }
  0x3b   :  { %472 = vmatmul.mubr.bf16.gmra.mxu0 %v799_v55 }
  0x3c   :  { %537 = vmatmul.mubr.bf16.gmra.mxu1 %v800_v56 }
  0x85   :  { %v116_v13 = vpop.permute.xlu1 %115 }
  0x8a   :  { %v121_v29 = vpop.permute.xlu1 %120 }
  0x8d   :  { %v106_v58 = vpop.permute.xlu0 %105 }
  0x8e   :  { %v131_v51 = vpop.permute.xlu1 %130 }
  0x91   :  { %v111_v4 = vpop.permute.xlu0 %110 }
  0x95   :  { %v126_v40 = vpop.permute.xlu0 %125 }
  0xe3   :  { %v678_v57 = vpop.f32.mrf.mxu0 }
  0xe4   :  { %v718_v59 = vpop.f32.mrf.mxu1 }
  0xe5   :  { %v679_v60 = vpop.f32.mrf.mxu0 }
  0xe6   :  { %v680_v61 = vadd.f32 %v679_v60, %v678_v57  ;;  %v719_v62 = vpop.f32.mrf.mxu1 }
  0xe7   :  { %v681_v63 = vpop.f32.mrf.mxu0  ;;  %v720_v0 = vadd.f32 %v719_v62, %v718_v59  ;;  %v136_v62 = vpop.permute.xlu0 %135 }
  0xe8   :  { %v450_v1 = vadd.f32 %v680_v61, %v106_v58  ;;  %v721_v2 = vpop.f32.mrf.mxu1 }
  0xe9   :  { %v682_v3 = vpop.f32.mrf.mxu0 }
  0xea   :  { %v515_v5 = vadd.f32 %v720_v0, %v450_v1  ;;  %v683_v6 = vadd.f32 %v682_v3, %v681_v63  ;;  %v722_v7 = vpop.f32.mrf.mxu1 }
  0xeb   :  { %v684_v8 = vpop.f32.mrf.mxu0  ;;  %v723_v10 = vadd.f32 %v722_v7, %v721_v2 }
  0xec   :  { %v545_v9 = vmax.f32 %v515_v5, 0.0  ;;  %v453_v11 = vadd.f32 %v683_v6, %v111_v4  ;;  %v724_v12 = vpop.f32.mrf.mxu1 }
  0xed   :  { %v685_v14 = vpop.f32.mrf.mxu0 }
  0xee   :  { %v654_v15 = vpack.c.bf16 %v545_v9, %v545_v9  ;;  %v518_v16 = vadd.f32 %v723_v10, %v453_v11  ;;  %v686_v17 = vadd.f32 %v685_v14, %v684_v8  ;;  %v725_v18 = vpop.f32.mrf.mxu1  ;;  %v141_v9 = vpop.permute.xlu1 %140 }
  0xef   :  { %v687_v19 = vpop.f32.mrf.mxu0  ;;  %v726_v22 = vadd.f32 %v725_v18, %v724_v12 }
  0xf0   :  { %586 = vst.msk [vmem:[%s1025_s3] sm:$0xf] %vm585_vm0, %v654_v15  ;;  %v546_v20 = vmax.f32 %v518_v16, 0.0  ;;  %v458_v21 = vadd.f32 %v686_v17, %v116_v13  ;;  %v727_v23 = vpop.f32.mrf.mxu1 }
  0xf1   :  { %v688_v24 = vpop.f32.mrf.mxu0 }
  0xf2   :  { %v655_v25 = vpack.c.bf16 %v546_v20, %v546_v20  ;;  %v523_v26 = vadd.f32 %v726_v22, %v458_v21  ;;  %v689_v27 = vadd.f32 %v688_v24, %v687_v19  ;;  %v728_v28 = vpop.f32.mrf.mxu1 }
  0xf3   :  { %v690_v30 = vpop.f32.mrf.mxu0  ;;  %v729_v33 = vadd.f32 %v728_v28, %v727_v23 }
  0xf4   :  { %587 = vst.msk [vmem:[%s1025_s3 + $0x4] sm:$0xf] %vm585_vm0, %v655_v25  ;;  %v547_v31 = vmax.f32 %v523_v26, 0.0  ;;  %v461_v32 = vadd.f32 %v689_v27, %v121_v29  ;;  %v730_v34 = vpop.f32.mrf.mxu1 }
  0xf5   :  { %v691_v35 = vpop.f32.mrf.mxu0 }
  0xf6   :  { %v656_v36 = vpack.c.bf16 %v547_v31, %v547_v31  ;;  %v526_v37 = vadd.f32 %v729_v33, %v461_v32  ;;  %v692_v38 = vadd.f32 %v691_v35, %v690_v30  ;;  %v731_v39 = vpop.f32.mrf.mxu1 }
  0xf7   :  { %v693_v41 = vpop.f32.mrf.mxu0  ;;  %v732_v44 = vadd.f32 %v731_v39, %v730_v34 }
  0xf8   :  { %588 = vst.msk [vmem:[%s1025_s3 + $0x8] sm:$0xf] %vm585_vm0, %v656_v36  ;;  %v548_v42 = vmax.f32 %v526_v37, 0.0  ;;  %v466_v43 = vadd.f32 %v692_v38, %v126_v40  ;;  %v733_v45 = vpop.f32.mrf.mxu1 }
  0xf9   :  { %v694_v46 = vpop.f32.mrf.mxu0 }
  0xfa   :  { %v657_v47 = vpack.c.bf16 %v548_v42, %v548_v42  ;;  %v531_v48 = vadd.f32 %v732_v44, %v466_v43  ;;  %v695_v49 = vadd.f32 %v694_v46, %v693_v41  ;;  %v734_v50 = vpop.f32.mrf.mxu1 }
  0xfb   :  { %v696_v52 = vpop.f32.mrf.mxu0  ;;  %v735_v55 = vadd.f32 %v734_v50, %v733_v45 }
  0xfc   :  { %589 = vst.msk [vmem:[%s1025_s3 + $0xc] sm:$0xf] %vm585_vm0, %v657_v47  ;;  %v549_v53 = vmax.f32 %v531_v48, 0.0  ;;  %v469_v54 = vadd.f32 %v695_v49, %v131_v51  ;;  %v736_v56 = vpop.f32.mrf.mxu1 }
  0xfd   :  { %v697_v57 = vpop.f32.mrf.mxu0 }
  0xfe   :  { %v658_v58 = vpack.c.bf16 %v549_v53, %v549_v53  ;;  %v534_v59 = vadd.f32 %v735_v55, %v469_v54  ;;  %v698_v60 = vadd.f32 %v697_v57, %v696_v52  ;;  %v737_v61 = vpop.f32.mrf.mxu1 }
  0xff   :  { %v699_v63 = vpop.f32.mrf.mxu0  ;;  %v738_v2 = vadd.f32 %v737_v61, %v736_v56 }
 0x100   :  { %590 = vst.msk [vmem:[%s1025_s3 + $0x10] sm:$0xf] %vm585_vm0, %v658_v58  ;;  %v550_v0 = vmax.f32 %v534_v59, 0.0  ;;  %v474_v1 = vadd.f32 %v698_v60, %v136_v62  ;;  %v739_v3 = vpop.f32.mrf.mxu1 }
 0x101   :  { %v700_v4 = vpop.f32.mrf.mxu0 }
 0x102   :  { %v659_v5 = vpack.c.bf16 %v550_v0, %v550_v0  ;;  %v539_v6 = vadd.f32 %v738_v2, %v474_v1  ;;  %v701_v7 = vadd.f32 %v700_v4, %v699_v63  ;;  %v740_v8 = vpop.f32.mrf.mxu1 }
 0x103   :  { %v741_v12 = vadd.f32 %v740_v8, %v739_v3 }
 0x104   :  { %591 = vst.msk [vmem:[%s1025_s3 + $0x14] sm:$0xf] %vm585_vm0, %v659_v5  ;;  %v551_v10 = vmax.f32 %v539_v6, 0.0  ;;  %v477_v11 = vadd.f32 %v701_v7, %v141_v9 }
 0x106   :  { %v660_v13 = vpack.c.bf16 %v551_v10, %v551_v10  ;;  %v542_v14 = vadd.f32 %v741_v12, %v477_v11 }
 0x108   :  { %592 = vst.msk [vmem:[%s1025_s3 + $0x18] sm:$0xf] %vm585_vm0, %v660_v13  ;;  %v552_v15 = vmax.f32 %v542_v14, 0.0 }
 0x10a   :  { %v661_v16 = vpack.c.bf16 %v552_v15, %v552_v15 }
 0x10c   :  { %593 = vst.msk [vmem:[%s1025_s3 + $0x1c] sm:$0xf] %vm585_vm0, %v661_v16 }

// kernel: _forward.36
= control target key start
LH: loop header
LB: loop body
LE: loop exit
PB: predicated region body
PF: predicated region fallthrough
CT: control target
= control target key end

     0   :  { %v1037_v1 = vmov 0   ;;  %vm478_vm0 = vcmask 523264   ;;  %vm750_vm1 = vcmask 11264   ;;  %s1328_s1 = inlined_call_operand.vmem [shape: bf16[576,2], index: 1, kind: input, shape index: {}]   ;;  %s1329_s0 = inlined_call_operand.vmem [shape: bf16[64,576], index: 0, kind: input, shape index: {}]   ;;  %s1330_s2 = inlined_call_operand.vmem [shape: f32[64,1], index: 2, kind: input, shape index: {}]   ;;  %s1331_s3 = inlined_call_operand.vmem [shape: bf16[64,2], index: 3, kind: input, shape index: {}]   ;;  %s1332_s4 = inlined_call_operand.vmem [shape: bf16[64,2], index: 4, kind: output, shape index: {}]  }
   0x1   :  { %v973_v0 = vld [vmem:[%s1328_s1 + $0x78] sm:$0xff]   ;;  %971 = vset.pattern.permute.xlu0 %v1037_v1  ;;  %972 = vset.pattern.permute.xlu1 %v1037_v1  ;;  %v977_v5 = vld [vmem:[%s1328_s1 + $0x70] sm:$0xff]   ;;  %v981_v9 = vld [vmem:[%s1328_s1 + $0x68] sm:$0xff]  }
   0x2   :  { %v974_v2 = vld [vmem:[%s1328_s1 + $0xf8] sm:$0xff]   ;;  %858 = vmatprep.subr.bf16.mxu0 %v973_v0  ;;  %v978_v6 = vld [vmem:[%s1328_s1 + $0xf0] sm:$0xff]   ;;  %v982_v10 = vld [vmem:[%s1328_s1 + $0xe8] sm:$0xff]  }
   0x3   :  { %v975_v3 = vld [vmem:[%s1328_s1 + $0x38] sm:$0xff]   ;;  %898 = vmatprep.subr.bf16.mxu1 %v974_v2  ;;  %v979_v7 = vld [vmem:[%s1328_s1 + $0x30] sm:$0xff]   ;;  %v983_v11 = vld [vmem:[%s1328_s1 + $0x28] sm:$0xff]  }
   0x4   :  { %v976_v4 = vld [vmem:[%s1328_s1 + $0xb8] sm:$0xff]   ;;  %859 = vmatpush3.bf16.msra.mxu0 %v975_v3  ;;  %v980_v8 = vld [vmem:[%s1328_s1 + $0xb0] sm:$0xff]   ;;  %v984_v12 = vld [vmem:[%s1328_s1 + $0xa8] sm:$0xff]  }
   0x5   :  { %899 = vmatpush3.bf16.msra.mxu1 %v976_v4  ;;  %860 = vmatprep.subr.bf16.mxu0 %v977_v5  ;;  %v985_v13 = vld [vmem:[%s1328_s1 + $0x60] sm:$0xff]   ;;  %v989_v17 = vld [vmem:[%s1328_s1 + $0x58] sm:$0xff]   ;;  %v993_v21 = vld [vmem:[%s1328_s1 + $0x50] sm:$0xff]  }
   0x6   :  { %900 = vmatprep.subr.bf16.mxu1 %v978_v6  ;;  %v986_v14 = vld [vmem:[%s1328_s1 + $0xe0] sm:$0xff]   ;;  %v990_v18 = vld [vmem:[%s1328_s1 + $0xd8] sm:$0xff]   ;;  %v994_v22 = vld [vmem:[%s1328_s1 + $0xd0] sm:$0xff]  }
   0x7   :  { %v987_v15 = vld [vmem:[%s1328_s1 + $0x20] sm:$0xff]   ;;  %v991_v19 = vld [vmem:[%s1328_s1 + $0x18] sm:$0xff]   ;;  %v995_v23 = vld [vmem:[%s1328_s1 + $0x10] sm:$0xff]  }
   0x8   :  { %861 = vmatpush3.bf16.msra.mxu0 %v979_v7  ;;  %v988_v16 = vld [vmem:[%s1328_s1 + $0xa0] sm:$0xff]   ;;  %v992_v20 = vld [vmem:[%s1328_s1 + $0x98] sm:$0xff]   ;;  %v996_v24 = vld [vmem:[%s1328_s1 + $0x90] sm:$0xff]  }
   0x9   :  { %901 = vmatpush3.bf16.msra.mxu1 %v980_v8  ;;  %862 = vmatprep.subr.bf16.mxu0 %v981_v9  ;;  %v997_v25 = vld [vmem:[%s1328_s1 + $0x48] sm:$0xff]   ;;  %v1001_v29 = vld [vmem:[%s1328_s1 + $0x40] sm:$0xff]   ;;  %v1011_v37 = vld [vmem:[%s1328_s1 + $0x118] sm:$0xff]  }
   0xa   :  { %902 = vmatprep.subr.bf16.mxu1 %v982_v10  ;;  %v998_v26 = vld [vmem:[%s1328_s1 + $0xc8] sm:$0xff]   ;;  %v1002_v30 = vld [vmem:[%s1328_s1 + $0xc0] sm:$0xff]   ;;  %v1018_v40 = vld [vmem:[%s1328_s1 + $0x110] sm:$0xff]  }
   0xb   :  { %v999_v27 = vld [vmem:[%s1328_s1 + $0x8] sm:$0xff]   ;;  %v1003_v31 = vld [vmem:[%s1328_s1] sm:$0xff]   ;;  %v1021_v44 = vld [vmem:[%s1329_s0 + $0x5c] ss:$20 sps:$4 sm:$0xff]  }
   0xc   :  { %863 = vmatpush3.bf16.msra.mxu0 %v983_v11  ;;  %v1000_v28 = vld [vmem:[%s1328_s1 + $0x88] sm:$0xff]   ;;  %v1004_v32 = vld [vmem:[%s1328_s1 + $0x80] sm:$0xff]   ;;  %v1026_v49 = vld [vmem:[%s1329_s0 + $0x7c] ss:$20 sps:$4 sm:$0xff]  }
   0xd   :  { %903 = vmatpush3.bf16.msra.mxu1 %v984_v12  ;;  %864 = vmatprep.subr.bf16.mxu0 %v985_v13  ;;  %v1005_v33 = vld [vmem:[%s1329_s0] ss:$20 sps:$4 sm:$0xff]   ;;  %v1007_v34 = vld [vmem:[%s1329_s0 + $0x4] ss:$20 sps:$4 sm:$0xff]   ;;  %v1008_v35 = vld [vmem:[%s1329_s0 + $0x8] ss:$20 sps:$4 sm:$0xff]  }
   0xe   :  { %904 = vmatprep.subr.bf16.mxu1 %v986_v14  ;;  %v1010_v36 = vld [vmem:[%s1329_s0 + $0xc] ss:$20 sps:$4 sm:$0xff]   ;;  %523 = vmatprep.mubr.bf16.mxu0 %v1007_v34  ;;  %v1014_v39 = vld [vmem:[%s1329_s0 + $0x34] ss:$20 sps:$4 sm:$0xff]   ;;  %v1017_v42 = vld [vmem:[%s1329_s0 + $0x30] ss:$20 sps:$4 sm:$0xff]  }
   0xf   :  { %588 = vmatprep.mubr.bf16.mxu1 %v1010_v36  ;;  %v1012_v38 = vld [vmem:[%s1329_s0 + $0x2c] ss:$20 sps:$4 sm:$0xff]   ;;  %v1016_v41 = vld [vmem:[%s1329_s0 + $0x28] ss:$20 sps:$4 sm:$0xff]   ;;  %v1023_v47 = vld [vmem:[%s1329_s0 + $0x50] ss:$20 sps:$4 sm:$0xff]  }
  0x10   :  { %865 = vmatpush3.bf16.msra.mxu0 %v987_v15  ;;  %v1019_v43 = vld [vmem:[%s1329_s0 + $0x54] ss:$20 sps:$4 sm:$0xff]   ;;  %v1032_v46 = vld [vmem:[%s1328_s1 + $0x100] sm:$0xff]   ;;  %v1024_v48 = vld [vmem:[%s1329_s0 + $0x58] ss:$20 sps:$4 sm:$0xff]  }
  0x11   :  { %905 = vmatpush3.bf16.msra.mxu1 %v988_v16  ;;  %866 = vmatprep.subr.bf16.mxu0 %v989_v17  ;;  %v1025_v45 = vld [vmem:[%s1328_s1 + $0x108] sm:$0xff]   ;;  %v1028_v50 = vld [vmem:[%s1329_s0 + $0x84] ss:$20 sps:$4 sm:$0xff]   ;;  %v116_v52 = vld [vmem:[%s1330_s2 + $0x10] sm:$0xff] }
  0x12   :  { %906 = vmatprep.subr.bf16.mxu1 %v990_v18  ;;  %v114_v51 = vld [vmem:[%s1330_s2] sm:$0xff]  ;;  %v115_v53 = vld [vmem:[%s1330_s2 + $0x8] sm:$0xff]  ;;  %134 = vperm.xlu1 %972, %v116_v52   ;;  %v117_v54 = vld [vmem:[%s1330_s2 + $0x18] sm:$0xff] }
  0x13   :  { %124 = vperm.xlu0 %971, %v114_v51   ;;  %v1030_v55 = vld [vmem:[%s1329_s0 + $0x78] ss:$20 sps:$4 sm:$0xff]   ;;  %v1031_v56 = vld [vmem:[%s1329_s0 + $0x80] ss:$20 sps:$4 sm:$0xff]   ;;  %v1033_v57 = vld [vmem:[%s1329_s0 + $0x10] ss:$20 sps:$4 sm:$0xff]  }
  0x14   :  { %867 = vmatpush3.bf16.msra.mxu0 %v991_v19  ;;  %v118_v58 = vld [vmem:[%s1330_s2 + $0x20] sm:$0xff]  ;;  %v119_v60 = vld [vmem:[%s1330_s2 + $0x28] sm:$0xff]  ;;  %v120_v61 = vld [vmem:[%s1330_s2 + $0x30] sm:$0xff] }
  0x15   :  { %907 = vmatpush3.bf16.msra.mxu1 %v992_v20  ;;  %868 = vmatprep.subr.bf16.mxu0 %v993_v21  ;;  %v1034_v59 = vld [vmem:[%s1329_s0 + $0x60] ss:$20 sps:$4 sm:$0xff]   ;;  %v121_v62 = vld [vmem:[%s1330_s2 + $0x38] sm:$0xff] }
  0x16   :  { %908 = vmatprep.subr.bf16.mxu1 %v994_v22  ;;  %139 = vperm.xlu1 %972, %v117_v54   ;;  %v1035_v63 = vld [vmem:[%s1329_s0 + $0x38] ss:$20 sps:$4 sm:$0xff]   ;;  %v1036_v0 = vld [vmem:[%s1329_s0 + $0x88] ss:$20 sps:$4 sm:$0xff]  }
  0x17   :  { %129 = vperm.xlu0 %971, %v115_v53  }
  0x18   :  { %869 = vmatpush3.bf16.msra.mxu0 %v995_v23 }
  0x19   :  { %909 = vmatpush3.bf16.msra.mxu1 %v996_v24  ;;  %870 = vmatprep.subr.bf16.mxu0 %v997_v25 }
  0x1a   :  { %910 = vmatprep.subr.bf16.mxu1 %v998_v26  ;;  %149 = vperm.xlu1 %972, %v119_v60  }
  0x1b   :  { %144 = vperm.xlu0 %971, %v118_v58  }
  0x1c   :  { %871 = vmatpush3.bf16.msra.mxu0 %v999_v27 }
  0x1d   :  { %911 = vmatpush3.bf16.msra.mxu1 %v1000_v28  ;;  %872 = vmatprep.subr.bf16.mxu0 %v1001_v29 }
  0x1e   :  { %912 = vmatprep.subr.bf16.mxu1 %v1002_v30  ;;  %159 = vperm.xlu1 %972, %v121_v62  }
  0x1f   :  { %154 = vperm.xlu0 %971, %v120_v61  }
  0x20   :  { %873 = vmatpush3.bf16.msra.mxu0 %v1003_v31  ;;  %v1268_v31 = vld [vmem:[%s1331_s3 + $0x8] sm:$0xff]  }
  0x21   :  { %913 = vmatpush3.bf16.msra.mxu1 %v1004_v32  ;;  %946 = vmatprep.subr.bf16.mxu0 %v1011_v37  ;;  %v1273_v32 = vld [vmem:[%s1331_s3 + $0x18] sm:$0xff]   ;;  %v846_v53 = vunpack.c.h.bf16 %v1268_v31 }
  0x22   :  { %962 = vmatprep.subr.bf16.mxu1 %v1011_v37  ;;  %v854_v58 = vunpack.c.h.bf16 %v1273_v32 }
  0x23   :  { %524 = vmatmul.mubr.bf16.vlgmr.msra.gmra.mxu0 %v1005_v33 }
  0x24   :  { %589 = vmatmul.mubr.bf16.vlgmr.msra.gmra.mxu1 %v1008_v35  ;;  %947 = vmatpush3.bf16.msra.mxu0 %v1011_v37  ;;  %v1278_v35 = vld [vmem:[%s1331_s3] sm:$0xff]  }
  0x25   :  { %966 = vmatpush3.bf16.msra.mxu1 %v1011_v37  ;;  %531 = vmatprep.mubr.bf16.mxu0 %v1012_v38  ;;  %v1283_v37 = vld [vmem:[%s1331_s3 + $0x10] sm:$0xff]  }
  0x26   :  { %596 = vmatprep.mubr.bf16.mxu1 %v1014_v39  ;;  %948 = vmatprep.subr.bf16.mxu0 %v1018_v40  ;;  %v849_v52 = vunpack.c.l.bf16 %v1283_v37 }
  0x27   :  { %963 = vmatprep.subr.bf16.mxu1 %v1018_v40 }
  0x28   :  { %949 = vmatpush3.bf16.msra.mxu0 %v1018_v40 }
  0x29   :  { %967 = vmatpush3.bf16.msra.mxu1 %v1018_v40  ;;  %950 = vmatprep.subr.bf16.mxu0 %v1025_v45 }
  0x2a   :  { %964 = vmatprep.subr.bf16.mxu1 %v1025_v45 }
  0x2b   :  { %532 = vmatmul.mubr.bf16.gmra.mxu0 %v1016_v41  ;;  %v845_v41 = vunpack.c.l.bf16 %v1268_v31 }
  0x2c   :  { %597 = vmatmul.mubr.bf16.gmra.mxu1 %v1017_v42  ;;  %539 = vmatprep.mubr.bf16.mxu0 %v1019_v43  ;;  %v853_v42 = vunpack.c.l.bf16 %v1273_v32 }
  0x2d   :  { %604 = vmatprep.mubr.bf16.mxu1 %v1021_v44  ;;  %951 = vmatpush3.bf16.msra.mxu0 %v1025_v45 }
  0x2e   :  { %968 = vmatpush3.bf16.msra.mxu1 %v1025_v45  ;;  %952 = vmatprep.subr.bf16.mxu0 %v1032_v46 }
  0x2f   :  { %965 = vmatprep.subr.bf16.mxu1 %v1032_v46 }
  0x31   :  { %953 = vmatpush3.bf16.msra.mxu0 %v1032_v46 }
  0x32   :  { %969 = vmatpush3.bf16.msra.mxu1 %v1032_v46 }
  0x33   :  { %540 = vmatmul.mubr.bf16.gmra.mxu0 %v1023_v47  ;;  %v841_v47 = vunpack.c.l.bf16 %v1278_v35 }
  0x34   :  { %605 = vmatmul.mubr.bf16.gmra.mxu1 %v1024_v48  ;;  %547 = vmatprep.mubr.bf16.mxu0 %v1026_v49 }
  0x35   :  { %612 = vmatprep.mubr.bf16.mxu1 %v1028_v50 }
  0x3b   :  { %548 = vmatmul.mubr.bf16.gmra.mxu0 %v1030_v55 }
  0x3c   :  { %613 = vmatmul.mubr.bf16.gmra.mxu1 %v1031_v56  ;;  %954 = vmatprep.mubr.msk.bf16.mxu0 %vm478_vm0, %v1033_v57 }
  0x3d   :  { %958 = vmatprep.mubr.msk.bf16.mxu1 %vm478_vm0, %v1034_v59 }
  0x43   :  { %955 = vmatmul.mubr.msk.bf16.vlgmr.msra.gmra.mxu0 %vm478_vm0, %v1035_v63 }
  0x44   :  { %959 = vmatmul.mubr.msk.bf16.vlgmr.msra.gmra.mxu1 %vm478_vm0, %v1036_v0 }
  0x8d   :  { %v135_v16 = vpop.permute.xlu1 %134 }
  0x8e   :  { %v125_v13 = vpop.permute.xlu0 %124 }
  0x91   :  { %v140_v24 = vpop.permute.xlu1 %139 }
  0x92   :  { %v130_v21 = vpop.permute.xlu0 %129 }
  0x95   :  { %v150_v39 = vpop.permute.xlu1 %149 }
  0x96   :  { %v145_v27 = vpop.permute.xlu0 %144 }
  0x9a   :  { %v155_v50 = vpop.permute.xlu0 %154 }
  0xe3   :  { %v874_v1 = vpop.f32.mrf.mxu0 }
  0xe4   :  { %v914_v2 = vpop.f32.mrf.mxu1 }
  0xe5   :  { %v875_v3 = vpop.f32.mrf.mxu0 }
  0xe6   :  { %v915_v4 = vpop.f32.mrf.mxu1  ;;  %v876_v33 = vadd.f32 %v875_v3, %v874_v1 }
  0xe7   :  { %v877_v5 = vpop.f32.mrf.mxu0  ;;  %v916_v59 = vadd.f32 %v915_v4, %v914_v2 }
  0xe8   :  { %v1259_v6 = vpop.f32.mrf.mxu1  ;;  %v526_v48 = vadd.f32 %v876_v33, %v125_v13  ;;  %v850_v33 = vunpack.c.h.bf16 %v1283_v37 }
  0xe9   :  { %v878_v7 = vpop.f32.mrf.mxu0 }
  0xea   :  { %v1261_v8 = vpop.f32.mrf.mxu1  ;;  %v879_v49 = vadd.f32 %v878_v7, %v877_v5 }
  0xeb   :  { %v880_v9 = vpop.f32.mrf.mxu0 }
  0xec   :  { %v920_v10 = vpop.f32.mrf.mxu1  ;;  %v529_v7 = vadd.f32 %v879_v49, %v130_v21 }
  0xed   :  { %v881_v11 = vpop.f32.mrf.mxu0 }
  0xee   :  { %v921_v12 = vpop.f32.mrf.mxu1  ;;  %v882_v29 = vadd.f32 %v881_v11, %v880_v9  ;;  %v160_v11 = vpop.permute.xlu1 %159 }
  0xef   :  { %v883_v14 = vpop.f32.mrf.mxu0  ;;  %v922_v54 = vadd.f32 %v921_v12, %v920_v10  ;;  %v591_v10 = vadd.f32 %v916_v59, %v526_v48  ;;  %v842_v12 = vunpack.c.h.bf16 %v1278_v35 }
  0xf0   :  { %v923_v15 = vpop.f32.mrf.mxu1  ;;  %v534_v43 = vadd.f32 %v882_v29, %v135_v16 }
  0xf1   :  { %v884_v17 = vpop.f32.mrf.mxu0 }
  0xf2   :  { %v924_v18 = vpop.f32.mrf.mxu1  ;;  %v885_v44 = vadd.f32 %v884_v17, %v883_v14  ;;  %v599_v3 = vadd.f32 %v922_v54, %v534_v43 }
  0xf3   :  { %v886_v19 = vpop.f32.mrf.mxu0  ;;  %v925_v14 = vadd.f32 %v924_v18, %v923_v15 }
  0xf4   :  { %v926_v20 = vpop.f32.mrf.mxu1  ;;  %v537_v63 = vadd.f32 %v885_v44, %v140_v24 }
  0xf5   :  { %v887_v22 = vpop.f32.mrf.mxu0 }
  0xf6   :  { %v927_v23 = vpop.f32.mrf.mxu1  ;;  %v888_v38 = vadd.f32 %v887_v22, %v886_v19  ;;  %v919_v19 = vadd.f32 %v1261_v8, %v1259_v6 }
  0xf7   :  { %v889_v25 = vpop.f32.mrf.mxu0  ;;  %v928_v9 = vadd.f32 %v927_v23, %v926_v20  ;;  %v602_v23 = vadd.f32 %v925_v14, %v537_v63 }
  0xf8   :  { %v1263_v26 = vpop.f32.mrf.mxu1  ;;  %v542_v60 = vadd.f32 %v888_v38, %v145_v27  ;;  %v594_v8 = vadd.f32 %v919_v19, %v529_v7 }
  0xf9   :  { %v890_v28 = vpop.f32.mrf.mxu0 }
  0xfa   :  { %v930_v30 = vpop.f32.mrf.mxu1  ;;  %v891_v61 = vadd.f32 %v890_v28, %v889_v25  ;;  %v607_v27 = vadd.f32 %v928_v9, %v542_v60 }
  0xfb   :  { %v892_v34 = vpop.f32.mrf.mxu0  ;;  %v931_v31 = vadd.f32 %v930_v30, %v1263_v26 }
  0xfc   :  { %v932_v36 = vpop.f32.mrf.mxu1  ;;  %v545_v22 = vadd.f32 %v891_v61, %v150_v39 }
  0xfd   :  { %v893_v40 = vpop.f32.mrf.mxu0 }
  0xfe   :  { %v894_v45 = vadd.f32 %v893_v40, %v892_v34  ;;  %v933_v46 = vpop.f32.mrf.mxu1  ;;  %v610_v43 = vadd.f32 %v931_v31, %v545_v22 }
  0xff   :  { %v895_v51 = vpop.f32.mrf.mxu0  ;;  %v934_v56 = vadd.f32 %v933_v46, %v932_v36 }
 0x100   :  { %v550_v55 = vadd.f32 %v894_v45, %v155_v50  ;;  %v935_v57 = vpop.f32.mrf.mxu1 }
 0x101   :  { %v896_v62 = vpop.f32.mrf.mxu0 }
 0x102   :  { %v897_v0 = vadd.f32 %v896_v62, %v895_v51  ;;  %v936_v1 = vpop.f32.mrf.mxu1  ;;  %v615_v5 = vadd.f32 %v934_v56, %v550_v55 }
 0x103   :  { %v956_v13 = vpop.f32.mrf.mxu0  ;;  %v937_v17 = vadd.f32 %v936_v1, %v935_v57 }
 0x104   :  { %v553_v16 = vadd.f32 %v897_v0, %v160_v11  ;;  %v664_v2 = vadd.f32 %v956_v13, %v599_v3  ;;  %v960_v4 = vpop.f32.mrf.mxu1 }
 0x105   :  { %v680_v24 = vadd.f32 %v960_v4, %v615_v5  ;;  %v655_v25 = vpop.f32.mrf.mxu0 }
 0x106   :  { %v704_v28 = vadd.f32 %v845_v41, %v664_v2  ;;  %v656_v21 = vadd.f32 %v655_v25, %v591_v10  ;;  %v671_v20 = vpop.f32.mrf.mxu1  ;;  %v618_v29 = vadd.f32 %v937_v17, %v553_v16 }
 0x107   :  { %v708_v32 = vadd.f32 %v853_v42, %v680_v24  ;;  %v672_v15 = vadd.f32 %v671_v20, %v607_v27  ;;  %v957_v18 = vpop.f32.mrf.mxu0 }
 0x108   :  { %v712_v34 = vmax.f32 %v704_v28, 0.0  ;;  %v702_v35 = vadd.f32 %v841_v47, %v656_v21  ;;  %v667_v36 = vadd.f32 %v957_v18, %v602_v23  ;;  %v961_v6 = vpop.f32.mrf.mxu1 }
 0x109   :  { %v716_v38 = vmax.f32 %v708_v32, 0.0  ;;  %v706_v39 = vadd.f32 %v849_v52, %v672_v15  ;;  %v683_v40 = vadd.f32 %v961_v6, %v618_v29  ;;  %v658_v41 = vpop.f32.mrf.mxu0 }
 0x10a   :  { %v833_v44 = vpack.c.bf16 %v712_v34, %v712_v34  ;;  %v710_v45 = vmax.f32 %v702_v35, 0.0  ;;  %v705_v46 = vadd.f32 %v846_v53, %v667_v36  ;;  %v659_v48 = vadd.f32 %v658_v41, %v594_v8  ;;  %v674_v26 = vpop.f32.mrf.mxu1 }
 0x10b   :  { %v837_v30 = vpack.c.bf16 %v716_v38, %v716_v38  ;;  %v714_v42 = vmax.f32 %v706_v39, 0.0  ;;  %v709_v49 = vadd.f32 %v854_v58, %v683_v40  ;;  %v675_v50 = vadd.f32 %v674_v26, %v610_v43 }
 0x10c   :  { %753 = vst.msk [vmem:[%s1332_s4 + $0x8] sm:$0xf] %vm750_vm1, %v833_v44  ;;  %v831_v37 = vpack.c.bf16 %v710_v45, %v710_v45  ;;  %v713_v47 = vmax.f32 %v705_v46, 0.0  ;;  %v703_v51 = vadd.f32 %v842_v12, %v659_v48 }
 0x10d   :  { %757 = vst.msk [vmem:[%s1332_s4 + $0x18] sm:$0xf] %vm750_vm1, %v837_v30  ;;  %v835_v52 = vpack.c.bf16 %v714_v42, %v714_v42  ;;  %v717_v53 = vmax.f32 %v709_v49, 0.0  ;;  %v707_v54 = vadd.f32 %v850_v33, %v675_v50 }
 0x10e   :  { %751 = vst.msk [vmem:[%s1332_s4] sm:$0xf] %vm750_vm1, %v831_v37  ;;  %v834_v55 = vpack.c.bf16 %v713_v47, %v713_v47  ;;  %v711_v56 = vmax.f32 %v703_v51, 0.0 }
 0x10f   :  { %755 = vst.msk [vmem:[%s1332_s4 + $0x10] sm:$0xf] %vm750_vm1, %v835_v52  ;;  %v838_v57 = vpack.c.bf16 %v717_v53, %v717_v53  ;;  %v715_v58 = vmax.f32 %v707_v54, 0.0 }
 0x110   :  { %754 = vst.msk [vmem:[%s1332_s4 + $0xc] sm:$0xf] %vm750_vm1, %v834_v55  ;;  %v832_v59 = vpack.c.bf16 %v711_v56, %v711_v56 }
 0x111   :  { %758 = vst.msk [vmem:[%s1332_s4 + $0x1c] sm:$0xf] %vm750_vm1, %v838_v57  ;;  %v836_v60 = vpack.c.bf16 %v715_v58, %v715_v58 }
 0x112   :  { %752 = vst.msk [vmem:[%s1332_s4 + $0x4] sm:$0xf] %vm750_vm1, %v832_v59 }
 0x113   :  { %756 = vst.msk [vmem:[%s1332_s4 + $0x14] sm:$0xf] %vm750_vm1, %v836_v60 }

// kernel: _forward.37
= control target key start
LH: loop header
LB: loop body
LE: loop exit
PB: predicated region body
PF: predicated region fallthrough
CT: control target
= control target key end

     0   :  { %v524_v1 = vmov 0   ;;  %vm129_vm0 = vcmask 523264   ;;  %vm412_vm1 = vcmask 11264   ;;  %s679_s0 = inlined_call_operand.vmem [shape: bf16[64,2], index: 0, kind: input, shape index: {}]   ;;  %s680_s1 = inlined_call_operand.vmem [shape: bf16[64,64], index: 1, kind: input, shape index: {}]   ;;  %s681_s2 = inlined_call_operand.vmem [shape: f32[64,1], index: 2, kind: input, shape index: {}]   ;;  %s682_s4 = inlined_call_operand.vmem [shape: f32[64,1], index: 4, kind: input, shape index: {}]   ;;  %s683_s3 = inlined_call_operand.vmem [shape: bf16[64,64], index: 3, kind: input, shape index: {}]   ;;  %s684_s5 = inlined_call_operand.vmem [shape: bf16[64,2], index: 5, kind: output, shape index: {}]  }
   0x1   :  { %v512_v0 = vld [vmem:[%s679_s0 + $0x18] sm:$0xff]   ;;  %510 = vset.pattern.permute.xlu0 %v524_v1  ;;  %511 = vset.pattern.permute.xlu1 %v524_v1  ;;  %v513_v2 = vld [vmem:[%s679_s0 + $0x10] sm:$0xff]   ;;  %v514_v3 = vld [vmem:[%s679_s0 + $0x8] sm:$0xff]  }
   0x2   :  { %477 = vmatprep.subr.bf16.mxu0 %v512_v0  ;;  %v516_v4 = vld [vmem:[%s680_s1] sm:$0xff]   ;;  %v43_v6 = vld [vmem:[%s681_s2 + $0x30] sm:$0xff]  ;;  %v44_v8 = vld [vmem:[%s681_s2 + $0x38] sm:$0xff] }
   0x3   :  { %478 = vmatpush3.bf16.msra.mxu0 %v512_v0  ;;  %485 = vmatprep.mubr.msk.bf16.mxu0 %vm129_vm0, %v516_v4  ;;  %v515_v5 = vld [vmem:[%s679_s0] sm:$0xff]   ;;  %v42_v9 = vld [vmem:[%s681_s2 + $0x28] sm:$0xff]  ;;  %v39_v11 = vld [vmem:[%s681_s2 + $0x10] sm:$0xff] }
   0x4   :  { %479 = vmatprep.subr.bf16.mxu0 %v513_v2  ;;  %v41_v7 = vld [vmem:[%s681_s2 + $0x20] sm:$0xff]  ;;  %77 = vperm.xlu0 %510, %v43_v6   ;;  %v517_v10 = vld [vmem:[%s680_s1 + $0x8] sm:$0xff]   ;;  %v40_v12 = vld [vmem:[%s681_s2 + $0x18] sm:$0xff] }
   0x5   :  { %67 = vperm.xlu1 %511, %v41_v7   ;;  %v518_v13 = vld [vmem:[%s680_s1 + $0x10] sm:$0xff]   ;;  %v37_v14 = vld [vmem:[%s681_s2] sm:$0xff]  ;;  %v38_v15 = vld [vmem:[%s681_s2 + $0x8] sm:$0xff] }
   0x6   :  { %v519_v16 = vld [vmem:[%s680_s1 + $0x18] sm:$0xff]   ;;  %v227_v17 = vld [vmem:[%s682_s4] sm:$0xff]  ;;  %v228_v18 = vld [vmem:[%s682_s4 + $0x8] sm:$0xff] }
   0x7   :  { %480 = vmatpush3.bf16.msra.mxu0 %v513_v2  ;;  %v229_v19 = vld [vmem:[%s682_s4 + $0x10] sm:$0xff]  ;;  %v230_v20 = vld [vmem:[%s682_s4 + $0x18] sm:$0xff]  ;;  %v231_v21 = vld [vmem:[%s682_s4 + $0x20] sm:$0xff] }
   0x8   :  { %481 = vmatprep.subr.bf16.mxu0 %v514_v3  ;;  %82 = vperm.xlu0 %510, %v44_v8   ;;  %v232_v22 = vld [vmem:[%s682_s4 + $0x28] sm:$0xff]  ;;  %v233_v23 = vld [vmem:[%s682_s4 + $0x30] sm:$0xff]  ;;  %v234_v24 = vld [vmem:[%s682_s4 + $0x38] sm:$0xff] }
   0x9   :  { %72 = vperm.xlu1 %511, %v42_v9   ;;  %v520_v25 = vld [vmem:[%s683_s3] sm:$0xff]   ;;  %v521_v62 = vld [vmem:[%s683_s3 + $0x8] sm:$0xff]   ;;  %v522_v63 = vld [vmem:[%s683_s3 + $0x10] sm:$0xff]  }
   0xa   :  { %501 = vmatprep.mubr.msk.bf16.mxu1 %vm129_vm0, %v520_v25  ;;  %v523_v0 = vld [vmem:[%s683_s3 + $0x18] sm:$0xff]  }
   0xb   :  { %482 = vmatpush3.bf16.msra.mxu0 %v514_v3 }
   0xc   :  { %483 = vmatprep.subr.bf16.mxu0 %v515_v5  ;;  %57 = vperm.xlu0 %510, %v39_v11  }
   0xd   :  { %62 = vperm.xlu1 %511, %v40_v12  }
   0xf   :  { %484 = vmatpush3.bf16.msra.mxu0 %v515_v5 }
  0x10   :  { %47 = vperm.xlu0 %510, %v37_v14  }
  0x11   :  { %52 = vperm.xlu1 %511, %v38_v15  }
  0x12   :  { %486 = vmatmul.mubr.msk.bf16.vlgmr.msra.gmra.mxu0 %vm129_vm0, %v517_v10 }
  0x13   :  { %489 = vmatprep.mubr.msk.bf16.mxu0 %vm129_vm0, %v518_v13 }
  0x14   :  { %237 = vperm.xlu0 %510, %v227_v17  }
  0x15   :  { %242 = vperm.xlu1 %511, %v228_v18  }
  0x18   :  { %247 = vperm.xlu0 %510, %v229_v19  }
  0x19   :  { %252 = vperm.xlu1 %511, %v230_v20  }
  0x1a   :  { %490 = vmatmul.mubr.msk.bf16.gmra.mxu0 %vm129_vm0, %v519_v16 }
  0x1c   :  { %257 = vperm.xlu0 %510, %v231_v21  }
  0x1d   :  { %262 = vperm.xlu1 %511, %v232_v22  }
  0x20   :  { %267 = vperm.xlu0 %510, %v233_v23  }
  0x21   :  { %272 = vperm.xlu1 %511, %v234_v24  }
  0x7f   :  { %v78_v28 = vpop.permute.xlu0 %77 }
  0x80   :  { %v68_v26 = vpop.permute.xlu1 %67 }
  0x83   :  { %v83_v33 = vpop.permute.xlu0 %82 }
  0x84   :  { %v73_v31 = vpop.permute.xlu1 %72 }
  0x87   :  { %v58_v41 = vpop.permute.xlu0 %57 }
  0x88   :  { %v63_v37 = vpop.permute.xlu1 %62 }
  0x8b   :  { %v48_v55 = vpop.permute.xlu0 %47 }
  0x8c   :  { %v53_v51 = vpop.permute.xlu1 %52 }
  0x8f   :  { %v238_v1 = vpop.permute.xlu0 %237 }
  0x90   :  { %v243_v2 = vpop.permute.xlu1 %242 }
  0x93   :  { %v248_v3 = vpop.permute.xlu0 %247 }
  0x94   :  { %v253_v4 = vpop.permute.xlu1 %252 }
  0x97   :  { %v258_v7 = vpop.permute.xlu0 %257 }
  0x98   :  { %v263_v15 = vpop.permute.xlu1 %262 }
  0x9b   :  { %v268_v20 = vpop.permute.xlu0 %267 }
  0xd2   :  { %v487_v27 = vpop.f32.mrf.mxu0 }
  0xd3   :  { %v185_v47 = vadd.f32 %v487_v27, %v58_v41 }
  0xd4   :  { %v176_v29 = vpop.f32.mrf.mxu0 }
  0xd5   :  { %v209_v56 = vmax.f32 %v185_v47, 0.0  ;;  %v177_v57 = vadd.f32 %v176_v29, %v48_v55  ;;  %v273_v29 = vpop.permute.xlu1 %272 }
  0xd6   :  { %v488_v30 = vpop.f32.mrf.mxu0 }
  0xd7   :  { %v188_v43 = vadd.f32 %v488_v30, %v63_v37  ;;  %v207_v60 = vmax.f32 %v177_v57, 0.0 }
  0xd8   :  { %v179_v32 = vpop.f32.mrf.mxu0 }
  0xd9   :  { %v210_v52 = vmax.f32 %v188_v43, 0.0  ;;  %v180_v53 = vadd.f32 %v179_v32, %v53_v51 }
  0xda   :  { %v491_v34 = vpop.f32.mrf.mxu0 }
  0xdb   :  { %v201_v36 = vadd.f32 %v491_v34, %v78_v28  ;;  %v216_v58 = vpack.c.bf16 %v210_v52, %v209_v56  ;;  %v208_v59 = vmax.f32 %v180_v53, 0.0 }
  0xdc   :  { %v192_v35 = vpop.f32.mrf.mxu0 }
  0xdd   :  { %v193_v39 = vadd.f32 %v192_v35, %v68_v26  ;;  %v213_v44 = vmax.f32 %v201_v36, 0.0  ;;  %v215_v61 = vpack.c.bf16 %v208_v59, %v207_v60 }
  0xde   :  { %v492_v38 = vpop.f32.mrf.mxu0 }
  0xdf   :  { %v204_v40 = vadd.f32 %v492_v38, %v83_v33  ;;  %v211_v48 = vmax.f32 %v193_v39, 0.0 }
  0xe0   :  { %v195_v42 = vpop.f32.mrf.mxu0 }
  0xe1   :  { %v214_v45 = vmax.f32 %v204_v40, 0.0  ;;  %v196_v46 = vadd.f32 %v195_v42, %v73_v31 }
  0xe3   :  { %v212_v49 = vmax.f32 %v196_v46, 0.0  ;;  %v218_v50 = vpack.c.bf16 %v214_v45, %v213_v44 }
  0xe5   :  { %v217_v54 = vpack.c.bf16 %v212_v49, %v211_v48  ;;  %493 = vmatprep.subr.bf16.mxu1 %v218_v50 }
  0xe6   :  { %494 = vmatpush3.bf16.msra.mxu1 %v218_v50 }
  0xe7   :  { %495 = vmatprep.subr.bf16.mxu1 %v217_v54 }
  0xea   :  { %496 = vmatpush3.bf16.msra.mxu1 %v217_v54 }
  0xeb   :  { %497 = vmatprep.subr.bf16.mxu1 %v216_v58 }
  0xee   :  { %498 = vmatpush3.bf16.msra.mxu1 %v216_v58 }
  0xef   :  { %499 = vmatprep.subr.bf16.mxu1 %v215_v61 }
  0xf2   :  { %500 = vmatpush3.bf16.msra.mxu1 %v215_v61 }
  0xf5   :  { %502 = vmatmul.mubr.msk.bf16.vlgmr.msra.gmra.mxu1 %vm129_vm0, %v521_v62 }
  0xf6   :  { %505 = vmatprep.mubr.msk.bf16.mxu1 %vm129_vm0, %v522_v63 }
  0xfd   :  { %506 = vmatmul.mubr.msk.bf16.gmra.mxu1 %vm129_vm0, %v523_v0 }
 0x1b5   :  { %v503_v5 = vpop.f32.mrf.mxu1 }
 0x1b6   :  { %v350_v6 = vadd.f32 %v503_v5, %v248_v3 }
 0x1b7   :  { %v341_v8 = vpop.f32.mrf.mxu1 }
 0x1b8   :  { %v374_v9 = vmax.f32 %v350_v6, 0.0  ;;  %v342_v10 = vadd.f32 %v341_v8, %v238_v1 }
 0x1b9   :  { %v504_v11 = vpop.f32.mrf.mxu1 }
 0x1ba   :  { %v455_v12 = vpack.c.bf16 %v374_v9, %v374_v9  ;;  %v372_v13 = vmax.f32 %v342_v10, 0.0  ;;  %v353_v14 = vadd.f32 %v504_v11, %v253_v4 }
 0x1bb   :  { %v344_v16 = vpop.f32.mrf.mxu1 }
 0x1bc   :  { %415 = vst.msk [vmem:[%s684_s5 + $0x8] sm:$0xf] %vm412_vm1, %v455_v12  ;;  %v453_v17 = vpack.c.bf16 %v372_v13, %v372_v13  ;;  %v375_v18 = vmax.f32 %v353_v14, 0.0  ;;  %v345_v19 = vadd.f32 %v344_v16, %v243_v2 }
 0x1bd   :  { %v507_v21 = vpop.f32.mrf.mxu1 }
 0x1be   :  { %413 = vst.msk [vmem:[%s684_s5] sm:$0xf] %vm412_vm1, %v453_v17  ;;  %v456_v22 = vpack.c.bf16 %v375_v18, %v375_v18  ;;  %v373_v23 = vmax.f32 %v345_v19, 0.0  ;;  %v366_v24 = vadd.f32 %v507_v21, %v268_v20 }
 0x1bf   :  { %v357_v25 = vpop.f32.mrf.mxu1 }
 0x1c0   :  { %416 = vst.msk [vmem:[%s684_s5 + $0xc] sm:$0xf] %vm412_vm1, %v456_v22  ;;  %v454_v26 = vpack.c.bf16 %v373_v23, %v373_v23  ;;  %v378_v27 = vmax.f32 %v366_v24, 0.0  ;;  %v358_v28 = vadd.f32 %v357_v25, %v258_v7 }
 0x1c1   :  { %v508_v30 = vpop.f32.mrf.mxu1 }
 0x1c2   :  { %414 = vst.msk [vmem:[%s684_s5 + $0x4] sm:$0xf] %vm412_vm1, %v454_v26  ;;  %v459_v31 = vpack.c.bf16 %v378_v27, %v378_v27  ;;  %v376_v32 = vmax.f32 %v358_v28, 0.0  ;;  %v369_v33 = vadd.f32 %v508_v30, %v273_v29 }
 0x1c3   :  { %v360_v34 = vpop.f32.mrf.mxu1 }
 0x1c4   :  { %419 = vst.msk [vmem:[%s684_s5 + $0x18] sm:$0xf] %vm412_vm1, %v459_v31  ;;  %v457_v35 = vpack.c.bf16 %v376_v32, %v376_v32  ;;  %v379_v36 = vmax.f32 %v369_v33, 0.0  ;;  %v361_v37 = vadd.f32 %v360_v34, %v263_v15 }
 0x1c6   :  { %417 = vst.msk [vmem:[%s684_s5 + $0x10] sm:$0xf] %vm412_vm1, %v457_v35  ;;  %v460_v38 = vpack.c.bf16 %v379_v36, %v379_v36  ;;  %v377_v39 = vmax.f32 %v361_v37, 0.0 }
 0x1c8   :  { %420 = vst.msk [vmem:[%s684_s5 + $0x1c] sm:$0xf] %vm412_vm1, %v460_v38  ;;  %v458_v40 = vpack.c.bf16 %v377_v39, %v377_v39 }
 0x1ca   :  { %418 = vst.msk [vmem:[%s684_s5 + $0x14] sm:$0xf] %vm412_vm1, %v458_v40 }

// kernel: _forward.39
= control target key start
LH: loop header
LB: loop body
LE: loop exit
PB: predicated region body
PF: predicated region fallthrough
CT: control target
= control target key end

     0   :  { %v458_v1 = vmov 0   ;;  %vm221_vm0 = vcmask 261120   ;;  %vm346_vm1 = vcmask 60416   ;;  %s581_s1 = inlined_call_operand.vmem [shape: bf16[288,8], index: 1, kind: input, shape index: {}]   ;;  %s582_s0 = inlined_call_operand.vmem [shape: bf16[32,288], index: 0, kind: input, shape index: {}]   ;;  %s583_s2 = inlined_call_operand.vmem [shape: f32[32,1], index: 2, kind: input, shape index: {}]   ;;  %s584_s3 = inlined_call_operand.vmem [shape: bf16[32,8], index: 3, kind: output, shape index: {}]  }
   0x1   :  { %v432_v0 = vld [vmem:[%s581_s1 + $0x78] sm:$0xff]   ;;  %430 = vset.pattern.permute.xlu0 %v458_v1  ;;  %431 = vset.pattern.permute.xlu1 %v458_v1  ;;  %v434_v3 = vld [vmem:[%s581_s1 + $0x70] sm:$0xff]   ;;  %v436_v5 = vld [vmem:[%s581_s1 + $0x68] sm:$0xff]  }
   0x2   :  { %v433_v2 = vld [vmem:[%s581_s1 + $0x38] sm:$0xff]   ;;  %389 = vmatprep.subr.bf16.mxu0 %v432_v0  ;;  %v435_v4 = vld [vmem:[%s581_s1 + $0x30] sm:$0xff]   ;;  %v437_v6 = vld [vmem:[%s581_s1 + $0x28] sm:$0xff]  }
   0x3   :  { %390 = vmatpush3.bf16.msra.mxu0 %v433_v2  ;;  %v438_v7 = vld [vmem:[%s581_s1 + $0x60] sm:$0xff]   ;;  %v440_v9 = vld [vmem:[%s581_s1 + $0x58] sm:$0xff]   ;;  %v447_v11 = vld [vmem:[%s581_s1 + $0x88] sm:$0xff]  }
   0x4   :  { %391 = vmatprep.subr.bf16.mxu0 %v434_v3  ;;  %v439_v8 = vld [vmem:[%s581_s1 + $0x20] sm:$0xff]   ;;  %v441_v10 = vld [vmem:[%s581_s1 + $0x18] sm:$0xff]   ;;  %v442_v12 = vld [vmem:[%s581_s1 + $0x50] sm:$0xff]   ;;  %421 = vmatprep.subr.bf16.mxu1 %v447_v11 }
   0x5   :  { %v443_v13 = vld [vmem:[%s581_s1 + $0x10] sm:$0xff]   ;;  %v444_v14 = vld [vmem:[%s581_s1 + $0x48] sm:$0xff]   ;;  %422 = vmatpush3.bf16.msra.mxu1 %v447_v11  ;;  %v452_v16 = vld [vmem:[%s581_s1 + $0x80] sm:$0xff]  }
   0x6   :  { %v451_v15 = vld [vmem:[%s582_s0 + $0x4] ss:$12 sps:$4 sm:$0xff]   ;;  %v453_v17 = vld [vmem:[%s582_s0 + $0x8] ss:$12 sps:$4 sm:$0xff]   ;;  %423 = vmatprep.subr.bf16.mxu1 %v452_v16  ;;  %v454_v18 = vld [vmem:[%s582_s0 + $0x20] ss:$12 sps:$4 sm:$0xff]  }
   0x7   :  { %392 = vmatpush3.bf16.msra.mxu0 %v435_v4  ;;  %260 = vmatprep.mubr.bf16.mxu0 %v451_v15  ;;  %v59_v19 = vld [vmem:[%s583_s2] sm:$0xff]  ;;  %v445_v20 = vld [vmem:[%s581_s1 + $0x8] sm:$0xff]   ;;  %v61_v21 = vld [vmem:[%s583_s2 + $0x10] sm:$0xff] }
   0x8   :  { %393 = vmatprep.subr.bf16.mxu0 %v436_v5  ;;  %425 = vmatprep.mubr.msk.bf16.mxu1 %vm221_vm0, %v453_v17  ;;  %v446_v22 = vld [vmem:[%s581_s1 + $0x40] sm:$0xff]   ;;  %v60_v23 = vld [vmem:[%s583_s2 + $0x8] sm:$0xff]  ;;  %v62_v24 = vld [vmem:[%s583_s2 + $0x18] sm:$0xff] }
   0x9   :  { %424 = vmatpush3.bf16.msra.mxu1 %v452_v16  ;;  %65 = vperm.xlu0 %430, %v59_v19   ;;  %v448_v25 = vld [vmem:[%s581_s1] sm:$0xff]   ;;  %v455_v27 = vld [vmem:[%s582_s0 + $0x1c] ss:$12 sps:$4 sm:$0xff]  }
   0xa   :  { %75 = vperm.xlu1 %431, %v61_v21   ;;  %v449_v26 = vld [vmem:[%s582_s0] ss:$12 sps:$4 sm:$0xff]   ;;  %v457_v28 = vld [vmem:[%s582_s0 + $0x18] ss:$12 sps:$4 sm:$0xff]  }
   0xb   :  { %394 = vmatpush3.bf16.msra.mxu0 %v437_v6 }
   0xc   :  { %395 = vmatprep.subr.bf16.mxu0 %v438_v7  ;;  %426 = vmatmul.mubr.msk.bf16.vlgmr.msra.gmra.mxu1 %vm221_vm0, %v454_v18 }
   0xd   :  { %70 = vperm.xlu0 %430, %v60_v23  }
   0xe   :  { %80 = vperm.xlu1 %431, %v62_v24  }
   0xf   :  { %396 = vmatpush3.bf16.msra.mxu0 %v439_v8 }
  0x10   :  { %397 = vmatprep.subr.bf16.mxu0 %v440_v9 }
  0x13   :  { %398 = vmatpush3.bf16.msra.mxu0 %v441_v10 }
  0x14   :  { %399 = vmatprep.subr.bf16.mxu0 %v442_v12 }
  0x17   :  { %400 = vmatpush3.bf16.msra.mxu0 %v443_v13 }
  0x18   :  { %401 = vmatprep.subr.bf16.mxu0 %v444_v14 }
  0x1b   :  { %402 = vmatpush3.bf16.msra.mxu0 %v445_v20 }
  0x1c   :  { %403 = vmatprep.subr.bf16.mxu0 %v446_v22 }
  0x1f   :  { %404 = vmatpush3.bf16.msra.mxu0 %v448_v25 }
  0x22   :  { %261 = vmatmul.mubr.bf16.vlgmr.msra.gmra.mxu0 %v449_v26 }
  0x23   :  { %268 = vmatprep.mubr.bf16.mxu0 %v455_v27 }
  0x2a   :  { %269 = vmatmul.mubr.bf16.gmra.mxu0 %v457_v28 }
  0x84   :  { %v66_v30 = vpop.permute.xlu0 %65 }
  0x85   :  { %v76_v46 = vpop.permute.xlu1 %75 }
  0x88   :  { %v71_v39 = vpop.permute.xlu0 %70 }
  0x89   :  { %v81_v58 = vpop.permute.xlu1 %80 }
  0xcc   :  { %v427_v29 = vpop.f32.mrf.mxu1 }
  0xce   :  { %v311_v32 = vpop.f32.mrf.mxu1 }
  0xd0   :  { %v428_v36 = vpop.f32.mrf.mxu1 }
  0xd2   :  { %v314_v43 = vpop.f32.mrf.mxu1 }
  0xe2   :  { %v405_v31 = vpop.f32.mrf.mxu0 }
  0xe4   :  { %v406_v33 = vpop.f32.mrf.mxu0 }
  0xe5   :  { %v407_v34 = vadd.f32 %v406_v33, %v405_v31 }
  0xe6   :  { %v408_v35 = vpop.f32.mrf.mxu0 }
  0xe7   :  { %v263_v37 = vadd.f32 %v407_v34, %v66_v30 }
  0xe8   :  { %v409_v38 = vpop.f32.mrf.mxu0 }
  0xe9   :  { %v410_v40 = vadd.f32 %v409_v38, %v408_v35  ;;  %v312_v41 = vadd.f32 %v311_v32, %v263_v37 }
  0xea   :  { %v411_v42 = vpop.f32.mrf.mxu0 }
  0xeb   :  { %v326_v44 = vmax.f32 %v312_v41, 0.0  ;;  %v266_v45 = vadd.f32 %v410_v40, %v71_v39 }
  0xec   :  { %v412_v47 = vpop.f32.mrf.mxu0 }
  0xed   :  { %v385_v48 = vpack.c.bf16 %v326_v44, %v326_v44  ;;  %v413_v49 = vadd.f32 %v412_v47, %v411_v42  ;;  %v315_v50 = vadd.f32 %v314_v43, %v266_v45 }
  0xee   :  { %v414_v51 = vpop.f32.mrf.mxu0 }
  0xef   :  { %347 = vst.msk [vmem:[%s584_s3] sm:$0xf] %vm346_vm1, %v385_v48  ;;  %v271_v52 = vadd.f32 %v413_v49, %v76_v46  ;;  %v327_v53 = vmax.f32 %v315_v50, 0.0 }
  0xf0   :  { %v415_v54 = vpop.f32.mrf.mxu0 }
  0xf1   :  { %v320_v55 = vadd.f32 %v427_v29, %v271_v52  ;;  %v386_v56 = vpack.c.bf16 %v327_v53, %v327_v53  ;;  %v416_v57 = vadd.f32 %v415_v54, %v414_v51 }
  0xf3   :  { %v328_v59 = vmax.f32 %v320_v55, 0.0  ;;  %348 = vst.msk [vmem:[%s584_s3 + $0x4] sm:$0xf] %vm346_vm1, %v386_v56  ;;  %v274_v60 = vadd.f32 %v416_v57, %v81_v58 }
  0xf5   :  { %v387_v61 = vpack.c.bf16 %v328_v59, %v328_v59  ;;  %v323_v62 = vadd.f32 %v428_v36, %v274_v60 }
  0xf7   :  { %349 = vst.msk [vmem:[%s584_s3 + $0x8] sm:$0xf] %vm346_vm1, %v387_v61  ;;  %v329_v63 = vmax.f32 %v323_v62, 0.0 }
  0xf9   :  { %v388_v0 = vpack.c.bf16 %v329_v63, %v329_v63 }
  0xfb   :  { %350 = vst.msk [vmem:[%s584_s3 + $0xc] sm:$0xf] %vm346_vm1, %v388_v0 }

// kernel: _forward.38
= control target key start
LH: loop header
LB: loop body
LE: loop exit
PB: predicated region body
PF: predicated region fallthrough
CT: control target
= control target key end

     0   :  { %v1447_v1 = vmov 0   ;;  %vm647_vm0 = vcmask 523264   ;;  %vm1043_vm1 = vcmask 11264   ;;  %s1930_s1 = inlined_call_operand.vmem [shape: bf16[576,2], index: 1, kind: input, shape index: {}]   ;;  %s1931_s0 = inlined_call_operand.vmem [shape: bf16[128,576], index: 0, kind: input, shape index: {}]   ;;  %s1932_s2 = inlined_call_operand.vmem [shape: f32[128,1], index: 2, kind: input, shape index: {}]   ;;  %s1933_s3 = inlined_call_operand.vmem [shape: bf16[128,2], index: 3, kind: output, shape index: {}]  }
   0x1   :  { %v1355_v0 = vld [vmem:[%s1930_s1 + $0x78] sm:$0xff]   ;;  %1353 = vset.pattern.permute.xlu0 %v1447_v1  ;;  %1354 = vset.pattern.permute.xlu1 %v1447_v1  ;;  %v1359_v5 = vld [vmem:[%s1930_s1 + $0x70] sm:$0xff]   ;;  %v1363_v9 = vld [vmem:[%s1930_s1 + $0x68] sm:$0xff]  }
   0x2   :  { %v1356_v2 = vld [vmem:[%s1930_s1 + $0xf8] sm:$0xff]   ;;  %1180 = vmatprep.subr.bf16.mxu0 %v1355_v0  ;;  %v1360_v6 = vld [vmem:[%s1930_s1 + $0xf0] sm:$0xff]   ;;  %v1364_v10 = vld [vmem:[%s1930_s1 + $0xe8] sm:$0xff]  }
   0x3   :  { %v1357_v3 = vld [vmem:[%s1930_s1 + $0x38] sm:$0xff]   ;;  %1244 = vmatprep.subr.bf16.mxu1 %v1356_v2  ;;  %v1361_v7 = vld [vmem:[%s1930_s1 + $0x30] sm:$0xff]   ;;  %v1365_v11 = vld [vmem:[%s1930_s1 + $0x28] sm:$0xff]  }
   0x4   :  { %v1358_v4 = vld [vmem:[%s1930_s1 + $0xb8] sm:$0xff]   ;;  %1181 = vmatpush3.bf16.msra.mxu0 %v1357_v3  ;;  %v1362_v8 = vld [vmem:[%s1930_s1 + $0xb0] sm:$0xff]   ;;  %v1366_v12 = vld [vmem:[%s1930_s1 + $0xa8] sm:$0xff]  }
   0x5   :  { %1245 = vmatpush3.bf16.msra.mxu1 %v1358_v4  ;;  %1182 = vmatprep.subr.bf16.mxu0 %v1359_v5  ;;  %v1367_v13 = vld [vmem:[%s1930_s1 + $0x60] sm:$0xff]   ;;  %v1371_v17 = vld [vmem:[%s1930_s1 + $0x58] sm:$0xff]   ;;  %v1375_v21 = vld [vmem:[%s1930_s1 + $0x50] sm:$0xff]  }
   0x6   :  { %1246 = vmatprep.subr.bf16.mxu1 %v1360_v6  ;;  %v1368_v14 = vld [vmem:[%s1930_s1 + $0xe0] sm:$0xff]   ;;  %v1372_v18 = vld [vmem:[%s1930_s1 + $0xd8] sm:$0xff]   ;;  %v1376_v22 = vld [vmem:[%s1930_s1 + $0xd0] sm:$0xff]  }
   0x7   :  { %v1369_v15 = vld [vmem:[%s1930_s1 + $0x20] sm:$0xff]   ;;  %v1373_v19 = vld [vmem:[%s1930_s1 + $0x18] sm:$0xff]   ;;  %v1377_v23 = vld [vmem:[%s1930_s1 + $0x10] sm:$0xff]  }
   0x8   :  { %1183 = vmatpush3.bf16.msra.mxu0 %v1361_v7  ;;  %v1370_v16 = vld [vmem:[%s1930_s1 + $0xa0] sm:$0xff]   ;;  %v1374_v20 = vld [vmem:[%s1930_s1 + $0x98] sm:$0xff]   ;;  %v1378_v24 = vld [vmem:[%s1930_s1 + $0x90] sm:$0xff]  }
   0x9   :  { %1247 = vmatpush3.bf16.msra.mxu1 %v1362_v8  ;;  %1184 = vmatprep.subr.bf16.mxu0 %v1363_v9  ;;  %v1379_v25 = vld [vmem:[%s1930_s1 + $0x48] sm:$0xff]   ;;  %v1383_v29 = vld [vmem:[%s1930_s1 + $0x40] sm:$0xff]   ;;  %v1393_v37 = vld [vmem:[%s1930_s1 + $0x118] sm:$0xff]  }
   0xa   :  { %1248 = vmatprep.subr.bf16.mxu1 %v1364_v10  ;;  %v1380_v26 = vld [vmem:[%s1930_s1 + $0xc8] sm:$0xff]   ;;  %v1384_v30 = vld [vmem:[%s1930_s1 + $0xc0] sm:$0xff]   ;;  %v1406_v43 = vld [vmem:[%s1930_s1 + $0x110] sm:$0xff]  }
   0xb   :  { %v1381_v27 = vld [vmem:[%s1930_s1 + $0x8] sm:$0xff]   ;;  %v1385_v31 = vld [vmem:[%s1930_s1] sm:$0xff]   ;;  %v1402_v44 = vld [vmem:[%s1931_s0 + $0x5c] ss:$20 sps:$4 sm:$0xff]  }
   0xc   :  { %1185 = vmatpush3.bf16.msra.mxu0 %v1365_v11  ;;  %v1382_v28 = vld [vmem:[%s1930_s1 + $0x88] sm:$0xff]   ;;  %v1386_v32 = vld [vmem:[%s1930_s1 + $0x80] sm:$0xff]   ;;  %v1407_v48 = vld [vmem:[%s1931_s0 + $0x7c] ss:$20 sps:$4 sm:$0xff]  }
   0xd   :  { %1249 = vmatpush3.bf16.msra.mxu1 %v1366_v12  ;;  %1186 = vmatprep.subr.bf16.mxu0 %v1367_v13  ;;  %v1387_v33 = vld [vmem:[%s1931_s0] ss:$20 sps:$4 sm:$0xff]   ;;  %v1389_v34 = vld [vmem:[%s1931_s0 + $0x4] ss:$20 sps:$4 sm:$0xff]   ;;  %v1390_v35 = vld [vmem:[%s1931_s0 + $0x8] ss:$20 sps:$4 sm:$0xff]  }
   0xe   :  { %1250 = vmatprep.subr.bf16.mxu1 %v1368_v14  ;;  %v1392_v36 = vld [vmem:[%s1931_s0 + $0xc] ss:$20 sps:$4 sm:$0xff]   ;;  %704 = vmatprep.mubr.bf16.mxu0 %v1389_v34  ;;  %v1396_v39 = vld [vmem:[%s1931_s0 + $0x34] ss:$20 sps:$4 sm:$0xff]   ;;  %v1399_v41 = vld [vmem:[%s1931_s0 + $0x30] ss:$20 sps:$4 sm:$0xff]  }
   0xf   :  { %801 = vmatprep.mubr.bf16.mxu1 %v1392_v36  ;;  %v1394_v38 = vld [vmem:[%s1931_s0 + $0x2c] ss:$20 sps:$4 sm:$0xff]   ;;  %v1398_v40 = vld [vmem:[%s1931_s0 + $0x28] ss:$20 sps:$4 sm:$0xff]   ;;  %v1404_v45 = vld [vmem:[%s1931_s0 + $0x50] ss:$20 sps:$4 sm:$0xff]  }
  0x10   :  { %1187 = vmatpush3.bf16.msra.mxu0 %v1369_v15  ;;  %v1400_v42 = vld [vmem:[%s1931_s0 + $0x54] ss:$20 sps:$4 sm:$0xff]   ;;  %v1405_v46 = vld [vmem:[%s1931_s0 + $0x58] ss:$20 sps:$4 sm:$0xff]   ;;  %v1432_v50 = vld [vmem:[%s1930_s1 + $0x100] sm:$0xff]  }
  0x11   :  { %1251 = vmatpush3.bf16.msra.mxu1 %v1370_v16  ;;  %1188 = vmatprep.subr.bf16.mxu0 %v1371_v17  ;;  %v1419_v47 = vld [vmem:[%s1930_s1 + $0x108] sm:$0xff]   ;;  %v1409_v49 = vld [vmem:[%s1931_s0 + $0x84] ss:$20 sps:$4 sm:$0xff]   ;;  %v1412_v52 = vld [vmem:[%s1931_s0 + $0x80] ss:$20 sps:$4 sm:$0xff]  }
  0x12   :  { %1252 = vmatprep.subr.bf16.mxu1 %v1372_v18  ;;  %v1411_v51 = vld [vmem:[%s1931_s0 + $0x78] ss:$20 sps:$4 sm:$0xff]   ;;  %v1417_v55 = vld [vmem:[%s1931_s0 + $0xa0] ss:$20 sps:$4 sm:$0xff]   ;;  %v1418_v56 = vld [vmem:[%s1931_s0 + $0xa8] ss:$20 sps:$4 sm:$0xff]  }
  0x13   :  { %v1413_v53 = vld [vmem:[%s1931_s0 + $0xa4] ss:$20 sps:$4 sm:$0xff]   ;;  %v1415_v54 = vld [vmem:[%s1931_s0 + $0xac] ss:$20 sps:$4 sm:$0xff]   ;;  %v1422_v59 = vld [vmem:[%s1931_s0 + $0xd4] ss:$20 sps:$4 sm:$0xff]  }
  0x14   :  { %1189 = vmatpush3.bf16.msra.mxu0 %v1373_v19  ;;  %v1420_v57 = vld [vmem:[%s1931_s0 + $0xcc] ss:$20 sps:$4 sm:$0xff]   ;;  %v137_v60 = vld [vmem:[%s1932_s2 + $0x10] sm:$0xff]  ;;  %v138_v62 = vld [vmem:[%s1932_s2 + $0x18] sm:$0xff] }
  0x15   :  { %1253 = vmatpush3.bf16.msra.mxu1 %v1374_v20  ;;  %1190 = vmatprep.subr.bf16.mxu0 %v1375_v21  ;;  %v135_v58 = vld [vmem:[%s1932_s2] sm:$0xff]  ;;  %v136_v61 = vld [vmem:[%s1932_s2 + $0x8] sm:$0xff]  ;;  %v1428_v4 = vld [vmem:[%s1931_s0 + $0xfc] ss:$20 sps:$4 sm:$0xff]  }
  0x16   :  { %1254 = vmatprep.subr.bf16.mxu1 %v1376_v22  ;;  %153 = vperm.xlu0 %1353, %v135_v58   ;;  %v139_v63 = vld [vmem:[%s1932_s2 + $0x20] sm:$0xff]  ;;  %v1424_v0 = vld [vmem:[%s1931_s0 + $0xc8] ss:$20 sps:$4 sm:$0xff]   ;;  %v141_v5 = vld [vmem:[%s1932_s2 + $0x30] sm:$0xff] }
  0x17   :  { %163 = vperm.xlu1 %1354, %v137_v60   ;;  %v140_v1 = vld [vmem:[%s1932_s2 + $0x28] sm:$0xff]  ;;  %v1425_v2 = vld [vmem:[%s1931_s0 + $0xd0] ss:$20 sps:$4 sm:$0xff]   ;;  %v142_v6 = vld [vmem:[%s1932_s2 + $0x38] sm:$0xff] }
  0x18   :  { %1191 = vmatpush3.bf16.msra.mxu0 %v1377_v23  ;;  %v1426_v3 = vld [vmem:[%s1931_s0 + $0xf4] ss:$20 sps:$4 sm:$0xff]   ;;  %v143_v7 = vld [vmem:[%s1932_s2 + $0x40] sm:$0xff]  ;;  %v1431_v10 = vld [vmem:[%s1931_s0 + $0xf8] ss:$20 sps:$4 sm:$0xff]  }
  0x19   :  { %1255 = vmatpush3.bf16.msra.mxu1 %v1378_v24  ;;  %1192 = vmatprep.subr.bf16.mxu0 %v1379_v25  ;;  %v1430_v8 = vld [vmem:[%s1931_s0 + $0xf0] ss:$20 sps:$4 sm:$0xff]   ;;  %v144_v9 = vld [vmem:[%s1932_s2 + $0x48] sm:$0xff]  ;;  %v146_v14 = vld [vmem:[%s1932_s2 + $0x58] sm:$0xff] }
  0x1a   :  { %1256 = vmatprep.subr.bf16.mxu1 %v1380_v26  ;;  %158 = vperm.xlu0 %1353, %v136_v61   ;;  %v1433_v11 = vld [vmem:[%s1931_s0 + $0x11c] ss:$20 sps:$4 sm:$0xff]   ;;  %v1435_v12 = vld [vmem:[%s1931_s0 + $0x124] ss:$20 sps:$4 sm:$0xff]   ;;  %v148_v17 = vld [vmem:[%s1932_s2 + $0x68] sm:$0xff] }
  0x1b   :  { %168 = vperm.xlu1 %1354, %v138_v62   ;;  %v145_v13 = vld [vmem:[%s1932_s2 + $0x50] sm:$0xff]  ;;  %v147_v15 = vld [vmem:[%s1932_s2 + $0x60] sm:$0xff]  ;;  %v1437_v16 = vld [vmem:[%s1931_s0 + $0x118] ss:$20 sps:$4 sm:$0xff]  }
  0x1c   :  { %1193 = vmatpush3.bf16.msra.mxu0 %v1381_v27  ;;  %v1438_v18 = vld [vmem:[%s1931_s0 + $0x120] ss:$20 sps:$4 sm:$0xff]   ;;  %v1439_v19 = vld [vmem:[%s1931_s0 + $0x10] ss:$20 sps:$4 sm:$0xff]   ;;  %v150_v22 = vld [vmem:[%s1932_s2 + $0x78] sm:$0xff] }
  0x1d   :  { %1257 = vmatpush3.bf16.msra.mxu1 %v1382_v28  ;;  %1194 = vmatprep.subr.bf16.mxu0 %v1383_v29  ;;  %v1440_v20 = vld [vmem:[%s1931_s0 + $0xb0] ss:$20 sps:$4 sm:$0xff]   ;;  %v1441_v23 = vld [vmem:[%s1931_s0 + $0x38] ss:$20 sps:$4 sm:$0xff]   ;;  %v1443_v25 = vld [vmem:[%s1931_s0 + $0x60] ss:$20 sps:$4 sm:$0xff]  }
  0x1e   :  { %1258 = vmatprep.subr.bf16.mxu1 %v1384_v30  ;;  %173 = vperm.xlu0 %1353, %v139_v63   ;;  %v149_v21 = vld [vmem:[%s1932_s2 + $0x70] sm:$0xff]  ;;  %v1442_v24 = vld [vmem:[%s1931_s0 + $0xd8] ss:$20 sps:$4 sm:$0xff]   ;;  %v1445_v27 = vld [vmem:[%s1931_s0 + $0x88] ss:$20 sps:$4 sm:$0xff]  }
  0x1f   :  { %178 = vperm.xlu1 %1354, %v140_v1   ;;  %v1444_v26 = vld [vmem:[%s1931_s0 + $0x100] ss:$20 sps:$4 sm:$0xff]   ;;  %v1446_v28 = vld [vmem:[%s1931_s0 + $0x128] ss:$20 sps:$4 sm:$0xff]  }
  0x20   :  { %1195 = vmatpush3.bf16.msra.mxu0 %v1385_v31 }
  0x21   :  { %1259 = vmatpush3.bf16.msra.mxu1 %v1386_v32  ;;  %1320 = vmatprep.subr.bf16.mxu0 %v1393_v37 }
  0x22   :  { %1344 = vmatprep.subr.bf16.mxu1 %v1393_v37  ;;  %183 = vperm.xlu0 %1353, %v141_v5  }
  0x23   :  { %705 = vmatmul.mubr.bf16.vlgmr.msra.gmra.mxu0 %v1387_v33  ;;  %188 = vperm.xlu1 %1354, %v142_v6  }
  0x24   :  { %802 = vmatmul.mubr.bf16.vlgmr.msra.gmra.mxu1 %v1390_v35  ;;  %1321 = vmatpush3.bf16.msra.mxu0 %v1393_v37 }
  0x25   :  { %1348 = vmatpush3.bf16.msra.mxu1 %v1393_v37  ;;  %712 = vmatprep.mubr.bf16.mxu0 %v1394_v38 }
  0x26   :  { %809 = vmatprep.mubr.bf16.mxu1 %v1396_v39  ;;  %1322 = vmatprep.subr.bf16.mxu0 %v1406_v43 }
  0x27   :  { %1345 = vmatprep.subr.bf16.mxu1 %v1406_v43  ;;  %193 = vperm.xlu0 %1353, %v143_v7  }
  0x28   :  { %1323 = vmatpush3.bf16.msra.mxu0 %v1406_v43  ;;  %198 = vperm.xlu1 %1354, %v144_v9  }
  0x29   :  { %1349 = vmatpush3.bf16.msra.mxu1 %v1406_v43  ;;  %1324 = vmatprep.subr.bf16.mxu0 %v1419_v47 }
  0x2a   :  { %1346 = vmatprep.subr.bf16.mxu1 %v1419_v47 }
  0x2b   :  { %713 = vmatmul.mubr.bf16.gmra.mxu0 %v1398_v40  ;;  %203 = vperm.xlu0 %1353, %v145_v13  }
  0x2c   :  { %810 = vmatmul.mubr.bf16.gmra.mxu1 %v1399_v41  ;;  %720 = vmatprep.mubr.bf16.mxu0 %v1400_v42 }
  0x2d   :  { %817 = vmatprep.mubr.bf16.mxu1 %v1402_v44  ;;  %1325 = vmatpush3.bf16.msra.mxu0 %v1419_v47 }
  0x2e   :  { %1350 = vmatpush3.bf16.msra.mxu1 %v1419_v47  ;;  %1326 = vmatprep.subr.bf16.mxu0 %v1432_v50 }
  0x2f   :  { %1347 = vmatprep.subr.bf16.mxu1 %v1432_v50  ;;  %208 = vperm.xlu1 %1354, %v146_v14  }
  0x30   :  { %213 = vperm.xlu0 %1353, %v147_v15  }
  0x31   :  { %1327 = vmatpush3.bf16.msra.mxu0 %v1432_v50 }
  0x32   :  { %1351 = vmatpush3.bf16.msra.mxu1 %v1432_v50 }
  0x33   :  { %721 = vmatmul.mubr.bf16.gmra.mxu0 %v1404_v45  ;;  %218 = vperm.xlu1 %1354, %v148_v17  }
  0x34   :  { %818 = vmatmul.mubr.bf16.gmra.mxu1 %v1405_v46  ;;  %728 = vmatprep.mubr.bf16.mxu0 %v1407_v48 }
  0x35   :  { %825 = vmatprep.mubr.bf16.mxu1 %v1409_v49  ;;  %223 = vperm.xlu0 %1353, %v149_v21  }
  0x37   :  { %228 = vperm.xlu1 %1354, %v150_v22  }
  0x3b   :  { %729 = vmatmul.mubr.bf16.gmra.mxu0 %v1411_v51 }
  0x3c   :  { %826 = vmatmul.mubr.bf16.gmra.mxu1 %v1412_v52  ;;  %736 = vmatprep.mubr.bf16.mxu0 %v1413_v53 }
  0x3d   :  { %833 = vmatprep.mubr.bf16.mxu1 %v1415_v54 }
  0x43   :  { %737 = vmatmul.mubr.bf16.gmra.mxu0 %v1417_v55 }
  0x44   :  { %834 = vmatmul.mubr.bf16.gmra.mxu1 %v1418_v56  ;;  %744 = vmatprep.mubr.bf16.mxu0 %v1420_v57 }
  0x45   :  { %841 = vmatprep.mubr.bf16.mxu1 %v1422_v59 }
  0x4b   :  { %745 = vmatmul.mubr.bf16.gmra.mxu0 %v1424_v0 }
  0x4c   :  { %842 = vmatmul.mubr.bf16.gmra.mxu1 %v1425_v2  ;;  %752 = vmatprep.mubr.bf16.mxu0 %v1426_v3 }
  0x4d   :  { %849 = vmatprep.mubr.bf16.mxu1 %v1428_v4 }
  0x53   :  { %753 = vmatmul.mubr.bf16.gmra.mxu0 %v1430_v8 }
  0x54   :  { %850 = vmatmul.mubr.bf16.gmra.mxu1 %v1431_v10  ;;  %760 = vmatprep.mubr.bf16.mxu0 %v1433_v11 }
  0x55   :  { %857 = vmatprep.mubr.bf16.mxu1 %v1435_v12 }
  0x5b   :  { %761 = vmatmul.mubr.bf16.gmra.mxu0 %v1437_v16 }
  0x5c   :  { %858 = vmatmul.mubr.bf16.gmra.mxu1 %v1438_v18  ;;  %1328 = vmatprep.mubr.msk.bf16.mxu0 %vm647_vm0, %v1439_v19 }
  0x5d   :  { %1336 = vmatprep.mubr.msk.bf16.mxu1 %vm647_vm0, %v1440_v20 }
  0x63   :  { %1329 = vmatmul.mubr.msk.bf16.vlgmr.msra.gmra.mxu0 %vm647_vm0, %v1441_v23 }
  0x64   :  { %1337 = vmatmul.mubr.msk.bf16.vlgmr.msra.gmra.mxu1 %vm647_vm0, %v1442_v24  ;;  %1332 = vmatprep.mubr.msk.bf16.mxu0 %vm647_vm0, %v1443_v25 }
  0x65   :  { %1340 = vmatprep.mubr.msk.bf16.mxu1 %vm647_vm0, %v1444_v26 }
  0x6b   :  { %1333 = vmatmul.mubr.msk.bf16.gmra.mxu0 %vm647_vm0, %v1445_v27 }
  0x6c   :  { %1341 = vmatmul.mubr.msk.bf16.gmra.mxu1 %vm647_vm0, %v1446_v28 }
  0x91   :  { %v154_v59 = vpop.permute.xlu0 %153 }
  0x92   :  { %v164_v63 = vpop.permute.xlu1 %163 }
  0x95   :  { %v159_v3 = vpop.permute.xlu0 %158 }
  0x96   :  { %v169_v7 = vpop.permute.xlu1 %168 }
  0x99   :  { %v174_v9 = vpop.permute.xlu0 %173 }
  0x9a   :  { %v1798_v13 = vpop.permute.xlu1 %178 }
  0x9b   :  { %1940 = vst [vmem:[#allocation8_spill] sm:$0xff] %v1798_v13 }
  0x9d   :  { %v184_v15 = vpop.permute.xlu0 %183 }
  0x9e   :  { %v189_v19 = vpop.permute.xlu1 %188 }
  0xa2   :  { %v194_v21 = vpop.permute.xlu0 %193 }
  0xe3   :  { %v1196_v29 = vpop.f32.mrf.mxu0 }
  0xe4   :  { %v1752_v30 = vpop.f32.mrf.mxu1 }
  0xe5   :  { %v1197_v31 = vpop.f32.mrf.mxu0 }
  0xe6   :  { %v1754_v32 = vpop.f32.mrf.mxu1  ;;  %v1198_v25 = vadd.f32 %v1197_v31, %v1196_v29 }
  0xe7   :  { %v1199_v33 = vpop.f32.mrf.mxu0 }
  0xe8   :  { %v1756_v34 = vpop.f32.mrf.mxu1 }
  0xe9   :  { %v1200_v35 = vpop.f32.mrf.mxu0 }
  0xea   :  { %v1758_v36 = vpop.f32.mrf.mxu1  ;;  %v1201_v26 = vadd.f32 %v1200_v35, %v1199_v33 }
  0xeb   :  { %v1202_v37 = vpop.f32.mrf.mxu0  ;;  %v1265_v33 = vadd.f32 %v1758_v36, %v1756_v34 }
  0xec   :  { %v1760_v38 = vpop.f32.mrf.mxu1 }
  0xed   :  { %v1203_v39 = vpop.f32.mrf.mxu0 }
  0xee   :  { %v1762_v40 = vpop.f32.mrf.mxu1  ;;  %v1204_v27 = vadd.f32 %v1203_v39, %v1202_v37 }
  0xef   :  { %v1205_v41 = vpop.f32.mrf.mxu0 }
  0xf0   :  { %v1764_v42 = vpop.f32.mrf.mxu1  ;;  %v715_v29 = vadd.f32 %v1204_v27, %v164_v63 }
  0xf1   :  { %v1206_v43 = vpop.f32.mrf.mxu0 }
  0xf2   :  { %v1766_v44 = vpop.f32.mrf.mxu1 }
  0xf3   :  { %v1208_v45 = vpop.f32.mrf.mxu0 }
  0xf4   :  { %v1768_v46 = vpop.f32.mrf.mxu1 }
  0xf5   :  { %v1209_v47 = vpop.f32.mrf.mxu0 }
  0xf6   :  { %v1770_v48 = vpop.f32.mrf.mxu1 }
  0xf7   :  { %v1772_v49 = vpop.f32.mrf.mxu0 }
  0xf8   :  { %v1774_v50 = vpop.f32.mrf.mxu1 }
  0xf9   :  { %v1776_v51 = vpop.f32.mrf.mxu0 }
  0xfa   :  { %v1778_v52 = vpop.f32.mrf.mxu1 }
  0xfb   :  { %v1214_v53 = vpop.f32.mrf.mxu0 }
  0xfc   :  { %v1780_v54 = vpop.f32.mrf.mxu1 }
  0xfd   :  { %v1215_v55 = vpop.f32.mrf.mxu0 }
  0xfe   :  { %v1782_v56 = vpop.f32.mrf.mxu1 }
  0xff   :  { %v1217_v57 = vpop.f32.mrf.mxu0 }
 0x100   :  { %v1784_v58 = vpop.f32.mrf.mxu1 }
 0x101   :  { %1934 = vst [vmem:[#allocation2_spill] sm:$0xff] %v1784_v58  ;;  %v1218_v60 = vpop.f32.mrf.mxu0  ;;  %v710_v58 = vadd.f32 %v1201_v26, %v159_v3 }
 0x102   :  { %v1786_v61 = vpop.f32.mrf.mxu1 }
 0x103   :  { %1935 = vst [vmem:[#allocation3_spill] sm:$0xff] %v1786_v61  ;;  %v1220_v62 = vpop.f32.mrf.mxu0 }
 0x104   :  { %v1788_v0 = vpop.f32.mrf.mxu1 }
 0x105   :  { %1936 = vst [vmem:[#allocation4_spill] sm:$0xff] %v1788_v0  ;;  %v1221_v1 = vpop.f32.mrf.mxu0  ;;  %v204_v0 = vpop.permute.xlu0 %203 }
 0x106   :  { %v1790_v2 = vpop.f32.mrf.mxu1 }
 0x107   :  { %1937 = vst [vmem:[#allocation5_spill] sm:$0xff] %v1790_v2  ;;  %v1223_v4 = vpop.f32.mrf.mxu0  ;;  %v199_v2 = vpop.permute.xlu1 %198 }
 0x108   :  { %v1792_v5 = vpop.f32.mrf.mxu1 }
 0x109   :  { %1938 = vst [vmem:[#allocation6_spill] sm:$0xff] %v1792_v5  ;;  %v1224_v6 = vpop.f32.mrf.mxu0  ;;  %v1210_v5 = vadd.f32 %v1209_v47, %v1208_v45  ;;  %v1216_v45 = vadd.f32 %v1215_v55, %v1214_v53  ;;  %v1219_v47 = vadd.f32 %v1218_v60, %v1217_v57  ;;  %v214_v53 = vpop.permute.xlu0 %213 }
 0x10a   :  { %v1794_v8 = vpop.f32.mrf.mxu1 }
 0x10b   :  { %1939 = vst [vmem:[#allocation7_spill] sm:$0xff] %v1794_v8  ;;  %v1226_v10 = vpop.f32.mrf.mxu0  ;;  %v1207_v8 = vadd.f32 %v1206_v43, %v1205_v41  ;;  %v723_v37 = vadd.f32 %v1210_v5, %v174_v9  ;;  %v1268_v43 = vadd.f32 %v1762_v40, %v1760_v38  ;;  %v209_v36 = vpop.permute.xlu1 %208  ;;  %v1213_v38 = vadd.f32 %v1776_v51, %v1772_v49  ;;  %v1947_v9 = vld [vmem:[#allocation3_spill] sm:$0xff] }
 0x10c   :  { %v1796_v11 = vpop.f32.mrf.mxu1  ;;  %v734_v57 = vadd.f32 %v1219_v47, %v189_v19 }
 0x10d   :  { %v1227_v12 = vpop.f32.mrf.mxu0  ;;  %v718_v35 = vadd.f32 %v1207_v8, %v169_v7  ;;  %v812_v5 = vadd.f32 %v1268_v43, %v715_v29  ;;  %v1826_v8 = vadd.f32 %v1265_v33, %v710_v58  ;;  %v224_v29 = vpop.permute.xlu0 %223 }
 0x10e   :  { %v1291_v14 = vpop.f32.mrf.mxu1  ;;  %v1228_v39 = vadd.f32 %v1227_v12, %v1226_v10  ;;  %v1948_v12 = vld [vmem:[#allocation4_spill] sm:$0xff] }
 0x10f   :  { %v1229_v16 = vpop.f32.mrf.mxu0 }
 0x110   :  { %v1800_v17 = vpop.f32.mrf.mxu1  ;;  %v747_v40 = vadd.f32 %v1228_v39, %v204_v0 }
 0x111   :  { %1941 = vst [vmem:[#allocation9_spill] sm:$0xff] %v1800_v17  ;;  %v1230_v18 = vpop.f32.mrf.mxu0 }
 0x112   :  { %v1802_v20 = vpop.f32.mrf.mxu1  ;;  %v1231_v63 = vadd.f32 %v1230_v18, %v1229_v16  ;;  %v1952_v19 = vld [vmem:[#allocation7_spill] sm:$0xff] }
 0x113   :  { %1942 = vst [vmem:[#allocation10_spill] sm:$0xff] %v1802_v20  ;;  %v1232_v22 = vpop.f32.mrf.mxu0  ;;  %v1262_v20 = vadd.f32 %v1754_v32, %v1752_v30  ;;  %v1271_v30 = vadd.f32 %v1766_v44, %v1764_v42  ;;  %v1274_v32 = vadd.f32 %v1770_v48, %v1768_v46  ;;  %v1834_v46 = vadd.f32 %v1778_v52, %v1774_v50  ;;  %v1949_v50 = vld [vmem:[#allocation5_spill] sm:$0xff] }
 0x114   :  { %v1804_v23 = vpop.f32.mrf.mxu1  ;;  %v731_v48 = vadd.f32 %v1216_v45, %v184_v15  ;;  %v750_v49 = vadd.f32 %v1231_v63, %v209_v36  ;;  %v1286_v52 = vadd.f32 %v1949_v50, %v1948_v12 }
 0x115   :  { %1943 = vst [vmem:[#allocation11_spill] sm:$0xff] %v1804_v23  ;;  %v1233_v24 = vpop.f32.mrf.mxu0  ;;  %v707_v23 = vadd.f32 %v1198_v25, %v154_v59  ;;  %v1225_v59 = vadd.f32 %v1224_v6, %v1223_v4  ;;  %v815_v42 = vadd.f32 %v1271_v30, %v718_v35  ;;  %v1830_v44 = vadd.f32 %v1274_v32, %v723_v37  ;;  %v1946_v6 = vld [vmem:[#allocation2_spill] sm:$0xff] }
 0x116   :  { %v1806_v28 = vpop.f32.mrf.mxu1  ;;  %v1234_v51 = vadd.f32 %v1233_v24, %v1232_v22  ;;  %v1280_v4 = vadd.f32 %v1782_v56, %v1780_v54  ;;  %v1283_v10 = vadd.f32 %v1947_v9, %v1946_v6  ;;  %v219_v54 = vpop.permute.xlu1 %218 }
 0x117   :  { %v1808_v13 = vpop.f32.mrf.mxu0  ;;  %v804_v7 = vadd.f32 %v1262_v20, %v707_v23  ;;  %v742_v58 = vadd.f32 %v1225_v59, %v199_v2  ;;  %v1951_v2 = vld [vmem:[#allocation6_spill] sm:$0xff] }
 0x118   :  { %v1810_v17 = vpop.f32.mrf.mxu1  ;;  %v828_v26 = vadd.f32 %v1280_v4, %v731_v48  ;;  %v1852_v27 = vadd.f32 %v1283_v10, %v734_v57  ;;  %v755_v33 = vadd.f32 %v1234_v51, %v214_v53 }
 0x119   :  { %1944 = vst [vmem:[#allocation12_spill] sm:$0xff] %v1810_v17  ;;  %v1812_v61 = vpop.f32.mrf.mxu0  ;;  %v1222_v17 = vadd.f32 %v1221_v1, %v1220_v62  ;;  %v1292_v1 = vadd.f32 %v1291_v14, %v1796_v11  ;;  %v1289_v11 = vadd.f32 %v1952_v19, %v1951_v2  ;;  %v1953_v14 = vld [vmem:[#allocation9_spill] sm:$0xff] }
 0x11a   :  { %1945 = vst [vmem:[#allocation13_spill] sm:$0xff] %v1812_v61  ;;  %v1816_v31 = vpop.f32.mrf.mxu1  ;;  %v1954_v20 = vld [vmem:[#allocation10_spill] sm:$0xff]  ;;  %v229_v6 = vpop.permute.xlu1 %228 }
 0x11b   :  { %v1238_v41 = vpop.f32.mrf.mxu0  ;;  %v739_v60 = vadd.f32 %v1222_v17, %v194_v21  ;;  %v1950_v17 = vld [vmem:[#allocation8_spill] sm:$0xff]  ;;  %v1295_v21 = vadd.f32 %v1954_v20, %v1953_v14  ;;  %v844_v23 = vadd.f32 %v1292_v1, %v747_v40 }
 0x11c   :  { %v1302_v61 = vpop.f32.mrf.mxu1  ;;  %v1846_v18 = vadd.f32 %v1213_v38, %v1950_v17  ;;  %v1955_v43 = vld [vmem:[#allocation11_spill] sm:$0xff] }
 0x11d   :  { %v1239_v34 = vpop.f32.mrf.mxu0  ;;  %v836_v25 = vadd.f32 %v1286_v52, %v739_v60  ;;  %v847_v39 = vadd.f32 %v1295_v21, %v750_v49  ;;  %v1298_v45 = vadd.f32 %v1806_v28, %v1955_v43 }
 0x11e   :  { %v1303_v3 = vpop.f32.mrf.mxu1  ;;  %v1240_v15 = vadd.f32 %v1239_v34, %v1238_v41  ;;  %v839_v41 = vadd.f32 %v1289_v11, %v742_v58 }
 0x11f   :  { %v1241_v55 = vpop.f32.mrf.mxu0  ;;  %v1304_v48 = vadd.f32 %v1303_v3, %v1302_v61  ;;  %v852_v4 = vadd.f32 %v1298_v45, %v755_v33 }
 0x120   :  { %v1836_v62 = vpop.f32.mrf.mxu1  ;;  %v763_v47 = vadd.f32 %v1240_v15, %v224_v29  ;;  %v1957_v21 = vld [vmem:[#allocation12_spill] sm:$0xff] }
 0x121   :  { %v1242_v0 = vpop.f32.mrf.mxu0  ;;  %v1956_v63 = vld [vmem:[#allocation13_spill] sm:$0xff] }
 0x122   :  { %v1306_v16 = vpop.f32.mrf.mxu1  ;;  %v1237_v34 = vadd.f32 %v1956_v63, %v1808_v13  ;;  %v1243_v36 = vadd.f32 %v1242_v0, %v1241_v55  ;;  %v860_v3 = vadd.f32 %v1304_v48, %v763_v47 }
 0x123   :  { %v1330_v22 = vpop.f32.mrf.mxu0  ;;  %v1307_v2 = vadd.f32 %v1306_v16, %v1836_v62 }
 0x124   :  { %v909_v56 = vadd.f32 %v1330_v22, %v812_v5  ;;  %v1338_v24 = vpop.f32.mrf.mxu1  ;;  %v766_v0 = vadd.f32 %v1243_v36, %v229_v6  ;;  %v758_v50 = vadd.f32 %v1237_v34, %v219_v54  ;;  %v1301_v22 = vadd.f32 %v1816_v31, %v1957_v21 }
 0x125   :  { %v941_v35 = vadd.f32 %v1338_v24, %v844_v23  ;;  %v900_v37 = vpop.f32.mrf.mxu0 }
 0x126   :  { %v965_v30 = vmax.f32 %v909_v56, 0.0  ;;  %v901_v32 = vadd.f32 %v900_v37, %v804_v7  ;;  %v932_v59 = vpop.f32.mrf.mxu1  ;;  %v863_v31 = vadd.f32 %v1307_v2, %v766_v0  ;;  %v823_v37 = vadd.f32 %v1834_v46, %v1846_v18 }
 0x127   :  { %v973_v5 = vmax.f32 %v941_v35, 0.0  ;;  %v933_v38 = vadd.f32 %v932_v59, %v836_v25  ;;  %v1331_v40 = vpop.f32.mrf.mxu0  ;;  %v855_v47 = vadd.f32 %v1301_v22, %v758_v50 }
 0x128   :  { %v1166_v53 = vpack.c.bf16 %v965_v30, %v965_v30  ;;  %v963_v57 = vmax.f32 %v901_v32, 0.0  ;;  %v912_v60 = vadd.f32 %v1331_v40, %v815_v42  ;;  %v1339_v1 = vpop.f32.mrf.mxu1 }
 0x129   :  { %v1174_v58 = vpack.c.bf16 %v973_v5, %v973_v5  ;;  %v971_v49 = vmax.f32 %v933_v38, 0.0  ;;  %v944_v51 = vadd.f32 %v1339_v1, %v847_v39  ;;  %v903_v28 = vpop.f32.mrf.mxu0 }
 0x12a   :  { %1046 = vst.msk [vmem:[%s1933_s3 + $0x8] sm:$0xf] %vm1043_vm1, %v1166_v53  ;;  %v1164_v13 = vpack.c.bf16 %v963_v57, %v963_v57  ;;  %v966_v7 = vmax.f32 %v912_v60, 0.0  ;;  %v904_v55 = vadd.f32 %v903_v28, %v1826_v8  ;;  %v935_v61 = vpop.f32.mrf.mxu1 }
 0x12b   :  { %1054 = vst.msk [vmem:[%s1933_s3 + $0x28] sm:$0xf] %vm1043_vm1, %v1174_v58  ;;  %v1172_v42 = vpack.c.bf16 %v971_v49, %v971_v49  ;;  %v974_v9 = vmax.f32 %v944_v51, 0.0  ;;  %v936_v10 = vadd.f32 %v935_v61, %v839_v41  ;;  %v1334_v12 = vpop.f32.mrf.mxu0 }
 0x12c   :  { %1044 = vst.msk [vmem:[%s1933_s3] sm:$0xf] %vm1043_vm1, %v1164_v13  ;;  %v1167_v52 = vpack.c.bf16 %v966_v7, %v966_v7  ;;  %v964_v8 = vmax.f32 %v904_v55, 0.0  ;;  %v925_v15 = vadd.f32 %v1334_v12, %v828_v26  ;;  %v1342_v17 = vpop.f32.mrf.mxu1 }
 0x12d   :  { %1052 = vst.msk [vmem:[%s1933_s3 + $0x20] sm:$0xf] %vm1043_vm1, %v1172_v42  ;;  %v1175_v19 = vpack.c.bf16 %v974_v9, %v974_v9  ;;  %v972_v11 = vmax.f32 %v936_v10, 0.0  ;;  %v957_v14 = vadd.f32 %v1342_v17, %v860_v3  ;;  %v916_v20 = vpop.f32.mrf.mxu0 }
 0x12e   :  { %1047 = vst.msk [vmem:[%s1933_s3 + $0xc] sm:$0xf] %vm1043_vm1, %v1167_v52  ;;  %v1165_v23 = vpack.c.bf16 %v964_v8, %v964_v8  ;;  %v969_v54 = vmax.f32 %v925_v15, 0.0  ;;  %v917_v62 = vadd.f32 %v916_v20, %v1830_v44  ;;  %v948_v16 = vpop.f32.mrf.mxu1 }
 0x12f   :  { %1055 = vst.msk [vmem:[%s1933_s3 + $0x2c] sm:$0xf] %vm1043_vm1, %v1175_v19  ;;  %v1173_v56 = vpack.c.bf16 %v972_v11, %v972_v11  ;;  %v977_v24 = vmax.f32 %v957_v14, 0.0  ;;  %v949_v25 = vadd.f32 %v948_v16, %v852_v4  ;;  %v1335_v26 = vpop.f32.mrf.mxu0 }
 0x130   :  { %1045 = vst.msk [vmem:[%s1933_s3 + $0x4] sm:$0xf] %vm1043_vm1, %v1165_v23  ;;  %v1170_v29 = vpack.c.bf16 %v969_v54, %v969_v54  ;;  %v967_v33 = vmax.f32 %v917_v62, 0.0  ;;  %v928_v44 = vadd.f32 %v1335_v26, %v1852_v27  ;;  %v1343_v35 = vpop.f32.mrf.mxu1 }
 0x131   :  { %1053 = vst.msk [vmem:[%s1933_s3 + $0x24] sm:$0xf] %vm1043_vm1, %v1173_v56  ;;  %v1178_v39 = vpack.c.bf16 %v977_v24, %v977_v24  ;;  %v975_v41 = vmax.f32 %v949_v25, 0.0  ;;  %v960_v43 = vadd.f32 %v1343_v35, %v863_v31  ;;  %v919_v45 = vpop.f32.mrf.mxu0 }
 0x132   :  { %1050 = vst.msk [vmem:[%s1933_s3 + $0x18] sm:$0xf] %vm1043_vm1, %v1170_v29  ;;  %v1168_v27 = vpack.c.bf16 %v967_v33, %v967_v33  ;;  %v970_v30 = vmax.f32 %v928_v44, 0.0  ;;  %v920_v32 = vadd.f32 %v919_v45, %v823_v37  ;;  %v951_v59 = vpop.f32.mrf.mxu1 }
 0x133   :  { %1058 = vst.msk [vmem:[%s1933_s3 + $0x38] sm:$0xf] %vm1043_vm1, %v1178_v39  ;;  %v1176_v46 = vpack.c.bf16 %v975_v41, %v975_v41  ;;  %v978_v18 = vmax.f32 %v960_v43, 0.0  ;;  %v952_v63 = vadd.f32 %v951_v59, %v855_v47 }
 0x134   :  { %1048 = vst.msk [vmem:[%s1933_s3 + $0x10] sm:$0xf] %vm1043_vm1, %v1168_v27  ;;  %v1171_v34 = vpack.c.bf16 %v970_v30, %v970_v30  ;;  %v968_v36 = vmax.f32 %v920_v32, 0.0 }
 0x135   :  { %1056 = vst.msk [vmem:[%s1933_s3 + $0x30] sm:$0xf] %vm1043_vm1, %v1176_v46  ;;  %v1179_v5 = vpack.c.bf16 %v978_v18, %v978_v18  ;;  %v976_v38 = vmax.f32 %v952_v63, 0.0 }
 0x136   :  { %1051 = vst.msk [vmem:[%s1933_s3 + $0x1c] sm:$0xf] %vm1043_vm1, %v1171_v34  ;;  %v1169_v40 = vpack.c.bf16 %v968_v36, %v968_v36 }
 0x137   :  { %1059 = vst.msk [vmem:[%s1933_s3 + $0x3c] sm:$0xf] %vm1043_vm1, %v1179_v5  ;;  %v1177_v48 = vpack.c.bf16 %v976_v38, %v976_v38 }
 0x138   :  { %1049 = vst.msk [vmem:[%s1933_s3 + $0x14] sm:$0xf] %vm1043_vm1, %v1169_v40 }
 0x139   :  { %1057 = vst.msk [vmem:[%s1933_s3 + $0x34] sm:$0xf] %vm1043_vm1, %v1177_v48 }

// kernel: _forward.42
= control target key start
LH: loop header
LB: loop body
LE: loop exit
PB: predicated region body
PF: predicated region fallthrough
CT: control target
= control target key end

     0   :  { %v277_v0 = vmov 0   ;;  %vm133_vm0 = vcmask 130048   ;;  %vm209_vm1 = vcmask 257024   ;;  %s365_s1 = inlined_call_operand.vmem [shape: bf16[144,32], index: 1, kind: input, shape index: {}]   ;;  %s366_s0 = inlined_call_operand.vmem [shape: bf16[32,144], index: 0, kind: input, shape index: {}]   ;;  %s367_s2 = inlined_call_operand.vmem [shape: f32[32,1], index: 2, kind: input, shape index: {}]   ;;  %s368_s3 = inlined_call_operand.vmem [shape: bf16[32,32], index: 3, kind: output, shape index: {}]  }
   0x1   :  { %140 = vmatprep.subr.bf16.mxu0 %v277_v0  ;;  %241 = vmatprep.subr.bf16.mxu1 %v277_v0  ;;  %v262_v1 = vld [vmem:[%s365_s1 + $0x38] sm:$0xff]   ;;  %v263_v2 = vld [vmem:[%s365_s1 + $0x30] sm:$0xff]   ;;  %v264_v3 = vld [vmem:[%s365_s1 + $0x28] sm:$0xff]  }
   0x2   :  { %261 = vset.pattern.permute.xlu1 %v277_v0  ;;  %260 = vset.pattern.permute.xlu0 %v277_v0  ;;  %v265_v4 = vld [vmem:[%s365_s1 + $0x20] sm:$0xff]   ;;  %v276_v6 = vld [vmem:[%s366_s0 + $0x14] ss:$8 sps:$4 sm:$0xff]   ;;  %v38_v11 = vld [vmem:[%s367_s2 + $0x8] sm:$0xff] }
   0x3   :  { %141 = vmatpush1.bf16.msra.mxu0 %v262_v1  ;;  %250 = vmatpush1.bf16.msra.mxu1 %v262_v1  ;;  %v273_v5 = vld [vmem:[%s366_s0 + $0x4] ss:$8 sps:$4 sm:$0xff]   ;;  %v39_v7 = vld [vmem:[%s367_s2 + $0x10] sm:$0xff]  ;;  %v40_v9 = vld [vmem:[%s367_s2 + $0x18] sm:$0xff] }
   0x4   :  { %142 = vmatprep.subr.bf16.mxu0 %v277_v0  ;;  %242 = vmatprep.subr.bf16.mxu1 %v277_v0  ;;  %v37_v8 = vld [vmem:[%s367_s2] sm:$0xff]  ;;  %v266_v10 = vld [vmem:[%s365_s1 + $0x18] sm:$0xff]   ;;  %v267_v12 = vld [vmem:[%s365_s1 + $0x10] sm:$0xff]  }
   0x5   :  { %231 = vmatprep.mubr.msk.bf16.mxu0 %vm133_vm0, %v273_v5  ;;  %53 = vperm.xlu1 %261, %v39_v7   ;;  %v268_v13 = vld [vmem:[%s365_s1 + $0x8] sm:$0xff]   ;;  %v269_v14 = vld [vmem:[%s365_s1] sm:$0xff]   ;;  %v274_v17 = vld [vmem:[%s366_s0 + $0x10] ss:$8 sps:$4 sm:$0xff]  }
   0x6   :  { %232 = vmatprep.mubr.msk.bf16.mxu1 %vm133_vm0, %v276_v6  ;;  %43 = vperm.xlu0 %260, %v37_v8   ;;  %v270_v15 = vld [vmem:[%s365_s1 + $0x40] sm:$0xff]  }
   0x7   :  { %143 = vmatpush1.bf16.msra.mxu0 %v263_v2  ;;  %251 = vmatpush1.bf16.msra.mxu1 %v263_v2  ;;  %v271_v16 = vld [vmem:[%s366_s0] ss:$8 sps:$4 sm:$0xff]  }
   0x8   :  { %144 = vmatprep.subr.bf16.mxu0 %v277_v0  ;;  %243 = vmatprep.subr.bf16.mxu1 %v277_v0 }
   0x9   :  { %58 = vperm.xlu1 %261, %v40_v9  }
   0xa   :  { %48 = vperm.xlu0 %260, %v38_v11  }
   0xb   :  { %145 = vmatpush1.bf16.msra.mxu0 %v264_v3  ;;  %252 = vmatpush1.bf16.msra.mxu1 %v264_v3 }
   0xc   :  { %146 = vmatprep.subr.bf16.mxu0 %v277_v0  ;;  %244 = vmatprep.subr.bf16.mxu1 %v277_v0 }
   0xf   :  { %147 = vmatpush1.bf16.msra.mxu0 %v265_v4  ;;  %253 = vmatpush1.bf16.msra.mxu1 %v265_v4 }
  0x10   :  { %148 = vmatprep.subr.bf16.mxu0 %v277_v0  ;;  %245 = vmatprep.subr.bf16.mxu1 %v277_v0 }
  0x13   :  { %149 = vmatpush1.bf16.msra.mxu0 %v266_v10  ;;  %254 = vmatpush1.bf16.msra.mxu1 %v266_v10 }
  0x14   :  { %150 = vmatprep.subr.bf16.mxu0 %v277_v0  ;;  %246 = vmatprep.subr.bf16.mxu1 %v277_v0 }
  0x17   :  { %151 = vmatpush1.bf16.msra.mxu0 %v267_v12  ;;  %255 = vmatpush1.bf16.msra.mxu1 %v267_v12 }
  0x18   :  { %152 = vmatprep.subr.bf16.mxu0 %v277_v0  ;;  %247 = vmatprep.subr.bf16.mxu1 %v277_v0 }
  0x1b   :  { %153 = vmatpush1.bf16.msra.mxu0 %v268_v13  ;;  %256 = vmatpush1.bf16.msra.mxu1 %v268_v13 }
  0x1c   :  { %154 = vmatprep.subr.bf16.mxu0 %v277_v0  ;;  %248 = vmatprep.subr.bf16.mxu1 %v277_v0 }
  0x1f   :  { %155 = vmatpush1.bf16.msra.mxu0 %v269_v14  ;;  %257 = vmatpush1.bf16.msra.mxu1 %v269_v14 }
  0x20   :  { %170 = vmatprep.subr.bf16.mxu0 %v277_v0  ;;  %249 = vmatprep.subr.bf16.mxu1 %v277_v0 }
  0x23   :  { %171 = vmatpush2.bf16.msra.mxu0 %v270_v15  ;;  %258 = vmatpush2.bf16.msra.mxu1 %v270_v15 }
  0x26   :  { %173 = vmatmul.mubr.bf16.vlgmr.msra.gmra.mxu0 %v271_v16  ;;  %181 = vmatmul.mubr.bf16.vlgmr.msra.gmra.mxu1 %v274_v17 }
  0x80   :  { %v54_v18 = vpop.permute.xlu1 %53 }
  0x81   :  { %v44_v19 = vpop.permute.xlu0 %43 }
  0x84   :  { %v59_v26 = vpop.permute.xlu1 %58 }
  0x85   :  { %v49_v27 = vpop.permute.xlu0 %48 }
  0xe6   :  { %v174_v20 = vpop.f32.mrf.mxu0  ;;  %v182_v21 = vpop.f32.mrf.mxu1 }
  0xe7   :  { %v175_v22 = vadd.f32 %v174_v20, %v44_v19  ;;  %v183_v23 = vadd.f32 %v182_v21, %v54_v18 }
  0xe8   :  { %v176_v24 = vpop.f32.mrf.mxu0  ;;  %v184_v25 = vpop.f32.mrf.mxu1 }
  0xe9   :  { %v189_v28 = vmax.f32 %v175_v22, 0.0  ;;  %v191_v29 = vmax.f32 %v183_v23, 0.0 }
  0xea   :  { %v177_v30 = vpop.f32.mrf.mxu0  ;;  %v185_v31 = vpop.f32.mrf.mxu1 }
  0xeb   :  { %v237_v32 = vpack.c.bf16 %v189_v28, %v189_v28  ;;  %v239_v33 = vpack.c.bf16 %v191_v29, %v191_v29  ;;  %v178_v34 = vadd.f32 %v177_v30, %v49_v27  ;;  %v186_v35 = vadd.f32 %v185_v31, %v59_v26 }
  0xec   :  { %v179_v36 = vpop.f32.mrf.mxu0  ;;  %v187_v37 = vpop.f32.mrf.mxu1 }
  0xed   :  { %210 = vst.msk [vmem:[%s368_s3] sm:$0xf] %vm209_vm1, %v237_v32  ;;  %212 = vst.msk [vmem:[%s368_s3 + $0x8] sm:$0xf] %vm209_vm1, %v239_v33  ;;  %v190_v38 = vmax.f32 %v178_v34, 0.0  ;;  %v192_v39 = vmax.f32 %v186_v35, 0.0 }
  0xef   :  { %v238_v40 = vpack.c.bf16 %v190_v38, %v190_v38  ;;  %v240_v41 = vpack.c.bf16 %v192_v39, %v192_v39 }
  0xf1   :  { %211 = vst.msk [vmem:[%s368_s3 + $0x4] sm:$0xf] %vm209_vm1, %v238_v40  ;;  %213 = vst.msk [vmem:[%s368_s3 + $0xc] sm:$0xf] %vm209_vm1, %v240_v41 }

// kernel: _forward.40
= control target key start
LH: loop header
LB: loop body
LE: loop exit
PB: predicated region body
PF: predicated region fallthrough
CT: control target
= control target key end

     0   :  { %v640_v1 = vmov 0   ;;  %vm283_vm0 = vcmask 261120   ;;  %vm466_vm1 = vcmask 60416   ;;  %s811_s1 = inlined_call_operand.vmem [shape: bf16[288,8], index: 1, kind: input, shape index: {}]   ;;  %s812_s0 = inlined_call_operand.vmem [shape: bf16[64,288], index: 0, kind: input, shape index: {}]   ;;  %s813_s2 = inlined_call_operand.vmem [shape: f32[64,1], index: 2, kind: input, shape index: {}]   ;;  %s814_s3 = inlined_call_operand.vmem [shape: bf16[64,8], index: 3, kind: output, shape index: {}]  }
   0x1   :  { %v606_v0 = vld [vmem:[%s811_s1 + $0x78] sm:$0xff]   ;;  %604 = vset.pattern.permute.xlu0 %v640_v1  ;;  %605 = vset.pattern.permute.xlu1 %v640_v1  ;;  %v608_v3 = vld [vmem:[%s811_s1 + $0x70] sm:$0xff]   ;;  %v610_v5 = vld [vmem:[%s811_s1 + $0x68] sm:$0xff]  }
   0x2   :  { %v607_v2 = vld [vmem:[%s811_s1 + $0x38] sm:$0xff]   ;;  %529 = vmatprep.subr.bf16.mxu0 %v606_v0  ;;  %587 = vmatprep.subr.bf16.mxu1 %v606_v0  ;;  %v609_v4 = vld [vmem:[%s811_s1 + $0x30] sm:$0xff]   ;;  %v611_v6 = vld [vmem:[%s811_s1 + $0x28] sm:$0xff]  }
   0x3   :  { %530 = vmatpush3.bf16.msra.mxu0 %v607_v2  ;;  %595 = vmatpush3.bf16.msra.mxu1 %v607_v2  ;;  %v612_v7 = vld [vmem:[%s811_s1 + $0x60] sm:$0xff]   ;;  %v614_v9 = vld [vmem:[%s811_s1 + $0x58] sm:$0xff]   ;;  %v616_v11 = vld [vmem:[%s811_s1 + $0x50] sm:$0xff]  }
   0x4   :  { %531 = vmatprep.subr.bf16.mxu0 %v608_v3  ;;  %588 = vmatprep.subr.bf16.mxu1 %v608_v3  ;;  %v613_v8 = vld [vmem:[%s811_s1 + $0x20] sm:$0xff]   ;;  %v615_v10 = vld [vmem:[%s811_s1 + $0x18] sm:$0xff]   ;;  %v617_v14 = vld [vmem:[%s811_s1 + $0x10] sm:$0xff]  }
   0x5   :  { %v624_v12 = vld [vmem:[%s812_s0 + $0x4] ss:$12 sps:$4 sm:$0xff]   ;;  %v627_v13 = vld [vmem:[%s812_s0 + $0x4c] ss:$12 sps:$4 sm:$0xff]   ;;  %v625_v23 = vld [vmem:[%s812_s0 + $0x48] ss:$12 sps:$4 sm:$0xff]  }
   0x6   :  { %v618_v15 = vld [vmem:[%s811_s1 + $0x48] sm:$0xff]   ;;  %328 = vmatprep.mubr.bf16.mxu0 %v624_v12  ;;  %352 = vmatprep.mubr.bf16.mxu1 %v627_v13  ;;  %v620_v17 = vld [vmem:[%s811_s1 + $0x40] sm:$0xff]   ;;  %v69_v20 = vld [vmem:[%s813_s2 + $0x10] sm:$0xff] }
   0x7   :  { %532 = vmatpush3.bf16.msra.mxu0 %v609_v4  ;;  %596 = vmatpush3.bf16.msra.mxu1 %v609_v4  ;;  %v619_v16 = vld [vmem:[%s811_s1 + $0x8] sm:$0xff]   ;;  %v621_v18 = vld [vmem:[%s811_s1] sm:$0xff]   ;;  %v70_v25 = vld [vmem:[%s813_s2 + $0x18] sm:$0xff] }
   0x8   :  { %533 = vmatprep.subr.bf16.mxu0 %v610_v5  ;;  %589 = vmatprep.subr.bf16.mxu1 %v610_v5  ;;  %v67_v19 = vld [vmem:[%s813_s2] sm:$0xff]  ;;  %v628_v21 = vld [vmem:[%s811_s1 + $0x88] sm:$0xff]   ;;  %v73_v33 = vld [vmem:[%s813_s2 + $0x30] sm:$0xff] }
   0x9   :  { %v622_v22 = vld [vmem:[%s812_s0] ss:$12 sps:$4 sm:$0xff]   ;;  %77 = vperm.xlu0 %604, %v67_v19   ;;  %87 = vperm.xlu1 %605, %v69_v20   ;;  %v630_v26 = vld [vmem:[%s812_s0 + $0x1c] ss:$12 sps:$4 sm:$0xff]   ;;  %v633_v31 = vld [vmem:[%s812_s0 + $0x18] ss:$12 sps:$4 sm:$0xff]  }
   0xa   :  { %v68_v24 = vld [vmem:[%s813_s2 + $0x8] sm:$0xff]  ;;  %v629_v27 = vld [vmem:[%s811_s1 + $0x80] sm:$0xff]   ;;  %v74_v34 = vld [vmem:[%s813_s2 + $0x38] sm:$0xff] }
   0xb   :  { %534 = vmatpush3.bf16.msra.mxu0 %v611_v6  ;;  %597 = vmatpush3.bf16.msra.mxu1 %v611_v6  ;;  %v632_v28 = vld [vmem:[%s812_s0 + $0x8] ss:$12 sps:$4 sm:$0xff]   ;;  %v71_v29 = vld [vmem:[%s813_s2 + $0x20] sm:$0xff]  ;;  %v638_v37 = vld [vmem:[%s812_s0 + $0x30] ss:$12 sps:$4 sm:$0xff]  }
   0xc   :  { %535 = vmatprep.subr.bf16.mxu0 %v612_v7  ;;  %590 = vmatprep.subr.bf16.mxu1 %v612_v7  ;;  %v72_v30 = vld [vmem:[%s813_s2 + $0x28] sm:$0xff]  ;;  %v635_v35 = vld [vmem:[%s812_s0 + $0x34] ss:$12 sps:$4 sm:$0xff]   ;;  %v637_v36 = vld [vmem:[%s812_s0 + $0x38] ss:$12 sps:$4 sm:$0xff]  }
   0xd   :  { %82 = vperm.xlu0 %604, %v68_v24   ;;  %92 = vperm.xlu1 %605, %v70_v25   ;;  %v634_v32 = vld [vmem:[%s812_s0 + $0x20] ss:$12 sps:$4 sm:$0xff]   ;;  %v639_v38 = vld [vmem:[%s812_s0 + $0x50] ss:$12 sps:$4 sm:$0xff]  }
   0xf   :  { %536 = vmatpush3.bf16.msra.mxu0 %v613_v8  ;;  %598 = vmatpush3.bf16.msra.mxu1 %v613_v8 }
  0x10   :  { %537 = vmatprep.subr.bf16.mxu0 %v614_v9  ;;  %591 = vmatprep.subr.bf16.mxu1 %v614_v9 }
  0x11   :  { %97 = vperm.xlu0 %604, %v71_v29   ;;  %102 = vperm.xlu1 %605, %v72_v30  }
  0x13   :  { %538 = vmatpush3.bf16.msra.mxu0 %v615_v10  ;;  %599 = vmatpush3.bf16.msra.mxu1 %v615_v10 }
  0x14   :  { %539 = vmatprep.subr.bf16.mxu0 %v616_v11  ;;  %592 = vmatprep.subr.bf16.mxu1 %v616_v11 }
  0x15   :  { %107 = vperm.xlu0 %604, %v73_v33   ;;  %112 = vperm.xlu1 %605, %v74_v34  }
  0x17   :  { %540 = vmatpush3.bf16.msra.mxu0 %v617_v14  ;;  %600 = vmatpush3.bf16.msra.mxu1 %v617_v14 }
  0x18   :  { %541 = vmatprep.subr.bf16.mxu0 %v618_v15  ;;  %593 = vmatprep.subr.bf16.mxu1 %v618_v15 }
  0x1b   :  { %542 = vmatpush3.bf16.msra.mxu0 %v619_v16  ;;  %601 = vmatpush3.bf16.msra.mxu1 %v619_v16 }
  0x1c   :  { %543 = vmatprep.subr.bf16.mxu0 %v620_v17  ;;  %594 = vmatprep.subr.bf16.mxu1 %v620_v17 }
  0x1f   :  { %544 = vmatpush3.bf16.msra.mxu0 %v621_v18  ;;  %602 = vmatpush3.bf16.msra.mxu1 %v621_v18 }
  0x20   :  { %575 = vmatprep.subr.bf16.mxu1 %v628_v21 }
  0x22   :  { %329 = vmatmul.mubr.bf16.vlgmr.msra.gmra.mxu0 %v622_v22  ;;  %353 = vmatmul.mubr.bf16.vlgmr.msra.gmra.mxu1 %v625_v23 }
  0x23   :  { %576 = vmatpush3.bf16.msra.mxu1 %v628_v21  ;;  %336 = vmatprep.mubr.bf16.mxu0 %v630_v26 }
  0x24   :  { %577 = vmatprep.subr.bf16.mxu1 %v629_v27  ;;  %579 = vmatprep.mubr.msk.bf16.mxu1 %vm283_vm0, %v632_v28 }
  0x27   :  { %578 = vmatpush3.bf16.msra.mxu1 %v629_v27 }
  0x2a   :  { %337 = vmatmul.mubr.bf16.gmra.mxu0 %v633_v31  ;;  %580 = vmatmul.mubr.msk.bf16.vlgmr.msra.gmra.mxu1 %vm283_vm0, %v634_v32 }
  0x2b   :  { %344 = vmatprep.mubr.bf16.mxu0 %v635_v35  ;;  %583 = vmatprep.mubr.msk.bf16.mxu1 %vm283_vm0, %v637_v36 }
  0x32   :  { %345 = vmatmul.mubr.bf16.gmra.mxu0 %v638_v37  ;;  %584 = vmatmul.mubr.msk.bf16.gmra.mxu1 %vm283_vm0, %v639_v38 }
  0x84   :  { %v78_v39 = vpop.permute.xlu0 %77  ;;  %v88_v40 = vpop.permute.xlu1 %87 }
  0x88   :  { %v83_v41 = vpop.permute.xlu0 %82  ;;  %v93_v46 = vpop.permute.xlu1 %92 }
  0x8c   :  { %v98_v49 = vpop.permute.xlu0 %97  ;;  %v103_v55 = vpop.permute.xlu1 %102 }
  0x90   :  { %v108_v61 = vpop.permute.xlu0 %107  ;;  %v113_v9 = vpop.permute.xlu1 %112 }
  0xe2   :  { %v545_v42 = vpop.f32.mrf.mxu0  ;;  %v563_v43 = vpop.f32.mrf.mxu1 }
  0xe4   :  { %v546_v44 = vpop.f32.mrf.mxu0  ;;  %v564_v45 = vpop.f32.mrf.mxu1 }
  0xe5   :  { %v547_v50 = vadd.f32 %v546_v44, %v545_v42  ;;  %v565_v58 = vadd.f32 %v564_v45, %v563_v43 }
  0xe6   :  { %v548_v47 = vpop.f32.mrf.mxu0  ;;  %v566_v48 = vpop.f32.mrf.mxu1 }
  0xe7   :  { %v331_v57 = vadd.f32 %v547_v50, %v78_v39  ;;  %v355_v5 = vadd.f32 %v565_v58, %v108_v61 }
  0xe8   :  { %v549_v51 = vpop.f32.mrf.mxu0  ;;  %v567_v52 = vpop.f32.mrf.mxu1 }
  0xe9   :  { %v550_v56 = vadd.f32 %v549_v51, %v548_v47  ;;  %v568_v6 = vadd.f32 %v567_v52, %v566_v48 }
  0xea   :  { %v551_v53 = vpop.f32.mrf.mxu0  ;;  %v581_v54 = vpop.f32.mrf.mxu1 }
  0xeb   :  { %v334_v4 = vadd.f32 %v550_v56, %v83_v41  ;;  %v358_v20 = vadd.f32 %v568_v6, %v113_v9 }
  0xec   :  { %v552_v59 = vpop.f32.mrf.mxu0  ;;  %v395_v60 = vpop.f32.mrf.mxu1 }
  0xed   :  { %v553_v62 = vadd.f32 %v552_v59, %v551_v53  ;;  %v396_v63 = vadd.f32 %v395_v60, %v331_v57 }
  0xee   :  { %v554_v0 = vpop.f32.mrf.mxu0  ;;  %v582_v1 = vpop.f32.mrf.mxu1 }
  0xef   :  { %v339_v2 = vadd.f32 %v553_v62, %v88_v40  ;;  %v426_v3 = vmax.f32 %v396_v63, 0.0 }
  0xf0   :  { %v555_v7 = vpop.f32.mrf.mxu0  ;;  %v398_v8 = vpop.f32.mrf.mxu1 }
  0xf1   :  { %v404_v10 = vadd.f32 %v581_v54, %v339_v2  ;;  %v521_v11 = vpack.c.bf16 %v426_v3, %v426_v3  ;;  %v556_v12 = vadd.f32 %v555_v7, %v554_v0  ;;  %v399_v13 = vadd.f32 %v398_v8, %v334_v4 }
  0xf2   :  { %v557_v14 = vpop.f32.mrf.mxu0  ;;  %v585_v15 = vpop.f32.mrf.mxu1 }
  0xf3   :  { %v428_v16 = vmax.f32 %v404_v10, 0.0  ;;  %467 = vst.msk [vmem:[%s814_s3] sm:$0xf] %vm466_vm1, %v521_v11  ;;  %v342_v17 = vadd.f32 %v556_v12, %v93_v46  ;;  %v427_v18 = vmax.f32 %v399_v13, 0.0  ;;  %v420_v19 = vadd.f32 %v585_v15, %v355_v5 }
  0xf4   :  { %v558_v21 = vpop.f32.mrf.mxu0  ;;  %v411_v22 = vpop.f32.mrf.mxu1 }
  0xf5   :  { %v523_v23 = vpack.c.bf16 %v428_v16, %v428_v16  ;;  %v407_v24 = vadd.f32 %v582_v1, %v342_v17  ;;  %v522_v25 = vpack.c.bf16 %v427_v18, %v427_v18  ;;  %v432_v26 = vmax.f32 %v420_v19, 0.0 }
  0xf6   :  { %v559_v27 = vadd.f32 %v558_v21, %v557_v14  ;;  %v560_v28 = vpop.f32.mrf.mxu0  ;;  %v586_v29 = vpop.f32.mrf.mxu1 }
  0xf7   :  { %469 = vst.msk [vmem:[%s814_s3 + $0x8] sm:$0xf] %vm466_vm1, %v523_v23  ;;  %v429_v30 = vmax.f32 %v407_v24, 0.0  ;;  %468 = vst.msk [vmem:[%s814_s3 + $0x4] sm:$0xf] %vm466_vm1, %v522_v25  ;;  %v527_v31 = vpack.c.bf16 %v432_v26, %v432_v26  ;;  %v423_v32 = vadd.f32 %v586_v29, %v358_v20 }
  0xf8   :  { %v347_v33 = vadd.f32 %v559_v27, %v98_v49  ;;  %v561_v34 = vpop.f32.mrf.mxu0  ;;  %v414_v42 = vpop.f32.mrf.mxu1 }
  0xf9   :  { %v524_v35 = vpack.c.bf16 %v429_v30, %v429_v30  ;;  %473 = vst.msk [vmem:[%s814_s3 + $0x18] sm:$0xf] %vm466_vm1, %v527_v31  ;;  %v433_v36 = vmax.f32 %v423_v32, 0.0  ;;  %v562_v37 = vadd.f32 %v561_v34, %v560_v28 }
  0xfa   :  { %v412_v38 = vadd.f32 %v411_v22, %v347_v33 }
  0xfb   :  { %470 = vst.msk [vmem:[%s814_s3 + $0xc] sm:$0xf] %vm466_vm1, %v524_v35  ;;  %v528_v39 = vpack.c.bf16 %v433_v36, %v433_v36  ;;  %v350_v40 = vadd.f32 %v562_v37, %v103_v55 }
  0xfc   :  { %v430_v41 = vmax.f32 %v412_v38, 0.0 }
  0xfd   :  { %474 = vst.msk [vmem:[%s814_s3 + $0x1c] sm:$0xf] %vm466_vm1, %v528_v39  ;;  %v415_v43 = vadd.f32 %v414_v42, %v350_v40 }
  0xfe   :  { %v525_v44 = vpack.c.bf16 %v430_v41, %v430_v41 }
  0xff   :  { %v431_v45 = vmax.f32 %v415_v43, 0.0 }
 0x100   :  { %471 = vst.msk [vmem:[%s814_s3 + $0x10] sm:$0xf] %vm466_vm1, %v525_v44 }
 0x101   :  { %v526_v46 = vpack.c.bf16 %v431_v45, %v431_v45 }
 0x103   :  { %472 = vst.msk [vmem:[%s814_s3 + $0x14] sm:$0xf] %vm466_vm1, %v526_v46 }

// kernel: _forward.41
= control target key start
LH: loop header
LB: loop body
LE: loop exit
PB: predicated region body
PF: predicated region fallthrough
CT: control target
= control target key end

     0   :  { %v202_v0 = vmov 0   ;;  %vm110_vm0 = vcmask 130048   ;;  %vm165_vm1 = vcmask 257024   ;;  %s268_s1 = inlined_call_operand.vmem [shape: bf16[144,32], index: 1, kind: input, shape index: {}]   ;;  %s269_s0 = inlined_call_operand.vmem [shape: bf16[16,144], index: 0, kind: input, shape index: {}]   ;;  %s270_s2 = inlined_call_operand.vmem [shape: f32[16,1], index: 2, kind: input, shape index: {}]   ;;  %s271_s3 = inlined_call_operand.vmem [shape: bf16[16,32], index: 3, kind: output, shape index: {}]  }
   0x1   :  { %114 = vmatprep.subr.bf16.mxu0 %v202_v0  ;;  %v190_v1 = vld [vmem:[%s268_s1 + $0x38] sm:$0xff]   ;;  %189 = vset.pattern.permute.xlu0 %v202_v0  ;;  %v191_v2 = vld [vmem:[%s268_s1 + $0x30] sm:$0xff]   ;;  %v192_v3 = vld [vmem:[%s268_s1 + $0x28] sm:$0xff]  }
   0x2   :  { %115 = vmatpush1.bf16.msra.mxu0 %v190_v1  ;;  %v193_v4 = vld [vmem:[%s268_s1 + $0x20] sm:$0xff]   ;;  %v36_v7 = vld [vmem:[%s270_s2 + $0x8] sm:$0xff]  ;;  %v194_v8 = vld [vmem:[%s268_s1 + $0x18] sm:$0xff]  }
   0x3   :  { %116 = vmatprep.subr.bf16.mxu0 %v202_v0  ;;  %v201_v5 = vld [vmem:[%s269_s0 + $0x4] ss:$8 sps:$4 sm:$0xff]   ;;  %v195_v9 = vld [vmem:[%s268_s1 + $0x10] sm:$0xff]   ;;  %v199_v13 = vld [vmem:[%s269_s0] ss:$8 sps:$4 sm:$0xff]  }
   0x4   :  { %v35_v6 = vld [vmem:[%s270_s2] sm:$0xff]  ;;  %183 = vmatprep.mubr.msk.bf16.mxu0 %vm110_vm0, %v201_v5  ;;  %v196_v10 = vld [vmem:[%s268_s1 + $0x8] sm:$0xff]  }
   0x5   :  { %39 = vperm.xlu0 %189, %v35_v6   ;;  %v197_v11 = vld [vmem:[%s268_s1] sm:$0xff]  }
   0x6   :  { %117 = vmatpush1.bf16.msra.mxu0 %v191_v2  ;;  %v198_v12 = vld [vmem:[%s268_s1 + $0x40] sm:$0xff]  }
   0x7   :  { %118 = vmatprep.subr.bf16.mxu0 %v202_v0 }
   0x9   :  { %44 = vperm.xlu0 %189, %v36_v7  }
   0xa   :  { %119 = vmatpush1.bf16.msra.mxu0 %v192_v3 }
   0xb   :  { %120 = vmatprep.subr.bf16.mxu0 %v202_v0 }
   0xe   :  { %121 = vmatpush1.bf16.msra.mxu0 %v193_v4 }
   0xf   :  { %122 = vmatprep.subr.bf16.mxu0 %v202_v0 }
  0x12   :  { %123 = vmatpush1.bf16.msra.mxu0 %v194_v8 }
  0x13   :  { %124 = vmatprep.subr.bf16.mxu0 %v202_v0 }
  0x16   :  { %125 = vmatpush1.bf16.msra.mxu0 %v195_v9 }
  0x17   :  { %126 = vmatprep.subr.bf16.mxu0 %v202_v0 }
  0x1a   :  { %127 = vmatpush1.bf16.msra.mxu0 %v196_v10 }
  0x1b   :  { %128 = vmatprep.subr.bf16.mxu0 %v202_v0 }
  0x1e   :  { %129 = vmatpush1.bf16.msra.mxu0 %v197_v11 }
  0x1f   :  { %144 = vmatprep.subr.bf16.mxu0 %v202_v0 }
  0x22   :  { %145 = vmatpush2.bf16.msra.mxu0 %v198_v12 }
  0x25   :  { %147 = vmatmul.mubr.bf16.vlgmr.msra.gmra.mxu0 %v199_v13 }
  0x80   :  { %v40_v14 = vpop.permute.xlu0 %39 }
  0x84   :  { %v45_v19 = vpop.permute.xlu0 %44 }
  0xe5   :  { %v148_v15 = vpop.f32.mrf.mxu0 }
  0xe6   :  { %v149_v16 = vadd.f32 %v148_v15, %v40_v14 }
  0xe7   :  { %v150_v17 = vpop.f32.mrf.mxu0 }
  0xe8   :  { %v155_v18 = vmax.f32 %v149_v16, 0.0 }
  0xe9   :  { %v151_v20 = vpop.f32.mrf.mxu0 }
  0xea   :  { %v186_v21 = vpack.c.bf16 %v155_v18, %v155_v18  ;;  %v152_v22 = vadd.f32 %v151_v20, %v45_v19 }
  0xeb   :  { %v153_v23 = vpop.f32.mrf.mxu0 }
  0xec   :  { %166 = vst.msk [vmem:[%s271_s3] sm:$0xf] %vm165_vm1, %v186_v21  ;;  %v156_v24 = vmax.f32 %v152_v22, 0.0 }
  0xee   :  { %v187_v25 = vpack.c.bf16 %v156_v24, %v156_v24 }
  0xf0   :  { %167 = vst.msk [vmem:[%s271_s3 + $0x4] sm:$0xf] %vm165_vm1, %v187_v25 }

// kernel: _forward.43
= control target key start
LH: loop header
LB: loop body
LE: loop exit
PB: predicated region body
PF: predicated region fallthrough
CT: control target
= control target key end

     0   :  { %vm62_vm0 = vcmask 1043456   ;;  %v148_v0 = vmov 0.0   ;;  %vm149_vm1 = vmmov 0   ;;  %v150_v3 = vmov 0   ;;  %s195_s1 = inlined_call_operand.vmem [shape: bf16[72,128], index: 1, kind: input, shape index: {}]   ;;  %s196_s2 = inlined_call_operand.vmem [shape: f32[8,1], index: 2, kind: input, shape index: {}]   ;;  %s197_s0 = inlined_call_operand.vmem [shape: bf16[8,72], index: 0, kind: input, shape index: {}]   ;;  %s198_s3 = inlined_call_operand.vmem [shape: bf16[8,128], index: 3, kind: output, shape index: {}]  }
   0x1   :  { %125 = vmatprep.subr.bf16.mxu0 %v148_v0  ;;  %v143_v1 = vld [vmem:[%s195_s1 + $0x20] ss:$0 sps:$4 sm:$0xff]   ;;  %135 = vmatprep.mubr.msk.bf16.mxu0 %vm149_vm1, %v148_v0  ;;  %v144_v4 = vld [vmem:[%s195_s1 + $0x18] sm:$0xff]   ;;  %v145_v6 = vld [vmem:[%s195_s1 + $0x10] sm:$0xff]   ;;  %vm58_vm2 = vcmask 588800  }
   0x2   :  { %v64_v2 = vsel %vm62_vm0, %v143_v1, 0  ;;  %142 = vset.pattern.permute.xlu0 %v150_v3  ;;  %v25_v5 = vld [vmem:[%s196_s2] sm:$0xff]  ;;  %v146_v7 = vld [vmem:[%s195_s1 + $0x8] sm:$0xff]  }
   0x3   :  { %126 = vmatpush3.bf16.msra.mxu0 %v64_v2  ;;  %28 = vperm.xlu0 %142, %v25_v5   ;;  %v147_v8 = vld [vmem:[%s195_s1] sm:$0xff]  }
   0x4   :  { %127 = vmatprep.subr.bf16.mxu0 %v148_v0  ;;  %v15_v9 = vld [vmem:[%s197_s0] sm:$0xf] }
   0x7   :  { %128 = vmatpush3.bf16.msra.mxu0 %v144_v4 }
   0x8   :  { %129 = vmatprep.subr.bf16.mxu0 %v148_v0 }
   0xb   :  { %130 = vmatpush3.bf16.msra.mxu0 %v145_v6 }
   0xc   :  { %131 = vmatprep.subr.bf16.mxu0 %v148_v0 }
   0xf   :  { %132 = vmatpush3.bf16.msra.mxu0 %v146_v7 }
  0x10   :  { %133 = vmatprep.subr.bf16.mxu0 %v148_v0 }
  0x13   :  { %134 = vmatpush3.bf16.msra.mxu0 %v147_v8 }
  0x16   :  { %136 = vmatmul.mubr.msk.bf16.vlgmr.msra.gmra.mxu0 %vm58_vm2, %v15_v9 }
  0x7e   :  { %v29_v10 = vpop.permute.xlu0 %28 }
  0xd6   :  { %v100_v11 = vpop.f32.mrf.mxu0 }
  0xd7   :  { %v101_v12 = vadd.f32 %v100_v11, %v29_v10 }
  0xd8   :  { %v137_v13 = vpop.f32.mrf.mxu0 }
  0xd9   :  { %v106_v14 = vmax.f32 %v101_v12, 0.0 }
  0xda   :  { %v103_v15 = vpop.f32.mrf.mxu0 }
  0xdb   :  { %v107_v16 = vpack.c.bf16 %v106_v14, %v106_v14 }
  0xdc   :  { %v138_v17 = vpop.f32.mrf.mxu0 }
  0xdd   :  { %108 = vst [vmem:[%s198_s3] sm:$0xf] %v107_v16 }

// kernel: _forward.44
= control target key start
LH: loop header
LB: loop body
LE: loop exit
PB: predicated region body
PF: predicated region fallthrough
CT: control target
= control target key end

     0   :  { %vm74_vm0 = vcmask 1043456   ;;  %v181_v0 = vmov 0.0   ;;  %vm182_vm1 = vmmov 0   ;;  %v183_v3 = vmov 0   ;;  %s231_s1 = inlined_call_operand.vmem [shape: bf16[72,128], index: 1, kind: input, shape index: {}]   ;;  %s232_s2 = inlined_call_operand.vmem [shape: f32[16,1], index: 2, kind: input, shape index: {}]   ;;  %s233_s0 = inlined_call_operand.vmem [shape: bf16[16,72], index: 0, kind: input, shape index: {}]   ;;  %s234_s3 = inlined_call_operand.vmem [shape: bf16[16,128], index: 3, kind: output, shape index: {}]  }
   0x1   :  { %157 = vmatprep.subr.bf16.mxu0 %v181_v0  ;;  %v175_v1 = vld [vmem:[%s231_s1 + $0x20] ss:$0 sps:$4 sm:$0xff]   ;;  %167 = vmatprep.mubr.msk.bf16.mxu0 %vm182_vm1, %v181_v0  ;;  %v176_v4 = vld [vmem:[%s231_s1 + $0x18] sm:$0xff]   ;;  %v177_v6 = vld [vmem:[%s231_s1 + $0x10] sm:$0xff]   ;;  %vm70_vm2 = vcmask 588800  }
   0x2   :  { %v76_v2 = vsel %vm74_vm0, %v175_v1, 0  ;;  %174 = vset.pattern.permute.xlu0 %v183_v3  ;;  %v26_v5 = vld [vmem:[%s232_s2] sm:$0xff]  ;;  %v27_v7 = vld [vmem:[%s232_s2 + $0x8] sm:$0xff] }
   0x3   :  { %158 = vmatpush3.bf16.msra.mxu0 %v76_v2  ;;  %30 = vperm.xlu0 %174, %v26_v5   ;;  %v178_v8 = vld [vmem:[%s231_s1 + $0x8] sm:$0xff]   ;;  %v179_v9 = vld [vmem:[%s231_s1] sm:$0xff]  }
   0x4   :  { %159 = vmatprep.subr.bf16.mxu0 %v181_v0  ;;  %v180_v10 = vld [vmem:[%s233_s0] sm:$0xff]  }
   0x7   :  { %160 = vmatpush3.bf16.msra.mxu0 %v176_v4  ;;  %35 = vperm.xlu0 %174, %v27_v7  }
   0x8   :  { %161 = vmatprep.subr.bf16.mxu0 %v181_v0 }
   0xb   :  { %162 = vmatpush3.bf16.msra.mxu0 %v177_v6 }
   0xc   :  { %163 = vmatprep.subr.bf16.mxu0 %v181_v0 }
   0xf   :  { %164 = vmatpush3.bf16.msra.mxu0 %v178_v8 }
  0x10   :  { %165 = vmatprep.subr.bf16.mxu0 %v181_v0 }
  0x13   :  { %166 = vmatpush3.bf16.msra.mxu0 %v179_v9 }
  0x16   :  { %168 = vmatmul.mubr.msk.bf16.vlgmr.msra.gmra.mxu0 %vm70_vm2, %v180_v10 }
  0x7e   :  { %v31_v11 = vpop.permute.xlu0 %30 }
  0x82   :  { %v36_v15 = vpop.permute.xlu0 %35 }
  0xd6   :  { %v112_v12 = vpop.f32.mrf.mxu0 }
  0xd7   :  { %v113_v14 = vadd.f32 %v112_v12, %v31_v11 }
  0xd8   :  { %v169_v13 = vpop.f32.mrf.mxu0 }
  0xd9   :  { %v119_v19 = vmax.f32 %v113_v14, 0.0 }
  0xda   :  { %v115_v16 = vpop.f32.mrf.mxu0 }
  0xdb   :  { %v116_v17 = vadd.f32 %v115_v16, %v36_v15 }
  0xdc   :  { %v170_v18 = vpop.f32.mrf.mxu0 }
  0xdd   :  { %v120_v20 = vmax.f32 %v116_v17, 0.0 }
  0xdf   :  { %v149_v21 = vpack.c.bf16 %v120_v20, %v119_v19 }
  0xe1   :  { %150 = vst [vmem:[%s234_s3] sm:$0xff] %v149_v21  }

// kernel: _forward.45
= control target key start
LH: loop header
LB: loop body
LE: loop exit
PB: predicated region body
PF: predicated region fallthrough
CT: control target
= control target key end

     0   :  { %vm86_vm0 = vcmask 1041408   ;;  %v253_v2 = vmov 0   ;;  %vm82_vm1 = vcmask 293888   ;;  %v254_v19 = vmov 1983009808   ;;  %s314_s1 = inlined_call_operand.vmem [shape: bf16[36,512], index: 1, kind: input, shape index: {}]   ;;  %s315_s2 = inlined_call_operand.vmem [shape: f32[4,1], index: 2, kind: input, shape index: {}]   ;;  %s316_s0 = inlined_call_operand.vmem [shape: bf16[4,36], index: 0, kind: input, shape index: {}]   ;;  %s317_s3 = inlined_call_operand.vmem [shape: bf16[4,512], index: 3, kind: output, shape index: {}]  }
   0x1   :  { %v24_v0 = vld [vmem:[%s314_s1 + $0x40] sm:$0x33]  ;;  %v25_v1 = vld [vmem:[%s314_s1 + $0x48] sm:$0x33]  ;;  %131 = vmatprep.mubr.bf16.mxu0 %v253_v2  ;;  %172 = vmatprep.mubr.bf16.mxu1 %v253_v2  ;;  %v196_v20 = vunpack.c.l.s4 %v254_v19  ;;  %v198_v21 = vlaneseq }
   0x2   :  { %v225_v3 = vcombine.high %v24_v0, %v24_v0  ;;  %v227_v4 = vcombine.high %v25_v1, %v25_v1  ;;  %v224_v5 = vcombine.low %v24_v0, %v24_v0  ;;  %v226_v6 = vcombine.low %v25_v1, %v25_v1  ;;  %v241_v7 = vld [vmem:[%s314_s1 + $0x24] ss:$16 sps:$4 sm:$0xff]   ;;  %236 = vset.pattern.permute.xlu0 %v253_v2  ;;  %v243_v8 = vld [vmem:[%s314_s1 + $0x2c] ss:$16 sps:$4 sm:$0xff]   ;;  %v245_v11 = vld [vmem:[%s314_s1 + $0x20] ss:$16 sps:$4 sm:$0xff]  }
   0x3   :  { %v246_v12 = vld [vmem:[%s314_s1 + $0x28] ss:$16 sps:$4 sm:$0xff]   ;;  %v247_v13 = vld [vmem:[%s314_s1 + $0x4] ss:$16 sps:$4 sm:$0xff]   ;;  %v249_v14 = vld [vmem:[%s314_s1 + $0xc] ss:$16 sps:$4 sm:$0xff]   ;;  %v197_v25 = vunpack.c.0.s8 %v196_v20 }
   0x4   :  { %228 = vmatprep.subr.msk.bf16.mxu0 %vm86_vm0, %v225_v3  ;;  %230 = vmatprep.subr.msk.bf16.mxu1 %vm86_vm0, %v227_v4  ;;  %v88_v9 = vsel %vm86_vm0, %v224_v5, 0  ;;  %v94_v10 = vsel %vm86_vm0, %v226_v6, 0  ;;  %v26_v15 = vld [vmem:[%s315_s2] sm:$0xf]  ;;  %v252_v17 = vld [vmem:[%s314_s1 + $0x8] ss:$16 sps:$4 sm:$0xff]  }
   0x5   :  { %110 = vmatpush1.bf16.msra.mxu0 %v88_v9  ;;  %151 = vmatpush1.bf16.msra.mxu1 %v94_v10  ;;  %v251_v16 = vld [vmem:[%s314_s1] ss:$16 sps:$4 sm:$0xff]   ;;  %v199_v26 = vshrl.u32 %v198_v21, 7 }
   0x6   :  { %111 = vmatprep.subr.bf16.mxu0 %v241_v7  ;;  %152 = vmatprep.subr.bf16.mxu1 %v243_v8  ;;  %v15_v18 = vld [vmem:[%s316_s0] sm:$0x3] }
   0x7   :  { %29 = vperm.xlu0 %236, %v26_v15   ;;  %v200_v33 = vsub.s32 %v197_v25, %v199_v26 }
   0x9   :  { %112 = vmatpush1.bf16.msra.mxu0 %v245_v11  ;;  %153 = vmatpush1.bf16.msra.mxu1 %v246_v12 }
   0xa   :  { %113 = vmatprep.subr.bf16.mxu0 %v247_v13  ;;  %154 = vmatprep.subr.bf16.mxu1 %v249_v14 }
   0xd   :  { %114 = vmatpush1.bf16.msra.mxu0 %v251_v16  ;;  %155 = vmatpush1.bf16.msra.mxu1 %v252_v17 }
  0x10   :  { %229 = vmatmul.mubr.msk.bf16.vlgmr.msra.gmra.mxu0 %vm82_vm1, %v15_v18  ;;  %231 = vmatmul.mubr.msk.bf16.vlgmr.msra.gmra.mxu1 %vm82_vm1, %v15_v18 }
  0x82   :  { %v30_v22 = vpop.permute.xlu0 %29 }
  0xd0   :  { %v133_v23 = vpop.f32.mrf.mxu0  ;;  %v174_v24 = vpop.f32.mrf.mxu1 }
  0xd1   :  { %v134_v27 = vadd.f32 %v133_v23, %v30_v22  ;;  %v175_v28 = vadd.f32 %v174_v24, %v30_v22 }
  0xd2   :  { %v135_v29 = vpop.f32.mrf.mxu0  ;;  %v176_v30 = vpop.f32.mrf.mxu1 }
  0xd3   :  { %v136_v31 = vadd.f32 %v135_v29, %v30_v22  ;;  %v177_v32 = vadd.f32 %v176_v30, %v30_v22  ;;  %v181_v36 = vmax.f32 %v134_v27, 0.0  ;;  %v183_v37 = vmax.f32 %v175_v28, 0.0 }
  0xd4   :  { %v137_v34 = vpop.f32.mrf.mxu0  ;;  %v178_v35 = vpop.f32.mrf.mxu1 }
  0xd5   :  { %v182_v38 = vmax.f32 %v136_v31, 0.0  ;;  %v184_v39 = vmax.f32 %v177_v32, 0.0 }
  0xd6   :  { %v138_v40 = vpop.f32.mrf.mxu0  ;;  %v179_v41 = vpop.f32.mrf.mxu1 }
  0xd7   :  { %v232_v42 = vpack.c.bf16 %v182_v38, %v181_v36  ;;  %v233_v43 = vpack.c.bf16 %v184_v39, %v183_v37 }
  0xd9   :  { %v201_v44 = vrot.slane %v232_v42, %v200_v33  ;;  %v208_v45 = vrot.slane %v233_v43, %v200_v33 }
  0xdb   :  { %v209_v46 = vcombine.low %v201_v44, %v208_v45 }
  0xdd   :  { %211 = vst [vmem:[%s317_s3] sm:$0xff] %v209_v46 }

// kernel: _forward.46
= control target key start
LH: loop header
LB: loop body
LE: loop exit
PB: predicated region body
PF: predicated region fallthrough
CT: control target
= control target key end

     0   :  { %vm86_vm0 = vcmask 1041408   ;;  %v245_v2 = vmov 0   ;;  %vm82_vm1 = vcmask 293888   ;;  %s308_s1 = inlined_call_operand.vmem [shape: bf16[36,512], index: 1, kind: input, shape index: {}]   ;;  %s309_s2 = inlined_call_operand.vmem [shape: f32[8,1], index: 2, kind: input, shape index: {}]   ;;  %s310_s0 = inlined_call_operand.vmem [shape: bf16[8,36], index: 0, kind: input, shape index: {}]   ;;  %s311_s3 = inlined_call_operand.vmem [shape: bf16[8,512], index: 3, kind: output, shape index: {}]  }
   0x1   :  { %v24_v0 = vld [vmem:[%s308_s1 + $0x40] sm:$0x33]  ;;  %v25_v1 = vld [vmem:[%s308_s1 + $0x48] sm:$0x33]  ;;  %131 = vmatprep.mubr.bf16.mxu0 %v245_v2  ;;  %172 = vmatprep.mubr.bf16.mxu1 %v245_v2 }
   0x2   :  { %v216_v3 = vcombine.high %v24_v0, %v24_v0  ;;  %v218_v4 = vcombine.high %v25_v1, %v25_v1  ;;  %v215_v5 = vcombine.low %v24_v0, %v24_v0  ;;  %v217_v6 = vcombine.low %v25_v1, %v25_v1  ;;  %v233_v7 = vld [vmem:[%s308_s1 + $0x24] ss:$16 sps:$4 sm:$0xff]   ;;  %228 = vset.pattern.permute.xlu0 %v245_v2  ;;  %v235_v8 = vld [vmem:[%s308_s1 + $0x2c] ss:$16 sps:$4 sm:$0xff]   ;;  %v237_v11 = vld [vmem:[%s308_s1 + $0x20] ss:$16 sps:$4 sm:$0xff]  }
   0x3   :  { %v238_v12 = vld [vmem:[%s308_s1 + $0x28] ss:$16 sps:$4 sm:$0xff]   ;;  %v239_v13 = vld [vmem:[%s308_s1 + $0x4] ss:$16 sps:$4 sm:$0xff]   ;;  %v241_v14 = vld [vmem:[%s308_s1 + $0xc] ss:$16 sps:$4 sm:$0xff]  }
   0x4   :  { %219 = vmatprep.subr.msk.bf16.mxu0 %vm86_vm0, %v216_v3  ;;  %221 = vmatprep.subr.msk.bf16.mxu1 %vm86_vm0, %v218_v4  ;;  %v88_v9 = vsel %vm86_vm0, %v215_v5, 0  ;;  %v94_v10 = vsel %vm86_vm0, %v217_v6, 0  ;;  %v26_v15 = vld [vmem:[%s309_s2] sm:$0xff]  ;;  %v244_v17 = vld [vmem:[%s308_s1 + $0x8] ss:$16 sps:$4 sm:$0xff]  }
   0x5   :  { %110 = vmatpush1.bf16.msra.mxu0 %v88_v9  ;;  %151 = vmatpush1.bf16.msra.mxu1 %v94_v10  ;;  %v243_v16 = vld [vmem:[%s308_s1] ss:$16 sps:$4 sm:$0xff]  }
   0x6   :  { %111 = vmatprep.subr.bf16.mxu0 %v233_v7  ;;  %152 = vmatprep.subr.bf16.mxu1 %v235_v8  ;;  %v15_v18 = vld [vmem:[%s310_s0] sm:$0xf] }
   0x7   :  { %29 = vperm.xlu0 %228, %v26_v15  }
   0x9   :  { %112 = vmatpush1.bf16.msra.mxu0 %v237_v11  ;;  %153 = vmatpush1.bf16.msra.mxu1 %v238_v12 }
   0xa   :  { %113 = vmatprep.subr.bf16.mxu0 %v239_v13  ;;  %154 = vmatprep.subr.bf16.mxu1 %v241_v14 }
   0xd   :  { %114 = vmatpush1.bf16.msra.mxu0 %v243_v16  ;;  %155 = vmatpush1.bf16.msra.mxu1 %v244_v17 }
  0x10   :  { %220 = vmatmul.mubr.msk.bf16.vlgmr.msra.gmra.mxu0 %vm82_vm1, %v15_v18  ;;  %222 = vmatmul.mubr.msk.bf16.vlgmr.msra.gmra.mxu1 %vm82_vm1, %v15_v18 }
  0x82   :  { %v30_v19 = vpop.permute.xlu0 %29 }
  0xd0   :  { %v133_v20 = vpop.f32.mrf.mxu0  ;;  %v174_v21 = vpop.f32.mrf.mxu1 }
  0xd1   :  { %v134_v22 = vadd.f32 %v133_v20, %v30_v19  ;;  %v175_v23 = vadd.f32 %v174_v21, %v30_v19 }
  0xd2   :  { %v135_v24 = vpop.f32.mrf.mxu0  ;;  %v176_v25 = vpop.f32.mrf.mxu1 }
  0xd3   :  { %v136_v26 = vadd.f32 %v135_v24, %v30_v19  ;;  %v177_v27 = vadd.f32 %v176_v25, %v30_v19  ;;  %v181_v30 = vmax.f32 %v134_v22, 0.0  ;;  %v183_v31 = vmax.f32 %v175_v23, 0.0 }
  0xd4   :  { %v137_v28 = vpop.f32.mrf.mxu0  ;;  %v178_v29 = vpop.f32.mrf.mxu1 }
  0xd5   :  { %v182_v32 = vmax.f32 %v136_v26, 0.0  ;;  %v184_v33 = vmax.f32 %v177_v27, 0.0 }
  0xd6   :  { %v138_v34 = vpop.f32.mrf.mxu0  ;;  %v179_v35 = vpop.f32.mrf.mxu1 }
  0xd7   :  { %v225_v36 = vpack.c.bf16 %v182_v32, %v181_v30  ;;  %v226_v37 = vpack.c.bf16 %v184_v33, %v183_v31 }
  0xd9   :  { %201 = vst [vmem:[%s311_s3] sm:$0xff] %v225_v36  ;;  %202 = vst [vmem:[%s311_s3 + $0x8] sm:$0xff] %v226_v37 }

// kernel: _forward.48
= control target key start
LH: loop header
LB: loop body
LE: loop exit
PB: predicated region body
PF: predicated region fallthrough
CT: control target
= control target key end

     0   :  { %vm170_vm0 = vcmask 1040384   ;;  %v750_v3 = vmov 0   ;;  %vm166_vm1 = vcmask 146432   ;;  %s933_s1 = inlined_call_operand.vmem [shape: bf16[18,2048], index: 1, kind: input, shape index: {}]   ;;  %s934_s0 = inlined_call_operand.vmem [shape: bf16[4,18], index: 0, kind: input, shape index: {}]   ;;  %s935_s2 = inlined_call_operand.vmem [shape: f32[4,1], index: 2, kind: input, shape index: {}]   ;;  %s936_s3 = inlined_call_operand.vmem [shape: bf16[4,2048], index: 3, kind: output, shape index: {}]  }
   0x1   :  { %v32_v0 = vld [vmem:[%s933_s1 + $0x80] sm:$0x11]  ;;  %v33_v1 = vld [vmem:[%s933_s1 + $0x88] sm:$0x11]  ;;  %251 = vmatprep.mubr.bf16.mxu0 %v750_v3  ;;  %292 = vmatprep.mubr.bf16.mxu1 %v750_v3  ;;  %v34_v13 = vld [vmem:[%s933_s1 + $0x90] sm:$0x11] }
   0x2   :  { %v16_v2 = vld [vmem:[%s933_s1] sm:$0xff]  ;;  %v692_v4 = vcombine.high %v32_v0, %v32_v0  ;;  %v694_v5 = vcombine.high %v33_v1, %v33_v1  ;;  %v691_v6 = vcombine.low %v32_v0, %v32_v0  ;;  %v693_v7 = vcombine.low %v33_v1, %v33_v1  ;;  %v17_v9 = vld [vmem:[%s933_s1 + $0x8] sm:$0xff]  ;;  %733 = vset.pattern.permute.xlu0 %v750_v3  ;;  %v35_v14 = vld [vmem:[%s933_s1 + $0x98] sm:$0x11] }
   0x3   :  { %v24_v8 = vld [vmem:[%s933_s1 + $0x40] sm:$0xff]  ;;  %v25_v10 = vld [vmem:[%s933_s1 + $0x48] sm:$0xff]  ;;  %v696_v19 = vcombine.high %v34_v13, %v34_v13  ;;  %v698_v20 = vcombine.high %v35_v14, %v35_v14  ;;  %v695_v21 = vcombine.low %v34_v13, %v34_v13  ;;  %v697_v22 = vcombine.low %v35_v14, %v35_v14  ;;  %v18_v23 = vld [vmem:[%s933_s1 + $0x10] sm:$0xff] }
   0x4   :  { %v676_v11 = vcombine.high %v16_v2, %v24_v8  ;;  %v678_v12 = vcombine.high %v17_v9, %v25_v10  ;;  %707 = vmatprep.subr.msk.bf16.mxu0 %vm170_vm0, %v692_v4  ;;  %709 = vmatprep.subr.msk.bf16.mxu1 %vm170_vm0, %v694_v5  ;;  %v172_v15 = vsel %vm170_vm0, %v691_v6, 0  ;;  %v178_v16 = vsel %vm170_vm0, %v693_v7, 0  ;;  %v26_v24 = vld [vmem:[%s933_s1 + $0x50] sm:$0xff]  ;;  %v19_v25 = vld [vmem:[%s933_s1 + $0x18] sm:$0xff]  ;;  %v818_v27 = vld [vmem:[%s934_s0] sm:$0x3] }
   0x5   :  { %232 = vmatpush1.bf16.msra.mxu0 %v172_v15  ;;  %273 = vmatpush1.bf16.msra.mxu1 %v178_v16  ;;  %v675_v17 = vcombine.low %v16_v2, %v24_v8  ;;  %v677_v18 = vcombine.low %v17_v9, %v25_v10  ;;  %v27_v26 = vld [vmem:[%s933_s1 + $0x58] sm:$0xff]  ;;  %v40_v28 = vld [vmem:[%s935_s2] sm:$0xf]  ;;  %v184_v29 = vsel %vm170_vm0, %v695_v21, 0  ;;  %v190_v30 = vsel %vm170_vm0, %v697_v22, 0  ;;  %v21_v43 = vld [vmem:[%s933_s1 + $0x28] sm:$0xff] }
   0x6   :  { %233 = vmatprep.subr.bf16.mxu0 %v676_v11  ;;  %274 = vmatprep.subr.bf16.mxu1 %v678_v12  ;;  %v680_v31 = vcombine.high %v18_v23, %v26_v24  ;;  %v682_v32 = vcombine.high %v19_v25, %v27_v26  ;;  %v36_v33 = vld [vmem:[%s933_s1 + $0xa0] sm:$0x11]  ;;  %v37_v34 = vld [vmem:[%s933_s1 + $0xa8] sm:$0x11]  ;;  %v679_v35 = vcombine.low %v18_v23, %v26_v24  ;;  %v38_v49 = vld [vmem:[%s933_s1 + $0xb0] sm:$0x11]  ;;  %v600_v6 = vlaneseq }
   0x7   :  { %43 = vperm.xlu0 %733, %v40_v28   ;;  %v681_v36 = vcombine.low %v19_v25, %v27_v26  ;;  %v700_v37 = vcombine.high %v36_v33, %v36_v33  ;;  %v702_v38 = vcombine.high %v37_v34, %v37_v34  ;;  %v699_v39 = vcombine.low %v36_v33, %v36_v33  ;;  %v20_v41 = vld [vmem:[%s933_s1 + $0x20] sm:$0xff]  ;;  %v29_v44 = vld [vmem:[%s933_s1 + $0x68] sm:$0xff]  ;;  %v39_v50 = vld [vmem:[%s933_s1 + $0xb8] sm:$0x11] }
   0x8   :  { %v701_v40 = vcombine.low %v37_v34, %v37_v34  ;;  %v28_v42 = vld [vmem:[%s933_s1 + $0x60] sm:$0xff]  ;;  %v686_v48 = vcombine.high %v21_v43, %v29_v44  ;;  %v685_v52 = vcombine.low %v21_v43, %v29_v44  ;;  %v704_v53 = vcombine.high %v38_v49, %v38_v49  ;;  %v22_v57 = vld [vmem:[%s933_s1 + $0x30] sm:$0xff]  ;;  %v23_v59 = vld [vmem:[%s933_s1 + $0x38] sm:$0xff] }
   0x9   :  { %234 = vmatpush1.bf16.msra.mxu0 %v675_v17  ;;  %275 = vmatpush1.bf16.msra.mxu1 %v677_v18  ;;  %v196_v45 = vsel %vm170_vm0, %v699_v39, 0  ;;  %v684_v47 = vcombine.high %v20_v41, %v28_v42  ;;  %v683_v51 = vcombine.low %v20_v41, %v28_v42  ;;  %v706_v54 = vcombine.high %v39_v50, %v39_v50  ;;  %v30_v58 = vld [vmem:[%s933_s1 + $0x70] sm:$0xff]  ;;  %v31_v60 = vld [vmem:[%s933_s1 + $0x78] sm:$0xff] }
   0xa   :  { %711 = vmatprep.subr.msk.bf16.mxu0 %vm170_vm0, %v696_v19  ;;  %713 = vmatprep.subr.msk.bf16.mxu1 %vm170_vm0, %v698_v20  ;;  %v202_v46 = vsel %vm170_vm0, %v701_v40, 0  ;;  %v703_v55 = vcombine.low %v38_v49, %v38_v49  ;;  %v705_v56 = vcombine.low %v39_v50, %v39_v50  ;;  %v688_v63 = vcombine.high %v22_v57, %v30_v58 }
   0xb   :  { %v690_v0 = vcombine.high %v23_v59, %v31_v60  ;;  %v687_v1 = vcombine.low %v22_v57, %v30_v58  ;;  %v689_v2 = vcombine.low %v23_v59, %v31_v60  ;;  %v751_v4 = vmov 1983009808  }
   0xc   :  { %708 = vmatmul.mubr.msk.bf16.vlgmr.msra.gmra.mxu0 %vm166_vm1, %v818_v27  ;;  %710 = vmatmul.mubr.msk.bf16.vlgmr.msra.gmra.mxu1 %vm166_vm1, %v818_v27  ;;  %v208_v61 = vsel %vm170_vm0, %v703_v55, 0  ;;  %v214_v62 = vsel %vm170_vm0, %v705_v56, 0  ;;  %v598_v5 = vunpack.c.l.s4 %v751_v4  ;;  %v601_v11 = vshrl.u32 %v600_v6, 7 }
   0xd   :  { %314 = vmatpush1.bf16.msra.mxu0 %v184_v29  ;;  %355 = vmatpush1.bf16.msra.mxu1 %v190_v30 }
   0xe   :  { %315 = vmatprep.subr.bf16.mxu0 %v680_v31  ;;  %356 = vmatprep.subr.bf16.mxu1 %v682_v32  ;;  %v599_v10 = vunpack.c.0.s8 %v598_v5 }
   0xf   :  { %333 = vmatprep.mubr.bf16.mxu0 %v750_v3  ;;  %374 = vmatprep.mubr.bf16.mxu1 %v750_v3 }
  0x10   :  { %v899_v17 = vsub.s32 %v599_v10, %v601_v11 }
  0x11   :  { %316 = vmatpush1.bf16.msra.mxu0 %v679_v35  ;;  %357 = vmatpush1.bf16.msra.mxu1 %v681_v36 }
  0x12   :  { %715 = vmatprep.subr.msk.bf16.mxu0 %vm170_vm0, %v700_v37  ;;  %717 = vmatprep.subr.msk.bf16.mxu1 %vm170_vm0, %v702_v38 }
  0x14   :  { %712 = vmatmul.mubr.msk.bf16.vlgmr.msra.gmra.mxu0 %vm166_vm1, %v818_v27  ;;  %714 = vmatmul.mubr.msk.bf16.vlgmr.msra.gmra.mxu1 %vm166_vm1, %v818_v27 }
  0x15   :  { %396 = vmatpush1.bf16.msra.mxu0 %v196_v45  ;;  %437 = vmatpush1.bf16.msra.mxu1 %v202_v46 }
  0x16   :  { %397 = vmatprep.subr.bf16.mxu0 %v684_v47  ;;  %438 = vmatprep.subr.bf16.mxu1 %v686_v48 }
  0x17   :  { %415 = vmatprep.mubr.bf16.mxu0 %v750_v3  ;;  %456 = vmatprep.mubr.bf16.mxu1 %v750_v3 }
  0x19   :  { %398 = vmatpush1.bf16.msra.mxu0 %v683_v51  ;;  %439 = vmatpush1.bf16.msra.mxu1 %v685_v52 }
  0x1a   :  { %719 = vmatprep.subr.msk.bf16.mxu0 %vm170_vm0, %v704_v53  ;;  %721 = vmatprep.subr.msk.bf16.mxu1 %vm170_vm0, %v706_v54 }
  0x1c   :  { %716 = vmatmul.mubr.msk.bf16.vlgmr.msra.gmra.mxu0 %vm166_vm1, %v818_v27  ;;  %718 = vmatmul.mubr.msk.bf16.vlgmr.msra.gmra.mxu1 %vm166_vm1, %v818_v27 }
  0x1d   :  { %478 = vmatpush1.bf16.msra.mxu0 %v208_v61  ;;  %519 = vmatpush1.bf16.msra.mxu1 %v214_v62 }
  0x1e   :  { %479 = vmatprep.subr.bf16.mxu0 %v688_v63  ;;  %520 = vmatprep.subr.bf16.mxu1 %v690_v0 }
  0x1f   :  { %497 = vmatprep.mubr.bf16.mxu0 %v750_v3  ;;  %538 = vmatprep.mubr.bf16.mxu1 %v750_v3 }
  0x21   :  { %480 = vmatpush1.bf16.msra.mxu0 %v687_v1  ;;  %521 = vmatpush1.bf16.msra.mxu1 %v689_v2 }
  0x24   :  { %720 = vmatmul.mubr.msk.bf16.vlgmr.msra.gmra.mxu0 %vm166_vm1, %v818_v27  ;;  %722 = vmatmul.mubr.msk.bf16.vlgmr.msra.gmra.mxu1 %vm166_vm1, %v818_v27 }
  0x82   :  { %v893_v7 = vpop.permute.xlu0 %43 }
  0xcc   :  { %v253_v8 = vpop.f32.mrf.mxu0  ;;  %v294_v9 = vpop.f32.mrf.mxu1 }
  0xcd   :  { %v254_v12 = vadd.f32 %v253_v8, %v893_v7  ;;  %v295_v3 = vadd.f32 %v294_v9, %v893_v7 }
  0xce   :  { %v255_v13 = vpop.f32.mrf.mxu0  ;;  %v296_v14 = vpop.f32.mrf.mxu1 }
  0xcf   :  { %v256_v15 = vadd.f32 %v255_v13, %v893_v7  ;;  %v297_v16 = vadd.f32 %v296_v14, %v893_v7  ;;  %v547_v20 = vmax.f32 %v254_v12, 0.0  ;;  %v549_v22 = vmax.f32 %v295_v3, 0.0 }
  0xd0   :  { %v257_v18 = vpop.f32.mrf.mxu0  ;;  %v298_v19 = vpop.f32.mrf.mxu1 }
  0xd1   :  { %v548_v21 = vmax.f32 %v256_v15, 0.0  ;;  %v550_v23 = vmax.f32 %v297_v16, 0.0 }
  0xd2   :  { %v258_v24 = vpop.f32.mrf.mxu0  ;;  %v299_v25 = vpop.f32.mrf.mxu1 }
  0xd3   :  { %v723_v26 = vpack.c.bf16 %v548_v21, %v547_v20  ;;  %v724_v27 = vpack.c.bf16 %v550_v23, %v549_v22 }
  0xd4   :  { %v335_v28 = vpop.f32.mrf.mxu0  ;;  %v376_v29 = vpop.f32.mrf.mxu1 }
  0xd5   :  { %v603_v30 = vrot.slane %v723_v26, %v899_v17  ;;  %v610_v31 = vrot.slane %v724_v27, %v899_v17  ;;  %v336_v32 = vadd.f32 %v335_v28, %v893_v7  ;;  %v377_v33 = vadd.f32 %v376_v29, %v893_v7 }
  0xd6   :  { %v337_v34 = vpop.f32.mrf.mxu0  ;;  %v378_v35 = vpop.f32.mrf.mxu1 }
  0xd7   :  { %v611_v36 = vcombine.low %v603_v30, %v610_v31  ;;  %v338_v37 = vadd.f32 %v337_v34, %v893_v7  ;;  %v379_v38 = vadd.f32 %v378_v35, %v893_v7  ;;  %v551_v41 = vmax.f32 %v336_v32, 0.0 }
  0xd8   :  { %v339_v39 = vpop.f32.mrf.mxu0  ;;  %v380_v40 = vpop.f32.mrf.mxu1  ;;  %v553_v43 = vmax.f32 %v377_v33, 0.0 }
  0xd9   :  { %667 = vst [vmem:[%s936_s3] sm:$0xff] %v611_v36  ;;  %v552_v42 = vmax.f32 %v338_v37, 0.0  ;;  %v554_v44 = vmax.f32 %v379_v38, 0.0 }
  0xda   :  { %v340_v45 = vpop.f32.mrf.mxu0  ;;  %v381_v46 = vpop.f32.mrf.mxu1 }
  0xdb   :  { %v725_v47 = vpack.c.bf16 %v552_v42, %v551_v41  ;;  %v726_v48 = vpack.c.bf16 %v554_v44, %v553_v43 }
  0xdc   :  { %v417_v49 = vpop.f32.mrf.mxu0  ;;  %v458_v50 = vpop.f32.mrf.mxu1 }
  0xdd   :  { %v620_v51 = vrot.slane %v725_v47, %v899_v17  ;;  %v418_v52 = vadd.f32 %v417_v49, %v893_v7  ;;  %v459_v53 = vadd.f32 %v458_v50, %v893_v7  ;;  %v627_v54 = vrot.slane %v726_v48, %v899_v17 }
  0xde   :  { %v419_v55 = vpop.f32.mrf.mxu0  ;;  %v460_v56 = vpop.f32.mrf.mxu1 }
  0xdf   :  { %v420_v57 = vadd.f32 %v419_v55, %v893_v7  ;;  %v461_v58 = vadd.f32 %v460_v56, %v893_v7  ;;  %v628_v59 = vcombine.low %v620_v51, %v627_v54  ;;  %v555_v62 = vmax.f32 %v418_v52, 0.0 }
  0xe0   :  { %v421_v60 = vpop.f32.mrf.mxu0  ;;  %v462_v61 = vpop.f32.mrf.mxu1  ;;  %v557_v63 = vmax.f32 %v459_v53, 0.0 }
  0xe1   :  { %v556_v0 = vmax.f32 %v420_v57, 0.0  ;;  %v558_v1 = vmax.f32 %v461_v58, 0.0  ;;  %668 = vst [vmem:[%s936_s3 + $0x8] sm:$0xff] %v628_v59 }
  0xe2   :  { %v422_v2 = vpop.f32.mrf.mxu0  ;;  %v463_v4 = vpop.f32.mrf.mxu1 }
  0xe3   :  { %v727_v5 = vpack.c.bf16 %v556_v0, %v555_v62  ;;  %v728_v6 = vpack.c.bf16 %v558_v1, %v557_v63 }
  0xe4   :  { %v499_v8 = vpop.f32.mrf.mxu0  ;;  %v540_v9 = vpop.f32.mrf.mxu1 }
  0xe5   :  { %v637_v10 = vrot.slane %v727_v5, %v899_v17  ;;  %v644_v11 = vrot.slane %v728_v6, %v899_v17  ;;  %v500_v12 = vadd.f32 %v499_v8, %v893_v7  ;;  %v541_v3 = vadd.f32 %v540_v9, %v893_v7 }
  0xe6   :  { %v501_v13 = vpop.f32.mrf.mxu0  ;;  %v542_v14 = vpop.f32.mrf.mxu1 }
  0xe7   :  { %v645_v15 = vcombine.low %v637_v10, %v644_v11  ;;  %v502_v16 = vadd.f32 %v501_v13, %v893_v7  ;;  %v543_v18 = vadd.f32 %v542_v14, %v893_v7  ;;  %v559_v21 = vmax.f32 %v500_v12, 0.0 }
  0xe8   :  { %v503_v19 = vpop.f32.mrf.mxu0  ;;  %v544_v20 = vpop.f32.mrf.mxu1  ;;  %v561_v23 = vmax.f32 %v541_v3, 0.0 }
  0xe9   :  { %669 = vst [vmem:[%s936_s3 + $0x10] sm:$0xff] %v645_v15  ;;  %v560_v22 = vmax.f32 %v502_v16, 0.0  ;;  %v562_v24 = vmax.f32 %v543_v18, 0.0 }
  0xea   :  { %v504_v25 = vpop.f32.mrf.mxu0  ;;  %v545_v26 = vpop.f32.mrf.mxu1 }
  0xeb   :  { %v729_v27 = vpack.c.bf16 %v560_v22, %v559_v21  ;;  %v730_v28 = vpack.c.bf16 %v562_v24, %v561_v23 }
  0xed   :  { %v654_v29 = vrot.slane %v729_v27, %v899_v17  ;;  %v661_v30 = vrot.slane %v730_v28, %v899_v17 }
  0xef   :  { %v662_v31 = vcombine.low %v654_v29, %v661_v30 }
  0xf1   :  { %670 = vst [vmem:[%s936_s3 + $0x18] sm:$0xff] %v662_v31 }

// kernel: _forward.47
= control target key start
LH: loop header
LB: loop body
LE: loop exit
PB: predicated region body
PF: predicated region fallthrough
CT: control target
= control target key end

     0   :  { %vm170_vm0 = vcmask 1040384   ;;  %v776_v3 = vmov 0   ;;  %vm166_vm1 = vcmask 146432   ;;  %s957_s1 = inlined_call_operand.vmem [shape: bf16[18,2048], index: 1, kind: input, shape index: {}]   ;;  %s958_s0 = inlined_call_operand.vmem [shape: bf16[2,18], index: 0, kind: input, shape index: {}]   ;;  %s959_s2 = inlined_call_operand.vmem [shape: f32[2,1], index: 2, kind: input, shape index: {}]   ;;  %s960_s3 = inlined_call_operand.vmem [shape: bf16[2,2048], index: 3, kind: output, shape index: {}]  }
   0x1   :  { %v32_v0 = vld [vmem:[%s957_s1 + $0x80] sm:$0x11]  ;;  %v33_v1 = vld [vmem:[%s957_s1 + $0x88] sm:$0x11]  ;;  %251 = vmatprep.mubr.bf16.mxu0 %v776_v3  ;;  %292 = vmatprep.mubr.bf16.mxu1 %v776_v3  ;;  %v34_v13 = vld [vmem:[%s957_s1 + $0x90] sm:$0x11] }
   0x2   :  { %v16_v2 = vld [vmem:[%s957_s1] sm:$0xff]  ;;  %v718_v4 = vcombine.high %v32_v0, %v32_v0  ;;  %v720_v5 = vcombine.high %v33_v1, %v33_v1  ;;  %v717_v6 = vcombine.low %v32_v0, %v32_v0  ;;  %v719_v7 = vcombine.low %v33_v1, %v33_v1  ;;  %v17_v9 = vld [vmem:[%s957_s1 + $0x8] sm:$0xff]  ;;  %759 = vset.pattern.permute.xlu0 %v776_v3  ;;  %v35_v14 = vld [vmem:[%s957_s1 + $0x98] sm:$0x11] }
   0x3   :  { %v24_v8 = vld [vmem:[%s957_s1 + $0x40] sm:$0xff]  ;;  %v25_v10 = vld [vmem:[%s957_s1 + $0x48] sm:$0xff]  ;;  %v722_v19 = vcombine.high %v34_v13, %v34_v13  ;;  %v724_v20 = vcombine.high %v35_v14, %v35_v14  ;;  %v721_v21 = vcombine.low %v34_v13, %v34_v13  ;;  %v723_v22 = vcombine.low %v35_v14, %v35_v14  ;;  %v18_v23 = vld [vmem:[%s957_s1 + $0x10] sm:$0xff] }
   0x4   :  { %v702_v11 = vcombine.high %v16_v2, %v24_v8  ;;  %v704_v12 = vcombine.high %v17_v9, %v25_v10  ;;  %733 = vmatprep.subr.msk.bf16.mxu0 %vm170_vm0, %v718_v4  ;;  %735 = vmatprep.subr.msk.bf16.mxu1 %vm170_vm0, %v720_v5  ;;  %v172_v15 = vsel %vm170_vm0, %v717_v6, 0  ;;  %v178_v16 = vsel %vm170_vm0, %v719_v7, 0  ;;  %v26_v24 = vld [vmem:[%s957_s1 + $0x50] sm:$0xff]  ;;  %v19_v25 = vld [vmem:[%s957_s1 + $0x18] sm:$0xff]  ;;  %v844_v27 = vld [vmem:[%s958_s0] sm:$0x1] }
   0x5   :  { %232 = vmatpush1.bf16.msra.mxu0 %v172_v15  ;;  %273 = vmatpush1.bf16.msra.mxu1 %v178_v16  ;;  %v701_v17 = vcombine.low %v16_v2, %v24_v8  ;;  %v703_v18 = vcombine.low %v17_v9, %v25_v10  ;;  %v27_v26 = vld [vmem:[%s957_s1 + $0x58] sm:$0xff]  ;;  %v40_v28 = vld [vmem:[%s959_s2] sm:$0x3]  ;;  %v184_v29 = vsel %vm170_vm0, %v721_v21, 0  ;;  %v190_v30 = vsel %vm170_vm0, %v723_v22, 0  ;;  %v21_v43 = vld [vmem:[%s957_s1 + $0x28] sm:$0xff] }
   0x6   :  { %233 = vmatprep.subr.bf16.mxu0 %v702_v11  ;;  %274 = vmatprep.subr.bf16.mxu1 %v704_v12  ;;  %v706_v31 = vcombine.high %v18_v23, %v26_v24  ;;  %v708_v32 = vcombine.high %v19_v25, %v27_v26  ;;  %v36_v33 = vld [vmem:[%s957_s1 + $0xa0] sm:$0x11]  ;;  %v37_v34 = vld [vmem:[%s957_s1 + $0xa8] sm:$0x11]  ;;  %v705_v35 = vcombine.low %v18_v23, %v26_v24  ;;  %v38_v49 = vld [vmem:[%s957_s1 + $0xb0] sm:$0x11]  ;;  %v602_v10 = vlaneseq }
   0x7   :  { %43 = vperm.xlu0 %759, %v40_v28   ;;  %v707_v36 = vcombine.low %v19_v25, %v27_v26  ;;  %v726_v37 = vcombine.high %v36_v33, %v36_v33  ;;  %v728_v38 = vcombine.high %v37_v34, %v37_v34  ;;  %v725_v39 = vcombine.low %v36_v33, %v36_v33  ;;  %v20_v41 = vld [vmem:[%s957_s1 + $0x20] sm:$0xff]  ;;  %v29_v44 = vld [vmem:[%s957_s1 + $0x68] sm:$0xff]  ;;  %v39_v50 = vld [vmem:[%s957_s1 + $0xb8] sm:$0x11] }
   0x8   :  { %v727_v40 = vcombine.low %v37_v34, %v37_v34  ;;  %v28_v42 = vld [vmem:[%s957_s1 + $0x60] sm:$0xff]  ;;  %v712_v48 = vcombine.high %v21_v43, %v29_v44  ;;  %v711_v52 = vcombine.low %v21_v43, %v29_v44  ;;  %v730_v53 = vcombine.high %v38_v49, %v38_v49  ;;  %v22_v57 = vld [vmem:[%s957_s1 + $0x30] sm:$0xff]  ;;  %v23_v59 = vld [vmem:[%s957_s1 + $0x38] sm:$0xff] }
   0x9   :  { %234 = vmatpush1.bf16.msra.mxu0 %v701_v17  ;;  %275 = vmatpush1.bf16.msra.mxu1 %v703_v18  ;;  %v196_v45 = vsel %vm170_vm0, %v725_v39, 0  ;;  %v710_v47 = vcombine.high %v20_v41, %v28_v42  ;;  %v709_v51 = vcombine.low %v20_v41, %v28_v42  ;;  %v732_v54 = vcombine.high %v39_v50, %v39_v50  ;;  %v30_v58 = vld [vmem:[%s957_s1 + $0x70] sm:$0xff]  ;;  %v31_v60 = vld [vmem:[%s957_s1 + $0x78] sm:$0xff] }
   0xa   :  { %737 = vmatprep.subr.msk.bf16.mxu0 %vm170_vm0, %v722_v19  ;;  %739 = vmatprep.subr.msk.bf16.mxu1 %vm170_vm0, %v724_v20  ;;  %v202_v46 = vsel %vm170_vm0, %v727_v40, 0  ;;  %v729_v55 = vcombine.low %v38_v49, %v38_v49  ;;  %v731_v56 = vcombine.low %v39_v50, %v39_v50  ;;  %v714_v63 = vcombine.high %v22_v57, %v30_v58 }
   0xb   :  { %v716_v0 = vcombine.high %v23_v59, %v31_v60  ;;  %v713_v1 = vcombine.low %v22_v57, %v30_v58  ;;  %v715_v2 = vcombine.low %v23_v59, %v31_v60  ;;  %v777_v8 = vmov 1966171168  }
   0xc   :  { %734 = vmatmul.mubr.msk.bf16.vlgmr.msra.gmra.mxu0 %vm166_vm1, %v844_v27  ;;  %736 = vmatmul.mubr.msk.bf16.vlgmr.msra.gmra.mxu1 %vm166_vm1, %v844_v27  ;;  %v208_v61 = vsel %vm170_vm0, %v729_v55, 0  ;;  %v214_v62 = vsel %vm170_vm0, %v731_v56, 0  ;;  %v600_v9 = vunpack.c.l.s4 %v777_v8  ;;  %v603_v19 = vshrl.u32 %v602_v10, 7 }
   0xd   :  { %314 = vmatpush1.bf16.msra.mxu0 %v184_v29  ;;  %355 = vmatpush1.bf16.msra.mxu1 %v190_v30 }
   0xe   :  { %315 = vmatprep.subr.bf16.mxu0 %v706_v31  ;;  %356 = vmatprep.subr.bf16.mxu1 %v708_v32  ;;  %v601_v18 = vunpack.c.0.s8 %v600_v9 }
   0xf   :  { %333 = vmatprep.mubr.bf16.mxu0 %v776_v3  ;;  %374 = vmatprep.mubr.bf16.mxu1 %v776_v3 }
  0x10   :  { %v926_v29 = vsub.s32 %v601_v18, %v603_v19 }
  0x11   :  { %316 = vmatpush1.bf16.msra.mxu0 %v705_v35  ;;  %357 = vmatpush1.bf16.msra.mxu1 %v707_v36 }
  0x12   :  { %741 = vmatprep.subr.msk.bf16.mxu0 %vm170_vm0, %v726_v37  ;;  %743 = vmatprep.subr.msk.bf16.mxu1 %vm170_vm0, %v728_v38 }
  0x14   :  { %738 = vmatmul.mubr.msk.bf16.vlgmr.msra.gmra.mxu0 %vm166_vm1, %v844_v27  ;;  %740 = vmatmul.mubr.msk.bf16.vlgmr.msra.gmra.mxu1 %vm166_vm1, %v844_v27 }
  0x15   :  { %396 = vmatpush1.bf16.msra.mxu0 %v196_v45  ;;  %437 = vmatpush1.bf16.msra.mxu1 %v202_v46 }
  0x16   :  { %397 = vmatprep.subr.bf16.mxu0 %v710_v47  ;;  %438 = vmatprep.subr.bf16.mxu1 %v712_v48 }
  0x17   :  { %415 = vmatprep.mubr.bf16.mxu0 %v776_v3  ;;  %456 = vmatprep.mubr.bf16.mxu1 %v776_v3 }
  0x19   :  { %398 = vmatpush1.bf16.msra.mxu0 %v709_v51  ;;  %439 = vmatpush1.bf16.msra.mxu1 %v711_v52 }
  0x1a   :  { %745 = vmatprep.subr.msk.bf16.mxu0 %vm170_vm0, %v730_v53  ;;  %747 = vmatprep.subr.msk.bf16.mxu1 %vm170_vm0, %v732_v54 }
  0x1c   :  { %742 = vmatmul.mubr.msk.bf16.vlgmr.msra.gmra.mxu0 %vm166_vm1, %v844_v27  ;;  %744 = vmatmul.mubr.msk.bf16.vlgmr.msra.gmra.mxu1 %vm166_vm1, %v844_v27 }
  0x1d   :  { %478 = vmatpush1.bf16.msra.mxu0 %v208_v61  ;;  %519 = vmatpush1.bf16.msra.mxu1 %v214_v62 }
  0x1e   :  { %479 = vmatprep.subr.bf16.mxu0 %v714_v63  ;;  %520 = vmatprep.subr.bf16.mxu1 %v716_v0 }
  0x1f   :  { %497 = vmatprep.mubr.bf16.mxu0 %v776_v3  ;;  %538 = vmatprep.mubr.bf16.mxu1 %v776_v3 }
  0x21   :  { %480 = vmatpush1.bf16.msra.mxu0 %v713_v1  ;;  %521 = vmatpush1.bf16.msra.mxu1 %v715_v2 }
  0x24   :  { %746 = vmatmul.mubr.msk.bf16.vlgmr.msra.gmra.mxu0 %vm166_vm1, %v844_v27  ;;  %748 = vmatmul.mubr.msk.bf16.vlgmr.msra.gmra.mxu1 %vm166_vm1, %v844_v27 }
  0x82   :  { %v919_v6 = vpop.permute.xlu0 %43 }
  0xcc   :  { %v253_v4 = vpop.f32.mrf.mxu0  ;;  %v294_v5 = vpop.f32.mrf.mxu1 }
  0xcd   :  { %v254_v13 = vadd.f32 %v253_v4, %v919_v6  ;;  %v295_v14 = vadd.f32 %v294_v5, %v919_v6 }
  0xce   :  { %v255_v7 = vpop.f32.mrf.mxu0  ;;  %v296_v11 = vpop.f32.mrf.mxu1 }
  0xcf   :  { %v256_v12 = vadd.f32 %v255_v7, %v919_v6  ;;  %v297_v3 = vadd.f32 %v296_v11, %v919_v6  ;;  %v547_v23 = vmax.f32 %v254_v13, 0.0  ;;  %v549_v24 = vmax.f32 %v295_v14, 0.0 }
  0xd0   :  { %v257_v15 = vpop.f32.mrf.mxu0  ;;  %v298_v16 = vpop.f32.mrf.mxu1 }
  0xd1   :  { %v548_v17 = vmax.f32 %v256_v12, 0.0  ;;  %v550_v20 = vmax.f32 %v297_v3, 0.0 }
  0xd2   :  { %v258_v21 = vpop.f32.mrf.mxu0  ;;  %v299_v22 = vpop.f32.mrf.mxu1 }
  0xd3   :  { %v749_v28 = vpack.c.bf16 %v548_v17, %v547_v23  ;;  %v750_v30 = vpack.c.bf16 %v550_v20, %v549_v24 }
  0xd4   :  { %v335_v25 = vpop.f32.mrf.mxu0  ;;  %v376_v26 = vpop.f32.mrf.mxu1 }
  0xd5   :  { %v336_v27 = vadd.f32 %v335_v25, %v919_v6  ;;  %v377_v31 = vadd.f32 %v376_v26, %v919_v6  ;;  %v605_v40 = vrot.slane %v749_v28, %v926_v29  ;;  %v612_v41 = vrot.slane %v750_v30, %v926_v29 }
  0xd6   :  { %v337_v32 = vpop.f32.mrf.mxu0  ;;  %v378_v33 = vpop.f32.mrf.mxu1 }
  0xd7   :  { %v338_v34 = vadd.f32 %v337_v32, %v919_v6  ;;  %v379_v35 = vadd.f32 %v378_v33, %v919_v6  ;;  %v551_v38 = vmax.f32 %v336_v27, 0.0  ;;  %v553_v42 = vmax.f32 %v377_v31, 0.0 }
  0xd8   :  { %v339_v36 = vpop.f32.mrf.mxu0  ;;  %v380_v37 = vpop.f32.mrf.mxu1  ;;  %v627_v51 = vcombine.low %v605_v40, %v612_v41 }
  0xd9   :  { %v552_v39 = vmax.f32 %v338_v34, 0.0  ;;  %v554_v43 = vmax.f32 %v379_v35, 0.0 }
  0xda   :  { %v340_v44 = vpop.f32.mrf.mxu0  ;;  %v381_v45 = vpop.f32.mrf.mxu1  ;;  %v635_v62 = vrot.slane %v627_v51, %v926_v29 }
  0xdb   :  { %v751_v46 = vpack.c.bf16 %v552_v39, %v551_v38  ;;  %v752_v47 = vpack.c.bf16 %v554_v43, %v553_v42 }
  0xdc   :  { %v417_v48 = vpop.f32.mrf.mxu0  ;;  %v458_v49 = vpop.f32.mrf.mxu1 }
  0xdd   :  { %v619_v50 = vrot.slane %v751_v46, %v926_v29  ;;  %v626_v52 = vrot.slane %v752_v47, %v926_v29  ;;  %v418_v58 = vadd.f32 %v417_v48, %v919_v6  ;;  %v459_v59 = vadd.f32 %v458_v49, %v919_v6 }
  0xde   :  { %v419_v53 = vpop.f32.mrf.mxu0  ;;  %v460_v54 = vpop.f32.mrf.mxu1 }
  0xdf   :  { %v420_v55 = vadd.f32 %v419_v53, %v919_v6  ;;  %v461_v56 = vadd.f32 %v460_v54, %v919_v6  ;;  %v628_v57 = vcombine.low %v619_v50, %v626_v52  ;;  %v555_v7 = vmax.f32 %v418_v58, 0.0 }
  0xe0   :  { %v421_v60 = vpop.f32.mrf.mxu0  ;;  %v462_v61 = vpop.f32.mrf.mxu1  ;;  %v557_v8 = vmax.f32 %v459_v59, 0.0 }
  0xe1   :  { %v642_v63 = vrot.slane %v628_v57, %v926_v29  ;;  %v556_v0 = vmax.f32 %v420_v55, 0.0  ;;  %v558_v1 = vmax.f32 %v461_v56, 0.0 }
  0xe2   :  { %v422_v2 = vpop.f32.mrf.mxu0  ;;  %v463_v4 = vpop.f32.mrf.mxu1 }
  0xe3   :  { %v643_v5 = vcombine.low %v635_v62, %v642_v63  ;;  %v753_v12 = vpack.c.bf16 %v556_v0, %v555_v7  ;;  %v754_v3 = vpack.c.bf16 %v558_v1, %v557_v8 }
  0xe4   :  { %v499_v9 = vpop.f32.mrf.mxu0  ;;  %v540_v10 = vpop.f32.mrf.mxu1 }
  0xe5   :  { %v500_v11 = vadd.f32 %v499_v9, %v919_v6  ;;  %695 = vst [vmem:[%s960_s3] sm:$0xff] %v643_v5  ;;  %v541_v13 = vadd.f32 %v540_v10, %v919_v6  ;;  %v654_v22 = vrot.slane %v753_v12, %v926_v29  ;;  %v661_v23 = vrot.slane %v754_v3, %v926_v29 }
  0xe6   :  { %v501_v14 = vpop.f32.mrf.mxu0  ;;  %v542_v15 = vpop.f32.mrf.mxu1 }
  0xe7   :  { %v502_v16 = vadd.f32 %v501_v14, %v919_v6  ;;  %v543_v17 = vadd.f32 %v542_v15, %v919_v6  ;;  %v559_v20 = vmax.f32 %v500_v11, 0.0  ;;  %v561_v24 = vmax.f32 %v541_v13, 0.0 }
  0xe8   :  { %v503_v18 = vpop.f32.mrf.mxu0  ;;  %v544_v19 = vpop.f32.mrf.mxu1  ;;  %v676_v32 = vcombine.low %v654_v22, %v661_v23 }
  0xe9   :  { %v560_v21 = vmax.f32 %v502_v16, 0.0  ;;  %v562_v25 = vmax.f32 %v543_v17, 0.0 }
  0xea   :  { %v504_v26 = vpop.f32.mrf.mxu0  ;;  %v545_v27 = vpop.f32.mrf.mxu1  ;;  %v684_v34 = vrot.slane %v676_v32, %v926_v29 }
  0xeb   :  { %v755_v28 = vpack.c.bf16 %v560_v21, %v559_v20  ;;  %v756_v30 = vpack.c.bf16 %v562_v25, %v561_v24 }
  0xed   :  { %v668_v31 = vrot.slane %v755_v28, %v926_v29  ;;  %v675_v33 = vrot.slane %v756_v30, %v926_v29 }
  0xef   :  { %v677_v6 = vcombine.low %v668_v31, %v675_v33 }
  0xf1   :  { %v691_v35 = vrot.slane %v677_v6, %v926_v29 }
  0xf3   :  { %v692_v36 = vcombine.low %v684_v34, %v691_v35 }
  0xf5   :  { %696 = vst [vmem:[%s960_s3 + $0x8] sm:$0xff] %v692_v36 }

// kernel: _forward.49
= control target key start
LH: loop header
LB: loop body
LE: loop exit
PB: predicated region body
PF: predicated region fallthrough
CT: control target
= control target key end

     0   :  { %s2109_s0 = inlined_call_operand.vmem [shape: bf16[1,9], index: 0, kind: input, shape index: {}]   ;;  %s2110_s1 = inlined_call_operand.vmem [shape: bf16[9,8192], index: 1, kind: input, shape index: {}]   ;;  %s2111_s2 = inlined_call_operand.<no memory space> [shape: f32[1,1], index: 2, kind: input, shape index: {}]   ;;  %s2112_s3 = inlined_call_operand.vmem [shape: bf16[1,8192], index: 3, kind: output, shape index: {}]  }
   0x1   :  { %v8_v0 = vstv %s2111_s2 }
   0x2   :  { %9 = vst [vmem:[#allocation2] sm:$0x1] %v8_v0 }
   0x3   :  { %s1737_s14 = smov 0   ;;  %s1739_s15 = smov 0  }
   0x4   :  { %s1741_s16 = smov 0  }
   0x5 LB: > { %s1582_s2 = sadd.s32 4294967295, %s1709_s16   ;;  %s1754_s17 = sadd.s32 1, %s1709_s16   ;;  %s1709_s16 = sphi %s1741_s16, %s2131_s16   ;;  %s1705_s15 = sphi %s1739_s15, %s2130_s15   ;;  %s1701_s14 = sphi %s1737_s14, %s2129_s14  }
   0x6   : > { %s40_s18 = ssub.s32 %s1709_s16, %s1754_s17  ;;  %s43_s19 = sadd.s32 1, %s1705_s15 }
   0x7   : > { %p41_p0 = scmp.eq.s32.totalorder %s40_s18, 0  ;;  %p50_p1 = scmp.ne.s32.totalorder %s1705_s15, %s1701_s14 }
   0x8   : > { %p51_p2 = scmp.eq.s32.totalorder %s1709_s16, 0  ;;  %p1585_p4 = scmp.ge.s32.totalorder %s1709_s16, 2 }
   0x9   : > { %s1763_s20 = scalar_select %p41_p0, %s1705_s15, %s43_s19  }
   0xa   : > { %p52_p3 = por %p51_p2, %p50_p1  ;;  %129 = sbr.rel (%p1585_p4) target bundleno = 35 (0x23), region = 24 }
   0xf   : > { %132 = sbr.rel (!%p52_p3) target bundleno = 35 (0x23), region = 28  ;;  %s134_s21 = sand.u32 (%p52_p3), 1, %s1705_s15  }
  0x10   : > { %s1658_s22 = sshll.u32 (%p52_p3), %s1709_s16, 7  ;;  %s1586_s23 = sshll.u32 (%p52_p3), %s134_s21, 8 }
  0x11   : > { %s1771_s26 = scalar_lea.vmem (%p52_p3), %s2110_s1, %s1658_s22  ;;  %s1776_s27 = scalar_lea.vmem (%p52_p3), [#allocation3], %s1586_s23 }
  0x12   : > { %v152_v1 = vld [vmem:[%s1771_s26] sm:$0xff] (%p52_p3)  ;;  %v154_v2 = vld [vmem:[%s1771_s26 + $0x8] sm:$0xff] (%p52_p3)  ;;  %v156_v3 = vld [vmem:[%s1771_s26 + $0x10] sm:$0xff] (%p52_p3) }
  0x13   : > { %153 = vst [vmem:[%s1776_s27] sm:$0xff] (%p52_p3), %v152_v1  ;;  %155 = vst [vmem:[%s1776_s27 + $0x8] sm:$0xff] (%p52_p3), %v154_v2  ;;  %v158_v4 = vld [vmem:[%s1771_s26 + $0x18] sm:$0xff] (%p52_p3)  ;;  %v160_v5 = vld [vmem:[%s1771_s26 + $0x20] sm:$0xff] (%p52_p3) }
  0x14   : > { %157 = vst [vmem:[%s1776_s27 + $0x10] sm:$0xff] %v156_v3  ;;  %v162_v6 = vld [vmem:[%s1771_s26 + $0x28] sm:$0xff]  ;;  %159 = vst [vmem:[%s1776_s27 + $0x18] sm:$0xff] %v158_v4  ;;  %v164_v7 = vld [vmem:[%s1771_s26 + $0x30] sm:$0xff] }
  0x15   : > { %161 = vst [vmem:[%s1776_s27 + $0x20] sm:$0xff] %v160_v5  ;;  %163 = vst [vmem:[%s1776_s27 + $0x28] sm:$0xff] %v162_v6  ;;  %v166_v8 = vld [vmem:[%s1771_s26 + $0x38] sm:$0xff]  ;;  %v168_v9 = vld [vmem:[%s1771_s26 + $0x40] sm:$0xff] }
  0x16   : > { %165 = vst [vmem:[%s1776_s27 + $0x30] sm:$0xff] %v164_v7  ;;  %167 = vst [vmem:[%s1776_s27 + $0x38] sm:$0xff] %v166_v8  ;;  %v170_v10 = vld [vmem:[%s1771_s26 + $0x48] sm:$0xff]  ;;  %v172_v11 = vld [vmem:[%s1771_s26 + $0x50] sm:$0xff] }
  0x17   : > { %169 = vst [vmem:[%s1776_s27 + $0x40] sm:$0xff] %v168_v9  ;;  %v174_v12 = vld [vmem:[%s1771_s26 + $0x58] sm:$0xff]  ;;  %171 = vst [vmem:[%s1776_s27 + $0x48] sm:$0xff] %v170_v10  ;;  %v176_v13 = vld [vmem:[%s1771_s26 + $0x60] sm:$0xff] }
  0x18   : > { %173 = vst [vmem:[%s1776_s27 + $0x50] sm:$0xff] %v172_v11  ;;  %175 = vst [vmem:[%s1776_s27 + $0x58] sm:$0xff] %v174_v12  ;;  %v178_v14 = vld [vmem:[%s1771_s26 + $0x68] sm:$0xff]  ;;  %v180_v15 = vld [vmem:[%s1771_s26 + $0x70] sm:$0xff] }
  0x19   : > { %177 = vst [vmem:[%s1776_s27 + $0x60] sm:$0xff] %v176_v13  ;;  %179 = vst [vmem:[%s1776_s27 + $0x68] sm:$0xff] %v178_v14  ;;  %v182_v16 = vld [vmem:[%s1771_s26 + $0x78] sm:$0xff]  ;;  %v184_v17 = vld [vmem:[%s1771_s26 + $0x100] sm:$0xff] }
  0x1a   : > { %181 = vst [vmem:[%s1776_s27 + $0x70] sm:$0xff] %v180_v15  ;;  %v186_v18 = vld [vmem:[%s1771_s26 + $0x108] sm:$0xff]  ;;  %183 = vst [vmem:[%s1776_s27 + $0x78] sm:$0xff] %v182_v16  ;;  %v188_v19 = vld [vmem:[%s1771_s26 + $0x110] sm:$0xff] }
  0x1b   : > { %185 = vst [vmem:[%s1776_s27 + $0x80] sm:$0xff] %v184_v17  ;;  %187 = vst [vmem:[%s1776_s27 + $0x88] sm:$0xff] %v186_v18  ;;  %v190_v20 = vld [vmem:[%s1771_s26 + $0x118] sm:$0xff]  ;;  %v192_v21 = vld [vmem:[%s1771_s26 + $0x120] sm:$0xff] }
  0x1c   : > { %189 = vst [vmem:[%s1776_s27 + $0x90] sm:$0xff] %v188_v19  ;;  %191 = vst [vmem:[%s1776_s27 + $0x98] sm:$0xff] %v190_v20  ;;  %v194_v22 = vld [vmem:[%s1771_s26 + $0x128] sm:$0xff]  ;;  %v196_v23 = vld [vmem:[%s1771_s26 + $0x130] sm:$0xff] }
  0x1d   : > { %193 = vst [vmem:[%s1776_s27 + $0xa0] sm:$0xff] %v192_v21  ;;  %v198_v24 = vld [vmem:[%s1771_s26 + $0x138] sm:$0xff]  ;;  %195 = vst [vmem:[%s1776_s27 + $0xa8] sm:$0xff] %v194_v22  ;;  %v200_v25 = vld [vmem:[%s1771_s26 + $0x140] sm:$0xff] }
  0x1e   : > { %197 = vst [vmem:[%s1776_s27 + $0xb0] sm:$0xff] %v196_v23  ;;  %199 = vst [vmem:[%s1776_s27 + $0xb8] sm:$0xff] %v198_v24  ;;  %v202_v26 = vld [vmem:[%s1771_s26 + $0x148] sm:$0xff]  ;;  %v204_v27 = vld [vmem:[%s1771_s26 + $0x150] sm:$0xff] }
  0x1f   : > { %201 = vst [vmem:[%s1776_s27 + $0xc0] sm:$0xff] %v200_v25  ;;  %203 = vst [vmem:[%s1776_s27 + $0xc8] sm:$0xff] %v202_v26  ;;  %v206_v28 = vld [vmem:[%s1771_s26 + $0x158] sm:$0xff]  ;;  %v208_v29 = vld [vmem:[%s1771_s26 + $0x160] sm:$0xff] }
  0x20   : > { %205 = vst [vmem:[%s1776_s27 + $0xd0] sm:$0xff] %v204_v27  ;;  %v210_v30 = vld [vmem:[%s1771_s26 + $0x168] sm:$0xff]  ;;  %207 = vst [vmem:[%s1776_s27 + $0xd8] sm:$0xff] %v206_v28  ;;  %v212_v31 = vld [vmem:[%s1771_s26 + $0x170] sm:$0xff] }
  0x21   : > { %209 = vst [vmem:[%s1776_s27 + $0xe0] sm:$0xff] %v208_v29  ;;  %211 = vst [vmem:[%s1776_s27 + $0xe8] sm:$0xff] %v210_v30  ;;  %v214_v32 = vld [vmem:[%s1771_s26 + $0x178] sm:$0xff] }
  0x22   : > { %213 = vst [vmem:[%s1776_s27 + $0xf0] sm:$0xff] %v212_v31  ;;  %215 = vst [vmem:[%s1776_s27 + $0xf8] sm:$0xff] %v214_v32 }
  0x23 PF: > { %p1589_p5 = scmp.ge.s32.totalorder %s1709_s16, 1  ;;  %p220_p6 = scmp.lt.s32.totalorder %s1709_s16, 3 }
  0x25   : > { %p221_p7 = pnand %p1589_p5, %p220_p6 }
  0x26   : > { %s227_s28 = sand.u32 (!%p221_p7), 1, %s1701_s14   ;;  %s1591_s6 = sshll.u32 (!%p221_p7), %s1582_s2, 5 }
  0x27   : > { %224 = sbr.rel (%p221_p7) target bundleno = 322 (0x142), region = 51  ;;  %s1590_s29 = sshll.u32 (!%p221_p7), %s227_s28, 8 }
  0x28   : > { %s1845_s30 = scalar_lea.vmem (!%p221_p7), [#allocation3], %s1590_s29  ;;  %p251_p8 = scmp.lt.s32.totalorder (!%p221_p7), %s1591_s6, 63 }
  0x2c   : > { %vm431_vm0 = vcmask 1043456   ;;  %vm432_vm1 = vcmask 1044480   ;;  %v1711_v33 = vmov 65535   ;;  %v1712_v35 = vmov 0   ;;  %v289_v36 = vld [vmem:[#allocation2] sm:$0x1] }
  0x2d   : > { %v433_v34 = vsel %vm431_vm0, 4294967295, %v1711_v33  ;;  %563 = vmatprep.mubr.bf16.mxu0 %v1712_v35  ;;  %604 = vmatprep.mubr.bf16.mxu1 %v1712_v35  ;;  %v257_v37 = vld [vmem:[%s1845_s30] sm:$0xff]  ;;  %v258_v40 = vld [vmem:[%s1845_s30 + $0x8] sm:$0xff]  ;;  %v259_v44 = vld [vmem:[%s1845_s30 + $0x10] sm:$0xff]  ;;  %vm427_vm2 = vcmask 72704   ;;  %vm1483_vm3 = vcmask 1040384  }
  0x2e   : > { %1686 = vset.pattern.permute.xlu0 %v1712_v35  ;;  %v273_v38 = vld [vmem:[%s1845_s30 + $0x80] sm:$0x11]  ;;  %v1849_v39 = vsel %vm432_vm1, %v433_v34, 0  ;;  %v274_v42 = vld [vmem:[%s1845_s30 + $0x88] sm:$0x11]  ;;  %v260_v50 = vld [vmem:[%s1845_s30 + $0x18] sm:$0xff] }
  0x2f   : > { %292 = vperm.xlu0 %1686, %v289_v36   ;;  %v1593_v41 = vcombine.high %v257_v37, %v273_v38  ;;  %v1592_v43 = vcombine.low %v257_v37, %v273_v38  ;;  %v275_v45 = vld [vmem:[%s1845_s30 + $0x90] sm:$0x11]  ;;  %v1595_v46 = vcombine.high %v258_v40, %v274_v42  ;;  %v1594_v47 = vcombine.low %v258_v40, %v274_v42  ;;  %v276_v51 = vld [vmem:[%s1845_s30 + $0x98] sm:$0x11]  ;;  %v261_v52 = vld [vmem:[%s1845_s30 + $0x20] sm:$0xff]  ;;  %s2133_s6 = smov (!%p251_p8, %s1591_s6), 63 }
  0x30   : > { %v1596_v48 = vcombine.low %v259_v44, %v275_v45  ;;  %v1597_v49 = vcombine.high %v259_v44, %v275_v45  ;;  %v1598_v55 = vcombine.low %v260_v50, %v276_v51  ;;  %v1599_v56 = vcombine.high %v260_v50, %v276_v51  ;;  %v277_v57 = vld [vmem:[%s1845_s30 + $0xa0] sm:$0x11]  ;;  %v262_v58 = vld [vmem:[%s1845_s30 + $0x28] sm:$0xff]  ;;  %v1870_v1 = vld [vmem:[%s2109_s0] sm:$0x1]  ;;  %s2032_s9 = scalar_lea.vmem %s2112_s3, %s2133_s6 }
  0x31   : > { %v439_v53 = vand.u32 %v1593_v41, %v1849_v39  ;;  %v436_v54 = vand.u32 %v1592_v43, %v1849_v39  ;;  %v278_v59 = vld [vmem:[%s1845_s30 + $0xa8] sm:$0x11]  ;;  %v445_v60 = vand.u32 %v1595_v46, %v1849_v39  ;;  %v442_v61 = vand.u32 %v1594_v47, %v1849_v39  ;;  %v263_v7 = vld [vmem:[%s1845_s30 + $0x30] sm:$0xff]  ;;  %v264_v10 = vld [vmem:[%s1845_s30 + $0x38] sm:$0xff] }
  0x32   : > { %v451_v62 = vand.u32 %v1597_v49, %v1849_v39  ;;  %v457_v63 = vand.u32 %v1599_v56, %v1849_v39  ;;  %v1601_v0 = vcombine.high %v261_v52, %v277_v57  ;;  %v448_v2 = vand.u32 %v1596_v48, %v1849_v39  ;;  %v279_v8 = vld [vmem:[%s1845_s30 + $0xb0] sm:$0x11]  ;;  %v280_v11 = vld [vmem:[%s1845_s30 + $0xb8] sm:$0x11]  ;;  %v265_v19 = vld [vmem:[%s1845_s30 + $0x40] sm:$0xff] }
  0x33   : > { %545 = vmatprep.subr.bf16.mxu0 %v439_v53  ;;  %586 = vmatprep.subr.bf16.mxu1 %v445_v60  ;;  %v1603_v3 = vcombine.high %v262_v58, %v278_v59  ;;  %v454_v4 = vand.u32 %v1598_v55, %v1849_v39  ;;  %v1600_v9 = vcombine.low %v261_v52, %v277_v57  ;;  %v281_v20 = vld [vmem:[%s1845_s30 + $0xc0] sm:$0x11]  ;;  %v266_v22 = vld [vmem:[%s1845_s30 + $0x48] sm:$0xff]  ;;  %v267_v31 = vld [vmem:[%s1845_s30 + $0x50] sm:$0xff]  ;;  %vm1484_vm4 = vsmask.f32 256 }
  0x34   : > { %546 = vmatpush1.bf16.msra.mxu0 %v436_v54  ;;  %587 = vmatpush1.bf16.msra.mxu1 %v442_v61  ;;  %v463_v5 = vand.u32 %v1601_v0, %v1849_v39  ;;  %v1602_v12 = vcombine.low %v262_v58, %v278_v59  ;;  %v1605_v13 = vcombine.high %v263_v7, %v279_v8  ;;  %v282_v23 = vld [vmem:[%s1845_s30 + $0xc8] sm:$0x11]  ;;  %v283_v32 = vld [vmem:[%s1845_s30 + $0xd0] sm:$0x11]  ;;  %v268_v34 = vld [vmem:[%s1845_s30 + $0x58] sm:$0xff]  ;;  %vm1486_vm5 = vcmask 1041409  }
  0x35   : > { %627 = vmatprep.subr.bf16.mxu0 %v451_v62  ;;  %668 = vmatprep.subr.bf16.mxu1 %v457_v63  ;;  %v469_v6 = vand.u32 %v1603_v3, %v1849_v39  ;;  %v1607_v14 = vcombine.high %v264_v10, %v280_v11  ;;  %v460_v15 = vand.u32 %v1600_v9, %v1849_v39  ;;  %v284_v36 = vld [vmem:[%s1845_s30 + $0xd8] sm:$0x11]  ;;  %v269_v45 = vld [vmem:[%s1845_s30 + $0x60] sm:$0xff]  ;;  %v270_v48 = vld [vmem:[%s1845_s30 + $0x68] sm:$0xff]  ;;  %vm1487_vm6 = vsmask.f32 1280 }
  0x36   : > { %v466_v16 = vand.u32 %v1602_v12, %v1849_v39  ;;  %v475_v17 = vand.u32 %v1605_v13, %v1849_v39  ;;  %v1604_v21 = vcombine.low %v263_v7, %v279_v8  ;;  %v1606_v24 = vcombine.low %v264_v10, %v280_v11  ;;  %v285_v46 = vld [vmem:[%s1845_s30 + $0xe0] sm:$0x11]  ;;  %v286_v49 = vld [vmem:[%s1845_s30 + $0xe8] sm:$0x11]  ;;  %v271_v57 = vld [vmem:[%s1845_s30 + $0x70] sm:$0xff] }
  0x37   : > { %1624 = vmatmul.mubr.msk.bf16.vlgmr.msra.gmra.mxu0 %vm427_vm2, %v1870_v1  ;;  %1625 = vmatmul.mubr.msk.bf16.vlgmr.msra.gmra.mxu1 %vm427_vm2, %v1870_v1  ;;  %v481_v18 = vand.u32 %v1607_v14, %v1849_v39  ;;  %v1609_v25 = vcombine.high %v265_v19, %v281_v20  ;;  %v1611_v26 = vcombine.high %v266_v22, %v282_v23  ;;  %v287_v58 = vld [vmem:[%s1845_s30 + $0xf0] sm:$0x11]  ;;  %v272_v60 = vld [vmem:[%s1845_s30 + $0x78] sm:$0xff]  ;;  %v295_v10 = vlaneseq  ;;  %vm1964_vm7 = vmand %vm1483_vm3, %vm1484_vm4 }
  0x38   : > { %628 = vmatpush1.bf16.msra.mxu0 %v448_v2  ;;  %669 = vmatpush1.bf16.msra.mxu1 %v454_v4  ;;  %v472_v27 = vand.u32 %v1604_v21, %v1849_v39  ;;  %v478_v28 = vand.u32 %v1606_v24, %v1849_v39  ;;  %v1608_v33 = vcombine.low %v265_v19, %v281_v20  ;;  %v288_v61 = vld [vmem:[%s1845_s30 + $0xf8] sm:$0x11]  ;;  %vm1968_vm8 = vmand %vm1486_vm5, %vm1487_vm6  ;;  %vm1490_vm9 = vcmask 1042434  }
  0x39   : > { %645 = vmatprep.mubr.bf16.mxu0 %v1712_v35  ;;  %686 = vmatprep.mubr.bf16.mxu1 %v1712_v35  ;;  %v487_v29 = vand.u32 %v1609_v25, %v1849_v39  ;;  %v493_v30 = vand.u32 %v1611_v26, %v1849_v39  ;;  %v1610_v37 = vcombine.low %v266_v22, %v282_v23  ;;  %vm1491_vm10 = vsmask.f32 2304  ;;  %vm1489_vm11 = vmor %vm1968_vm8, %vm1964_vm7 }
  0x3a   : > { %709 = vmatprep.subr.bf16.mxu0 %v463_v5  ;;  %750 = vmatprep.subr.bf16.mxu1 %v469_v6  ;;  %v1613_v38 = vcombine.high %v267_v31, %v283_v32  ;;  %v1615_v40 = vcombine.high %v268_v34, %v284_v36  ;;  %v484_v41 = vand.u32 %v1608_v33, %v1849_v39  ;;  %vm1492_vm12 = vmand %vm1490_vm9, %vm1491_vm10  ;;  %vm1494_vm13 = vcmask 1043459  }
  0x3b   : > { %v490_v42 = vand.u32 %v1610_v37, %v1849_v39  ;;  %v1612_v47 = vcombine.low %v267_v31, %v283_v32  ;;  %v1614_v50 = vcombine.low %v268_v34, %v284_v36  ;;  %v1617_v51 = vcombine.high %v269_v45, %v285_v46  ;;  %vm1979_vm15 = vmor %vm1492_vm12, %vm1489_vm11 }
  0x3c   : > { %v499_v43 = vand.u32 %v1613_v38, %v1849_v39  ;;  %v505_v44 = vand.u32 %v1615_v40, %v1849_v39  ;;  %v1619_v52 = vcombine.high %v270_v48, %v286_v49  ;;  %v1616_v59 = vcombine.low %v269_v45, %v285_v46 }
  0x3d   : > { %v496_v53 = vand.u32 %v1612_v47, %v1849_v39  ;;  %v502_v54 = vand.u32 %v1614_v50, %v1849_v39  ;;  %v511_v55 = vand.u32 %v1617_v51, %v1849_v39  ;;  %v1618_v62 = vcombine.low %v270_v48, %v286_v49 }
  0x3e   : > { %v517_v56 = vand.u32 %v1619_v52, %v1849_v39  ;;  %v1621_v63 = vcombine.high %v271_v57, %v287_v58  ;;  %v1623_v0 = vcombine.high %v272_v60, %v288_v61  ;;  %v508_v2 = vand.u32 %v1616_v59, %v1849_v39 }
  0x3f   : > { %1626 = vmatmul.mubr.msk.bf16.vlgmr.msra.gmra.mxu0 %vm427_vm2, %v1870_v1  ;;  %1627 = vmatmul.mubr.msk.bf16.vlgmr.msra.gmra.mxu1 %vm427_vm2, %v1870_v1  ;;  %v514_v3 = vand.u32 %v1618_v62, %v1849_v39  ;;  %v1620_v6 = vcombine.low %v271_v57, %v287_v58  ;;  %v1622_v7 = vcombine.low %v272_v60, %v288_v61  ;;  %vm1495_vm14 = vsmask.f32 3328 }
  0x40   : > { %710 = vmatpush1.bf16.msra.mxu0 %v460_v15  ;;  %751 = vmatpush1.bf16.msra.mxu1 %v466_v16  ;;  %v523_v4 = vand.u32 %v1621_v63, %v1849_v39  ;;  %v529_v5 = vand.u32 %v1623_v0, %v1849_v39  ;;  %vm1986_vm0 = vmand %vm1494_vm13, %vm1495_vm14  ;;  %vm1498_vm1 = vcmask 1044484   ;;  %vm1502_vm5 = vcmask 1045509  }
  0x41   : > { %727 = vmatprep.mubr.bf16.mxu0 %v1712_v35  ;;  %768 = vmatprep.mubr.bf16.mxu1 %v1712_v35  ;;  %v520_v8 = vand.u32 %v1620_v6, %v1849_v39  ;;  %v526_v9 = vand.u32 %v1622_v7, %v1849_v39  ;;  %v296_v39 = vshrl.u32 %v295_v10, 7  ;;  %vm1497_vm3 = vmor %vm1986_vm0, %vm1979_vm15  ;;  %vm1503_vm6 = vsmask.f32 5376 }
  0x42   : > { %791 = vmatprep.subr.bf16.mxu0 %v475_v17  ;;  %832 = vmatprep.subr.bf16.mxu1 %v481_v18  ;;  %v1713_v17 = vmov 1966171168   ;;  %vm2011_vm8 = vmand %vm1502_vm5, %vm1503_vm6  ;;  %vm1506_vm9 = vcmask 1046534   ;;  %vm1507_vm10 = vsmask.f32 6400  ;;  %vm1510_vm13 = vcmask 1047559  }
  0x43   : > { %v297_v12 = vsub.s32 0, %v296_v39  ;;  %v1288_v18 = vunpack.c.l.s4 %v1713_v17  ;;  %vm1508_vm12 = vmand %vm1506_vm9, %vm1507_vm10  ;;  %vm1511_vm14 = vsmask.f32 7424 }
  0x44   : > { %vm1512_vm0 = vmand %vm1510_vm13, %vm1511_vm14 }
  0x47   : > { %1628 = vmatmul.mubr.msk.bf16.vlgmr.msra.gmra.mxu0 %vm427_vm2, %v1870_v1  ;;  %1629 = vmatmul.mubr.msk.bf16.vlgmr.msra.gmra.mxu1 %vm427_vm2, %v1870_v1 }
  0x48   : > { %792 = vmatpush1.bf16.msra.mxu0 %v472_v27  ;;  %833 = vmatpush1.bf16.msra.mxu1 %v478_v28 }
  0x49   : > { %809 = vmatprep.mubr.bf16.mxu0 %v1712_v35  ;;  %850 = vmatprep.mubr.bf16.mxu1 %v1712_v35 }
  0x4a   : > { %873 = vmatprep.subr.bf16.mxu0 %v487_v29  ;;  %914 = vmatprep.subr.bf16.mxu1 %v493_v30  ;;  %v1289_v29 = vunpack.c.0.s8 %v1288_v18  ;;  %v1514_v18 = vld [vmem:[%s2032_s9] sm:$0xff] }
  0x4f   : > { %1630 = vmatmul.mubr.msk.bf16.vlgmr.msra.gmra.mxu0 %vm427_vm2, %v1870_v1  ;;  %1631 = vmatmul.mubr.msk.bf16.vlgmr.msra.gmra.mxu1 %vm427_vm2, %v1870_v1 }
  0x50   : > { %874 = vmatpush1.bf16.msra.mxu0 %v484_v41  ;;  %915 = vmatpush1.bf16.msra.mxu1 %v490_v42  ;;  %v1997_v41 = vsub.s32 %v1289_v29, %v296_v39 }
  0x51   : > { %891 = vmatprep.mubr.bf16.mxu0 %v1712_v35  ;;  %932 = vmatprep.mubr.bf16.mxu1 %v1712_v35 }
  0x52   : > { %955 = vmatprep.subr.bf16.mxu0 %v499_v43  ;;  %996 = vmatprep.subr.bf16.mxu1 %v505_v44 }
  0x57   : > { %1632 = vmatmul.mubr.msk.bf16.vlgmr.msra.gmra.mxu0 %vm427_vm2, %v1870_v1  ;;  %1633 = vmatmul.mubr.msk.bf16.vlgmr.msra.gmra.mxu1 %vm427_vm2, %v1870_v1 }
  0x58   : > { %956 = vmatpush1.bf16.msra.mxu0 %v496_v53  ;;  %997 = vmatpush1.bf16.msra.mxu1 %v502_v54 }
  0x59   : > { %973 = vmatprep.mubr.bf16.mxu0 %v1712_v35  ;;  %1014 = vmatprep.mubr.bf16.mxu1 %v1712_v35 }
  0x5a   : > { %1037 = vmatprep.subr.bf16.mxu0 %v511_v55  ;;  %1078 = vmatprep.subr.bf16.mxu1 %v517_v56 }
  0x5f   : > { %1634 = vmatmul.mubr.msk.bf16.vlgmr.msra.gmra.mxu0 %vm427_vm2, %v1870_v1  ;;  %1635 = vmatmul.mubr.msk.bf16.vlgmr.msra.gmra.mxu1 %vm427_vm2, %v1870_v1 }
  0x60   : > { %1038 = vmatpush1.bf16.msra.mxu0 %v508_v2  ;;  %1079 = vmatpush1.bf16.msra.mxu1 %v514_v3 }
  0x61   : > { %1055 = vmatprep.mubr.bf16.mxu0 %v1712_v35  ;;  %1096 = vmatprep.mubr.bf16.mxu1 %v1712_v35 }
  0x62   : > { %1119 = vmatprep.subr.bf16.mxu0 %v523_v4  ;;  %1160 = vmatprep.subr.bf16.mxu1 %v529_v5  ;;  %v1517_v5 = vld [vmem:[%s2032_s9 + $0x8] sm:$0xff] }
  0x67   : > { %1636 = vmatmul.mubr.msk.bf16.vlgmr.msra.gmra.mxu0 %vm427_vm2, %v1870_v1  ;;  %1637 = vmatmul.mubr.msk.bf16.vlgmr.msra.gmra.mxu1 %vm427_vm2, %v1870_v1 }
  0x68   : > { %1120 = vmatpush1.bf16.msra.mxu0 %v520_v8  ;;  %1161 = vmatpush1.bf16.msra.mxu1 %v526_v9 }
  0x69   : > { %1137 = vmatprep.mubr.bf16.mxu0 %v1712_v35  ;;  %1178 = vmatprep.mubr.bf16.mxu1 %v1712_v35 }
  0x6f   : > { %1638 = vmatmul.mubr.msk.bf16.vlgmr.msra.gmra.mxu0 %vm427_vm2, %v1870_v1  ;;  %1639 = vmatmul.mubr.msk.bf16.vlgmr.msra.gmra.mxu1 %vm427_vm2, %v1870_v1  ;;  %vm1499_vm2 = vsmask.f32 4352 }
  0x70   : > { %vm1500_vm4 = vmand %vm1498_vm1, %vm1499_vm2 }
  0x71   : > { %vm2006_vm7 = vmor %vm1500_vm4, %vm1497_vm3 }
  0x72   : > { %vm1505_vm11 = vmor %vm2011_vm8, %vm2006_vm7 }
  0x73   : > { %vm2024_vm15 = vmor %vm1508_vm12, %vm1505_vm11 }
  0x74   : > { %vm2041_vm1 = vmor %vm1512_vm0, %vm2024_vm15 }
  0xaa   : > { %v293_v35 = vpop.permute.xlu0 %292 }
  0xab   : > { %v1976_v1 = vrot.slane %v293_v35, %v297_v12 }
  0xf7   : > { %v565_v14 = vpop.f32.mrf.mxu0  ;;  %v606_v15 = vpop.f32.mrf.mxu1 }
  0xf8   : > { %v566_v22 = vadd.f32 %v565_v14, %v1976_v1  ;;  %v607_v23 = vadd.f32 %v606_v15, %v1976_v1 }
  0xf9   : > { %v567_v16 = vpop.f32.mrf.mxu0  ;;  %v608_v20 = vpop.f32.mrf.mxu1 }
  0xfa   : > { %v568_v19 = vadd.f32 %v567_v16, %v1976_v1  ;;  %v609_v24 = vadd.f32 %v608_v20, %v1976_v1  ;;  %v1187_v33 = vmax.f32 %v566_v22, 0.0  ;;  %v1189_v34 = vmax.f32 %v607_v23, 0.0 }
  0xfb   : > { %v569_v25 = vpop.f32.mrf.mxu0  ;;  %v610_v27 = vpop.f32.mrf.mxu1 }
  0xfc   : > { %v1188_v28 = vmax.f32 %v568_v19, 0.0  ;;  %v1190_v30 = vmax.f32 %v609_v24, 0.0 }
  0xfd   : > { %v570_v31 = vpop.f32.mrf.mxu0  ;;  %v611_v32 = vpop.f32.mrf.mxu1 }
  0xfe   : > { %v1640_v40 = vpack.c.bf16 %v1188_v28, %v1187_v33  ;;  %v1641_v42 = vpack.c.bf16 %v1190_v30, %v1189_v34 }
  0xff   : > { %v647_v36 = vpop.f32.mrf.mxu0  ;;  %v688_v38 = vpop.f32.mrf.mxu1 }
 0x100   : > { %v648_v37 = vadd.f32 %v647_v36, %v1976_v1  ;;  %v689_v43 = vadd.f32 %v688_v38, %v1976_v1  ;;  %v1293_v54 = vrot.slane %v1640_v40, %v1997_v41  ;;  %v1300_v55 = vrot.slane %v1641_v42, %v1997_v41 }
 0x101   : > { %v649_v44 = vpop.f32.mrf.mxu0  ;;  %v690_v46 = vpop.f32.mrf.mxu1 }
 0x102   : > { %v650_v45 = vadd.f32 %v649_v44, %v1976_v1  ;;  %v691_v48 = vadd.f32 %v690_v46, %v1976_v1  ;;  %v1191_v51 = vmax.f32 %v648_v37, 0.0  ;;  %v1193_v56 = vmax.f32 %v689_v43, 0.0 }
 0x103   : > { %v651_v50 = vpop.f32.mrf.mxu0  ;;  %v692_v53 = vpop.f32.mrf.mxu1  ;;  %v1315_v2 = vcombine.low %v1293_v54, %v1300_v55 }
 0x104   : > { %v1192_v52 = vmax.f32 %v650_v45, 0.0  ;;  %v1194_v57 = vmax.f32 %v691_v48, 0.0 }
 0x105   : > { %v652_v58 = vpop.f32.mrf.mxu0  ;;  %v693_v60 = vpop.f32.mrf.mxu1  ;;  %v1323_v13 = vrot.slane %v1315_v2, %v1997_v41 }
 0x106   : > { %v1642_v59 = vpack.c.bf16 %v1192_v52, %v1191_v51  ;;  %v1643_v61 = vpack.c.bf16 %v1194_v57, %v1193_v56 }
 0x107   : > { %v729_v62 = vpop.f32.mrf.mxu0  ;;  %v770_v0 = vpop.f32.mrf.mxu1 }
 0x108   : > { %v1307_v63 = vrot.slane %v1642_v59, %v1997_v41  ;;  %v1314_v3 = vrot.slane %v1643_v61, %v1997_v41  ;;  %v730_v9 = vadd.f32 %v729_v62, %v1976_v1  ;;  %v771_v10 = vadd.f32 %v770_v0, %v1976_v1 }
 0x109   : > { %v731_v4 = vpop.f32.mrf.mxu0  ;;  %v772_v7 = vpop.f32.mrf.mxu1 }
 0x10a   : > { %v732_v6 = vadd.f32 %v731_v4, %v1976_v1  ;;  %v1316_v8 = vcombine.low %v1307_v63, %v1314_v3  ;;  %v773_v39 = vadd.f32 %v772_v7, %v1976_v1  ;;  %v1195_v21 = vmax.f32 %v730_v9, 0.0 }
 0x10b   : > { %v733_v11 = vpop.f32.mrf.mxu0  ;;  %v774_v12 = vpop.f32.mrf.mxu1  ;;  %v1197_v22 = vmax.f32 %v771_v10, 0.0 }
 0x10c   : > { %v1330_v35 = vrot.slane %v1316_v8, %v1997_v41  ;;  %v1196_v14 = vmax.f32 %v732_v6, 0.0  ;;  %v1198_v15 = vmax.f32 %v773_v39, 0.0 }
 0x10d   : > { %v734_v16 = vpop.f32.mrf.mxu0  ;;  %v775_v19 = vpop.f32.mrf.mxu1 }
 0x10e   : > { %v1331_v20 = vcombine.low %v1323_v13, %v1330_v35  ;;  %v1644_v27 = vpack.c.bf16 %v1196_v14, %v1195_v21  ;;  %v1645_v28 = vpack.c.bf16 %v1198_v15, %v1197_v22 }
 0x10f   : > { %v811_v23 = vpop.f32.mrf.mxu0  ;;  %v852_v25 = vpop.f32.mrf.mxu1 }
 0x110   : > { %v812_v24 = vadd.f32 %v811_v23, %v1976_v1  ;;  %v1515_v26 = vsel %vm2041_vm1, %v1331_v20, %v1514_v18  ;;  %v853_v29 = vadd.f32 %v852_v25, %v1976_v1  ;;  %v1342_v40 = vrot.slane %v1644_v27, %v1997_v41 }
 0x111   : > { %v813_v30 = vpop.f32.mrf.mxu0  ;;  %1516 = vst [vmem:[%s2032_s9] sm:$0xff] %v1515_v26  ;;  %v854_v32 = vpop.f32.mrf.mxu1  ;;  %v1349_v42 = vrot.slane %v1645_v28, %v1997_v41 }
 0x112   : > { %v814_v31 = vadd.f32 %v813_v30, %v1976_v1  ;;  %v855_v33 = vadd.f32 %v854_v32, %v1976_v1  ;;  %v1199_v36 = vmax.f32 %v812_v24, 0.0  ;;  %v1201_v43 = vmax.f32 %v853_v29, 0.0 }
 0x113   : > { %v815_v34 = vpop.f32.mrf.mxu0  ;;  %v856_v38 = vpop.f32.mrf.mxu1  ;;  %v1364_v52 = vcombine.low %v1342_v40, %v1349_v42 }
 0x114   : > { %v1200_v37 = vmax.f32 %v814_v31, 0.0  ;;  %v1202_v44 = vmax.f32 %v855_v33, 0.0 }
 0x115   : > { %v816_v45 = vpop.f32.mrf.mxu0  ;;  %v857_v47 = vpop.f32.mrf.mxu1  ;;  %v1372_v63 = vrot.slane %v1364_v52, %v1997_v41 }
 0x116   : > { %v1646_v46 = vpack.c.bf16 %v1200_v37, %v1199_v36  ;;  %v1647_v48 = vpack.c.bf16 %v1202_v44, %v1201_v43 }
 0x117   : > { %v893_v49 = vpop.f32.mrf.mxu0  ;;  %v934_v51 = vpop.f32.mrf.mxu1 }
 0x118   : > { %v1356_v50 = vrot.slane %v1646_v46, %v1997_v41  ;;  %v1363_v53 = vrot.slane %v1647_v48, %v1997_v41  ;;  %v894_v58 = vadd.f32 %v893_v49, %v1976_v1  ;;  %v935_v59 = vadd.f32 %v934_v51, %v1976_v1 }
 0x119   : > { %v895_v54 = vpop.f32.mrf.mxu0  ;;  %v936_v56 = vpop.f32.mrf.mxu1 }
 0x11a   : > { %v896_v55 = vadd.f32 %v895_v54, %v1976_v1  ;;  %v1365_v57 = vcombine.low %v1356_v50, %v1363_v53  ;;  %v937_v60 = vadd.f32 %v936_v56, %v1976_v1  ;;  %v1203_v8 = vmax.f32 %v894_v58, 0.0  ;;  %v1520_v54 = vld [vmem:[%s2032_s9 + $0x10] sm:$0xff] }
 0x11b   : > { %v897_v61 = vpop.f32.mrf.mxu0  ;;  %v938_v62 = vpop.f32.mrf.mxu1  ;;  %v1205_v9 = vmax.f32 %v935_v59, 0.0 }
 0x11c   : > { %v1379_v0 = vrot.slane %v1365_v57, %v1997_v41  ;;  %v1204_v2 = vmax.f32 %v896_v55, 0.0  ;;  %v1206_v3 = vmax.f32 %v937_v60, 0.0 }
 0x11d   : > { %v898_v4 = vpop.f32.mrf.mxu0  ;;  %v939_v6 = vpop.f32.mrf.mxu1 }
 0x11e   : > { %v1380_v7 = vcombine.low %v1372_v63, %v1379_v0  ;;  %v1648_v13 = vpack.c.bf16 %v1204_v2, %v1203_v8  ;;  %v1649_v35 = vpack.c.bf16 %v1206_v3, %v1205_v9 }
 0x11f   : > { %v975_v10 = vpop.f32.mrf.mxu0  ;;  %v1016_v11 = vpop.f32.mrf.mxu1 }
 0x120   : > { %v976_v39 = vadd.f32 %v975_v10, %v1976_v1  ;;  %v1518_v12 = vsel %vm2041_vm1, %v1380_v7, %v1517_v5  ;;  %v1017_v14 = vadd.f32 %v1016_v11, %v1976_v1  ;;  %v1391_v24 = vrot.slane %v1648_v13, %v1997_v41 }
 0x121   : > { %v977_v15 = vpop.f32.mrf.mxu0  ;;  %1519 = vst [vmem:[%s2032_s9 + $0x8] sm:$0xff] %v1518_v12  ;;  %v1018_v18 = vpop.f32.mrf.mxu1  ;;  %v1398_v25 = vrot.slane %v1649_v35, %v1997_v41 }
 0x122   : > { %v978_v16 = vadd.f32 %v977_v15, %v1976_v1  ;;  %v1019_v19 = vadd.f32 %v1018_v18, %v1976_v1  ;;  %v1207_v21 = vmax.f32 %v976_v39, 0.0  ;;  %v1209_v26 = vmax.f32 %v1017_v14, 0.0 }
 0x123   : > { %v979_v20 = vpop.f32.mrf.mxu0  ;;  %v1020_v23 = vpop.f32.mrf.mxu1  ;;  %v1413_v36 = vcombine.low %v1391_v24, %v1398_v25 }
 0x124   : > { %v1208_v22 = vmax.f32 %v978_v16, 0.0  ;;  %v1210_v27 = vmax.f32 %v1019_v19, 0.0  ;;  %v1523_v23 = vld [vmem:[%s2032_s9 + $0x18] sm:$0xff] }
 0x125   : > { %v980_v28 = vpop.f32.mrf.mxu0  ;;  %v1021_v30 = vpop.f32.mrf.mxu1  ;;  %v1421_v49 = vrot.slane %v1413_v36, %v1997_v41 }
 0x126   : > { %v1650_v29 = vpack.c.bf16 %v1208_v22, %v1207_v21  ;;  %v1651_v31 = vpack.c.bf16 %v1210_v27, %v1209_v26 }
 0x127   : > { %v1057_v32 = vpop.f32.mrf.mxu0  ;;  %v1098_v34 = vpop.f32.mrf.mxu1 }
 0x128   : > { %v1405_v33 = vrot.slane %v1650_v29, %v1997_v41  ;;  %v1412_v37 = vrot.slane %v1651_v31, %v1997_v41  ;;  %v1058_v44 = vadd.f32 %v1057_v32, %v1976_v1  ;;  %v1099_v45 = vadd.f32 %v1098_v34, %v1976_v1 }
 0x129   : > { %v1059_v38 = vpop.f32.mrf.mxu0  ;;  %v1100_v42 = vpop.f32.mrf.mxu1 }
 0x12a   : > { %v1060_v40 = vadd.f32 %v1059_v38, %v1976_v1  ;;  %v1414_v43 = vcombine.low %v1405_v33, %v1412_v37  ;;  %v1101_v46 = vadd.f32 %v1100_v42, %v1976_v1  ;;  %v1211_v57 = vmax.f32 %v1058_v44, 0.0 }
 0x12b   : > { %v1061_v47 = vpop.f32.mrf.mxu0  ;;  %v1102_v48 = vpop.f32.mrf.mxu1  ;;  %v1213_v58 = vmax.f32 %v1099_v45, 0.0 }
 0x12c   : > { %v1428_v50 = vrot.slane %v1414_v43, %v1997_v41  ;;  %v1212_v51 = vmax.f32 %v1060_v40, 0.0  ;;  %v1214_v52 = vmax.f32 %v1101_v46, 0.0 }
 0x12d   : > { %v1062_v53 = vpop.f32.mrf.mxu0  ;;  %v1103_v55 = vpop.f32.mrf.mxu1 }
 0x12e   : > { %v1429_v56 = vcombine.low %v1421_v49, %v1428_v50  ;;  %v1652_v63 = vpack.c.bf16 %v1212_v51, %v1211_v57  ;;  %v1653_v0 = vpack.c.bf16 %v1214_v52, %v1213_v58 }
 0x12f   : > { %v1139_v59 = vpop.f32.mrf.mxu0  ;;  %v1180_v61 = vpop.f32.mrf.mxu1 }
 0x130   : > { %v1140_v60 = vadd.f32 %v1139_v59, %v1976_v1  ;;  %v1521_v62 = vsel %vm2041_vm1, %v1429_v56, %v1520_v54  ;;  %v1181_v2 = vadd.f32 %v1180_v61, %v1976_v1  ;;  %v1440_v39 = vrot.slane %v1652_v63, %v1997_v41 }
 0x131   : > { %v1141_v3 = vpop.f32.mrf.mxu0  ;;  %1522 = vst [vmem:[%s2032_s9 + $0x10] sm:$0xff] %v1521_v62  ;;  %v1182_v5 = vpop.f32.mrf.mxu1  ;;  %v1447_v11 = vrot.slane %v1653_v0, %v1997_v41 }
 0x132   : > { %v1142_v4 = vadd.f32 %v1141_v3, %v1976_v1  ;;  %v1183_v6 = vadd.f32 %v1182_v5, %v1976_v1  ;;  %v1215_v8 = vmax.f32 %v1140_v60, 0.0  ;;  %v1217_v12 = vmax.f32 %v1181_v2, 0.0 }
 0x133   : > { %v1143_v7 = vpop.f32.mrf.mxu0  ;;  %v1184_v10 = vpop.f32.mrf.mxu1  ;;  %v1462_v19 = vcombine.low %v1440_v39, %v1447_v11 }
 0x134   : > { %v1216_v9 = vmax.f32 %v1142_v4, 0.0  ;;  %v1218_v13 = vmax.f32 %v1183_v6, 0.0 }
 0x135   : > { %v1144_v35 = vpop.f32.mrf.mxu0  ;;  %v1185_v15 = vpop.f32.mrf.mxu1  ;;  %v1470_v21 = vrot.slane %v1462_v19, %v1997_v41 }
 0x136   : > { %v1654_v14 = vpack.c.bf16 %v1216_v9, %v1215_v8  ;;  %v1655_v16 = vpack.c.bf16 %v1218_v13, %v1217_v12 }
 0x138   : > { %v1454_v18 = vrot.slane %v1654_v14, %v1997_v41  ;;  %v1461_v1 = vrot.slane %v1655_v16, %v1997_v41 }
 0x13a   : > { %v1463_v20 = vcombine.low %v1454_v18, %v1461_v1 }
 0x13c   : > { %v1477_v22 = vrot.slane %v1463_v20, %v1997_v41 }
 0x13e   : > { %v1478_v24 = vcombine.low %v1470_v21, %v1477_v22 }
 0x140   : > { %v1524_v25 = vsel %vm2041_vm1, %v1478_v24, %v1523_v23 }
 0x141   : > { %1525 = vst [vmem:[%s2032_s9 + $0x18] sm:$0xff] %v1524_v25 }
 0x142 PF: > { %p12_p9 = scmp.ge.s32.totalorder %s1754_s17, 4   ;;  %s2129_s14 = smov %s1705_s15 }
 0x143   : > { %s2130_s15 = smov %s1763_s20  ;;  %s2131_s16 = smov %s1754_s17 }
 0x144   :  { %14 = sbr.rel (!%p12_p9) target bundleno = 5 (0x5), region = 90 }

</bundles_post_ra>
